<compile_context>
chip_gen: v6e
topology: v6e:2x2x1
jax: 0.10.0
libtpu: 0.0.40
codegen_flags: <defaults>
</compile_context>

<pallas_src>
import functools

import jax
import jax.numpy as jnp
from jax.experimental import pallas as pl
from jax.experimental.pallas import tpu as pltpu


def _round_up(x, m):
    return ((x + m - 1) // m) * m


def pointnet_feature_kernel(x_ref,
                            w1_ref, b1_ref,
                            w2_ref, b2_ref,
                            w3_ref,
                            o_ref,
                            *, chunk):
    """One (batch, segment, point-tile) grid step of the PointNetFeature forward."""
    j = pl.program_id(2)

    # Output block is resident across the point-tile (reduction) axis: init the
    # running max once per (batch, segment) cell.
    @pl.when(j == 0)
    def _():
        o_ref[...] = jnp.full(o_ref.shape, -jnp.inf, dtype=o_ref.dtype)

    x = x_ref[0]                                                     # (tn, C_in) f32, NLC

    # conv1 + bn1 + relu  (BN scale folded into w1; K = C_in is tiny, keep f32)
    z = jnp.dot(x, w1_ref[...], preferred_element_type=jnp.float32)  # (tn, C1)
    h = jnp.maximum(z + b1_ref[...], 0.0).astype(jnp.bfloat16)

    # conv2 + bn2 + relu  (bf16 MXU, f32 accumulation)
    z = jnp.dot(h, w2_ref[...], preferred_element_type=jnp.float32)  # (tn, C2)
    h = jnp.maximum(z + b2_ref[...], 0.0).astype(jnp.bfloat16)

    # conv3 fused with the max-pool over `chunk`-row point sub-blocks: the full
    # (tn, C3) f32 conv3 result is never materialized, so no vst/vld round-trip
    # through VMEM.  bn3's shift is hoisted to the wrapper (max(z+b) == max(z)+b).
    w3 = w3_ref[...]
    c3 = w3.shape[1]
    tn = h.shape[0]
    tile_max = jnp.full((1, c3), -jnp.inf, dtype=jnp.float32)
    for c in range(tn // chunk):                                     # static, fully unrolled
        hc = h[c * chunk:(c + 1) * chunk, :]                         # (chunk, C2) bf16
        zc = jnp.dot(hc, w3, preferred_element_type=jnp.float32)     # (chunk, C3) f32
        tile_max = jnp.maximum(tile_max, jnp.max(zc, axis=0, keepdims=True))

    o_ref[...] = jnp.maximum(o_ref[...], tile_max[None, None].astype(o_ref.dtype))


@functools.partial(jax.jit, static_argnames=("tn", "n_seg", "chunk"))
def pointnet_feature_forward(x_ncl, params, tn=1024, n_seg=2, chunk=128):
    """x_ncl: (B, C_in, n_pts) f32 (torch Conv1d layout).

    Returns (global_feat (B, C3) f32, trans, trans_feat), matching
    PointNetFeature(max_pool=True, global_feat=True, input_transform=False,
    feature_transform=False) in eval mode.
    """
    B, C_in, N = x_ncl.shape
    (w1, b1), (w2, b2), (w3, b3) = params
    C1, C2, C3 = w1.shape[1], w2.shape[1], w3.shape[1]

    # One cheap XLA-side NLC transpose so every in-kernel matmul is a plain row-major
    # (points x channels) MXU matmul — no in-kernel transpose of the input tile.
    x_nlc = jnp.transpose(x_ncl, (0, 2, 1))                          # (B, N, C_in)

    # Right-size the point tile: per-segment point count, rounded to `chunk` rows.
    n_per_seg = -(-N // n_seg)
    tn = max(chunk, _round_up(min(tn, _round_up(n_per_seg, chunk)), chunk))
    tiles_per_seg = -(-n_per_seg // tn)
    Np = n_seg * tiles_per_seg * tn

    # Pad the point axis by replicating the last point: max-pool over points is
    # invariant to duplicated points, so no masking is needed.
    pad = Np - N
    if pad:
        x_nlc = jnp.concatenate(
            [x_nlc, jnp.broadcast_to(x_nlc[:, -1:, :], (B, pad, C_in))], axis=1)

    def _const(shape):
        # Grid-invariant weight/constant, fully resident in VMEM for every grid step.
        return pl.BlockSpec(shape, lambda b, s, j: (0,) * len(shape))

    out = pl.pallas_call(
        functools.partial(pointnet_feature_kernel, chunk=chunk),
        out_shape=jax.ShapeDtypeStruct((B, n_seg, 1, C3), jnp.float32),
        grid_spec=pltpu.PrefetchScalarGridSpec(
            num_scalar_prefetch=0,
            # batch x segment: parallel (>= 2 units even at B == 1, feeds both v7x TCs);
            # point tiles within a segment: reduction (resident max accumulator).
            grid=(B, n_seg, tiles_per_seg),
            in_specs=[
                pl.BlockSpec((1, tn, C_in),
                             lambda b, s, j: (b, s * tiles_per_seg + j, 0)),
                _const((C_in, C1)), _const((1, C1)),
                _const((C1, C2)), _const((1, C2)),
                _const((C2, C3)),
            ],
            out_specs=pl.BlockSpec((1, 1, 1, C3), lambda b, s, j: (b, s, 0, 0)),
        ),
        compiler_params=pltpu.CompilerParams(
            dimension_semantics=("parallel", "parallel", "arbitrary"),
            vmem_limit_bytes=16 * 1024 * 1024,   # right-sized; leaves headroom on v7x
        ),
    )(x_nlc, w1, b1, w2, b2, w3)

    # Fold per-segment partial maxes, then add the hoisted bn3 shift once per channel.
    global_feat = jnp.max(out[:, :, 0, :], axis=1) + b3              # (B, C3)

    # TODO(synk): stn (SimpleLayer) / fstn not defined in the spec and do not affect x
    # under the default flags; returned as None to keep the module's output arity.
    trans = None
    trans_feat = None
    return global_feat, trans, trans_feat


# ---------------------------------------------------------------------------
# Deterministic parameter construction (mirrors PointNetFeature.__init__ with
# scaling=1.0) and eval-mode BatchNorm folding (scale into weights, shift kept).
# ---------------------------------------------------------------------------
def make_params(key, input_dim=3, feature_size=64, eps=1e-5):
    layer_dims = [
        (input_dim, feature_size, jnp.float32),               # conv1:   3 ->   64 (tiny K)
        (feature_size, feature_size * 2, jnp.bfloat16),       # conv2:  64 ->  128
        (feature_size * 2, feature_size * 16, jnp.bfloat16),  # conv3: 128 -> 1024
    ]
    params = []
    for cin, cout, wdtype in layer_dims:
        key, kw, kb, kg, kbeta, kmu, kvar = jax.random.split(key, 7)
        w = jax.random.normal(kw, (cin, cout), jnp.float32) / jnp.sqrt(float(cin))
        b = jax.random.normal(kb, (cout,), jnp.float32) * 0.01
        gamma = jax.random.uniform(kg, (cout,), jnp.float32, 0.5, 1.5)
        beta = jax.random.normal(kbeta, (cout,), jnp.float32) * 0.1
        mean = jax.random.normal(kmu, (cout,), jnp.float32) * 0.1
        var = jax.random.uniform(kvar, (cout,), jnp.float32, 0.5, 1.5)
        scale = gamma / jnp.sqrt(var + eps)
        w_folded = (w * scale[None, :]).astype(wdtype)                # BN scale folded in
        shift = ((b - mean) * scale + beta).reshape(1, cout).astype(jnp.float32)
        params.append((w_folded, shift))
    return params


def reference_forward(x_ncl, params):
    """Plain-JAX reference mirroring the kernel's (eval-mode, mixed-precision) math."""
    B, C, N = x_ncl.shape
    (w1, b1), (w2, b2), (w3, b3) = params
    h = jnp.transpose(x_ncl, (0, 2, 1)).reshape(B * N, C)
    z = jnp.dot(h, w1, preferred_element_type=jnp.float32) + b1
    h = jnp.maximum(z, 0.0).astype(jnp.bfloat16)
    z = jnp.dot(h, w2, preferred_element_type=jnp.float32) + b2
    h = jnp.maximum(z, 0.0).astype(jnp.bfloat16)
    z = jnp.dot(h, w3, preferred_element_type=jnp.float32)
    return jnp.max(z.reshape(B, N, -1), axis=1) + b3                 # (B, C3) max-pool


if __name__ == "__main__":
    key = jax.random.PRNGKey(0)
    k_params, k_x = jax.random.split(key)

    input_dim = 3            # xyz point clouds
    feature_size = 64        # scaling = 1.0
    B, N = 2, 2048           # grid = (2, 2, 1): 4 parallel cells, 8 fused chunks each

    params = make_params(k_params, input_dim=input_dim, feature_size=feature_size)
    x = jax.random.normal(k_x, (B, input_dim, N), jnp.float32)   # NCL like torch Conv1d

    feat, trans, trans_feat = pointnet_feature_forward(x, params)
    feat = jax.block_until_ready(feat)

    ref = reference_forward(x, params)
    assert feat.shape == (B, feature_size * 16), feat.shape
    err = float(jnp.max(jnp.abs(feat - ref)))
    assert jnp.allclose(feat, ref, atol=2e-2, rtol=2e-2), err

    print("KERNEL_OK")
</pallas_src>

<mosaic_0001>
module attributes {stable_mosaic.version = 11 : i64} {
  func.func @pointnet_feature_kernel(%arg0: i32, %arg1: i32, %arg2: i32, %arg3: memref<1x1024x3xf32, #tpu.memory_space<vmem>>, %arg4: memref<3x64xf32, #tpu.memory_space<vmem>>, %arg5: memref<1x64xf32, #tpu.memory_space<vmem>>, %arg6: memref<64x128xbf16, #tpu.memory_space<vmem>>, %arg7: memref<1x128xf32, #tpu.memory_space<vmem>>, %arg8: memref<128x1024xbf16, #tpu.memory_space<vmem>>, %arg9: memref<1x1x1x1024xf32, #tpu.memory_space<vmem>>) attributes {dimension_semantics = [#tpu.dimension_semantics<parallel>, #tpu.dimension_semantics<parallel>, #tpu.dimension_semantics<arbitrary>], iteration_bounds = array<i64: 2, 2, 1>, scalar_prefetch = 0 : i64, scratch_operands = 0 : i64, tpu.core_type = #tpu.core_type<tc>, window_params = [{transform_indices = @transform_0, window_bounds = array<i64: 1, 1024, 3>}, {pipeline_mode = #tpu.pipeline_mode<synchronous>, transform_indices = @transform_1, window_bounds = array<i64: 3, 64>}, {pipeline_mode = #tpu.pipeline_mode<synchronous>, transform_indices = @transform_2, window_bounds = array<i64: 1, 64>}, {pipeline_mode = #tpu.pipeline_mode<synchronous>, transform_indices = @transform_3, window_bounds = array<i64: 64, 128>}, {pipeline_mode = #tpu.pipeline_mode<synchronous>, transform_indices = @transform_4, window_bounds = array<i64: 1, 128>}, {pipeline_mode = #tpu.pipeline_mode<synchronous>, transform_indices = @transform_5, window_bounds = array<i64: 128, 1024>}, {transform_indices = @transform_6, window_bounds = array<i64: 1, 1, 1, 1024>}]} {
    %c0_i32 = arith.constant 0 : i32
    %0 = arith.cmpi eq, %arg2, %c0_i32 : i32
    %1 = arith.extui %0 : i1 to i32
    %c0_i32_0 = arith.constant 0 : i32
    %2 = arith.cmpi ne, %1, %c0_i32_0 : i32
    scf.if %2 {
      %cst_41 = arith.constant 0xFF800000 : f32
      %67 = vector.broadcast %cst_41 : f32 to vector<1x1x1x1024xf32>
      %c0_42 = arith.constant 0 : index
      %c0_43 = arith.constant 0 : index
      %c0_44 = arith.constant 0 : index
      %c0_45 = arith.constant 0 : index
      %68 = vector.load %arg9[%c0_42, %c0_43, %c0_44, %c0_45] : memref<1x1x1x1024xf32, #tpu.memory_space<vmem>>, vector<1x1x1x1024xf32>
      tpu.vector_store %arg9[%c0_42, %c0_43, %c0_44, %c0_45], %67 {strides = array<i32>} : memref<1x1x1x1024xf32, #tpu.memory_space<vmem>>, vector<1x1x1x1024xf32>,
    } else {
    }
    %c0 = arith.constant 0 : index
    %c0_1 = arith.constant 0 : index
    %c0_2 = arith.constant 0 : index
    %3 = vector.load %arg3[%c0, %c0_1, %c0_2] : memref<1x1024x3xf32, #tpu.memory_space<vmem>>, vector<1x1024x3xf32>
    %4 = vector.shape_cast %3 : vector<1x1024x3xf32> to vector<1024x3xf32>
    %c0_3 = arith.constant 0 : index
    %c0_4 = arith.constant 0 : index
    %5 = vector.load %arg4[%c0_3, %c0_4] : memref<3x64xf32, #tpu.memory_space<vmem>>, vector<3x64xf32>
    %cst = arith.constant dense<0.000000e+00> : vector<1024x64xf32>
    %6 = tpu.matmul %4, %5, %cst {dimension_numbers = #tpu.dot_dimension_numbers<[1], [0], [0], [1], [0, 0, 1, 1], [], []>} : vector<1024x3xf32>, vector<3x64xf32>, vector<1024x64xf32> -> vector<1024x64xf32>
    %c0_5 = arith.constant 0 : index
    %c0_6 = arith.constant 0 : index
    %7 = vector.load %arg5[%c0_5, %c0_6] : memref<1x64xf32, #tpu.memory_space<vmem>>, vector<1x64xf32>
    %8 = vector.broadcast %7 : vector<1x64xf32> to vector<1024x64xf32>
    %9 = arith.addf %6, %8 : vector<1024x64xf32>
    %cst_7 = arith.constant 0.000000e+00 : f32
    %10 = vector.broadcast %cst_7 : f32 to vector<1024x64xf32>
    %11 = arith.maximumf %9, %10 : vector<1024x64xf32>
    %12 = arith.truncf %11 : vector<1024x64xf32> to vector<1024x64xbf16>
    %c0_8 = arith.constant 0 : index
    %c0_9 = arith.constant 0 : index
    %13 = vector.load %arg6[%c0_8, %c0_9] : memref<64x128xbf16, #tpu.memory_space<vmem>>, vector<64x128xbf16>
    %cst_10 = arith.constant dense<0.000000e+00> : vector<1024x128xf32>
    %14 = tpu.matmul %12, %13, %cst_10 {dimension_numbers = #tpu.dot_dimension_numbers<[1], [0], [0], [1], [0, 0, 1, 1], [], []>} : vector<1024x64xbf16>, vector<64x128xbf16>, vector<1024x128xf32> -> vector<1024x128xf32>
    %c0_11 = arith.constant 0 : index
    %c0_12 = arith.constant 0 : index
    %15 = vector.load %arg7[%c0_11, %c0_12] : memref<1x128xf32, #tpu.memory_space<vmem>>, vector<1x128xf32>
    %16 = vector.broadcast %15 : vector<1x128xf32> to vector<1024x128xf32>
    %17 = arith.addf %14, %16 : vector<1024x128xf32>
    %cst_13 = arith.constant 0.000000e+00 : f32
    %18 = vector.broadcast %cst_13 : f32 to vector<1024x128xf32>
    %19 = arith.maximumf %17, %18 : vector<1024x128xf32>
    %20 = arith.truncf %19 : vector<1024x128xf32> to vector<1024x128xbf16>
    %c0_14 = arith.constant 0 : index
    %c0_15 = arith.constant 0 : index
    %21 = vector.load %arg8[%c0_14, %c0_15] : memref<128x1024xbf16, #tpu.memory_space<vmem>>, vector<128x1024xbf16>
    %cst_16 = arith.constant 0xFF800000 : f32
    %22 = vector.broadcast %cst_16 : f32 to vector<1x1024xf32>
    %23 = vector.extract_strided_slice %20 {offsets = [0, 0], sizes = [128, 128], strides = [1, 1]} : vector<1024x128xbf16> to vector<128x128xbf16>
    %cst_17 = arith.constant dense<0.000000e+00> : vector<128x1024xf32>
    %24 = tpu.matmul %23, %21, %cst_17 {dimension_numbers = #tpu.dot_dimension_numbers<[1], [0], [0], [1], [0, 0, 1, 1], [], []>} : vector<128x128xbf16>, vector<128x1024xbf16>, vector<128x1024xf32> -> vector<128x1024xf32>
    %cst_18 = arith.constant dense<0xFF800000> : vector<1024xf32>
    %25 = vector.multi_reduction <maximumf>, %24, %cst_18 [0] : vector<128x1024xf32> to vector<1024xf32>
    %26 = vector.shape_cast %25 : vector<1024xf32> to vector<1x1024xf32>
    %27 = arith.maximumf %22, %26 : vector<1x1024xf32>
    %28 = vector.extract_strided_slice %20 {offsets = [128, 0], sizes = [128, 128], strides = [1, 1]} : vector<1024x128xbf16> to vector<128x128xbf16>
    %cst_19 = arith.constant dense<0.000000e+00> : vector<128x1024xf32>
    %29 = tpu.matmul %28, %21, %cst_19 {dimension_numbers = #tpu.dot_dimension_numbers<[1], [0], [0], [1], [0, 0, 1, 1], [], []>} : vector<128x128xbf16>, vector<128x1024xbf16>, vector<128x1024xf32> -> vector<128x1024xf32>
    %cst_20 = arith.constant dense<0xFF800000> : vector<1024xf32>
    %30 = vector.multi_reduction <maximumf>, %29, %cst_20 [0] : vector<128x1024xf32> to vector<1024xf32>
    %31 = vector.shape_cast %30 : vector<1024xf32> to vector<1x1024xf32>
    %32 = arith.maximumf %27, %31 : vector<1x1024xf32>
    %33 = vector.extract_strided_slice %20 {offsets = [256, 0], sizes = [128, 128], strides = [1, 1]} : vector<1024x128xbf16> to vector<128x128xbf16>
    %cst_21 = arith.constant dense<0.000000e+00> : vector<128x1024xf32>
    %34 = tpu.matmul %33, %21, %cst_21 {dimension_numbers = #tpu.dot_dimension_numbers<[1], [0], [0], [1], [0, 0, 1, 1], [], []>} : vector<128x128xbf16>, vector<128x1024xbf16>, vector<128x1024xf32> -> vector<128x1024xf32>
    %cst_22 = arith.constant dense<0xFF800000> : vector<1024xf32>
    %35 = vector.multi_reduction <maximumf>, %34, %cst_22 [0] : vector<128x1024xf32> to vector<1024xf32>
    %36 = vector.shape_cast %35 : vector<1024xf32> to vector<1x1024xf32>
    %37 = arith.maximumf %32, %36 : vector<1x1024xf32>
    %38 = vector.extract_strided_slice %20 {offsets = [384, 0], sizes = [128, 128], strides = [1, 1]} : vector<1024x128xbf16> to vector<128x128xbf16>
    %cst_23 = arith.constant dense<0.000000e+00> : vector<128x1024xf32>
    %39 = tpu.matmul %38, %21, %cst_23 {dimension_numbers = #tpu.dot_dimension_numbers<[1], [0], [0], [1], [0, 0, 1, 1], [], []>} : vector<128x128xbf16>, vector<128x1024xbf16>, vector<128x1024xf32> -> vector<128x1024xf32>
    %cst_24 = arith.constant dense<0xFF800000> : vector<1024xf32>
    %40 = vector.multi_reduction <maximumf>, %39, %cst_24 [0] : vector<128x1024xf32> to vector<1024xf32>
    %41 = vector.shape_cast %40 : vector<1024xf32> to vector<1x1024xf32>
    %42 = arith.maximumf %37, %41 : vector<1x1024xf32>
    %43 = vector.extract_strided_slice %20 {offsets = [512, 0], sizes = [128, 128], strides = [1, 1]} : vector<1024x128xbf16> to vector<128x128xbf16>
    %cst_25 = arith.constant dense<0.000000e+00> : vector<128x1024xf32>
    %44 = tpu.matmul %43, %21, %cst_25 {dimension_numbers = #tpu.dot_dimension_numbers<[1], [0], [0], [1], [0, 0, 1, 1], [], []>} : vector<128x128xbf16>, vector<128x1024xbf16>, vector<128x1024xf32> -> vector<128x1024xf32>
    %cst_26 = arith.constant dense<0xFF800000> : vector<1024xf32>
    %45 = vector.multi_reduction <maximumf>, %44, %cst_26 [0] : vector<128x1024xf32> to vector<1024xf32>
    %46 = vector.shape_cast %45 : vector<1024xf32> to vector<1x1024xf32>
    %47 = arith.maximumf %42, %46 : vector<1x1024xf32>
    %48 = vector.extract_strided_slice %20 {offsets = [640, 0], sizes = [128, 128], strides = [1, 1]} : vector<1024x128xbf16> to vector<128x128xbf16>
    %cst_27 = arith.constant dense<0.000000e+00> : vector<128x1024xf32>
    %49 = tpu.matmul %48, %21, %cst_27 {dimension_numbers = #tpu.dot_dimension_numbers<[1], [0], [0], [1], [0, 0, 1, 1], [], []>} : vector<128x128xbf16>, vector<128x1024xbf16>, vector<128x1024xf32> -> vector<128x1024xf32>
    %cst_28 = arith.constant dense<0xFF800000> : vector<1024xf32>
    %50 = vector.multi_reduction <maximumf>, %49, %cst_28 [0] : vector<128x1024xf32> to vector<1024xf32>
    %51 = vector.shape_cast %50 : vector<1024xf32> to vector<1x1024xf32>
    %52 = arith.maximumf %47, %51 : vector<1x1024xf32>
    %53 = vector.extract_strided_slice %20 {offsets = [768, 0], sizes = [128, 128], strides = [1, 1]} : vector<1024x128xbf16> to vector<128x128xbf16>
    %cst_29 = arith.constant dense<0.000000e+00> : vector<128x1024xf32>
    %54 = tpu.matmul %53, %21, %cst_29 {dimension_numbers = #tpu.dot_dimension_numbers<[1], [0], [0], [1], [0, 0, 1, 1], [], []>} : vector<128x128xbf16>, vector<128x1024xbf16>, vector<128x1024xf32> -> vector<128x1024xf32>
    %cst_30 = arith.constant dense<0xFF800000> : vector<1024xf32>
    %55 = vector.multi_reduction <maximumf>, %54, %cst_30 [0] : vector<128x1024xf32> to vector<1024xf32>
    %56 = vector.shape_cast %55 : vector<1024xf32> to vector<1x1024xf32>
    %57 = arith.maximumf %52, %56 : vector<1x1024xf32>
    %58 = vector.extract_strided_slice %20 {offsets = [896, 0], sizes = [128, 128], strides = [1, 1]} : vector<1024x128xbf16> to vector<128x128xbf16>
    %cst_31 = arith.constant dense<0.000000e+00> : vector<128x1024xf32>
    %59 = tpu.matmul %58, %21, %cst_31 {dimension_numbers = #tpu.dot_dimension_numbers<[1], [0], [0], [1], [0, 0, 1, 1], [], []>} : vector<128x128xbf16>, vector<128x1024xbf16>, vector<128x1024xf32> -> vector<128x1024xf32>
    %cst_32 = arith.constant dense<0xFF800000> : vector<1024xf32>
    %60 = vector.multi_reduction <maximumf>, %59, %cst_32 [0] : vector<128x1024xf32> to vector<1024xf32>
    %61 = vector.shape_cast %60 : vector<1024xf32> to vector<1x1024xf32>
    %62 = arith.maximumf %57, %61 : vector<1x1024xf32>
    %c0_33 = arith.constant 0 : index
    %c0_34 = arith.constant 0 : index
    %c0_35 = arith.constant 0 : index
    %c0_36 = arith.constant 0 : index
    %63 = vector.load %arg9[%c0_33, %c0_34, %c0_35, %c0_36] : memref<1x1x1x1024xf32, #tpu.memory_space<vmem>>, vector<1x1x1x1024xf32>
    %64 = vector.shape_cast %62 : vector<1x1024xf32> to vector<1x1x1x1024xf32>
    %65 = arith.maximumf %63, %64 : vector<1x1x1x1024xf32>
    %c0_37 = arith.constant 0 : index
    %c0_38 = arith.constant 0 : index
    %c0_39 = arith.constant 0 : index
    %c0_40 = arith.constant 0 : index
    %66 = vector.load %arg9[%c0_37, %c0_38, %c0_39, %c0_40] : memref<1x1x1x1024xf32, #tpu.memory_space<vmem>>, vector<1x1x1x1024xf32>
    tpu.vector_store %arg9[%c0_37, %c0_38, %c0_39, %c0_40], %65 {strides = array<i32>} : memref<1x1x1x1024xf32, #tpu.memory_space<vmem>>, vector<1x1x1x1024xf32>,
    return
  }
  func.func @transform_0(%arg0: i32, %arg1: i32, %arg2: i32) -> (i32, i32, i32) {
    %c1_i32 = arith.constant 1 : i32
    %0 = arith.muli %arg1, %c1_i32 : i32
    %1 = arith.addi %0, %arg2 : i32
    %c0_i32 = arith.constant 0 : i32
    %c0_i32_0 = arith.constant 0 : i32
    return %arg0, %1, %c0_i32 : i32, i32, i32
  }
  func.func @transform_1(%arg0: i32, %arg1: i32, %arg2: i32) -> (i32, i32) {
    %c0_i32 = arith.constant 0 : i32
    %c0_i32_0 = arith.constant 0 : i32
    %c0_i32_1 = arith.constant 0 : i32
    return %c0_i32, %c0_i32_0 : i32, i32
  }
  func.func @transform_2(%arg0: i32, %arg1: i32, %arg2: i32) -> (i32, i32) {
    %c0_i32 = arith.constant 0 : i32
    %c0_i32_0 = arith.constant 0 : i32
    %c0_i32_1 = arith.constant 0 : i32
    return %c0_i32, %c0_i32_0 : i32, i32
  }
  func.func @transform_3(%arg0: i32, %arg1: i32, %arg2: i32) -> (i32, i32) {
    %c0_i32 = arith.constant 0 : i32
    %c0_i32_0 = arith.constant 0 : i32
    %c0_i32_1 = arith.constant 0 : i32
    return %c0_i32, %c0_i32_0 : i32, i32
  }
  func.func @transform_4(%arg0: i32, %arg1: i32, %arg2: i32) -> (i32, i32) {
    %c0_i32 = arith.constant 0 : i32
    %c0_i32_0 = arith.constant 0 : i32
    %c0_i32_1 = arith.constant 0 : i32
    return %c0_i32, %c0_i32_0 : i32, i32
  }
  func.func @transform_5(%arg0: i32, %arg1: i32, %arg2: i32) -> (i32, i32) {
    %c0_i32 = arith.constant 0 : i32
    %c0_i32_0 = arith.constant 0 : i32
    %c0_i32_1 = arith.constant 0 : i32
    return %c0_i32, %c0_i32_0 : i32, i32
  }
  func.func @transform_6(%arg0: i32, %arg1: i32, %arg2: i32) -> (i32, i32, i32, i32) {
    %c0_i32 = arith.constant 0 : i32
    %c0_i32_0 = arith.constant 0 : i32
    %c0_i32_1 = arith.constant 0 : i32
    return %arg0, %arg1, %c0_i32, %c0_i32_0 : i32, i32, i32, i32
  }
}

</mosaic_0001>

<bundles_post_ra>
// kernel: pointnet_feature_forward.1
= control target key start
LH: loop header
LB: loop body
LE: loop exit
PB: predicated region body
PF: predicated region fallthrough
CT: control target
= control target key end

     0   :  { %s9177_s21 = smov 0   ;;  %s9179_s22 = smov 0   ;;  %s11653_s0 = inlined_call_operand.vmem [shape: f32[2,2048,3], index: 0, kind: input, shape index: {}]   ;;  %s11654_s1 = inlined_call_operand.vmem [shape: f32[3,64], index: 1, kind: input, shape index: {}]   ;;  %s11655_s2 = inlined_call_operand.vmem [shape: f32[1,64], index: 2, kind: input, shape index: {}]   ;;  %s11656_s3 = inlined_call_operand.vmem [shape: bf16[64,128], index: 3, kind: input, shape index: {}]   ;;  %s11657_s4 = inlined_call_operand.vmem [shape: f32[1,128], index: 4, kind: input, shape index: {}]   ;;  %s11658_s5 = inlined_call_operand.vmem [shape: bf16[128,1024], index: 5, kind: input, shape index: {}]   ;;  %s11659_s6 = inlined_call_operand.vmem [shape: f32[2,2,1,1024], index: 6, kind: output, shape index: {}]  }
   0x1   :  { %s9181_s23 = smov 0   ;;  %s9183_s24 = smov 0  }
   0x2   :  { %s9185_s25 = smov 0  }
   0x3 LB: > { %s31_s26 = sadd.s32 1, %s9130_s23  ;;  %s35_s27 = sadd.s32 1, %s9134_s24  ;;  %s9138_s25 = sphi %s9185_s25, %s16_s25   ;;  %s9134_s24 = sphi %s9183_s24, %s12292_s24   ;;  %s9130_s23 = sphi %s9181_s23, %s12291_s23   ;;  %s9126_s22 = sphi %s9179_s22, %s12290_s22   ;;  %s9122_s21 = sphi %s9177_s21, %s12289_s21  }
   0x4   : > { %p33_p0 = scmp.ge.s32.totalorder %s31_s26, 2  ;;  %p8253_p1 = scmp.ge.s32.totalorder %s9138_s25, 1 }
   0x5   : > { %p244_p2 = scmp.lt.s32.totalorder %s9138_s25, 5 }
   0x6   : > { %s12294_s26 = smov (%p33_p0, %s31_s26), 0  ;;  %s12296_s27 = smov (!%p33_p0, %s35_s27), %s9134_s24 }
   0x7   : > { %p245_p3 = pnand %p8253_p1, %p244_p2  ;;  %p37_p4 = scmp.ge.s32.totalorder %s12296_s27, 2 }
   0x9   : > { %s12298_s27 = smov (%p37_p4, %s12296_s27), 0  ;;  %248 = sbr.rel (%p245_p3) target bundleno = 1726 (0x6be), region = 44 }
   0xe   : > { %v436_v0 = vld [vmem:[%s11654_s1] sm:$0x7]  ;;  %vm829_vm0 = vcmask 1042432   ;;  %s8254_s30 = sshll.u32 %s9122_s21, 7  ;;  %p284_p5 = scmp.lt.s32.totalorder %s9126_s22, 1  ;;  %vm444_vm1 = vcmask 23552  }
   0xf   : > { %8721 = vmatprep.subr.msk.mxu0 %vm829_vm0, %v436_v0  ;;  %p286_p6 = scmp.lt.s32.totalorder %s8254_s30, 255  ;;  %v9094_v34 = vld [vmem:[%s11656_s3 + $0x18] sm:$0xff]   ;;  %v9095_v37 = vld [vmem:[%s11656_s3 + $0x10] sm:$0xff]   ;;  %v9096_v40 = vld [vmem:[%s11656_s3 + $0x8] sm:$0xff]   ;;  %vm1769_vm2 = vcmask 523264   ;;  %p296_p7 = scmp.lt.s32.totalorder %s9122_s21, 1 }
  0x10   : > { %8722 = vmatpush3.msk.msra.mxu0 %vm829_vm0, %v436_v0  ;;  %s12300_s22 = smov (!%p284_p5, %s9126_s22), 1  ;;  %8915 = vmatprep.subr.bf16.mxu1 %v9094_v34  ;;  %v9097_v43 = vld [vmem:[%s11656_s3] sm:$0xff]   ;;  %v2756_v50 = vld [vmem:[%s11658_s5 + $0x1c8] sm:$0xff] }
  0x11   : > { %s12302_s30 = smov (!%p286_p6, %s8254_s30), 255  ;;  %s8255_s7 = sshll.u32 %s12300_s22, 8  ;;  %8916 = vmatpush3.bf16.msra.mxu1 %v9094_v34  ;;  %v2755_v48 = vld [vmem:[%s11658_s5 + $0x1c0] sm:$0xff]  ;;  %v2760_v52 = vld [vmem:[%s11658_s5 + $0x1e8] sm:$0xff] }
  0x12   : > { %s289_s8 = sadd.s32 %s8255_s7, %s12302_s30  ;;  %8917 = vmatprep.subr.bf16.mxu1 %v9095_v37  ;;  %v2759_v49 = vld [vmem:[%s11658_s5 + $0x1e0] sm:$0xff]  ;;  %v9336_v55 = vcombine.high %v2756_v50, %v2760_v52  ;;  %v9338_v56 = vcombine.low %v2756_v50, %v2760_v52  ;;  %s12304_s21 = smov (!%p296_p7, %s9122_s21), 1 }
  0x13   : > { %s8256_s9 = sshll.u32 %s289_s8, 3  ;;  %v9327_v51 = vcombine.high %v2755_v48, %v2759_v49  ;;  %v9332_v53 = vcombine.low %v2755_v48, %v2759_v49  ;;  %v2731_v48 = vld [vmem:[%s11658_s5 + $0x100] sm:$0xff]  ;;  %s8257_s30 = sshll.u32 %s12304_s21, 3 }
  0x14   : > { %s9219_s12 = scalar_lea.vmem %s11653_s0, %s8256_s9  ;;  %11862 = vst [vmem:[#allocation4_spill] sm:$0xff] %v9336_v55  ;;  %v2735_v49 = vld [vmem:[%s11658_s5 + $0x120] sm:$0xff]  ;;  %s8258_s7 = sshll.u32 %s12300_s22, 4 }
  0x15   : > { %v308_v1 = vld [vmem:[%s9219_s12] sm:$0xff]  ;;  %v309_v2 = vld [vmem:[%s9219_s12 + $0x8] sm:$0xff]  ;;  %v310_v3 = vld [vmem:[%s9219_s12 + $0x10] sm:$0xff]  ;;  %8918 = vmatpush3.bf16.msra.mxu1 %v9095_v37  ;;  %11860 = vst [vmem:[#allocation2_spill] sm:$0xff] %v9327_v51  ;;  %3083 = vmatprep.subr.bf16.mxu0 %v9327_v51  ;;  %v9467_v50 = vcombine.high %v2731_v48, %v2735_v49  ;;  %v9469_v52 = vcombine.low %v2731_v48, %v2735_v49  ;;  %s300_s8 = sadd.s32 %s8258_s7, %s8257_s30 }
  0x16   : > { %8723 = vmatprep.mubr.msk.f32.mxu0 %vm444_vm1, %v308_v1  ;;  %v311_v4 = vld [vmem:[%s9219_s12 + $0x18] sm:$0xff]  ;;  %v312_v5 = vld [vmem:[%s9219_s12 + $0x20] sm:$0xff]  ;;  %v313_v6 = vld [vmem:[%s9219_s12 + $0x28] sm:$0xff]  ;;  %8919 = vmatprep.subr.bf16.mxu1 %v9096_v40  ;;  %11861 = vst [vmem:[#allocation3_spill] sm:$0xff] %v9332_v53  ;;  %s301_s11 = scalar_lea.vmem %s11659_s6, %s300_s8 }
  0x17   : > { %8724 = vmatmul.mubr.msk.f32.vlgmr.msra.gmra.mxu0 %vm444_vm1, %v309_v2  ;;  %v314_v7 = vld [vmem:[%s9219_s12 + $0x30] sm:$0xff]  ;;  %v315_v8 = vld [vmem:[%s9219_s12 + $0x38] sm:$0xff]  ;;  %v316_v9 = vld [vmem:[%s9219_s12 + $0x40] sm:$0xff]  ;;  %11865 = vst [vmem:[#allocation7_spill] sm:$0xff] %v9467_v50 }
  0x18   : > { %8726 = vmatprep.mubr.msk.f32.mxu0 %vm444_vm1, %v310_v3  ;;  %v317_v10 = vld [vmem:[%s9219_s12 + $0x48] sm:$0xff]  ;;  %v318_v11 = vld [vmem:[%s9219_s12 + $0x50] sm:$0xff]  ;;  %v319_v12 = vld [vmem:[%s9219_s12 + $0x58] sm:$0xff]  ;;  %3084 = vmatpush1.bf16.msra.mxu0 %v9332_v53 }
  0x19   : > { %v320_v13 = vld [vmem:[%s9219_s12 + $0x60] sm:$0xff]  ;;  %v321_v14 = vld [vmem:[%s9219_s12 + $0x68] sm:$0xff]  ;;  %v322_v15 = vld [vmem:[%s9219_s12 + $0x70] sm:$0xff]  ;;  %8920 = vmatpush3.bf16.msra.mxu1 %v9096_v40 }
  0x1a   : > { %v323_v16 = vld [vmem:[%s9219_s12 + $0x78] sm:$0xff]  ;;  %v324_v17 = vld [vmem:[%s9219_s12 + $0x80] sm:$0xff]  ;;  %v325_v18 = vld [vmem:[%s9219_s12 + $0x88] sm:$0xff]  ;;  %8921 = vmatprep.subr.bf16.mxu1 %v9097_v43 }
  0x1b   : > { %8727 = vmatmul.mubr.msk.f32.gmra.mxu0 %vm444_vm1, %v311_v4  ;;  %v326_v19 = vld [vmem:[%s9219_s12 + $0x90] sm:$0xff]  ;;  %v327_v20 = vld [vmem:[%s9219_s12 + $0x98] sm:$0xff]  ;;  %v328_v21 = vld [vmem:[%s9219_s12 + $0xa0] sm:$0xff] }
  0x1c   : > { %8729 = vmatprep.mubr.msk.f32.mxu0 %vm444_vm1, %v312_v5  ;;  %v329_v22 = vld [vmem:[%s9219_s12 + $0xa8] sm:$0xff]  ;;  %v330_v23 = vld [vmem:[%s9219_s12 + $0xb0] sm:$0xff]  ;;  %v331_v24 = vld [vmem:[%s9219_s12 + $0xb8] sm:$0xff] }
  0x1d   : > { %v332_v25 = vld [vmem:[%s9219_s12 + $0xc0] sm:$0xff]  ;;  %v333_v26 = vld [vmem:[%s9219_s12 + $0xc8] sm:$0xff]  ;;  %v334_v27 = vld [vmem:[%s9219_s12 + $0xd0] sm:$0xff]  ;;  %8922 = vmatpush3.bf16.msra.mxu1 %v9097_v43 }
  0x1e   : > { %v335_v28 = vld [vmem:[%s9219_s12 + $0xd8] sm:$0xff]  ;;  %v336_v29 = vld [vmem:[%s9219_s12 + $0xe0] sm:$0xff]  ;;  %v337_v30 = vld [vmem:[%s9219_s12 + $0xe8] sm:$0xff]  ;;  %3196 = vmatprep.subr.bf16.mxu1 %v9336_v55 }
  0x1f   : > { %8730 = vmatmul.mubr.msk.f32.gmra.mxu0 %vm444_vm1, %v313_v6  ;;  %v338_v31 = vld [vmem:[%s9219_s12 + $0xf0] sm:$0xff]  ;;  %v339_v32 = vld [vmem:[%s9219_s12 + $0xf8] sm:$0xff]  ;;  %v340_v33 = vld [vmem:[%s9219_s12 + $0x100] sm:$0xff] }
  0x20   : > { %8732 = vmatprep.mubr.msk.f32.mxu0 %vm444_vm1, %v314_v7  ;;  %v341_v35 = vld [vmem:[%s9219_s12 + $0x108] sm:$0xff]  ;;  %v342_v36 = vld [vmem:[%s9219_s12 + $0x110] sm:$0xff]  ;;  %v343_v38 = vld [vmem:[%s9219_s12 + $0x118] sm:$0xff] }
  0x21   : > { %v344_v39 = vld [vmem:[%s9219_s12 + $0x120] sm:$0xff]  ;;  %v345_v41 = vld [vmem:[%s9219_s12 + $0x128] sm:$0xff]  ;;  %v346_v42 = vld [vmem:[%s9219_s12 + $0x130] sm:$0xff] }
  0x22   : > { %v347_v44 = vld [vmem:[%s9219_s12 + $0x138] sm:$0xff]  ;;  %v348_v45 = vld [vmem:[%s9219_s12 + $0x140] sm:$0xff]  ;;  %v349_v46 = vld [vmem:[%s9219_s12 + $0x148] sm:$0xff] }
  0x23   : > { %8733 = vmatmul.mubr.msk.f32.gmra.mxu0 %vm444_vm1, %v315_v8  ;;  %v350_v47 = vld [vmem:[%s9219_s12 + $0x150] sm:$0xff]  ;;  %v351_v54 = vld [vmem:[%s9219_s12 + $0x158] sm:$0xff]  ;;  %v352_v57 = vld [vmem:[%s9219_s12 + $0x160] sm:$0xff] }
  0x24   : > { %8735 = vmatprep.mubr.msk.f32.mxu0 %vm444_vm1, %v316_v9  ;;  %v353_v58 = vld [vmem:[%s9219_s12 + $0x168] sm:$0xff]  ;;  %v354_v59 = vld [vmem:[%s9219_s12 + $0x170] sm:$0xff]  ;;  %v355_v60 = vld [vmem:[%s9219_s12 + $0x178] sm:$0xff] }
  0x25   : > { %v356_v61 = vld [vmem:[%s9219_s12 + $0x180] sm:$0xff]  ;;  %v357_v62 = vld [vmem:[%s9219_s12 + $0x188] sm:$0xff]  ;;  %v358_v63 = vld [vmem:[%s9219_s12 + $0x190] sm:$0xff] }
  0x26   : > { %v359_v0 = vld [vmem:[%s9219_s12 + $0x198] sm:$0xff]  ;;  %v360_v1 = vld [vmem:[%s9219_s12 + $0x1a0] sm:$0xff]  ;;  %v361_v2 = vld [vmem:[%s9219_s12 + $0x1a8] sm:$0xff] }
  0x27   : > { %8736 = vmatmul.mubr.msk.f32.gmra.mxu0 %vm444_vm1, %v317_v10  ;;  %v362_v3 = vld [vmem:[%s9219_s12 + $0x1b0] sm:$0xff]  ;;  %v363_v4 = vld [vmem:[%s9219_s12 + $0x1b8] sm:$0xff]  ;;  %v364_v5 = vld [vmem:[%s9219_s12 + $0x1c0] sm:$0xff] }
  0x28   : > { %8738 = vmatprep.mubr.msk.f32.mxu0 %vm444_vm1, %v318_v11  ;;  %v365_v6 = vld [vmem:[%s9219_s12 + $0x1c8] sm:$0xff]  ;;  %v366_v7 = vld [vmem:[%s9219_s12 + $0x1d0] sm:$0xff]  ;;  %v2747_v8 = vld [vmem:[%s11658_s5 + $0x180] sm:$0xff] }
  0x29   : > { %v2751_v9 = vld [vmem:[%s11658_s5 + $0x1a0] sm:$0xff]  ;;  %v385_v34 = vld [vmem:[%s9219_s12 + $0x268] sm:$0xff]  ;;  %v391_v40 = vld [vmem:[%s9219_s12 + $0x298] sm:$0xff] }
  0x2a   : > { %v9379_v10 = vcombine.high %v2747_v8, %v2751_v9  ;;  %v9381_v11 = vcombine.low %v2747_v8, %v2751_v9  ;;  %v388_v37 = vld [vmem:[%s9219_s12 + $0x280] sm:$0xff]  ;;  %v394_v43 = vld [vmem:[%s9219_s12 + $0x2b0] sm:$0xff]  ;;  %v2732_v48 = vld [vmem:[%s11658_s5 + $0x108] sm:$0xff] }
  0x2b   : > { %8739 = vmatmul.mubr.msk.f32.gmra.mxu0 %vm444_vm1, %v319_v12  ;;  %v367_v12 = vld [vmem:[%s9219_s12 + $0x1d8] sm:$0xff]  ;;  %v2736_v49 = vld [vmem:[%s11658_s5 + $0x128] sm:$0xff] }
  0x2c   : > { %8741 = vmatprep.mubr.msk.f32.mxu0 %vm444_vm1, %v320_v13  ;;  %11863 = vst [vmem:[#allocation5_spill] sm:$0xff] %v9379_v10  ;;  %v368_v13 = vld [vmem:[%s9219_s12 + $0x1e0] sm:$0xff]  ;;  %3085 = vmatprep.subr.bf16.mxu0 %v9379_v10 }
  0x2d   : > { %3086 = vmatpush1.bf16.msra.mxu0 %v9381_v11 }
  0x2f   : > { %8742 = vmatmul.mubr.msk.f32.gmra.mxu0 %vm444_vm1, %v321_v14  ;;  %v369_v14 = vld [vmem:[%s9219_s12 + $0x1e8] sm:$0xff] }
  0x30   : > { %8744 = vmatprep.mubr.msk.f32.mxu0 %vm444_vm1, %v322_v15  ;;  %v370_v15 = vld [vmem:[%s9219_s12 + $0x1f0] sm:$0xff] }
  0x33   : > { %8745 = vmatmul.mubr.msk.f32.gmra.mxu0 %vm444_vm1, %v323_v16  ;;  %v371_v16 = vld [vmem:[%s9219_s12 + $0x1f8] sm:$0xff] }
  0x34   : > { %8747 = vmatprep.mubr.msk.f32.mxu0 %vm444_vm1, %v324_v17  ;;  %v372_v17 = vld [vmem:[%s9219_s12 + $0x200] sm:$0xff] }
  0x37   : > { %8748 = vmatmul.mubr.msk.f32.gmra.mxu0 %vm444_vm1, %v325_v18  ;;  %v373_v18 = vld [vmem:[%s9219_s12 + $0x208] sm:$0xff] }
  0x38   : > { %8750 = vmatprep.mubr.msk.f32.mxu0 %vm444_vm1, %v326_v19  ;;  %v374_v19 = vld [vmem:[%s9219_s12 + $0x210] sm:$0xff] }
  0x3b   : > { %8751 = vmatmul.mubr.msk.f32.gmra.mxu0 %vm444_vm1, %v327_v20  ;;  %v375_v20 = vld [vmem:[%s9219_s12 + $0x218] sm:$0xff] }
  0x3c   : > { %8753 = vmatprep.mubr.msk.f32.mxu0 %vm444_vm1, %v328_v21  ;;  %v376_v21 = vld [vmem:[%s9219_s12 + $0x220] sm:$0xff] }
  0x3f   : > { %8754 = vmatmul.mubr.msk.f32.gmra.mxu0 %vm444_vm1, %v329_v22  ;;  %v377_v22 = vld [vmem:[%s9219_s12 + $0x228] sm:$0xff] }
  0x40   : > { %8756 = vmatprep.mubr.msk.f32.mxu0 %vm444_vm1, %v330_v23  ;;  %v378_v23 = vld [vmem:[%s9219_s12 + $0x230] sm:$0xff] }
  0x43   : > { %8757 = vmatmul.mubr.msk.f32.gmra.mxu0 %vm444_vm1, %v331_v24  ;;  %v379_v24 = vld [vmem:[%s9219_s12 + $0x238] sm:$0xff] }
  0x44   : > { %8759 = vmatprep.mubr.msk.f32.mxu0 %vm444_vm1, %v332_v25  ;;  %v380_v25 = vld [vmem:[%s9219_s12 + $0x240] sm:$0xff] }
  0x47   : > { %8760 = vmatmul.mubr.msk.f32.gmra.mxu0 %vm444_vm1, %v333_v26  ;;  %v381_v26 = vld [vmem:[%s9219_s12 + $0x248] sm:$0xff] }
  0x48   : > { %8762 = vmatprep.mubr.msk.f32.mxu0 %vm444_vm1, %v334_v27  ;;  %v382_v27 = vld [vmem:[%s9219_s12 + $0x250] sm:$0xff] }
  0x4b   : > { %8763 = vmatmul.mubr.msk.f32.gmra.mxu0 %vm444_vm1, %v335_v28  ;;  %v2739_v28 = vld [vmem:[%s11658_s5 + $0x140] sm:$0xff] }
  0x4c   : > { %8765 = vmatprep.mubr.msk.f32.mxu0 %vm444_vm1, %v336_v29  ;;  %v2743_v29 = vld [vmem:[%s11658_s5 + $0x160] sm:$0xff] }
  0x4f   : > { %8766 = vmatmul.mubr.msk.f32.gmra.mxu0 %vm444_vm1, %v337_v30  ;;  %v9423_v30 = vcombine.high %v2739_v28, %v2743_v29 }
  0x50   : > { %8768 = vmatprep.mubr.msk.f32.mxu0 %vm444_vm1, %v338_v31  ;;  %v9425_v31 = vcombine.low %v2739_v28, %v2743_v29 }
  0x51   : > { %11864 = vst [vmem:[#allocation6_spill] sm:$0xff] %v9423_v30  ;;  %3087 = vmatprep.subr.bf16.mxu0 %v9423_v30 }
  0x52   : > { %3088 = vmatpush1.bf16.msra.mxu0 %v9425_v31 }
  0x53   : > { %8769 = vmatmul.mubr.msk.f32.gmra.mxu0 %vm444_vm1, %v339_v32  ;;  %v383_v32 = vld [vmem:[%s9219_s12 + $0x258] sm:$0xff]  ;;  %3089 = vmatprep.subr.bf16.mxu0 %v9467_v50 }
  0x54   : > { %8771 = vmatprep.mubr.msk.f32.mxu0 %vm444_vm1, %v340_v33  ;;  %v384_v33 = vld [vmem:[%s9219_s12 + $0x260] sm:$0xff] }
  0x56   : > { %3090 = vmatpush1.bf16.msra.mxu0 %v9469_v52 }
  0x57   : > { %8772 = vmatmul.mubr.msk.f32.gmra.mxu0 %vm444_vm1, %v341_v35  ;;  %v386_v35 = vld [vmem:[%s9219_s12 + $0x270] sm:$0xff] }
  0x58   : > { %8774 = vmatprep.mubr.msk.f32.mxu0 %vm444_vm1, %v342_v36  ;;  %v387_v36 = vld [vmem:[%s9219_s12 + $0x278] sm:$0xff] }
  0x5b   : > { %8775 = vmatmul.mubr.msk.f32.gmra.mxu0 %vm444_vm1, %v343_v38  ;;  %v389_v38 = vld [vmem:[%s9219_s12 + $0x288] sm:$0xff] }
  0x5c   : > { %8777 = vmatprep.mubr.msk.f32.mxu0 %vm444_vm1, %v344_v39  ;;  %v390_v39 = vld [vmem:[%s9219_s12 + $0x290] sm:$0xff] }
  0x5f   : > { %8778 = vmatmul.mubr.msk.f32.gmra.mxu0 %vm444_vm1, %v345_v41  ;;  %v392_v41 = vld [vmem:[%s9219_s12 + $0x2a0] sm:$0xff] }
  0x60   : > { %8780 = vmatprep.mubr.msk.f32.mxu0 %vm444_vm1, %v346_v42  ;;  %v393_v42 = vld [vmem:[%s9219_s12 + $0x2a8] sm:$0xff] }
  0x63   : > { %8781 = vmatmul.mubr.msk.f32.gmra.mxu0 %vm444_vm1, %v347_v44  ;;  %v395_v44 = vld [vmem:[%s9219_s12 + $0x2b8] sm:$0xff] }
  0x64   : > { %8783 = vmatprep.mubr.msk.f32.mxu0 %vm444_vm1, %v348_v45  ;;  %v396_v45 = vld [vmem:[%s9219_s12 + $0x2c0] sm:$0xff] }
  0x67   : > { %8784 = vmatmul.mubr.msk.f32.gmra.mxu0 %vm444_vm1, %v349_v46  ;;  %v397_v46 = vld [vmem:[%s9219_s12 + $0x2c8] sm:$0xff] }
  0x68   : > { %8786 = vmatprep.mubr.msk.f32.mxu0 %vm444_vm1, %v350_v47  ;;  %v398_v47 = vld [vmem:[%s9219_s12 + $0x2d0] sm:$0xff] }
  0x6b   : > { %8787 = vmatmul.mubr.msk.f32.gmra.mxu0 %vm444_vm1, %v351_v54  ;;  %v399_v54 = vld [vmem:[%s9219_s12 + $0x2d8] sm:$0xff] }
  0x6c   : > { %8789 = vmatprep.mubr.msk.f32.mxu0 %vm444_vm1, %v352_v57  ;;  %v400_v57 = vld [vmem:[%s9219_s12 + $0x2e0] sm:$0xff] }
  0x6f   : > { %8790 = vmatmul.mubr.msk.f32.gmra.mxu0 %vm444_vm1, %v353_v58  ;;  %v401_v58 = vld [vmem:[%s9219_s12 + $0x2e8] sm:$0xff] }
  0x70   : > { %8792 = vmatprep.mubr.msk.f32.mxu0 %vm444_vm1, %v354_v59  ;;  %v402_v59 = vld [vmem:[%s9219_s12 + $0x2f0] sm:$0xff] }
  0x73   : > { %8793 = vmatmul.mubr.msk.f32.gmra.mxu0 %vm444_vm1, %v355_v60  ;;  %v403_v60 = vld [vmem:[%s9219_s12 + $0x2f8] sm:$0xff] }
  0x74   : > { %8795 = vmatprep.mubr.msk.f32.mxu0 %vm444_vm1, %v356_v61  ;;  %v404_v61 = vld [vmem:[%s9219_s12 + $0x300] sm:$0xff] }
  0x77   : > { %8796 = vmatmul.mubr.msk.f32.gmra.mxu0 %vm444_vm1, %v357_v62  ;;  %v405_v62 = vld [vmem:[%s9219_s12 + $0x308] sm:$0xff] }
  0x78   : > { %8798 = vmatprep.mubr.msk.f32.mxu0 %vm444_vm1, %v358_v63  ;;  %v9490_v63 = vld [vmem:[%s11655_s2] ss:$0 sm:$0xff] }
  0x7b   : > { %8799 = vmatmul.mubr.msk.f32.gmra.mxu0 %vm444_vm1, %v359_v0  ;;  %v406_v0 = vld [vmem:[%s9219_s12 + $0x310] sm:$0xff] }
  0x7c   : > { %8801 = vmatprep.mubr.msk.f32.mxu0 %vm444_vm1, %v360_v1 }
  0x7f   : > { %8802 = vmatmul.mubr.msk.f32.gmra.mxu0 %vm444_vm1, %v361_v2 }
  0x80   : > { %8804 = vmatprep.mubr.msk.f32.mxu0 %vm444_vm1, %v362_v3  ;;  %v407_v3 = vld [vmem:[%s9219_s12 + $0x318] sm:$0xff] }
  0x83   : > { %8805 = vmatmul.mubr.msk.f32.gmra.mxu0 %vm444_vm1, %v363_v4 }
  0x84   : > { %8807 = vmatprep.mubr.msk.f32.mxu0 %vm444_vm1, %v364_v5  ;;  %v408_v5 = vld [vmem:[%s9219_s12 + $0x320] sm:$0xff] }
  0x87   : > { %8808 = vmatmul.mubr.msk.f32.gmra.mxu0 %vm444_vm1, %v365_v6 }
  0x88   : > { %8810 = vmatprep.mubr.msk.f32.mxu0 %vm444_vm1, %v366_v7 }
  0x8b   : > { %8811 = vmatmul.mubr.msk.f32.gmra.mxu0 %vm444_vm1, %v367_v12 }
  0x8c   : > { %8813 = vmatprep.mubr.msk.f32.mxu0 %vm444_vm1, %v368_v13  ;;  %v409_v13 = vld [vmem:[%s9219_s12 + $0x328] sm:$0xff] }
  0x8f   : > { %8814 = vmatmul.mubr.msk.f32.gmra.mxu0 %vm444_vm1, %v369_v14 }
  0x90   : > { %8816 = vmatprep.mubr.msk.f32.mxu0 %vm444_vm1, %v370_v15  ;;  %v410_v15 = vld [vmem:[%s9219_s12 + $0x330] sm:$0xff] }
  0x93   : > { %8817 = vmatmul.mubr.msk.f32.gmra.mxu0 %vm444_vm1, %v371_v16 }
  0x94   : > { %8819 = vmatprep.mubr.msk.f32.mxu0 %vm444_vm1, %v372_v17 }
  0x97   : > { %8820 = vmatmul.mubr.msk.f32.gmra.mxu0 %vm444_vm1, %v373_v18 }
  0x98   : > { %8822 = vmatprep.mubr.msk.f32.mxu0 %vm444_vm1, %v374_v19  ;;  %v2748_v19 = vld [vmem:[%s11658_s5 + $0x188] sm:$0xff] }
  0x9b   : > { %8823 = vmatmul.mubr.msk.f32.gmra.mxu0 %vm444_vm1, %v375_v20  ;;  %v2752_v20 = vld [vmem:[%s11658_s5 + $0x1a8] sm:$0xff] }
  0x9c   : > { %8825 = vmatprep.mubr.msk.f32.mxu0 %vm444_vm1, %v376_v21  ;;  %v9518_v29 = vcombine.high %v2748_v19, %v2752_v20 }
  0x9e   : > { %11866 = vst [vmem:[#allocation8_spill] sm:$0xff] %v9518_v29 }
  0x9f   : > { %8826 = vmatmul.mubr.msk.f32.gmra.mxu0 %vm444_vm1, %v377_v22 }
  0xa0   : > { %8828 = vmatprep.mubr.msk.f32.mxu0 %vm444_vm1, %v378_v23 }
  0xa3   : > { %8829 = vmatmul.mubr.msk.f32.gmra.mxu0 %vm444_vm1, %v379_v24  ;;  %v411_v24 = vld [vmem:[%s9219_s12 + $0x338] sm:$0xff] }
  0xa4   : > { %8831 = vmatprep.mubr.msk.f32.mxu0 %vm444_vm1, %v380_v25 }
  0xa7   : > { %8832 = vmatmul.mubr.msk.f32.gmra.mxu0 %vm444_vm1, %v381_v26  ;;  %v412_v26 = vld [vmem:[%s9219_s12 + $0x340] sm:$0xff] }
  0xa8   : > { %8834 = vmatprep.mubr.msk.f32.mxu0 %vm444_vm1, %v382_v27 }
  0xab   : > { %8835 = vmatmul.mubr.msk.f32.gmra.mxu0 %vm444_vm1, %v383_v32 }
  0xac   : > { %8837 = vmatprep.mubr.msk.f32.mxu0 %vm444_vm1, %v384_v33  ;;  %v2740_v33 = vld [vmem:[%s11658_s5 + $0x148] sm:$0xff] }
  0xaf   : > { %8838 = vmatmul.mubr.msk.f32.gmra.mxu0 %vm444_vm1, %v385_v34  ;;  %v2744_v34 = vld [vmem:[%s11658_s5 + $0x168] sm:$0xff] }
  0xb0   : > { %8840 = vmatprep.mubr.msk.f32.mxu0 %vm444_vm1, %v386_v35 }
  0xb3   : > { %8841 = vmatmul.mubr.msk.f32.gmra.mxu0 %vm444_vm1, %v387_v36 }
  0xb4   : > { %8843 = vmatprep.mubr.msk.f32.mxu0 %vm444_vm1, %v388_v37 }
  0xb7   : > { %8844 = vmatmul.mubr.msk.f32.gmra.mxu0 %vm444_vm1, %v389_v38  ;;  %v413_v38 = vld [vmem:[%s9219_s12 + $0x348] sm:$0xff] }
  0xb8   : > { %8846 = vmatprep.mubr.msk.f32.mxu0 %vm444_vm1, %v390_v39 }
  0xbb   : > { %8847 = vmatmul.mubr.msk.f32.gmra.mxu0 %vm444_vm1, %v391_v40  ;;  %v414_v40 = vld [vmem:[%s9219_s12 + $0x350] sm:$0xff] }
  0xbc   : > { %8849 = vmatprep.mubr.msk.f32.mxu0 %vm444_vm1, %v392_v41  ;;  %v9533_v41 = vcombine.low %v2748_v19, %v2752_v20 }
  0xbe   : > { %11867 = vst [vmem:[#allocation9_spill] sm:$0xff] %v9533_v41 }
  0xbf   : > { %8850 = vmatmul.mubr.msk.f32.gmra.mxu0 %vm444_vm1, %v393_v42 }
  0xc0   : > { %8852 = vmatprep.mubr.msk.f32.mxu0 %vm444_vm1, %v394_v43 }
  0xc3   : > { %8853 = vmatmul.mubr.msk.f32.gmra.mxu0 %vm444_vm1, %v395_v44  ;;  %v9537_v44 = vcombine.high %v2740_v33, %v2744_v34 }
  0xc4   : > { %8855 = vmatprep.mubr.msk.f32.mxu0 %vm444_vm1, %v396_v45  ;;  %v2723_v45 = vld [vmem:[%s11658_s5 + $0xc0] sm:$0xff] }
  0xc5   : > { %11868 = vst [vmem:[#allocation10_spill] sm:$0xff] %v9537_v44 }
  0xc7   : > { %8856 = vmatmul.mubr.msk.f32.gmra.mxu0 %vm444_vm1, %v397_v46  ;;  %v2727_v46 = vld [vmem:[%s11658_s5 + $0xe0] sm:$0xff] }
  0xc8   : > { %8858 = vmatprep.mubr.msk.f32.mxu0 %vm444_vm1, %v398_v47 }
  0xcb   : > { %8859 = vmatmul.mubr.msk.f32.gmra.mxu0 %vm444_vm1, %v399_v54  ;;  %v9552_v54 = vcombine.high %v2723_v45, %v2727_v46 }
  0xcc   : > { %8861 = vmatprep.mubr.msk.f32.mxu0 %vm444_vm1, %v400_v57  ;;  %v9554_v57 = vcombine.low %v2723_v45, %v2727_v46 }
  0xcd   : > { %11869 = vst [vmem:[#allocation11_spill] sm:$0xff] %v9552_v54  ;;  %3091 = vmatprep.subr.bf16.mxu0 %v9552_v54 }
  0xce   : > { %11870 = vst [vmem:[#allocation12_spill] sm:$0xff] %v9554_v57  ;;  %3092 = vmatpush1.bf16.msra.mxu0 %v9554_v57 }
  0xcf   : > { %8862 = vmatmul.mubr.msk.f32.gmra.mxu0 %vm444_vm1, %v401_v58 }
  0xd0   : > { %8864 = vmatprep.mubr.msk.f32.mxu0 %vm444_vm1, %v402_v59 }
  0xd3   : > { %8865 = vmatmul.mubr.msk.f32.gmra.mxu0 %vm444_vm1, %v403_v60 }
  0xd4   : > { %8867 = vmatprep.mubr.msk.f32.mxu0 %vm444_vm1, %v404_v61  ;;  %v415_v61 = vld [vmem:[%s9219_s12 + $0x358] sm:$0xff] }
  0xd7   : > { %v8725_v1 = vpop.f32.mrf.mxu0  ;;  %8868 = vmatmul.mubr.msk.f32.gmra.mxu0 %vm444_vm1, %v405_v62 }
  0xd8   : > { %v905_v2 = vadd.f32 %v8725_v1, %v9490_v63  ;;  %8870 = vmatprep.mubr.msk.f32.mxu0 %vm444_vm1, %v406_v0  ;;  %v416_v0 = vld [vmem:[%s9219_s12 + $0x360] sm:$0xff]  ;;  %v9562_v1 = vcombine.low %v2740_v33, %v2744_v34 }
  0xd9   : > { %v899_v4 = vpop.f32.mrf.mxu0 }
  0xda   : > { %v900_v6 = vadd.f32 %v9490_v63, %v899_v4  ;;  %v1539_v8 = vmax.f32 %v905_v2, 0.0  ;;  %11871 = vst [vmem:[#allocation13_spill] sm:$0xff] %v9562_v1  ;;  %v9567_v4 = vcombine.high %v2732_v48, %v2736_v49 }
  0xdb   : > { %v8728_v7 = vpop.f32.mrf.mxu0  ;;  %8871 = vmatmul.mubr.msk.f32.gmra.mxu0 %vm444_vm1, %v407_v3 }
  0xdc   : > { %v1538_v9 = vmax.f32 %v900_v6, 0.0  ;;  %v915_v12 = vadd.f32 %v8728_v7, %v9490_v63  ;;  %8873 = vmatprep.mubr.msk.f32.mxu0 %vm444_vm1, %v408_v5  ;;  %11872 = vst [vmem:[#allocation14_spill] sm:$0xff] %v9567_v4  ;;  %v2724_v6 = vld [vmem:[%s11658_s5 + $0xc8] sm:$0xff] }
  0xdd   : > { %v909_v14 = vpop.f32.mrf.mxu0  ;;  %v2728_v7 = vld [vmem:[%s11658_s5 + $0xe8] sm:$0xff] }
  0xde   : > { %v910_v16 = vadd.f32 %v9490_v63, %v909_v14  ;;  %v1666_v17 = vpack.c.bf16 %v1539_v8, %v1538_v9  ;;  %v1541_v21 = vmax.f32 %v915_v12, 0.0  ;;  %v9587_v19 = vcombine.high %v2724_v6, %v2728_v7 }
  0xdf   : > { %v8731_v18 = vpop.f32.mrf.mxu0  ;;  %8874 = vmatmul.mubr.msk.f32.gmra.mxu0 %vm444_vm1, %v409_v13  ;;  %v417_v13 = vld [vmem:[%s9219_s12 + $0x368] sm:$0xff] }
  0xe0   : > { %v1540_v22 = vmax.f32 %v910_v16, 0.0  ;;  %v925_v23 = vadd.f32 %v8731_v18, %v9490_v63  ;;  %8923 = vmatprep.mubr.msk.bf16.mxu1 %vm1769_vm2, %v1666_v17  ;;  %8876 = vmatprep.mubr.msk.f32.mxu0 %vm444_vm1, %v410_v15  ;;  %v418_v15 = vld [vmem:[%s9219_s12 + $0x370] sm:$0xff]  ;;  %v9583_v16 = vcombine.low %v2732_v48, %v2736_v49  ;;  %11874 = vst [vmem:[#allocation16_spill] sm:$0xff] %v9587_v19  ;;  %v423_v48 = vld [vmem:[%s9219_s12 + $0x398] sm:$0xff] }
  0xe1   : > { %v919_v25 = vpop.f32.mrf.mxu0 }
  0xe2   : > { %v1667_v27 = vpack.c.bf16 %v1541_v21, %v1540_v22  ;;  %v920_v28 = vadd.f32 %v9490_v63, %v919_v25  ;;  %v1543_v35 = vmax.f32 %v925_v23, 0.0  ;;  %11873 = vst [vmem:[#allocation15_spill] sm:$0xff] %v9583_v16 }
  0xe3   : > { %v8734_v32 = vpop.f32.mrf.mxu0  ;;  %8877 = vmatmul.mubr.msk.f32.gmra.mxu0 %vm444_vm1, %v411_v24  ;;  %v419_v24 = vld [vmem:[%s9219_s12 + $0x378] sm:$0xff] }
  0xe4   : > { %v1542_v36 = vmax.f32 %v920_v28, 0.0  ;;  %v935_v37 = vadd.f32 %v8734_v32, %v9490_v63  ;;  %8924 = vmatmul.mubr.msk.bf16.vlgmr.msra.gmra.mxu1 %vm1769_vm2, %v1667_v27  ;;  %8879 = vmatprep.mubr.msk.f32.mxu0 %vm444_vm1, %v412_v26  ;;  %v420_v26 = vld [vmem:[%s9219_s12 + $0x380] sm:$0xff]  ;;  %v9596_v27 = vcombine.low %v2724_v6, %v2728_v7  ;;  %v426_v6 = vld [vmem:[%s9219_s12 + $0x3b0] sm:$0xff] }
  0xe5   : > { %3197 = vmatpush1.bf16.msra.mxu1 %v9338_v56  ;;  %v929_v39 = vpop.f32.mrf.mxu0 }
  0xe6   : > { %v1668_v42 = vpack.c.bf16 %v1543_v35, %v1542_v36  ;;  %v930_v43 = vadd.f32 %v9490_v63, %v929_v39  ;;  %3198 = vmatprep.subr.bf16.mxu1 %v9518_v29  ;;  %v1545_v58 = vmax.f32 %v935_v37, 0.0  ;;  %11875 = vst [vmem:[#allocation17_spill] sm:$0xff] %v9596_v27  ;;  %v421_v37 = vld [vmem:[%s9219_s12 + $0x388] sm:$0xff]  ;;  %v422_v39 = vld [vmem:[%s9219_s12 + $0x390] sm:$0xff] }
  0xe7   : > { %v8737_v47 = vpop.f32.mrf.mxu0  ;;  %8880 = vmatmul.mubr.msk.f32.gmra.mxu0 %vm444_vm1, %v413_v38 }
  0xe8   : > { %v1544_v59 = vmax.f32 %v930_v43, 0.0  ;;  %v945_v60 = vadd.f32 %v8737_v47, %v9490_v63  ;;  %8927 = vmatprep.mubr.msk.bf16.mxu1 %vm1769_vm2, %v1668_v42  ;;  %8882 = vmatprep.mubr.msk.f32.mxu0 %vm444_vm1, %v414_v40 }
  0xe9   : > { %v939_v62 = vpop.f32.mrf.mxu0  ;;  %3199 = vmatpush1.bf16.msra.mxu1 %v9533_v41 }
  0xea   : > { %v1669_v2 = vpack.c.bf16 %v1545_v58, %v1544_v59  ;;  %v940_v3 = vadd.f32 %v9490_v63, %v939_v62  ;;  %3200 = vmatprep.subr.bf16.mxu1 %v9537_v44  ;;  %v1547_v8 = vmax.f32 %v945_v60, 0.0  ;;  %v424_v58 = vld [vmem:[%s9219_s12 + $0x3a0] sm:$0xff] }
  0xeb   : > { %v8740_v5 = vpop.f32.mrf.mxu0  ;;  %8883 = vmatmul.mubr.msk.f32.gmra.mxu0 %vm444_vm1, %v415_v61 }
  0xec   : > { %v1546_v9 = vmax.f32 %v940_v3, 0.0  ;;  %v955_v12 = vadd.f32 %v8740_v5, %v9490_v63  ;;  %8928 = vmatmul.mubr.msk.bf16.gmra.mxu1 %vm1769_vm2, %v1669_v2  ;;  %8885 = vmatprep.mubr.msk.f32.mxu0 %vm444_vm1, %v416_v0  ;;  %v425_v3 = vld [vmem:[%s9219_s12 + $0x3a8] sm:$0xff] }
  0xed   : > { %v949_v14 = vpop.f32.mrf.mxu0  ;;  %3201 = vmatpush1.bf16.msra.mxu1 %v9562_v1 }
  0xee   : > { %v1670_v17 = vpack.c.bf16 %v1547_v8, %v1546_v9  ;;  %v950_v18 = vadd.f32 %v9490_v63, %v949_v14  ;;  %3202 = vmatprep.subr.bf16.mxu1 %v9567_v4  ;;  %v1549_v21 = vmax.f32 %v955_v12, 0.0 }
  0xef   : > { %v8743_v20 = vpop.f32.mrf.mxu0  ;;  %8886 = vmatmul.mubr.msk.f32.gmra.mxu0 %vm444_vm1, %v417_v13 }
  0xf0   : > { %v1548_v22 = vmax.f32 %v950_v18, 0.0  ;;  %v965_v23 = vadd.f32 %v8743_v20, %v9490_v63  ;;  %8931 = vmatprep.mubr.msk.bf16.mxu1 %vm1769_vm2, %v1670_v17  ;;  %8888 = vmatprep.mubr.msk.f32.mxu0 %vm444_vm1, %v418_v15  ;;  %v427_v15 = vld [vmem:[%s9219_s12 + $0x3b8] sm:$0xff]  ;;  %v428_v18 = vld [vmem:[%s9219_s12 + $0x3c0] sm:$0xff] }
  0xf1   : > { %v959_v25 = vpop.f32.mrf.mxu0  ;;  %3203 = vmatpush1.bf16.msra.mxu1 %v9583_v16 }
  0xf2   : > { %v1671_v28 = vpack.c.bf16 %v1549_v21, %v1548_v22  ;;  %v960_v32 = vadd.f32 %v9490_v63, %v959_v25  ;;  %3204 = vmatprep.subr.bf16.mxu1 %v9587_v19  ;;  %v1551_v34 = vmax.f32 %v965_v23, 0.0 }
  0xf3   : > { %v8746_v33 = vpop.f32.mrf.mxu0  ;;  %8889 = vmatmul.mubr.msk.f32.gmra.mxu0 %vm444_vm1, %v419_v24 }
  0xf4   : > { %v1550_v35 = vmax.f32 %v960_v32, 0.0  ;;  %v975_v36 = vadd.f32 %v8746_v33, %v9490_v63  ;;  %8932 = vmatmul.mubr.msk.bf16.gmra.mxu1 %vm1769_vm2, %v1671_v28  ;;  %8891 = vmatprep.mubr.msk.f32.mxu0 %vm444_vm1, %v420_v26  ;;  %v429_v26 = vld [vmem:[%s9219_s12 + $0x3c8] sm:$0xff]  ;;  %v430_v32 = vld [vmem:[%s9219_s12 + $0x3d0] sm:$0xff] }
  0xf5   : > { %v969_v38 = vpop.f32.mrf.mxu0  ;;  %3205 = vmatpush1.bf16.msra.mxu1 %v9596_v27 }
  0xf6   : > { %v1672_v40 = vpack.c.bf16 %v1551_v34, %v1550_v35  ;;  %v970_v42 = vadd.f32 %v9490_v63, %v969_v38  ;;  %v1553_v45 = vmax.f32 %v975_v36, 0.0  ;;  %v2715_v35 = vld [vmem:[%s11658_s5 + $0x80] sm:$0xff] }
  0xf7   : > { %v8749_v43 = vpop.f32.mrf.mxu0  ;;  %8892 = vmatmul.mubr.msk.f32.gmra.mxu0 %vm444_vm1, %v421_v37  ;;  %v2719_v36 = vld [vmem:[%s11658_s5 + $0xa0] sm:$0xff]  ;;  %v2716_v37 = vld [vmem:[%s11658_s5 + $0x88] sm:$0xff] }
  0xf8   : > { %v1552_v46 = vmax.f32 %v970_v42, 0.0  ;;  %v985_v47 = vadd.f32 %v8749_v43, %v9490_v63  ;;  %8935 = vmatprep.mubr.msk.bf16.mxu1 %vm1769_vm2, %v1672_v40  ;;  %8894 = vmatprep.mubr.msk.f32.mxu0 %vm444_vm1, %v422_v39  ;;  %v9646_v40 = vcombine.high %v2715_v35, %v2719_v36  ;;  %v2720_v42 = vld [vmem:[%s11658_s5 + $0xa8] sm:$0xff]  ;;  %v9651_v43 = vcombine.low %v2715_v35, %v2719_v36 }
  0xf9   : > { %v979_v49 = vpop.f32.mrf.mxu0 }
  0xfa   : > { %v1673_v59 = vpack.c.bf16 %v1553_v45, %v1552_v46  ;;  %v980_v60 = vadd.f32 %v9490_v63, %v979_v49  ;;  %v1555_v62 = vmax.f32 %v985_v47, 0.0  ;;  %11876 = vst [vmem:[#allocation18_spill] sm:$0xff] %v9646_v40  ;;  %11877 = vst [vmem:[#allocation19_spill] sm:$0xff] %v9651_v43  ;;  %v431_v47 = vld [vmem:[%s9219_s12 + $0x3d8] sm:$0xff]  ;;  %v9659_v49 = vcombine.low %v2716_v37, %v2720_v42 }
  0xfb   : > { %v8752_v61 = vpop.f32.mrf.mxu0  ;;  %8895 = vmatmul.mubr.msk.f32.gmra.mxu0 %vm444_vm1, %v423_v48  ;;  %v9657_v48 = vcombine.high %v2716_v37, %v2720_v42  ;;  %3093 = vmatprep.subr.bf16.mxu0 %v9646_v40 }
  0xfc   : > { %v1554_v0 = vmax.f32 %v980_v60, 0.0  ;;  %v995_v2 = vadd.f32 %v8752_v61, %v9490_v63  ;;  %8936 = vmatmul.mubr.msk.bf16.gmra.mxu1 %vm1769_vm2, %v1673_v59  ;;  %8897 = vmatprep.mubr.msk.f32.mxu0 %vm444_vm1, %v424_v58  ;;  %11879 = vst [vmem:[#allocation21_spill] sm:$0xff] %v9659_v49  ;;  %v432_v59 = vld [vmem:[%s9219_s12 + $0x3e0] sm:$0xff] }
  0xfd   : > { %v989_v5 = vpop.f32.mrf.mxu0  ;;  %11878 = vst [vmem:[#allocation20_spill] sm:$0xff] %v9657_v48  ;;  %3206 = vmatprep.subr.bf16.mxu1 %v9657_v48  ;;  %3094 = vmatpush1.bf16.msra.mxu0 %v9651_v43 }
  0xfe   : > { %v1674_v7 = vpack.c.bf16 %v1555_v62, %v1554_v0  ;;  %v990_v8 = vadd.f32 %v9490_v63, %v989_v5  ;;  %v1557_v12 = vmax.f32 %v995_v2, 0.0  ;;  %3207 = vmatpush1.bf16.msra.mxu1 %v9659_v49  ;;  %v433_v5 = vld [vmem:[%s9219_s12 + $0x3e8] sm:$0xff] }
  0xff   : > { %v8755_v9 = vpop.f32.mrf.mxu0  ;;  %8898 = vmatmul.mubr.msk.f32.gmra.mxu0 %vm444_vm1, %v425_v3 }
 0x100   : > { %v1556_v13 = vmax.f32 %v990_v8, 0.0  ;;  %v1005_v14 = vadd.f32 %v8755_v9, %v9490_v63  ;;  %8939 = vmatprep.mubr.msk.bf16.mxu1 %vm1769_vm2, %v1674_v7  ;;  %8900 = vmatprep.mubr.msk.f32.mxu0 %vm444_vm1, %v426_v6  ;;  %v434_v7 = vld [vmem:[%s9219_s12 + $0x3f0] sm:$0xff] }
 0x101   : > { %v999_v17 = vpop.f32.mrf.mxu0 }
 0x102   : > { %v1675_v20 = vpack.c.bf16 %v1557_v12, %v1556_v13  ;;  %v1000_v21 = vadd.f32 %v9490_v63, %v999_v17  ;;  %v1559_v23 = vmax.f32 %v1005_v14, 0.0  ;;  %v435_v17 = vld [vmem:[%s9219_s12 + $0x3f8] sm:$0xff] }
 0x103   : > { %v8758_v22 = vpop.f32.mrf.mxu0  ;;  %8901 = vmatmul.mubr.msk.f32.gmra.mxu0 %vm444_vm1, %v427_v15 }
 0x104   : > { %v1558_v24 = vmax.f32 %v1000_v21, 0.0  ;;  %v1015_v25 = vadd.f32 %v8758_v22, %v9490_v63  ;;  %8940 = vmatmul.mubr.msk.bf16.gmra.mxu1 %vm1769_vm2, %v1675_v20  ;;  %8903 = vmatprep.mubr.msk.f32.mxu0 %vm444_vm1, %v428_v18 }
 0x105   : > { %v1009_v28 = vpop.f32.mrf.mxu0 }
 0x106   : > { %v1676_v33 = vpack.c.bf16 %v1559_v23, %v1558_v24  ;;  %v1010_v34 = vadd.f32 %v9490_v63, %v1009_v28  ;;  %v1561_v38 = vmax.f32 %v1015_v25, 0.0 }
 0x107   : > { %v8761_v39 = vpop.f32.mrf.mxu0  ;;  %8904 = vmatmul.mubr.msk.f32.gmra.mxu0 %vm444_vm1, %v429_v26 }
 0x108   : > { %v1560_v45 = vmax.f32 %v1010_v34, 0.0  ;;  %v1025_v46 = vadd.f32 %v8761_v39, %v9490_v63  ;;  %8943 = vmatprep.mubr.msk.bf16.mxu1 %vm1769_vm2, %v1676_v33  ;;  %8906 = vmatprep.mubr.msk.f32.mxu0 %vm444_vm1, %v430_v32 }
 0x109   : > { %v1019_v58 = vpop.f32.mrf.mxu0 }
 0x10a   : > { %v1677_v60 = vpack.c.bf16 %v1561_v38, %v1560_v45  ;;  %v1020_v61 = vadd.f32 %v9490_v63, %v1019_v58  ;;  %v1563_v0 = vmax.f32 %v1025_v46, 0.0 }
 0x10b   : > { %v8764_v62 = vpop.f32.mrf.mxu0  ;;  %8907 = vmatmul.mubr.msk.f32.gmra.mxu0 %vm444_vm1, %v431_v47 }
 0x10c   : > { %v1562_v2 = vmax.f32 %v1020_v61, 0.0  ;;  %v1035_v3 = vadd.f32 %v8764_v62, %v9490_v63  ;;  %8944 = vmatmul.mubr.msk.bf16.gmra.mxu1 %vm1769_vm2, %v1677_v60  ;;  %8909 = vmatprep.mubr.msk.f32.mxu0 %vm444_vm1, %v432_v59 }
 0x10d   : > { %v1029_v6 = vpop.f32.mrf.mxu0 }
 0x10e   : > { %v1678_v8 = vpack.c.bf16 %v1563_v0, %v1562_v2  ;;  %v1030_v9 = vadd.f32 %v9490_v63, %v1029_v6  ;;  %v1565_v13 = vmax.f32 %v1035_v3, 0.0 }
 0x10f   : > { %v8767_v12 = vpop.f32.mrf.mxu0  ;;  %8910 = vmatmul.mubr.msk.f32.gmra.mxu0 %vm444_vm1, %v433_v5 }
 0x110   : > { %v1564_v14 = vmax.f32 %v1030_v9, 0.0  ;;  %v1045_v15 = vadd.f32 %v8767_v12, %v9490_v63  ;;  %8947 = vmatprep.mubr.msk.bf16.mxu1 %vm1769_vm2, %v1678_v8  ;;  %8912 = vmatprep.mubr.msk.f32.mxu0 %vm444_vm1, %v434_v7 }
 0x111   : > { %v1039_v18 = vpop.f32.mrf.mxu0 }
 0x112   : > { %v1679_v20 = vpack.c.bf16 %v1565_v13, %v1564_v14  ;;  %v1040_v21 = vadd.f32 %v9490_v63, %v1039_v18  ;;  %v1567_v23 = vmax.f32 %v1045_v15, 0.0  ;;  %v2711_v18 = vld [vmem:[%s11658_s5 + $0x60] sm:$0xff] }
 0x113   : > { %v8770_v22 = vpop.f32.mrf.mxu0  ;;  %8913 = vmatmul.mubr.msk.f32.gmra.mxu0 %vm444_vm1, %v435_v17  ;;  %v2707_v17 = vld [vmem:[%s11658_s5 + $0x40] sm:$0xff] }
 0x114   : > { %v1566_v24 = vmax.f32 %v1040_v21, 0.0  ;;  %v1055_v25 = vadd.f32 %v8770_v22, %v9490_v63  ;;  %8948 = vmatmul.mubr.msk.bf16.gmra.mxu1 %vm1769_vm2, %v1679_v20  ;;  %v2708_v20 = vld [vmem:[%s11658_s5 + $0x48] sm:$0xff] }
 0x115   : > { %v1049_v26 = vpop.f32.mrf.mxu0 }
 0x116   : > { %v1680_v28 = vpack.c.bf16 %v1567_v23, %v1566_v24  ;;  %v1050_v32 = vadd.f32 %v9490_v63, %v1049_v26  ;;  %v1569_v34 = vmax.f32 %v1055_v25, 0.0  ;;  %v9705_v23 = vcombine.high %v2707_v17, %v2711_v18  ;;  %v2712_v24 = vld [vmem:[%s11658_s5 + $0x68] sm:$0xff] }
 0x117   : > { %v8773_v33 = vpop.f32.mrf.mxu0  ;;  %v9710_v25 = vcombine.low %v2707_v17, %v2711_v18 }
 0x118   : > { %v1568_v35 = vmax.f32 %v1050_v32, 0.0  ;;  %v1065_v36 = vadd.f32 %v8773_v33, %v9490_v63  ;;  %8951 = vmatprep.mubr.msk.bf16.mxu1 %vm1769_vm2, %v1680_v28  ;;  %11880 = vst [vmem:[#allocation22_spill] sm:$0xff] %v9705_v23  ;;  %v9714_v32 = vcombine.high %v2708_v20, %v2712_v24  ;;  %v9716_v33 = vcombine.low %v2708_v20, %v2712_v24 }
 0x119   : > { %v1059_v37 = vpop.f32.mrf.mxu0  ;;  %11881 = vst [vmem:[#allocation23_spill] sm:$0xff] %v9710_v25  ;;  %3095 = vmatprep.subr.bf16.mxu0 %v9705_v23 }
 0x11a   : > { %v1681_v38 = vpack.c.bf16 %v1569_v34, %v1568_v35  ;;  %v1060_v39 = vadd.f32 %v9490_v63, %v1059_v37  ;;  %v1571_v45 = vmax.f32 %v1065_v36, 0.0  ;;  %11882 = vst [vmem:[#allocation24_spill] sm:$0xff] %v9714_v32  ;;  %11883 = vst [vmem:[#allocation25_spill] sm:$0xff] %v9716_v33  ;;  %3208 = vmatprep.subr.bf16.mxu1 %v9714_v32  ;;  %3096 = vmatpush1.bf16.msra.mxu0 %v9710_v25  ;;  %v2699_v37 = vld [vmem:[%s11658_s5] sm:$0xff] }
 0x11b   : > { %v8776_v42 = vpop.f32.mrf.mxu0  ;;  %3209 = vmatpush1.bf16.msra.mxu1 %v9716_v33 }
 0x11c   : > { %v1570_v46 = vmax.f32 %v1060_v39, 0.0  ;;  %v1075_v47 = vadd.f32 %v8776_v42, %v9490_v63  ;;  %8952 = vmatmul.mubr.msk.bf16.gmra.mxu1 %vm1769_vm2, %v1681_v38  ;;  %v2703_v38 = vld [vmem:[%s11658_s5 + $0x20] sm:$0xff] }
 0x11d   : > { %v1069_v58 = vpop.f32.mrf.mxu0  ;;  %v9729_v42 = vcombine.high %v2699_v37, %v2703_v38 }
 0x11e   : > { %v1682_v59 = vpack.c.bf16 %v1571_v45, %v1570_v46  ;;  %v1070_v60 = vadd.f32 %v9490_v63, %v1069_v58  ;;  %v1573_v62 = vmax.f32 %v1075_v47, 0.0  ;;  %v9733_v58 = vcombine.low %v2699_v37, %v2703_v38 }
 0x11f   : > { %v8779_v61 = vpop.f32.mrf.mxu0  ;;  %11884 = vst [vmem:[#allocation26_spill] sm:$0xff] %v9729_v42  ;;  %3097 = vmatprep.subr.bf16.mxu0 %v9729_v42 }
 0x120   : > { %v1572_v0 = vmax.f32 %v1070_v60, 0.0  ;;  %v1085_v2 = vadd.f32 %v8779_v61, %v9490_v63  ;;  %8955 = vmatprep.mubr.msk.bf16.mxu1 %vm1769_vm2, %v1682_v59  ;;  %11885 = vst [vmem:[#allocation27_spill] sm:$0xff] %v9733_v58  ;;  %3098 = vmatpush1.bf16.msra.mxu0 %v9733_v58 }
 0x121   : > { %v1079_v3 = vpop.f32.mrf.mxu0 }
 0x122   : > { %v1683_v5 = vpack.c.bf16 %v1573_v62, %v1572_v0  ;;  %v1080_v6 = vadd.f32 %v9490_v63, %v1079_v3  ;;  %v1575_v8 = vmax.f32 %v1085_v2, 0.0 }
 0x123   : > { %v8782_v7 = vpop.f32.mrf.mxu0 }
 0x124   : > { %v1574_v9 = vmax.f32 %v1080_v6, 0.0  ;;  %v1095_v12 = vadd.f32 %v8782_v7, %v9490_v63  ;;  %8956 = vmatmul.mubr.msk.bf16.gmra.mxu1 %vm1769_vm2, %v1683_v5  ;;  %v11660_v5 = vmov 0  }
 0x125   : > { %v1089_v13 = vpop.f32.mrf.mxu0  ;;  %3115 = vmatprep.mubr.bf16.mxu0 %v11660_v5 }
 0x126   : > { %v1684_v14 = vpack.c.bf16 %v1575_v8, %v1574_v9  ;;  %v1090_v15 = vadd.f32 %v9490_v63, %v1089_v13  ;;  %v1577_v21 = vmax.f32 %v1095_v12, 0.0 }
 0x127   : > { %v8785_v22 = vpop.f32.mrf.mxu0 }
 0x128   : > { %v1576_v26 = vmax.f32 %v1090_v15, 0.0  ;;  %v1105_v28 = vadd.f32 %v8785_v22, %v9490_v63  ;;  %8959 = vmatprep.mubr.msk.bf16.mxu1 %vm1769_vm2, %v1684_v14 }
 0x129   : > { %v1099_v34 = vpop.f32.mrf.mxu0 }
 0x12a   : > { %v1685_v35 = vpack.c.bf16 %v1577_v21, %v1576_v26  ;;  %v1100_v36 = vadd.f32 %v9490_v63, %v1099_v34  ;;  %v1579_v45 = vmax.f32 %v1105_v28, 0.0 }
 0x12b   : > { %v8788_v39 = vpop.f32.mrf.mxu0 }
 0x12c   : > { %v1578_v46 = vmax.f32 %v1100_v36, 0.0  ;;  %v1115_v47 = vadd.f32 %v8788_v39, %v9490_v63  ;;  %8960 = vmatmul.mubr.msk.bf16.gmra.mxu1 %vm1769_vm2, %v1685_v35 }
 0x12d   : > { %v1109_v59 = vpop.f32.mrf.mxu0 }
 0x12e   : > { %v1686_v60 = vpack.c.bf16 %v1579_v45, %v1578_v46  ;;  %v1110_v61 = vadd.f32 %v9490_v63, %v1109_v59  ;;  %v1581_v0 = vmax.f32 %v1115_v47, 0.0 }
 0x12f   : > { %v8791_v62 = vpop.f32.mrf.mxu0 }
 0x130   : > { %v1580_v2 = vmax.f32 %v1110_v61, 0.0  ;;  %v1125_v3 = vadd.f32 %v8791_v62, %v9490_v63  ;;  %8963 = vmatprep.mubr.msk.bf16.mxu1 %vm1769_vm2, %v1686_v60 }
 0x131   : > { %v1119_v6 = vpop.f32.mrf.mxu0 }
 0x132   : > { %v1687_v7 = vpack.c.bf16 %v1581_v0, %v1580_v2  ;;  %v1120_v8 = vadd.f32 %v9490_v63, %v1119_v6  ;;  %v1583_v12 = vmax.f32 %v1125_v3, 0.0 }
 0x133   : > { %v8794_v9 = vpop.f32.mrf.mxu0 }
 0x134   : > { %v1582_v13 = vmax.f32 %v1120_v8, 0.0  ;;  %v1135_v14 = vadd.f32 %v8794_v9, %v9490_v63  ;;  %8964 = vmatmul.mubr.msk.bf16.gmra.mxu1 %vm1769_vm2, %v1687_v7 }
 0x135   : > { %v1129_v15 = vpop.f32.mrf.mxu0 }
 0x136   : > { %v1688_v17 = vpack.c.bf16 %v1583_v12, %v1582_v13  ;;  %v1130_v18 = vadd.f32 %v9490_v63, %v1129_v15  ;;  %v1585_v21 = vmax.f32 %v1135_v14, 0.0 }
 0x137   : > { %v8797_v20 = vpop.f32.mrf.mxu0 }
 0x138   : > { %v1584_v22 = vmax.f32 %v1130_v18, 0.0  ;;  %v1145_v24 = vadd.f32 %v8797_v20, %v9490_v63  ;;  %8967 = vmatprep.mubr.msk.bf16.mxu1 %vm1769_vm2, %v1688_v17  ;;  %v2700_v17 = vld [vmem:[%s11658_s5 + $0x8] sm:$0xff] }
 0x139   : > { %v1139_v26 = vpop.f32.mrf.mxu0  ;;  %v2704_v18 = vld [vmem:[%s11658_s5 + $0x28] sm:$0xff] }
 0x13a   : > { %v1689_v28 = vpack.c.bf16 %v1585_v21, %v1584_v22  ;;  %v1140_v34 = vadd.f32 %v9490_v63, %v1139_v26  ;;  %v1587_v36 = vmax.f32 %v1145_v24, 0.0  ;;  %v9765_v22 = vcombine.high %v2700_v17, %v2704_v18 }
 0x13b   : > { %v8800_v35 = vpop.f32.mrf.mxu0  ;;  %v9767_v24 = vcombine.low %v2700_v17, %v2704_v18 }
 0x13c   : > { %v1586_v37 = vmax.f32 %v1140_v34, 0.0  ;;  %v1155_v38 = vadd.f32 %v8800_v35, %v9490_v63  ;;  %8968 = vmatmul.mubr.msk.bf16.gmra.mxu1 %vm1769_vm2, %v1689_v28  ;;  %11886 = vst [vmem:[#allocation28_spill] sm:$0xff] %v9765_v22  ;;  %3210 = vmatprep.subr.bf16.mxu1 %v9765_v22 }
 0x13d   : > { %v1149_v39 = vpop.f32.mrf.mxu0  ;;  %11887 = vst [vmem:[#allocation29_spill] sm:$0xff] %v9767_v24  ;;  %3211 = vmatpush1.bf16.msra.mxu1 %v9767_v24 }
 0x13e   : > { %v1690_v45 = vpack.c.bf16 %v1587_v36, %v1586_v37  ;;  %v1150_v46 = vadd.f32 %v9490_v63, %v1149_v39  ;;  %v1589_v59 = vmax.f32 %v1155_v38, 0.0 }
 0x13f   : > { %v8803_v47 = vpop.f32.mrf.mxu0 }
 0x140   : > { %v1588_v60 = vmax.f32 %v1150_v46, 0.0  ;;  %v1165_v61 = vadd.f32 %v8803_v47, %v9490_v63  ;;  %8971 = vmatprep.mubr.msk.bf16.mxu1 %vm1769_vm2, %v1690_v45  ;;  %v2757_v47 = vld [vmem:[%s11658_s5 + $0x1d0] sm:$0xff] }
 0x141   : > { %v1159_v62 = vpop.f32.mrf.mxu0 }
 0x142   : > { %v1691_v0 = vpack.c.bf16 %v1589_v59, %v1588_v60  ;;  %v1160_v2 = vadd.f32 %v9490_v63, %v1159_v62  ;;  %v1591_v6 = vmax.f32 %v1165_v61, 0.0  ;;  %v2761_v59 = vld [vmem:[%s11658_s5 + $0x1f0] sm:$0xff] }
 0x143   : > { %v8806_v3 = vpop.f32.mrf.mxu0  ;;  %v9781_v61 = vcombine.high %v2757_v47, %v2761_v59 }
 0x144   : > { %v1590_v7 = vmax.f32 %v1160_v2, 0.0  ;;  %v1175_v8 = vadd.f32 %v8806_v3, %v9490_v63  ;;  %8972 = vmatmul.mubr.msk.bf16.gmra.mxu1 %vm1769_vm2, %v1691_v0  ;;  %v9785_v3 = vcombine.low %v2757_v47, %v2761_v59 }
 0x145   : > { %v1169_v9 = vpop.f32.mrf.mxu0  ;;  %11888 = vst [vmem:[#allocation30_spill] sm:$0xff] %v9781_v61  ;;  %3309 = vmatprep.subr.bf16.mxu0 %v9781_v61 }
 0x146   : > { %v1692_v12 = vpack.c.bf16 %v1591_v6, %v1590_v7  ;;  %v1170_v13 = vadd.f32 %v9490_v63, %v1169_v9  ;;  %v1593_v14 = vmax.f32 %v1175_v8, 0.0  ;;  %11889 = vst [vmem:[#allocation31_spill] sm:$0xff] %v9785_v3 }
 0x147   : > { %v8809_v15 = vpop.f32.mrf.mxu0 }
 0x148   : > { %v1592_v20 = vmax.f32 %v1170_v13, 0.0  ;;  %v1185_v21 = vadd.f32 %v8809_v15, %v9490_v63  ;;  %8975 = vmatprep.mubr.msk.bf16.mxu1 %vm1769_vm2, %v1692_v12 }
 0x149   : > { %v1179_v26 = vpop.f32.mrf.mxu0 }
 0x14a   : > { %v1693_v28 = vpack.c.bf16 %v1593_v14, %v1592_v20  ;;  %v1180_v34 = vadd.f32 %v9490_v63, %v1179_v26  ;;  %v1595_v36 = vmax.f32 %v1185_v21, 0.0 }
 0x14b   : > { %v8812_v35 = vpop.f32.mrf.mxu0 }
 0x14c   : > { %v1594_v37 = vmax.f32 %v1180_v34, 0.0  ;;  %v1195_v38 = vadd.f32 %v8812_v35, %v9490_v63  ;;  %8976 = vmatmul.mubr.msk.bf16.gmra.mxu1 %vm1769_vm2, %v1693_v28 }
 0x14d   : > { %v1189_v39 = vpop.f32.mrf.mxu0 }
 0x14e   : > { %v1694_v45 = vpack.c.bf16 %v1595_v36, %v1594_v37  ;;  %v1190_v46 = vadd.f32 %v9490_v63, %v1189_v39  ;;  %v1597_v62 = vmax.f32 %v1195_v38, 0.0 }
 0x14f   : > { %v8815_v60 = vpop.f32.mrf.mxu0 }
 0x150   : > { %v1596_v0 = vmax.f32 %v1190_v46, 0.0  ;;  %v1205_v2 = vadd.f32 %v8815_v60, %v9490_v63  ;;  %8979 = vmatprep.mubr.msk.bf16.mxu1 %vm1769_vm2, %v1694_v45 }
 0x151   : > { %v1199_v6 = vpop.f32.mrf.mxu0 }
 0x152   : > { %v1695_v7 = vpack.c.bf16 %v1597_v62, %v1596_v0  ;;  %v1200_v8 = vadd.f32 %v9490_v63, %v1199_v6  ;;  %v1599_v12 = vmax.f32 %v1205_v2, 0.0 }
 0x153   : > { %v8818_v9 = vpop.f32.mrf.mxu0 }
 0x154   : > { %v1598_v13 = vmax.f32 %v1200_v8, 0.0  ;;  %v1215_v14 = vadd.f32 %v8818_v9, %v9490_v63  ;;  %8980 = vmatmul.mubr.msk.bf16.gmra.mxu1 %vm1769_vm2, %v1695_v7 }
 0x155   : > { %v1209_v15 = vpop.f32.mrf.mxu0 }
 0x156   : > { %v1696_v17 = vpack.c.bf16 %v1599_v12, %v1598_v13  ;;  %v1210_v18 = vadd.f32 %v9490_v63, %v1209_v15  ;;  %v1601_v21 = vmax.f32 %v1215_v14, 0.0 }
 0x157   : > { %v8821_v20 = vpop.f32.mrf.mxu0 }
 0x158   : > { %v1600_v26 = vmax.f32 %v1210_v18, 0.0  ;;  %v1225_v28 = vadd.f32 %v8821_v20, %v9490_v63  ;;  %8983 = vmatprep.mubr.msk.bf16.mxu1 %vm1769_vm2, %v1696_v17 }
 0x159   : > { %v1219_v34 = vpop.f32.mrf.mxu0 }
 0x15a   : > { %v1697_v35 = vpack.c.bf16 %v1601_v21, %v1600_v26  ;;  %v1220_v36 = vadd.f32 %v9490_v63, %v1219_v34  ;;  %v1603_v38 = vmax.f32 %v1225_v28, 0.0  ;;  %v2758_v26 = vld [vmem:[%s11658_s5 + $0x1d8] sm:$0xff] }
 0x15b   : > { %v8824_v37 = vpop.f32.mrf.mxu0  ;;  %v2762_v28 = vld [vmem:[%s11658_s5 + $0x1f8] sm:$0xff] }
 0x15c   : > { %v1602_v39 = vmax.f32 %v1220_v36, 0.0  ;;  %v1235_v45 = vadd.f32 %v8824_v37, %v9490_v63  ;;  %8984 = vmatmul.mubr.msk.bf16.gmra.mxu1 %vm1769_vm2, %v1697_v35  ;;  %v9812_v36 = vcombine.high %v2758_v26, %v2762_v28  ;;  %v9814_v37 = vcombine.low %v2758_v26, %v2762_v28 }
 0x15d   : > { %v1229_v46 = vpop.f32.mrf.mxu0 }
 0x15e   : > { %v1698_v47 = vpack.c.bf16 %v1603_v38, %v1602_v39  ;;  %v1230_v59 = vadd.f32 %v9490_v63, %v1229_v46  ;;  %v1605_v62 = vmax.f32 %v1235_v45, 0.0  ;;  %11890 = vst [vmem:[#allocation32_spill] sm:$0xff] %v9812_v36  ;;  %11891 = vst [vmem:[#allocation33_spill] sm:$0xff] %v9814_v37  ;;  %3422 = vmatprep.subr.bf16.mxu1 %v9812_v36 }
 0x15f   : > { %v8827_v60 = vpop.f32.mrf.mxu0 }
 0x160   : > { %v1604_v0 = vmax.f32 %v1230_v59, 0.0  ;;  %v1245_v2 = vadd.f32 %v8827_v60, %v9490_v63  ;;  %8987 = vmatprep.mubr.msk.bf16.mxu1 %vm1769_vm2, %v1698_v47 }
 0x161   : > { %v1239_v6 = vpop.f32.mrf.mxu0 }
 0x162   : > { %v1699_v7 = vpack.c.bf16 %v1605_v62, %v1604_v0  ;;  %v1240_v8 = vadd.f32 %v9490_v63, %v1239_v6  ;;  %v1607_v12 = vmax.f32 %v1245_v2, 0.0 }
 0x163   : > { %v8830_v9 = vpop.f32.mrf.mxu0 }
 0x164   : > { %v1606_v13 = vmax.f32 %v1240_v8, 0.0  ;;  %v1255_v14 = vadd.f32 %v8830_v9, %v9490_v63  ;;  %8988 = vmatmul.mubr.msk.bf16.gmra.mxu1 %vm1769_vm2, %v1699_v7 }
 0x165   : > { %v1249_v15 = vpop.f32.mrf.mxu0 }
 0x166   : > { %v1700_v17 = vpack.c.bf16 %v1607_v12, %v1606_v13  ;;  %v1250_v18 = vadd.f32 %v9490_v63, %v1249_v15  ;;  %v1609_v20 = vmax.f32 %v1255_v14, 0.0 }
 0x167   : > { %v8833_v21 = vpop.f32.mrf.mxu0 }
 0x168   : > { %v1608_v34 = vmax.f32 %v1250_v18, 0.0  ;;  %v1265_v35 = vadd.f32 %v8833_v21, %v9490_v63  ;;  %8991 = vmatprep.mubr.msk.bf16.mxu1 %vm1769_vm2, %v1700_v17 }
 0x169   : > { %v1259_v38 = vpop.f32.mrf.mxu0 }
 0x16a   : > { %v1701_v39 = vpack.c.bf16 %v1609_v20, %v1608_v34  ;;  %v1260_v45 = vadd.f32 %v9490_v63, %v1259_v38  ;;  %v1611_v47 = vmax.f32 %v1265_v35, 0.0 }
 0x16b   : > { %v8836_v46 = vpop.f32.mrf.mxu0 }
 0x16c   : > { %v1610_v59 = vmax.f32 %v1260_v45, 0.0  ;;  %v1275_v60 = vadd.f32 %v8836_v46, %v9490_v63  ;;  %8992 = vmatmul.mubr.msk.bf16.gmra.mxu1 %vm1769_vm2, %v1701_v39 }
 0x16d   : > { %v1269_v62 = vpop.f32.mrf.mxu0 }
 0x16e   : > { %v1702_v0 = vpack.c.bf16 %v1611_v47, %v1610_v59  ;;  %v1270_v2 = vadd.f32 %v9490_v63, %v1269_v62  ;;  %v1613_v7 = vmax.f32 %v1275_v60, 0.0 }
 0x16f   : > { %v8839_v6 = vpop.f32.mrf.mxu0 }
 0x170   : > { %v1612_v8 = vmax.f32 %v1270_v2, 0.0  ;;  %v1285_v9 = vadd.f32 %v8839_v6, %v9490_v63  ;;  %8995 = vmatprep.mubr.msk.bf16.mxu1 %vm1769_vm2, %v1702_v0 }
 0x171   : > { %v1279_v12 = vpop.f32.mrf.mxu0 }
 0x172   : > { %v1703_v13 = vpack.c.bf16 %v1613_v7, %v1612_v8  ;;  %v1280_v14 = vadd.f32 %v9490_v63, %v1279_v12  ;;  %v1615_v17 = vmax.f32 %v1285_v9, 0.0 }
 0x173   : > { %v8842_v15 = vpop.f32.mrf.mxu0 }
 0x174   : > { %v1614_v18 = vmax.f32 %v1280_v14, 0.0  ;;  %v1295_v20 = vadd.f32 %v8842_v15, %v9490_v63  ;;  %8996 = vmatmul.mubr.msk.bf16.gmra.mxu1 %vm1769_vm2, %v1703_v13 }
 0x175   : > { %v1289_v21 = vpop.f32.mrf.mxu0 }
 0x176   : > { %v1704_v26 = vpack.c.bf16 %v1615_v17, %v1614_v18  ;;  %v1290_v28 = vadd.f32 %v9490_v63, %v1289_v21  ;;  %v1617_v35 = vmax.f32 %v1295_v20, 0.0 }
 0x177   : > { %v8845_v34 = vpop.f32.mrf.mxu0 }
 0x178   : > { %v1616_v38 = vmax.f32 %v1290_v28, 0.0  ;;  %v1305_v39 = vadd.f32 %v8845_v34, %v9490_v63  ;;  %8999 = vmatprep.mubr.msk.bf16.mxu1 %vm1769_vm2, %v1704_v26 }
 0x179   : > { %v1299_v45 = vpop.f32.mrf.mxu0 }
 0x17a   : > { %v1705_v46 = vpack.c.bf16 %v1617_v35, %v1616_v38  ;;  %v1300_v47 = vadd.f32 %v9490_v63, %v1299_v45  ;;  %v1619_v60 = vmax.f32 %v1305_v39, 0.0 }
 0x17b   : > { %v8848_v59 = vpop.f32.mrf.mxu0 }
 0x17c   : > { %v1618_v62 = vmax.f32 %v1300_v47, 0.0  ;;  %v1315_v0 = vadd.f32 %v8848_v59, %v9490_v63  ;;  %9000 = vmatmul.mubr.msk.bf16.gmra.mxu1 %vm1769_vm2, %v1705_v46 }
 0x17d   : > { %v1309_v2 = vpop.f32.mrf.mxu0 }
 0x17e   : > { %v1706_v6 = vpack.c.bf16 %v1619_v60, %v1618_v62  ;;  %v1310_v7 = vadd.f32 %v9490_v63, %v1309_v2  ;;  %v1621_v9 = vmax.f32 %v1315_v0, 0.0 }
 0x17f   : > { %v8851_v8 = vpop.f32.mrf.mxu0 }
 0x180   : > { %v1620_v12 = vmax.f32 %v1310_v7, 0.0  ;;  %v1325_v13 = vadd.f32 %v8851_v8, %v9490_v63  ;;  %9003 = vmatprep.mubr.msk.bf16.mxu1 %vm1769_vm2, %v1706_v6 }
 0x181   : > { %v1319_v14 = vpop.f32.mrf.mxu0 }
 0x182   : > { %v1707_v15 = vpack.c.bf16 %v1621_v9, %v1620_v12  ;;  %v1320_v17 = vadd.f32 %v9490_v63, %v1319_v14  ;;  %v1623_v20 = vmax.f32 %v1325_v13, 0.0 }
 0x183   : > { %v8854_v18 = vpop.f32.mrf.mxu0 }
 0x184   : > { %v1622_v21 = vmax.f32 %v1320_v17, 0.0  ;;  %v1335_v26 = vadd.f32 %v8854_v18, %v9490_v63  ;;  %9004 = vmatmul.mubr.msk.bf16.gmra.mxu1 %vm1769_vm2, %v1707_v15 }
 0x185   : > { %v1329_v28 = vpop.f32.mrf.mxu0 }
 0x186   : > { %v1708_v34 = vpack.c.bf16 %v1623_v20, %v1622_v21  ;;  %v1330_v35 = vadd.f32 %v9490_v63, %v1329_v28  ;;  %v1625_v39 = vmax.f32 %v1335_v26, 0.0  ;;  %v9850_v20 = vld [vmem:[%s11655_s2] ss:$0 sm:$0xff] }
 0x187   : > { %v8857_v38 = vpop.f32.mrf.mxu0 }
 0x188   : > { %v1624_v45 = vmax.f32 %v1330_v35, 0.0  ;;  %v1345_v46 = vadd.f32 %v8857_v38, %v9490_v63  ;;  %9007 = vmatprep.mubr.msk.bf16.mxu1 %vm1769_vm2, %v1708_v34 }
 0x189   : > { %v1339_v47 = vpop.f32.mrf.mxu0 }
 0x18a   : > { %v1709_v59 = vpack.c.bf16 %v1625_v39, %v1624_v45  ;;  %v1340_v60 = vadd.f32 %v9490_v63, %v1339_v47  ;;  %v1627_v0 = vmax.f32 %v1345_v46, 0.0 }
 0x18b   : > { %v8860_v62 = vpop.f32.mrf.mxu0 }
 0x18c   : > { %v1626_v2 = vmax.f32 %v1340_v60, 0.0  ;;  %v1355_v6 = vadd.f32 %v8860_v62, %v9490_v63  ;;  %9008 = vmatmul.mubr.msk.bf16.gmra.mxu1 %vm1769_vm2, %v1709_v59 }
 0x18d   : > { %v1349_v7 = vpop.f32.mrf.mxu0 }
 0x18e   : > { %v1710_v8 = vpack.c.bf16 %v1627_v0, %v1626_v2  ;;  %v1350_v9 = vadd.f32 %v9490_v63, %v1349_v7  ;;  %v1629_v13 = vmax.f32 %v1355_v6, 0.0 }
 0x18f   : > { %v8863_v12 = vpop.f32.mrf.mxu0 }
 0x190   : > { %v1628_v14 = vmax.f32 %v1350_v9, 0.0  ;;  %v1365_v15 = vadd.f32 %v8863_v12, %v9490_v63  ;;  %9011 = vmatprep.mubr.msk.bf16.mxu1 %vm1769_vm2, %v1710_v8 }
 0x191   : > { %v1359_v17 = vpop.f32.mrf.mxu0 }
 0x192   : > { %v1711_v18 = vpack.c.bf16 %v1629_v13, %v1628_v14  ;;  %v1360_v21 = vadd.f32 %v9850_v20, %v1359_v17  ;;  %v1631_v28 = vmax.f32 %v1365_v15, 0.0 }
 0x193   : > { %v8866_v26 = vpop.f32.mrf.mxu0 }
 0x194   : > { %v1630_v34 = vmax.f32 %v1360_v21, 0.0  ;;  %v1375_v35 = vadd.f32 %v9850_v20, %v8866_v26  ;;  %9012 = vmatmul.mubr.msk.bf16.gmra.mxu1 %vm1769_vm2, %v1711_v18 }
 0x195   : > { %v1369_v38 = vpop.f32.mrf.mxu0 }
 0x196   : > { %v1712_v63 = vpack.c.bf16 %v1631_v28, %v1630_v34  ;;  %v1370_v39 = vadd.f32 %v9850_v20, %v1369_v38  ;;  %v1633_v46 = vmax.f32 %v1375_v35, 0.0 }
 0x197   : > { %v8869_v45 = vpop.f32.mrf.mxu0 }
 0x198   : > { %v1632_v47 = vmax.f32 %v1370_v39, 0.0  ;;  %v1385_v59 = vadd.f32 %v9850_v20, %v8869_v45  ;;  %9015 = vmatprep.mubr.msk.bf16.mxu1 %vm1769_vm2, %v1712_v63 }
 0x199   : > { %v1379_v60 = vpop.f32.mrf.mxu0 }
 0x19a   : > { %v1713_v62 = vpack.c.bf16 %v1633_v46, %v1632_v47  ;;  %v1380_v0 = vadd.f32 %v9850_v20, %v1379_v60  ;;  %v1635_v6 = vmax.f32 %v1385_v59, 0.0 }
 0x19b   : > { %v8872_v2 = vpop.f32.mrf.mxu0 }
 0x19c   : > { %v1634_v7 = vmax.f32 %v1380_v0, 0.0  ;;  %v1395_v8 = vadd.f32 %v9850_v20, %v8872_v2  ;;  %9016 = vmatmul.mubr.msk.bf16.gmra.mxu1 %vm1769_vm2, %v1713_v62  ;;  %v9871_v0 = vld [vmem:[%s11657_s4] ss:$0 sm:$0xff] }
 0x19d   : > { %v1389_v9 = vpop.f32.mrf.mxu0 }
 0x19e   : > { %v1714_v12 = vpack.c.bf16 %v1635_v6, %v1634_v7  ;;  %v1390_v13 = vadd.f32 %v9850_v20, %v1389_v9  ;;  %v1637_v15 = vmax.f32 %v1395_v8, 0.0 }
 0x19f   : > { %v8875_v14 = vpop.f32.mrf.mxu0 }
 0x1a0   : > { %v1636_v17 = vmax.f32 %v1390_v13, 0.0  ;;  %v1405_v18 = vadd.f32 %v9850_v20, %v8875_v14  ;;  %9019 = vmatprep.mubr.msk.bf16.mxu1 %vm1769_vm2, %v1714_v12 }
 0x1a1   : > { %v1399_v21 = vpop.f32.mrf.mxu0 }
 0x1a2   : > { %v1715_v26 = vpack.c.bf16 %v1637_v15, %v1636_v17  ;;  %v1400_v28 = vadd.f32 %v9850_v20, %v1399_v21  ;;  %v1639_v35 = vmax.f32 %v1405_v18, 0.0 }
 0x1a3   : > { %v8878_v34 = vpop.f32.mrf.mxu0 }
 0x1a4   : > { %v1638_v38 = vmax.f32 %v1400_v28, 0.0  ;;  %v1415_v63 = vadd.f32 %v9850_v20, %v8878_v34  ;;  %v8925_v39 = vpop.f32.mrf.mxu1  ;;  %9020 = vmatmul.mubr.msk.bf16.gmra.mxu1 %vm1769_vm2, %v1715_v26  ;;  %v2749_v34 = vld [vmem:[%s11658_s5 + $0x190] sm:$0xff] }
 0x1a5   : > { %v1409_v45 = vpop.f32.mrf.mxu0 }
 0x1a6   : > { %v1716_v46 = vpack.c.bf16 %v1639_v35, %v1638_v38  ;;  %v1410_v47 = vadd.f32 %v9850_v20, %v1409_v45  ;;  %v1996_v59 = vpop.f32.mrf.mxu1  ;;  %v1641_v62 = vmax.f32 %v1415_v63, 0.0  ;;  %v2753_v35 = vld [vmem:[%s11658_s5 + $0x1b0] sm:$0xff] }
 0x1a7   : > { %v8881_v60 = vpop.f32.mrf.mxu0  ;;  %v1997_v8 = vadd.f32 %v9871_v0, %v1996_v59 }
 0x1a8   : > { %v1640_v2 = vmax.f32 %v1410_v47, 0.0  ;;  %v1425_v6 = vadd.f32 %v9850_v20, %v8881_v60  ;;  %v8926_v7 = vpop.f32.mrf.mxu1  ;;  %9023 = vmatprep.mubr.msk.bf16.mxu1 %vm1769_vm2, %v1716_v46 }
 0x1a9   : > { %v1419_v9 = vpop.f32.mrf.mxu0  ;;  %v2507_v38 = vmax.f32 %v1997_v8, 0.0  ;;  %v2008_v60 = vadd.f32 %v8926_v7, %v9871_v0  ;;  %v2741_v8 = vld [vmem:[%s11658_s5 + $0x150] sm:$0xff] }
 0x1aa   : > { %v1717_v12 = vpack.c.bf16 %v1641_v62, %v1640_v2  ;;  %v1420_v13 = vadd.f32 %v9850_v20, %v1419_v9  ;;  %v1999_v14 = vpop.f32.mrf.mxu1  ;;  %v1643_v18 = vmax.f32 %v1425_v6, 0.0  ;;  %v9892_v6 = vcombine.high %v2749_v34, %v2753_v35  ;;  %v2745_v7 = vld [vmem:[%s11658_s5 + $0x170] sm:$0xff] }
 0x1ab   : > { %v2000_v15 = vadd.f32 %v9871_v0, %v1999_v14  ;;  %v8884_v17 = vpop.f32.mrf.mxu0 }
 0x1ac   : > { %v1642_v21 = vmax.f32 %v1420_v13, 0.0  ;;  %v1435_v26 = vadd.f32 %v9850_v20, %v8884_v17  ;;  %v9879_v28 = vpop.f32.mrf.mxu1  ;;  %9024 = vmatmul.mubr.msk.bf16.gmra.mxu1 %vm1769_vm2, %v1717_v12  ;;  %11892 = vst [vmem:[#allocation34_spill] sm:$0xff] %v9892_v6 }
 0x1ad   : > { %v2508_v63 = vmax.f32 %v2000_v15, 0.0  ;;  %v1429_v45 = vpop.f32.mrf.mxu0  ;;  %v2005_v15 = vadd.f32 %v8925_v39, %v9871_v0 }
 0x1ae   : > { %v1718_v46 = vpack.c.bf16 %v1643_v18, %v1642_v21  ;;  %v1430_v47 = vadd.f32 %v9850_v20, %v1429_v45  ;;  %v2012_v59 = vpop.f32.mrf.mxu1  ;;  %v1645_v9 = vmax.f32 %v1435_v26, 0.0 }
 0x1af   : > { %v9890_v62 = vpack.c.bf16 %v2508_v63, %v2507_v38  ;;  %v8887_v2 = vpop.f32.mrf.mxu0  ;;  %v9909_v38 = vcombine.low %v2749_v34, %v2753_v35  ;;  %v2510_v63 = vmax.f32 %v2008_v60, 0.0  ;;  %v2737_v34 = vld [vmem:[%s11658_s5 + $0x130] sm:$0xff]  ;;  %v2509_v35 = vmax.f32 %v2005_v15, 0.0 }
 0x1b0   : > { %v1644_v12 = vmax.f32 %v1430_v47, 0.0  ;;  %v1445_v13 = vadd.f32 %v9850_v20, %v8887_v2  ;;  %v9895_v14 = vpop.f32.mrf.mxu1  ;;  %9027 = vmatprep.mubr.msk.bf16.mxu1 %vm1769_vm2, %v1718_v46  ;;  %v9912_v46 = vcombine.high %v2741_v8, %v2745_v7 }
 0x1b1   : > { %v1439_v17 = vpop.f32.mrf.mxu0  ;;  %3116 = vmatmul.mubr.bf16.vlgmr.msra.gmra.mxu0 %v9890_v62  ;;  %11893 = vst [vmem:[#allocation35_spill] sm:$0xff] %v9909_v38 }
 0x1b2   : > { %v1719_v18 = vpack.c.bf16 %v1645_v9, %v1644_v12  ;;  %v1440_v21 = vadd.f32 %v9850_v20, %v1439_v17  ;;  %v2015_v26 = vpop.f32.mrf.mxu1  ;;  %3125 = vmatprep.mubr.bf16.mxu0 %v11660_v5  ;;  %3310 = vmatpush1.bf16.msra.mxu0 %v9785_v3  ;;  %11894 = vst [vmem:[#allocation36_spill] sm:$0xff] %v9912_v46  ;;  %v1647_v39 = vmax.f32 %v1445_v13, 0.0  ;;  %v2733_v12 = vld [vmem:[%s11658_s5 + $0x110] sm:$0xff] }
 0x1b3   : > { %v8890_v45 = vpop.f32.mrf.mxu0  ;;  %3311 = vmatprep.subr.bf16.mxu0 %v9892_v6  ;;  %v2016_v5 = vadd.f32 %v9871_v0, %v2015_v26  ;;  %v9934_v24 = vcombine.high %v2733_v12, %v2737_v34  ;;  %v2013_v26 = vadd.f32 %v9871_v0, %v2012_v59 }
 0x1b4   : > { %v1646_v47 = vmax.f32 %v1440_v21, 0.0  ;;  %v1455_v2 = vadd.f32 %v9850_v20, %v8890_v45  ;;  %v9915_v9 = vpop.f32.mrf.mxu1  ;;  %9028 = vmatmul.mubr.msk.bf16.gmra.mxu1 %vm1769_vm2, %v1719_v18  ;;  %v9928_v45 = vcombine.low %v2741_v8, %v2745_v7  ;;  %v9930_v18 = vpack.c.bf16 %v2510_v63, %v2509_v35  ;;  %v2725_v8 = vld [vmem:[%s11658_s5 + $0xd0] sm:$0xff] }
 0x1b5   : > { %v1449_v60 = vpop.f32.mrf.mxu0  ;;  %11896 = vst [vmem:[#allocation38_spill] sm:$0xff] %v9934_v24  ;;  %v2729_v7 = vld [vmem:[%s11658_s5 + $0xf0] sm:$0xff] }
 0x1b6   : > { %v1720_v17 = vpack.c.bf16 %v1647_v39, %v1646_v47  ;;  %v1450_v13 = vadd.f32 %v9850_v20, %v1449_v60  ;;  %v9925_v21 = vpop.f32.mrf.mxu1  ;;  %3312 = vmatpush1.bf16.msra.mxu0 %v9909_v38  ;;  %11895 = vst [vmem:[#allocation37_spill] sm:$0xff] %v9928_v45  ;;  %v1649_v15 = vmax.f32 %v1455_v2, 0.0  ;;  %v11897_v60 = vmov 0  }
 0x1b7   : > { %v8893_v36 = vpop.f32.mrf.mxu0  ;;  %3313 = vmatprep.subr.bf16.mxu0 %v9912_v46  ;;  %v9954_v32 = vcombine.high %v2725_v8, %v2729_v7 }
 0x1b8   : > { %v1648_v22 = vmax.f32 %v1450_v13, 0.0  ;;  %v1465_v39 = vadd.f32 %v9850_v20, %v8893_v36  ;;  %v9937_v47 = vpop.f32.mrf.mxu1  ;;  %9031 = vmatprep.mubr.msk.bf16.mxu1 %vm1769_vm2, %v1720_v17  ;;  %v9951_v17 = vcombine.low %v2733_v12, %v2737_v34  ;;  %v2512_v13 = vmax.f32 %v2016_v5, 0.0  ;;  %v2721_v5 = vld [vmem:[%s11658_s5 + $0xb0] sm:$0xff] }
 0x1b9   : > { %v1459_v63 = vpop.f32.mrf.mxu0  ;;  %3126 = vmatmul.mubr.bf16.gmra.mxu0 %v9930_v18  ;;  %11899 = vst [vmem:[#allocation40_spill] sm:$0xff] %v9954_v32  ;;  %v2511_v12 = vmax.f32 %v2013_v26, 0.0 }
 0x1ba   : > { %v1721_v2 = vpack.c.bf16 %v1649_v15, %v1648_v22  ;;  %v1460_v36 = vadd.f32 %v9850_v20, %v1459_v63  ;;  %v2031_v35 = vpop.f32.mrf.mxu1  ;;  %3135 = vmatprep.mubr.bf16.mxu0 %v11897_v60  ;;  %3314 = vmatpush1.bf16.msra.mxu0 %v9928_v45  ;;  %11898 = vst [vmem:[#allocation39_spill] sm:$0xff] %v9951_v17  ;;  %v1651_v59 = vmax.f32 %v1465_v39, 0.0  ;;  %v2717_v15 = vld [vmem:[%s11658_s5 + $0x90] sm:$0xff] }
 0x1bb   : > { %v8896_v33 = vpop.f32.mrf.mxu0  ;;  %3315 = vmatprep.subr.bf16.mxu0 %v9934_v24  ;;  %v9974_v24 = vpack.c.bf16 %v2512_v13, %v2511_v12  ;;  %v9977_v38 = vcombine.high %v2717_v15, %v2721_v5 }
 0x1bc   : > { %v1650_v49 = vmax.f32 %v1460_v36, 0.0  ;;  %v1475_v46 = vadd.f32 %v9850_v20, %v8896_v33  ;;  %v9957_v22 = vpop.f32.mrf.mxu1  ;;  %9032 = vmatmul.mubr.msk.bf16.gmra.mxu1 %vm1769_vm2, %v1721_v2  ;;  %v9970_v33 = vcombine.low %v2725_v8, %v2729_v7  ;;  %v2024_v2 = vadd.f32 %v9895_v14, %v9871_v0  ;;  %v2709_v8 = vld [vmem:[%s11658_s5 + $0x50] sm:$0xff] }
 0x1bd   : > { %v1469_v34 = vpop.f32.mrf.mxu0  ;;  %11901 = vst [vmem:[#allocation42_spill] sm:$0xff] %v9977_v38  ;;  %v2713_v14 = vld [vmem:[%s11658_s5 + $0x70] sm:$0xff]  ;;  %v2021_v7 = vadd.f32 %v9879_v28, %v9871_v0 }
 0x1be   : > { %v1722_v63 = vpack.c.bf16 %v1651_v59, %v1650_v49  ;;  %v1470_v39 = vadd.f32 %v9850_v20, %v1469_v34  ;;  %v9967_v36 = vpop.f32.mrf.mxu1  ;;  %3316 = vmatpush1.bf16.msra.mxu0 %v9951_v17  ;;  %11900 = vst [vmem:[#allocation41_spill] sm:$0xff] %v9970_v33  ;;  %v1653_v26 = vmax.f32 %v1475_v46, 0.0  ;;  %v10000_v17 = vcombine.high %v2709_v8, %v2713_v14 }
 0x1bf   : > { %v8899_v45 = vpop.f32.mrf.mxu0  ;;  %3317 = vmatprep.subr.bf16.mxu0 %v9954_v32 }
 0x1c0   : > { %v1652_v49 = vmax.f32 %v1470_v39, 0.0  ;;  %v1485_v59 = vadd.f32 %v9850_v20, %v8899_v45  ;;  %v9980_v34 = vpop.f32.mrf.mxu1  ;;  %9035 = vmatprep.mubr.msk.bf16.mxu1 %vm1769_vm2, %v1722_v63  ;;  %v9997_v63 = vcombine.low %v2717_v15, %v2721_v5  ;;  %v2514_v39 = vmax.f32 %v2024_v2, 0.0  ;;  %11903 = vst [vmem:[#allocation44_spill] sm:$0xff] %v10000_v17  ;;  %v2705_v15 = vld [vmem:[%s11658_s5 + $0x30] sm:$0xff] }
 0x1c1   : > { %v1479_v13 = vpop.f32.mrf.mxu0  ;;  %3136 = vmatmul.mubr.bf16.gmra.mxu0 %v9974_v24  ;;  %v2513_v5 = vmax.f32 %v2021_v7, 0.0 }
 0x1c2   : > { %v1723_v46 = vpack.c.bf16 %v1653_v26, %v1652_v49  ;;  %v1480_v45 = vadd.f32 %v9850_v20, %v1479_v13  ;;  %v9993_v12 = vpop.f32.mrf.mxu1  ;;  %3145 = vmatprep.mubr.bf16.mxu0 %v11897_v60  ;;  %3318 = vmatpush1.bf16.msra.mxu0 %v9970_v33  ;;  %11902 = vst [vmem:[#allocation43_spill] sm:$0xff] %v9997_v63  ;;  %v1655_v28 = vmax.f32 %v1485_v59, 0.0  ;;  %v2701_v13 = vld [vmem:[%s11658_s5 + $0x10] sm:$0xff] }
 0x1c3   : > { %v8902_v32 = vpop.f32.mrf.mxu0  ;;  %3319 = vmatprep.subr.bf16.mxu0 %v9977_v38  ;;  %v10019_v3 = vcombine.high %v2701_v13, %v2705_v15 }
 0x1c4   : > { %v1654_v48 = vmax.f32 %v1480_v45, 0.0  ;;  %v1495_v26 = vadd.f32 %v9850_v20, %v8902_v32  ;;  %v8941_v49 = vpop.f32.mrf.mxu1  ;;  %9036 = vmatmul.mubr.msk.bf16.gmra.mxu1 %vm1769_vm2, %v1723_v46  ;;  %v10012_v32 = vcombine.low %v2709_v8, %v2713_v14  ;;  %v10014_v45 = vpack.c.bf16 %v2514_v39, %v2513_v5 }
 0x1c5   : > { %v1489_v2 = vpop.f32.mrf.mxu0  ;;  %v2032_v46 = vadd.f32 %v9871_v0, %v2031_v35  ;;  %v2069_v27 = vadd.f32 %v8941_v49, %v9871_v0  ;;  %11905 = vst [vmem:[#allocation46_spill] sm:$0xff] %v10019_v3  ;;  %v2029_v8 = vadd.f32 %v9871_v0, %v9925_v21 }
 0x1c6   : > { %v1724_v38 = vpack.c.bf16 %v1655_v28, %v1654_v48  ;;  %v1490_v33 = vadd.f32 %v9850_v20, %v1489_v2  ;;  %v2060_v59 = vpop.f32.mrf.mxu1  ;;  %3320 = vmatpush1.bf16.msra.mxu0 %v9997_v63  ;;  %11904 = vst [vmem:[#allocation45_spill] sm:$0xff] %v10012_v32  ;;  %v1657_v7 = vmax.f32 %v1495_v26, 0.0 }
 0x1c7   : > { %v8905_v6 = vpop.f32.mrf.mxu0  ;;  %3321 = vmatprep.subr.bf16.mxu0 %v10000_v17  ;;  %v2061_v14 = vadd.f32 %v9871_v0, %v2060_v59 }
 0x1c8   : > { %v1656_v48 = vmax.f32 %v1490_v33, 0.0  ;;  %v1505_v28 = vadd.f32 %v9850_v20, %v8905_v6  ;;  %v8942_v2 = vpop.f32.mrf.mxu1  ;;  %9039 = vmatprep.mubr.msk.bf16.mxu1 %vm1769_vm2, %v1724_v38  ;;  %v10031_v6 = vcombine.low %v2701_v13, %v2705_v15  ;;  %v2516_v38 = vmax.f32 %v2032_v46, 0.0 }
 0x1c9   : > { %v2072_v35 = vadd.f32 %v8942_v2, %v9871_v0  ;;  %v1499_v39 = vpop.f32.mrf.mxu0  ;;  %3146 = vmatmul.mubr.bf16.gmra.mxu0 %v10014_v45  ;;  %v2525_v33 = vmax.f32 %v2069_v27, 0.0  ;;  %v2523_v19 = vmax.f32 %v2061_v14, 0.0 }
 0x1ca   : > { %v1725_v49 = vpack.c.bf16 %v1657_v7, %v1656_v48  ;;  %v1500_v5 = vadd.f32 %v9850_v20, %v1499_v39  ;;  %v2063_v26 = vpop.f32.mrf.mxu1  ;;  %3155 = vmatprep.mubr.bf16.mxu0 %v11897_v60  ;;  %3322 = vmatpush1.bf16.msra.mxu0 %v10012_v32  ;;  %11906 = vst [vmem:[#allocation47_spill] sm:$0xff] %v10031_v6  ;;  %v1659_v2 = vmax.f32 %v1505_v28, 0.0  ;;  %v2515_v39 = vmax.f32 %v2029_v8, 0.0 }
 0x1cb   : > { %v2526_v21 = vmax.f32 %v2072_v35, 0.0  ;;  %v2064_v59 = vadd.f32 %v9871_v0, %v2063_v26  ;;  %v8908_v17 = vpop.f32.mrf.mxu0  ;;  %3323 = vmatprep.subr.bf16.mxu0 %v10019_v3  ;;  %v2040_v28 = vadd.f32 %v9937_v47, %v9871_v0 }
 0x1cc   : > { %v1658_v63 = vmax.f32 %v1500_v5, 0.0  ;;  %v1515_v7 = vadd.f32 %v9850_v20, %v8908_v17  ;;  %v8945_v48 = vpop.f32.mrf.mxu1  ;;  %9040 = vmatmul.mubr.msk.bf16.gmra.mxu1 %vm1769_vm2, %v1725_v49  ;;  %v10043_v5 = vpack.c.bf16 %v2516_v38, %v2515_v39 }
 0x1cd   : > { %v10037_v32 = vpack.c.bf16 %v2526_v21, %v2525_v33  ;;  %v2524_v13 = vmax.f32 %v2064_v59, 0.0  ;;  %v1509_v15 = vpop.f32.mrf.mxu0  ;;  %v2085_v8 = vadd.f32 %v8945_v48, %v9871_v0  ;;  %v2037_v21 = vadd.f32 %v9915_v9, %v9871_v0 }
 0x1ce   : > { %v1726_v27 = vpack.c.bf16 %v1659_v2, %v1658_v63  ;;  %v1510_v46 = vadd.f32 %v9850_v20, %v1509_v15  ;;  %v2076_v35 = vpop.f32.mrf.mxu1  ;;  %3324 = vmatpush1.bf16.msra.mxu0 %v10031_v6  ;;  %v1661_v49 = vmax.f32 %v1515_v7, 0.0  ;;  %v2518_v48 = vmax.f32 %v2040_v28, 0.0 }
 0x1cf   : > { %v10045_v17 = vpack.c.bf16 %v2524_v13, %v2523_v19  ;;  %v8911_v14 = vpop.f32.mrf.mxu0  ;;  %3703 = vmatprep.subr.bf16.mxu0 %v9327_v51  ;;  %v2077_v47 = vadd.f32 %v9871_v0, %v2076_v35  ;;  %v2529_v39 = vmax.f32 %v2085_v8, 0.0 }
 0x1d0   : > { %v1660_v26 = vmax.f32 %v1510_v46, 0.0  ;;  %v1525_v63 = vadd.f32 %v9850_v20, %v8911_v14  ;;  %v8946_v33 = vpop.f32.mrf.mxu1  ;;  %9043 = vmatprep.mubr.msk.bf16.mxu1 %vm1769_vm2, %v1726_v27 }
 0x1d1   : > { %v2088_v19 = vadd.f32 %v8946_v33, %v9871_v0  ;;  %v1519_v38 = vpop.f32.mrf.mxu0  ;;  %3156 = vmatmul.mubr.bf16.gmra.mxu0 %v10043_v5  ;;  %v2517_v33 = vmax.f32 %v2037_v21, 0.0 }
 0x1d2   : > { %v1727_v59 = vpack.c.bf16 %v1661_v49, %v1660_v26  ;;  %v1520_v2 = vadd.f32 %v9850_v20, %v1519_v38  ;;  %v2079_v7 = vpop.f32.mrf.mxu1  ;;  %3165 = vmatprep.mubr.bf16.mxu0 %v11897_v60  ;;  %v1663_v9 = vmax.f32 %v1525_v63, 0.0  ;;  %v2527_v49 = vmax.f32 %v2077_v47, 0.0 }
 0x1d3   : > { %v2530_v13 = vmax.f32 %v2088_v19, 0.0  ;;  %v2080_v15 = vadd.f32 %v9871_v0, %v2079_v7  ;;  %v8914_v27 = vpop.f32.mrf.mxu0  ;;  %v10064_v19 = vpack.c.bf16 %v2518_v48, %v2517_v33  ;;  %v2048_v63 = vadd.f32 %v9871_v0, %v9993_v12 }
 0x1d4   : > { %v1662_v46 = vmax.f32 %v1520_v2, 0.0  ;;  %v1535_v35 = vadd.f32 %v9850_v20, %v8914_v27  ;;  %v8949_v14 = vpop.f32.mrf.mxu1  ;;  %9044 = vmatmul.mubr.msk.bf16.gmra.mxu1 %vm1769_vm2, %v1727_v59 }
 0x1d5   : > { %v10061_v26 = vpack.c.bf16 %v2530_v13, %v2529_v39  ;;  %v2528_v38 = vmax.f32 %v2080_v15, 0.0  ;;  %v1529_v51 = vpop.f32.mrf.mxu0  ;;  %v2101_v7 = vadd.f32 %v8949_v14, %v9871_v0  ;;  %v2045_v39 = vadd.f32 %v9871_v0, %v9967_v36 }
 0x1d6   : > { %v1728_v6 = vpack.c.bf16 %v1663_v9, %v1662_v46  ;;  %v1530_v28 = vadd.f32 %v9850_v20, %v1529_v51  ;;  %v2092_v8 = vpop.f32.mrf.mxu1  ;;  %v1665_v59 = vmax.f32 %v1535_v35, 0.0  ;;  %v2520_v13 = vmax.f32 %v2048_v63, 0.0  ;;  %v2750_v63 = vld [vmem:[%s11658_s5 + $0x198] sm:$0xff] }
 0x1d7   : > { %v10068_v2 = vpack.c.bf16 %v2528_v38, %v2527_v49  ;;  %v2093_v51 = vadd.f32 %v9871_v0, %v2092_v8  ;;  %v2533_v15 = vmax.f32 %v2101_v7, 0.0  ;;  %v2056_v49 = vadd.f32 %v9980_v34, %v9871_v0  ;;  %v2754_v7 = vld [vmem:[%s11658_s5 + $0x1b8] sm:$0xff] }
 0x1d8   : > { %v1664_v21 = vmax.f32 %v1530_v28, 0.0  ;;  %v8950_v47 = vpop.f32.mrf.mxu1  ;;  %9047 = vmatprep.mubr.msk.bf16.mxu1 %vm1769_vm2, %v1728_v6  ;;  %v2519_v6 = vmax.f32 %v2045_v39, 0.0 }
 0x1d9   : > { %v2104_v20 = vadd.f32 %v8950_v47, %v9871_v0  ;;  %3166 = vmatmul.mubr.bf16.gmra.mxu0 %v10064_v19  ;;  %v2531_v36 = vmax.f32 %v2093_v51, 0.0  ;;  %v10102_v51 = vcombine.high %v2750_v63, %v2754_v7 }
 0x1da   : > { %v1729_v48 = vpack.c.bf16 %v1665_v59, %v1664_v21  ;;  %v2095_v12 = vpop.f32.mrf.mxu1  ;;  %3175 = vmatprep.mubr.bf16.mxu0 %v11897_v60  ;;  %v10085_v38 = vpack.c.bf16 %v2520_v13, %v2519_v6  ;;  %v2053_v21 = vadd.f32 %v9957_v22, %v9871_v0  ;;  %v2742_v22 = vld [vmem:[%s11658_s5 + $0x158] sm:$0xff] }
 0x1db   : > { %v2534_v27 = vmax.f32 %v2104_v20, 0.0  ;;  %v2096_v9 = vadd.f32 %v9871_v0, %v2095_v12  ;;  %11907 = vst [vmem:[#allocation48_spill] sm:$0xff] %v10102_v51  ;;  %v2522_v20 = vmax.f32 %v2056_v49, 0.0 }
 0x1dc   : > { %v8953_v46 = vpop.f32.mrf.mxu1  ;;  %9048 = vmatmul.mubr.msk.bf16.gmra.mxu1 %vm1769_vm2, %v1729_v48 }
 0x1dd   : > { %v10080_v35 = vpack.c.bf16 %v2534_v27, %v2533_v15  ;;  %v2532_v14 = vmax.f32 %v2096_v9, 0.0  ;;  %3228 = vmatprep.mubr.bf16.mxu1 %v11897_v60  ;;  %v2117_v8 = vadd.f32 %v8953_v46, %v9871_v0  ;;  %v2746_v15 = vld [vmem:[%s11658_s5 + $0x178] sm:$0xff]  ;;  %v10112_v9 = vcombine.low %v2750_v63, %v2754_v7 }
 0x1de   : > { %v2108_v33 = vpop.f32.mrf.mxu1  ;;  %v2521_v46 = vmax.f32 %v2053_v21, 0.0  ;;  %v10119_v49 = vcombine.high %v2742_v22, %v2746_v15  ;;  %v2734_v7 = vld [vmem:[%s11658_s5 + $0x118] sm:$0xff] }
 0x1df   : > { %v10087_v28 = vpack.c.bf16 %v2532_v14, %v2531_v36  ;;  %v2109_v34 = vadd.f32 %v9871_v0, %v2108_v33  ;;  %v2537_v48 = vmax.f32 %v2117_v8, 0.0  ;;  %11908 = vst [vmem:[#allocation49_spill] sm:$0xff] %v10112_v9  ;;  %v2738_v21 = vld [vmem:[%s11658_s5 + $0x138] sm:$0xff] }
 0x1e0   : > { %v8954_v59 = vpop.f32.mrf.mxu1  ;;  %11909 = vst [vmem:[#allocation50_spill] sm:$0xff] %v10119_v49  ;;  %v10121_v8 = vpack.c.bf16 %v2522_v20, %v2521_v46  ;;  %v10136_v20 = vcombine.low %v2742_v22, %v2746_v15  ;;  %v2730_v22 = vld [vmem:[%s11658_s5 + $0xf8] sm:$0xff] }
 0x1e1   : > { %v2120_v47 = vadd.f32 %v8954_v59, %v9871_v0  ;;  %3176 = vmatmul.mubr.bf16.gmra.mxu0 %v10085_v38  ;;  %v2535_v6 = vmax.f32 %v2109_v34, 0.0 }
 0x1e2   : > { %v2111_v39 = vpop.f32.mrf.mxu1  ;;  %3185 = vmatprep.mubr.bf16.mxu0 %v11897_v60  ;;  %11910 = vst [vmem:[#allocation51_spill] sm:$0xff] %v10136_v20 }
 0x1e3   : > { %v2538_v12 = vmax.f32 %v2120_v47, 0.0  ;;  %v2112_v13 = vadd.f32 %v9871_v0, %v2111_v39 }
 0x1e4   : > { %v8957_v27 = vpop.f32.mrf.mxu1  ;;  %3229 = vmatmul.mubr.bf16.vlgmr.msra.gmra.mxu1 %v9890_v62 }
 0x1e5   : > { %v10114_v36 = vpack.c.bf16 %v2538_v12, %v2537_v48  ;;  %v2536_v14 = vmax.f32 %v2112_v13, 0.0  ;;  %3423 = vmatpush1.bf16.msra.mxu1 %v9814_v37  ;;  %3238 = vmatprep.mubr.bf16.mxu1 %v11897_v60  ;;  %v2133_v63 = vadd.f32 %v8957_v27, %v9871_v0  ;;  %v10140_v12 = vcombine.high %v2734_v7, %v2738_v21 }
 0x1e6   : > { %v2124_v33 = vpop.f32.mrf.mxu1  ;;  %3424 = vmatprep.subr.bf16.mxu1 %v10102_v51 }
 0x1e7   : > { %v10123_v59 = vpack.c.bf16 %v2536_v14, %v2535_v6  ;;  %v2125_v47 = vadd.f32 %v9871_v0, %v2124_v33  ;;  %11911 = vst [vmem:[#allocation52_spill] sm:$0xff] %v10140_v12  ;;  %v2541_v13 = vmax.f32 %v2133_v63, 0.0  ;;  %v2726_v6 = vld [vmem:[%s11658_s5 + $0xd8] sm:$0xff]  ;;  %v10154_v63 = vcombine.low %v2734_v7, %v2738_v21 }
 0x1e8   : > { %v8958_v34 = vpop.f32.mrf.mxu1 }
 0x1e9   : > { %v2136_v39 = vadd.f32 %v8958_v34, %v9871_v0  ;;  %3186 = vmatmul.mubr.bf16.gmra.mxu0 %v10121_v8  ;;  %3425 = vmatpush1.bf16.msra.mxu1 %v10112_v9  ;;  %v2539_v14 = vmax.f32 %v2125_v47, 0.0  ;;  %11913 = vst [vmem:[#allocation54_spill] sm:$0xff] %v10154_v63  ;;  %v2718_v47 = vld [vmem:[%s11658_s5 + $0x98] sm:$0xff] }
 0x1ea   : > { %v2127_v48 = vpop.f32.mrf.mxu1  ;;  %3341 = vmatprep.mubr.bf16.mxu0 %v11897_v60  ;;  %3426 = vmatprep.subr.bf16.mxu1 %v10119_v49 }
 0x1eb   : > { %v2542_v27 = vmax.f32 %v2136_v39, 0.0  ;;  %v2128_v46 = vadd.f32 %v9871_v0, %v2127_v48  ;;  %v10157_v48 = vcombine.high %v2726_v6, %v2730_v22 }
 0x1ec   : > { %v8961_v15 = vpop.f32.mrf.mxu1  ;;  %3239 = vmatmul.mubr.bf16.gmra.mxu1 %v9930_v18 }
 0x1ed   : > { %v10150_v33 = vpack.c.bf16 %v2542_v27, %v2541_v13  ;;  %v2540_v34 = vmax.f32 %v2128_v46, 0.0  ;;  %3248 = vmatprep.mubr.bf16.mxu1 %v11897_v60  ;;  %3427 = vmatpush1.bf16.msra.mxu1 %v10136_v20  ;;  %11914 = vst [vmem:[#allocation55_spill] sm:$0xff] %v10157_v48  ;;  %v2149_v9 = vadd.f32 %v8961_v15, %v9871_v0  ;;  %v2722_v13 = vld [vmem:[%s11658_s5 + $0xb8] sm:$0xff] }
 0x1ee   : > { %v2140_v39 = vpop.f32.mrf.mxu1  ;;  %3428 = vmatprep.subr.bf16.mxu1 %v10140_v12  ;;  %v10172_v46 = vcombine.low %v2726_v6, %v2730_v22  ;;  %v2714_v6 = vld [vmem:[%s11658_s5 + $0x78] sm:$0xff] }
 0x1ef   : > { %11912 = vst [vmem:[#allocation53_spill] sm:$0xff] %v10150_v33  ;;  %v10159_v49 = vpack.c.bf16 %v2540_v34, %v2539_v14  ;;  %v2141_v7 = vadd.f32 %v9871_v0, %v2140_v39  ;;  %v10176_v14 = vcombine.high %v2718_v47, %v2722_v13  ;;  %v2545_v34 = vmax.f32 %v2149_v9, 0.0  ;;  %v2710_v39 = vld [vmem:[%s11658_s5 + $0x58] sm:$0xff] }
 0x1f0   : > { %v8962_v27 = vpop.f32.mrf.mxu1  ;;  %11916 = vst [vmem:[#allocation57_spill] sm:$0xff] %v10172_v46 }
 0x1f1   : > { %11915 = vst [vmem:[#allocation56_spill] sm:$0xff] %v10159_v49  ;;  %v2152_v21 = vadd.f32 %v8962_v27, %v9871_v0  ;;  %3342 = vmatmul.mubr.bf16.vlgmr.msra.gmra.mxu0 %v9890_v62  ;;  %3429 = vmatpush1.bf16.msra.mxu1 %v10154_v63  ;;  %v2543_v27 = vmax.f32 %v2141_v7, 0.0 }
 0x1f2   : > { %v2143_v15 = vpop.f32.mrf.mxu1  ;;  %3351 = vmatprep.mubr.bf16.mxu0 %v11897_v60  ;;  %3430 = vmatprep.subr.bf16.mxu1 %v10157_v48  ;;  %v10195_v48 = vcombine.high %v2710_v39, %v2714_v6 }
 0x1f3   : > { %v2546_v33 = vmax.f32 %v2152_v21, 0.0  ;;  %v2144_v49 = vadd.f32 %v9871_v0, %v2143_v15  ;;  %3704 = vmatpush1.bf16.msra.mxu0 %v9332_v53  ;;  %v10192_v15 = vcombine.low %v2718_v47, %v2722_v13 }
 0x1f4   : > { %v8965_v22 = vpop.f32.mrf.mxu1  ;;  %3249 = vmatmul.mubr.bf16.gmra.mxu1 %v9974_v24  ;;  %3705 = vmatprep.subr.bf16.mxu0 %v9379_v10  ;;  %11919 = vst [vmem:[#allocation60_spill] sm:$0xff] %v10195_v48 }
 0x1f5   : > { %v10188_v9 = vpack.c.bf16 %v2546_v33, %v2545_v34  ;;  %v2544_v21 = vmax.f32 %v2144_v49, 0.0  ;;  %3258 = vmatprep.mubr.bf16.mxu1 %v11897_v60  ;;  %3431 = vmatpush1.bf16.msra.mxu1 %v10172_v46  ;;  %11918 = vst [vmem:[#allocation59_spill] sm:$0xff] %v10192_v15  ;;  %v2165_v12 = vadd.f32 %v8965_v22, %v9871_v0  ;;  %v2702_v49 = vld [vmem:[%s11658_s5 + $0x18] sm:$0xff] }
 0x1f6   : > { %v2156_v53 = vpop.f32.mrf.mxu1  ;;  %3432 = vmatprep.subr.bf16.mxu1 %v10176_v14  ;;  %v2706_v33 = vld [vmem:[%s11658_s5 + $0x38] sm:$0xff]  ;;  %v10212_v34 = vcombine.low %v2710_v39, %v2714_v6 }
 0x1f7   : > { %11917 = vst [vmem:[#allocation58_spill] sm:$0xff] %v10188_v9  ;;  %v10197_v63 = vpack.c.bf16 %v2544_v21, %v2543_v27  ;;  %3706 = vmatpush1.bf16.msra.mxu0 %v9381_v11  ;;  %v2157_v13 = vadd.f32 %v9871_v0, %v2156_v53  ;;  %v10216_v27 = vcombine.high %v2702_v49, %v2706_v33  ;;  %v2549_v21 = vmax.f32 %v2165_v12, 0.0 }
 0x1f8   : > { %v8966_v47 = vpop.f32.mrf.mxu1  ;;  %3707 = vmatprep.subr.bf16.mxu0 %v9423_v30 }
 0x1f9   : > { %11920 = vst [vmem:[#allocation61_spill] sm:$0xff] %v10197_v63  ;;  %v2168_v7 = vadd.f32 %v8966_v47, %v9871_v0  ;;  %3352 = vmatmul.mubr.bf16.gmra.mxu0 %v9930_v18  ;;  %3433 = vmatpush1.bf16.msra.mxu1 %v10192_v15  ;;  %v2547_v39 = vmax.f32 %v2157_v13, 0.0 }
 0x1fa   : > { %v2159_v22 = vpop.f32.mrf.mxu1  ;;  %3361 = vmatprep.mubr.bf16.mxu0 %v11897_v60  ;;  %3434 = vmatprep.subr.bf16.mxu1 %v10195_v48  ;;  %v10226_v48 = vcombine.low %v2702_v49, %v2706_v33 }
 0x1fb   : > { %v2550_v9 = vmax.f32 %v2168_v7, 0.0  ;;  %v2160_v63 = vadd.f32 %v9871_v0, %v2159_v22  ;;  %3708 = vmatpush1.bf16.msra.mxu0 %v9425_v31 }
 0x1fc   : > { %v8969_v53 = vpop.f32.mrf.mxu1  ;;  %3259 = vmatmul.mubr.bf16.gmra.mxu1 %v10014_v45  ;;  %3709 = vmatprep.subr.bf16.mxu0 %v9467_v50  ;;  %11922 = vst [vmem:[#allocation63_spill] sm:$0xff] %v10226_v48 }
 0x1fd   : > { %v10222_v6 = vpack.c.bf16 %v2550_v9, %v2549_v21  ;;  %v2548_v47 = vmax.f32 %v2160_v63, 0.0  ;;  %3268 = vmatprep.mubr.bf16.mxu1 %v11897_v60  ;;  %3435 = vmatpush1.bf16.msra.mxu1 %v10212_v34  ;;  %v2181_v22 = vadd.f32 %v8969_v53, %v9871_v0 }
 0x1fe   : > { %v2172_v12 = vpop.f32.mrf.mxu1  ;;  %3436 = vmatprep.subr.bf16.mxu1 %v10216_v27 }
 0x1ff   : > { %11921 = vst [vmem:[#allocation62_spill] sm:$0xff] %v10222_v6  ;;  %v10229_v7 = vpack.c.bf16 %v2548_v47, %v2547_v39  ;;  %3710 = vmatpush1.bf16.msra.mxu0 %v9469_v52  ;;  %v2173_v63 = vadd.f32 %v9871_v0, %v2172_v12  ;;  %v2553_v33 = vmax.f32 %v2181_v22, 0.0 }
 0x200   : > { %v8970_v50 = vpop.f32.mrf.mxu1  ;;  %3711 = vmatprep.subr.bf16.mxu0 %v9552_v54 }
 0x201   : > { %11923 = vst [vmem:[#allocation64_spill] sm:$0xff] %v10229_v7  ;;  %v2184_v9 = vadd.f32 %v8970_v50, %v9871_v0  ;;  %3362 = vmatmul.mubr.bf16.gmra.mxu0 %v9974_v24  ;;  %3437 = vmatpush1.bf16.msra.mxu1 %v10226_v48  ;;  %v2551_v50 = vmax.f32 %v2173_v63, 0.0 }
 0x202   : > { %v2175_v49 = vpop.f32.mrf.mxu1  ;;  %3371 = vmatprep.mubr.bf16.mxu0 %v11897_v60  ;;  %3816 = vmatprep.subr.bf16.mxu1 %v9336_v55 }
 0x203   : > { %v2554_v13 = vmax.f32 %v2184_v9, 0.0  ;;  %v2176_v21 = vadd.f32 %v9871_v0, %v2175_v49  ;;  %3712 = vmatpush1.bf16.msra.mxu0 %v9554_v57 }
 0x204   : > { %v8973_v53 = vpop.f32.mrf.mxu1  ;;  %3269 = vmatmul.mubr.bf16.gmra.mxu1 %v10043_v5  ;;  %3713 = vmatprep.subr.bf16.mxu0 %v9646_v40 }
 0x205   : > { %v10244_v39 = vpack.c.bf16 %v2554_v13, %v2553_v33  ;;  %v2552_v47 = vmax.f32 %v2176_v21, 0.0  ;;  %3278 = vmatprep.mubr.bf16.mxu1 %v11897_v60  ;;  %v2197_v22 = vadd.f32 %v8973_v53, %v9871_v0 }
 0x206   : > { %v2188_v12 = vpop.f32.mrf.mxu1 }
 0x207   : > { %11924 = vst [vmem:[#allocation65_spill] sm:$0xff] %v10244_v39  ;;  %v10247_v6 = vpack.c.bf16 %v2552_v47, %v2551_v50  ;;  %3714 = vmatpush1.bf16.msra.mxu0 %v9651_v43  ;;  %v2189_v49 = vadd.f32 %v9871_v0, %v2188_v12  ;;  %v2557_v33 = vmax.f32 %v2197_v22, 0.0 }
 0x208   : > { %v8974_v9 = vpop.f32.mrf.mxu1  ;;  %3715 = vmatprep.subr.bf16.mxu0 %v9705_v23 }
 0x209   : > { %11925 = vst [vmem:[#allocation66_spill] sm:$0xff] %v10247_v6  ;;  %v2200_v7 = vadd.f32 %v8974_v9, %v9871_v0  ;;  %3372 = vmatmul.mubr.bf16.gmra.mxu0 %v10014_v45  ;;  %v2555_v50 = vmax.f32 %v2189_v49, 0.0 }
 0x20a   : > { %v2191_v63 = vpop.f32.mrf.mxu1  ;;  %3381 = vmatprep.mubr.bf16.mxu0 %v11897_v60 }
 0x20b   : > { %v2558_v13 = vmax.f32 %v2200_v7, 0.0  ;;  %v2192_v21 = vadd.f32 %v9871_v0, %v2191_v63  ;;  %3716 = vmatpush1.bf16.msra.mxu0 %v9710_v25 }
 0x20c   : > { %v8977_v53 = vpop.f32.mrf.mxu1  ;;  %3279 = vmatmul.mubr.bf16.gmra.mxu1 %v10064_v19  ;;  %3717 = vmatprep.subr.bf16.mxu0 %v9729_v42 }
 0x20d   : > { %v10260_v47 = vpack.c.bf16 %v2558_v13, %v2557_v33  ;;  %v2556_v12 = vmax.f32 %v2192_v21, 0.0  ;;  %3288 = vmatprep.mubr.bf16.mxu1 %v11897_v60  ;;  %v2213_v7 = vadd.f32 %v8977_v53, %v9871_v0 }
 0x20e   : > { %v2204_v9 = vpop.f32.mrf.mxu1 }
 0x20f   : > { %11926 = vst [vmem:[#allocation67_spill] sm:$0xff] %v10260_v47  ;;  %v10263_v39 = vpack.c.bf16 %v2556_v12, %v2555_v50  ;;  %3718 = vmatpush1.bf16.msra.mxu0 %v9733_v58  ;;  %v2205_v63 = vadd.f32 %v9871_v0, %v2204_v9  ;;  %v2561_v33 = vmax.f32 %v2213_v7, 0.0 }
 0x210   : > { %v8978_v22 = vpop.f32.mrf.mxu1  ;;  %3929 = vmatprep.subr.bf16.mxu0 %v9781_v61 }
 0x211   : > { %11927 = vst [vmem:[#allocation68_spill] sm:$0xff] %v10263_v39  ;;  %v2216_v6 = vadd.f32 %v8978_v22, %v9871_v0  ;;  %3382 = vmatmul.mubr.bf16.gmra.mxu0 %v10043_v5  ;;  %v2559_v53 = vmax.f32 %v2205_v63, 0.0 }
 0x212   : > { %v2207_v49 = vpop.f32.mrf.mxu1  ;;  %3391 = vmatprep.mubr.bf16.mxu0 %v11897_v60 }
 0x213   : > { %v2562_v13 = vmax.f32 %v2216_v6, 0.0  ;;  %v2208_v21 = vadd.f32 %v9871_v0, %v2207_v49 }
 0x214   : > { %v8981_v50 = vpop.f32.mrf.mxu1  ;;  %3289 = vmatmul.mubr.bf16.gmra.mxu1 %v10085_v38 }
 0x215   : > { %v10274_v12 = vpack.c.bf16 %v2562_v13, %v2561_v33  ;;  %v2560_v47 = vmax.f32 %v2208_v21, 0.0  ;;  %3298 = vmatprep.mubr.bf16.mxu1 %v11897_v60  ;;  %v2229_v39 = vadd.f32 %v8981_v50, %v9871_v0 }
 0x216   : > { %v2220_v9 = vpop.f32.mrf.mxu1 }
 0x217   : > { %11928 = vst [vmem:[#allocation69_spill] sm:$0xff] %v10274_v12  ;;  %v10277_v22 = vpack.c.bf16 %v2560_v47, %v2559_v53  ;;  %v2221_v7 = vadd.f32 %v9871_v0, %v2220_v9  ;;  %v2565_v63 = vmax.f32 %v2229_v39, 0.0 }
 0x218   : > { %v8982_v61 = vpop.f32.mrf.mxu1 }
 0x219   : > { %11929 = vst [vmem:[#allocation70_spill] sm:$0xff] %v10277_v22  ;;  %v2232_v6 = vadd.f32 %v8982_v61, %v9871_v0  ;;  %3392 = vmatmul.mubr.bf16.gmra.mxu0 %v10064_v19  ;;  %v2563_v47 = vmax.f32 %v2221_v7, 0.0 }
 0x21a   : > { %v2223_v49 = vpop.f32.mrf.mxu1  ;;  %3401 = vmatprep.mubr.bf16.mxu0 %v11897_v60 }
 0x21b   : > { %v2566_v33 = vmax.f32 %v2232_v6, 0.0  ;;  %v2224_v13 = vadd.f32 %v9871_v0, %v2223_v49 }
 0x21c   : > { %v8985_v21 = vpop.f32.mrf.mxu1  ;;  %3299 = vmatmul.mubr.bf16.gmra.mxu1 %v10121_v8 }
 0x21d   : > { %v10286_v53 = vpack.c.bf16 %v2566_v33, %v2565_v63  ;;  %v2564_v50 = vmax.f32 %v2224_v13, 0.0  ;;  %3454 = vmatprep.mubr.bf16.mxu1 %v11897_v60  ;;  %v2245_v12 = vadd.f32 %v8985_v21, %v9871_v0 }
 0x21e   : > { %v2236_v9 = vpop.f32.mrf.mxu1 }
 0x21f   : > { %11930 = vst [vmem:[#allocation71_spill] sm:$0xff] %v10286_v53  ;;  %v10289_v61 = vpack.c.bf16 %v2564_v50, %v2563_v47  ;;  %v2237_v39 = vadd.f32 %v9871_v0, %v2236_v9  ;;  %v2569_v7 = vmax.f32 %v2245_v12, 0.0 }
 0x220   : > { %v8986_v22 = vpop.f32.mrf.mxu1 }
 0x221   : > { %11931 = vst [vmem:[#allocation72_spill] sm:$0xff] %v10289_v61  ;;  %v2248_v6 = vadd.f32 %v8986_v22, %v9871_v0  ;;  %3402 = vmatmul.mubr.bf16.gmra.mxu0 %v10085_v38  ;;  %v2567_v47 = vmax.f32 %v2237_v39, 0.0  ;;  %v11943_v61 = vld [vmem:[#allocation35_spill] sm:$0xff] }
 0x222   : > { %v2239_v49 = vpop.f32.mrf.mxu1  ;;  %3411 = vmatprep.mubr.bf16.mxu0 %v11897_v60 }
 0x223   : > { %v2570_v63 = vmax.f32 %v2248_v6, 0.0  ;;  %v2240_v33 = vadd.f32 %v9871_v0, %v2239_v49 }
 0x224   : > { %v8989_v13 = vpop.f32.mrf.mxu1  ;;  %3455 = vmatmul.mubr.bf16.vlgmr.msra.gmra.mxu1 %v9890_v62 }
 0x225   : > { %v10298_v50 = vpack.c.bf16 %v2570_v63, %v2569_v7  ;;  %v2568_v21 = vmax.f32 %v2240_v33, 0.0  ;;  %3817 = vmatpush1.bf16.msra.mxu1 %v9338_v56  ;;  %3464 = vmatprep.mubr.bf16.mxu1 %v11897_v60  ;;  %v2261_v12 = vadd.f32 %v8989_v13, %v9871_v0 }
 0x226   : > { %v2252_v22 = vpop.f32.mrf.mxu1  ;;  %3818 = vmatprep.subr.bf16.mxu1 %v9518_v29 }
 0x227   : > { %11932 = vst [vmem:[#allocation73_spill] sm:$0xff] %v10298_v50  ;;  %v10303_v9 = vpack.c.bf16 %v2568_v21, %v2567_v47  ;;  %v2253_v49 = vadd.f32 %v9871_v0, %v2252_v22  ;;  %v2573_v7 = vmax.f32 %v2261_v12, 0.0 }
 0x228   : > { %v8990_v6 = vpop.f32.mrf.mxu1 }
 0x229   : > { %11933 = vst [vmem:[#allocation74_spill] sm:$0xff] %v10303_v9  ;;  %v2264_v62 = vadd.f32 %v8990_v6, %v9871_v0  ;;  %3412 = vmatmul.mubr.bf16.gmra.mxu0 %v10121_v8  ;;  %3819 = vmatpush1.bf16.msra.mxu1 %v9533_v41  ;;  %v2571_v13 = vmax.f32 %v2253_v49, 0.0  ;;  %v11941_v9 = vld [vmem:[#allocation20_spill] sm:$0xff] }
 0x22a   : > { %v2255_v39 = vpop.f32.mrf.mxu1  ;;  %3735 = vmatprep.mubr.bf16.mxu0 %v11897_v60  ;;  %3820 = vmatprep.subr.bf16.mxu1 %v9537_v44 }
 0x22b   : > { %v2574_v63 = vmax.f32 %v2264_v62, 0.0  ;;  %v2256_v33 = vadd.f32 %v9871_v0, %v2255_v39 }
 0x22c   : > { %v8993_v47 = vpop.f32.mrf.mxu1  ;;  %3465 = vmatmul.mubr.bf16.gmra.mxu1 %v9930_v18 }
 0x22d   : > { %v10314_v21 = vpack.c.bf16 %v2574_v63, %v2573_v7  ;;  %v2572_v22 = vmax.f32 %v2256_v33, 0.0  ;;  %3474 = vmatprep.mubr.bf16.mxu1 %v11897_v60  ;;  %3821 = vmatpush1.bf16.msra.mxu1 %v9562_v1  ;;  %v2277_v12 = vadd.f32 %v8993_v47, %v9871_v0  ;;  %v11936_v7 = vld [vmem:[#allocation16_spill] sm:$0xff]  ;;  %v10331_v47 = vld [vmem:[%s11657_s4] ss:$0 sm:$0xff] }
 0x22e   : > { %v2268_v6 = vpop.f32.mrf.mxu1  ;;  %3822 = vmatprep.subr.bf16.mxu1 %v9567_v4 }
 0x22f   : > { %11934 = vst [vmem:[#allocation75_spill] sm:$0xff] %v10314_v21  ;;  %v10319_v50 = vpack.c.bf16 %v2572_v22, %v2571_v13  ;;  %v2269_v39 = vadd.f32 %v9871_v0, %v2268_v6  ;;  %v2577_v63 = vmax.f32 %v2277_v12, 0.0  ;;  %v11937_v22 = vld [vmem:[#allocation31_spill] sm:$0xff]  ;;  %v11938_v6 = vld [vmem:[#allocation34_spill] sm:$0xff]  ;;  %v11940_v12 = vld [vmem:[#allocation17_spill] sm:$0xff] }
 0x230   : > { %v8994_v62 = vpop.f32.mrf.mxu1 }
 0x231   : > { %11935 = vst [vmem:[#allocation76_spill] sm:$0xff] %v10319_v50  ;;  %v2280_v18 = vadd.f32 %v8994_v62, %v9871_v0  ;;  %3736 = vmatmul.mubr.bf16.vlgmr.msra.gmra.mxu0 %v10045_v17  ;;  %3823 = vmatpush1.bf16.msra.mxu1 %v9583_v16  ;;  %v2575_v62 = vmax.f32 %v2269_v39, 0.0 }
 0x232   : > { %v2271_v49 = vpop.f32.mrf.mxu1  ;;  %3745 = vmatprep.mubr.bf16.mxu0 %v11897_v60  ;;  %3824 = vmatprep.subr.bf16.mxu1 %v11936_v7 }
 0x233   : > { %v2578_v33 = vmax.f32 %v2280_v18, 0.0  ;;  %v2272_v13 = vadd.f32 %v10331_v47, %v2271_v49  ;;  %3930 = vmatpush1.bf16.msra.mxu0 %v11937_v22  ;;  %v11944_v22 = vld [vmem:[#allocation36_spill] sm:$0xff] }
 0x234   : > { %v8997_v0 = vpop.f32.mrf.mxu1  ;;  %3475 = vmatmul.mubr.bf16.gmra.mxu1 %v9974_v24  ;;  %3931 = vmatprep.subr.bf16.mxu0 %v11938_v6 }
 0x235   : > { %v10337_v21 = vpack.c.bf16 %v2578_v33, %v2577_v63  ;;  %v2576_v50 = vmax.f32 %v2272_v13, 0.0  ;;  %3484 = vmatprep.mubr.bf16.mxu1 %v11897_v60  ;;  %3825 = vmatpush1.bf16.msra.mxu1 %v11940_v12  ;;  %v2293_v49 = vadd.f32 %v10331_v47, %v8997_v0  ;;  %v11945_v33 = vld [vmem:[#allocation21_spill] sm:$0xff]  ;;  %v11954_v12 = vld [vmem:[#allocation40_spill] sm:$0xff] }
 0x236   : > { %v2284_v18 = vpop.f32.mrf.mxu1  ;;  %3826 = vmatprep.subr.bf16.mxu1 %v11941_v9  ;;  %v11950_v9 = vld [vmem:[#allocation25_spill] sm:$0xff] }
 0x237   : > { %11939 = vst [vmem:[#allocation77_spill] sm:$0xff] %v10337_v21  ;;  %v10342_v53 = vpack.c.bf16 %v2576_v50, %v2575_v62  ;;  %3932 = vmatpush1.bf16.msra.mxu0 %v11943_v61  ;;  %v2285_v39 = vadd.f32 %v10331_v47, %v2284_v18  ;;  %v11946_v50 = vld [vmem:[#allocation24_spill] sm:$0xff]  ;;  %v2581_v62 = vmax.f32 %v2293_v49, 0.0  ;;  %v11948_v18 = vld [vmem:[#allocation38_spill] sm:$0xff] }
 0x238   : > { %v8998_v24 = vpop.f32.mrf.mxu1  ;;  %3933 = vmatprep.subr.bf16.mxu0 %v11944_v22  ;;  %v11951_v49 = vld [vmem:[#allocation28_spill] sm:$0xff] }
 0x239   : > { %11942 = vst [vmem:[#allocation78_spill] sm:$0xff] %v10342_v53  ;;  %v2296_v63 = vadd.f32 %v10331_v47, %v8998_v24  ;;  %3746 = vmatmul.mubr.bf16.gmra.mxu0 %v10037_v32  ;;  %3827 = vmatpush1.bf16.msra.mxu1 %v11945_v33  ;;  %v11947_v53 = vld [vmem:[#allocation37_spill] sm:$0xff]  ;;  %v2579_v24 = vmax.f32 %v2285_v39, 0.0 }
 0x23a   : > { %v2287_v13 = vpop.f32.mrf.mxu1  ;;  %3755 = vmatprep.mubr.bf16.mxu0 %v11897_v60  ;;  %3828 = vmatprep.subr.bf16.mxu1 %v11946_v50 }
 0x23b   : > { %v2582_v0 = vmax.f32 %v2296_v63, 0.0  ;;  %v2288_v21 = vadd.f32 %v10331_v47, %v2287_v13  ;;  %3934 = vmatpush1.bf16.msra.mxu0 %v11947_v53  ;;  %v11953_v53 = vld [vmem:[#allocation39_spill] sm:$0xff] }
 0x23c   : > { %v9001_v22 = vpop.f32.mrf.mxu1  ;;  %3485 = vmatmul.mubr.bf16.gmra.mxu1 %v10014_v45  ;;  %3935 = vmatprep.subr.bf16.mxu0 %v11948_v18 }
 0x23d   : > { %v10357_v61 = vpack.c.bf16 %v2582_v0, %v2581_v62  ;;  %v2580_v33 = vmax.f32 %v2288_v21, 0.0  ;;  %3494 = vmatprep.mubr.bf16.mxu1 %v11897_v60  ;;  %3829 = vmatpush1.bf16.msra.mxu1 %v11950_v9  ;;  %v2309_v13 = vadd.f32 %v10331_v47, %v9001_v22  ;;  %v11955_v62 = vld [vmem:[#allocation29_spill] sm:$0xff] }
 0x23e   : > { %v2300_v50 = vpop.f32.mrf.mxu1  ;;  %3830 = vmatprep.subr.bf16.mxu1 %v11951_v49 }
 0x23f   : > { %11949 = vst [vmem:[#allocation79_spill] sm:$0xff] %v10357_v61  ;;  %v10362_v63 = vpack.c.bf16 %v2580_v33, %v2579_v24  ;;  %3936 = vmatpush1.bf16.msra.mxu0 %v11953_v53  ;;  %v2301_v39 = vadd.f32 %v10331_v47, %v2300_v50  ;;  %v11956_v33 = vld [vmem:[#allocation32_spill] sm:$0xff]  ;;  %v2585_v24 = vmax.f32 %v2309_v13, 0.0  ;;  %v11958_v50 = vld [vmem:[#allocation42_spill] sm:$0xff] }
 0x240   : > { %v9002_v45 = vpop.f32.mrf.mxu1  ;;  %3937 = vmatprep.subr.bf16.mxu0 %v11954_v12 }
 0x241   : > { %11952 = vst [vmem:[#allocation80_spill] sm:$0xff] %v10362_v63  ;;  %v2312_v21 = vadd.f32 %v10331_v47, %v9002_v45  ;;  %3756 = vmatmul.mubr.bf16.gmra.mxu0 %v10068_v2  ;;  %3831 = vmatpush1.bf16.msra.mxu1 %v11955_v62  ;;  %v11957_v63 = vld [vmem:[#allocation41_spill] sm:$0xff]  ;;  %v2583_v45 = vmax.f32 %v2301_v39, 0.0 }
 0x242   : > { %v2303_v0 = vpop.f32.mrf.mxu1  ;;  %3765 = vmatprep.mubr.bf16.mxu0 %v11897_v60  ;;  %4042 = vmatprep.subr.bf16.mxu1 %v11956_v33 }
 0x243   : > { %v2586_v22 = vmax.f32 %v2312_v21, 0.0  ;;  %v2304_v61 = vadd.f32 %v10331_v47, %v2303_v0  ;;  %3938 = vmatpush1.bf16.msra.mxu0 %v11957_v63  ;;  %v11961_v21 = vld [vmem:[#allocation43_spill] sm:$0xff]  ;;  %v11962_v63 = vld [vmem:[#allocation44_spill] sm:$0xff] }
 0x244   : > { %v9005_v12 = vpop.f32.mrf.mxu1  ;;  %3495 = vmatmul.mubr.bf16.gmra.mxu1 %v10043_v5  ;;  %3939 = vmatprep.subr.bf16.mxu0 %v11958_v50 }
 0x245   : > { %v10377_v53 = vpack.c.bf16 %v2586_v22, %v2585_v24  ;;  %v2584_v62 = vmax.f32 %v2304_v61, 0.0  ;;  %3504 = vmatprep.mubr.bf16.mxu1 %v11897_v60  ;;  %v2325_v13 = vadd.f32 %v10331_v47, %v9005_v12  ;;  %v11963_v22 = vld [vmem:[#allocation45_spill] sm:$0xff] }
 0x246   : > { %v2316_v49 = vpop.f32.mrf.mxu1 }
 0x247   : > { %11959 = vst [vmem:[#allocation81_spill] sm:$0xff] %v10377_v53  ;;  %v10380_v9 = vpack.c.bf16 %v2584_v62, %v2583_v45  ;;  %3940 = vmatpush1.bf16.msra.mxu0 %v11961_v21  ;;  %v2317_v5 = vadd.f32 %v10331_v47, %v2316_v49  ;;  %v2589_v61 = vmax.f32 %v2325_v13, 0.0  ;;  %v11966_v13 = vld [vmem:[#allocation47_spill] sm:$0xff] }
 0x248   : > { %v9006_v0 = vpop.f32.mrf.mxu1  ;;  %3941 = vmatprep.subr.bf16.mxu0 %v11962_v63 }
 0x249   : > { %11960 = vst [vmem:[#allocation82_spill] sm:$0xff] %v10380_v9  ;;  %v2328_v50 = vadd.f32 %v10331_v47, %v9006_v0  ;;  %3766 = vmatmul.mubr.bf16.gmra.mxu0 %v10061_v26  ;;  %v2587_v45 = vmax.f32 %v2317_v5, 0.0 }
 0x24a   : > { %v2319_v39 = vpop.f32.mrf.mxu1  ;;  %3775 = vmatprep.mubr.bf16.mxu0 %v11897_v60 }
 0x24b   : > { %v2590_v24 = vmax.f32 %v2328_v50, 0.0  ;;  %v2320_v62 = vadd.f32 %v10331_v47, %v2319_v39  ;;  %3942 = vmatpush1.bf16.msra.mxu0 %v11963_v22  ;;  %v11967_v22 = vld [vmem:[#allocation2_spill] sm:$0xff] }
 0x24c   : > { %v9009_v12 = vpop.f32.mrf.mxu1  ;;  %3505 = vmatmul.mubr.bf16.gmra.mxu1 %v10064_v19  ;;  %3943 = vmatprep.subr.bf16.mxu0 %v10019_v3 }
 0x24d   : > { %v10393_v49 = vpack.c.bf16 %v2590_v24, %v2589_v61  ;;  %v2588_v0 = vmax.f32 %v2320_v62, 0.0  ;;  %3514 = vmatprep.mubr.bf16.mxu1 %v11897_v60  ;;  %v2341_v50 = vadd.f32 %v10331_v47, %v9009_v12 }
 0x24e   : > { %v2332_v53 = vpop.f32.mrf.mxu1 }
 0x24f   : > { %11964 = vst [vmem:[#allocation83_spill] sm:$0xff] %v10393_v49  ;;  %v10396_v9 = vpack.c.bf16 %v2588_v0, %v2587_v45  ;;  %3944 = vmatpush1.bf16.msra.mxu0 %v11966_v13  ;;  %v2333_v19 = vadd.f32 %v10331_v47, %v2332_v53  ;;  %v2593_v61 = vmax.f32 %v2341_v50, 0.0 }
 0x250   : > { %v9010_v39 = vpop.f32.mrf.mxu1  ;;  %4331 = vmatprep.subr.bf16.mxu0 %v11967_v22 }
 0x251   : > { %11965 = vst [vmem:[#allocation84_spill] sm:$0xff] %v10396_v9  ;;  %v2344_v3 = vadd.f32 %v10331_v47, %v9010_v39  ;;  %3776 = vmatmul.mubr.bf16.gmra.mxu0 %v10087_v28  ;;  %v2591_v12 = vmax.f32 %v2333_v19, 0.0 }
 0x252   : > { %v2335_v5 = vpop.f32.mrf.mxu1  ;;  %3785 = vmatprep.mubr.bf16.mxu0 %v11897_v60 }
 0x253   : > { %v2594_v24 = vmax.f32 %v2344_v3, 0.0  ;;  %v2336_v62 = vadd.f32 %v10331_v47, %v2335_v5 }
 0x254   : > { %v9013_v45 = vpop.f32.mrf.mxu1  ;;  %3515 = vmatmul.mubr.bf16.gmra.mxu1 %v10085_v38 }
 0x255   : > { %v10407_v0 = vpack.c.bf16 %v2594_v24, %v2593_v61  ;;  %v2592_v49 = vmax.f32 %v2336_v62, 0.0  ;;  %3524 = vmatprep.mubr.bf16.mxu1 %v11897_v60  ;;  %v2357_v9 = vadd.f32 %v10331_v47, %v9013_v45 }
 0x256   : > { %v2348_v53 = vpop.f32.mrf.mxu1 }
 0x257   : > { %11968 = vst [vmem:[#allocation85_spill] sm:$0xff] %v10407_v0  ;;  %v10410_v39 = vpack.c.bf16 %v2592_v49, %v2591_v12  ;;  %v2349_v50 = vadd.f32 %v10331_v47, %v2348_v53  ;;  %v2597_v38 = vmax.f32 %v2357_v9, 0.0 }
 0x258   : > { %v9014_v22 = vpop.f32.mrf.mxu1 }
 0x259   : > { %11969 = vst [vmem:[#allocation86_spill] sm:$0xff] %v10410_v39  ;;  %v2360_v3 = vadd.f32 %v10331_v47, %v9014_v22  ;;  %3786 = vmatmul.mubr.bf16.gmra.mxu0 %v10080_v35  ;;  %v2595_v49 = vmax.f32 %v2349_v50, 0.0 }
 0x25a   : > { %v2351_v5 = vpop.f32.mrf.mxu1  ;;  %3795 = vmatprep.mubr.bf16.mxu0 %v11897_v60 }
 0x25b   : > { %v2598_v19 = vmax.f32 %v2360_v3, 0.0  ;;  %v2352_v61 = vadd.f32 %v10331_v47, %v2351_v5 }
 0x25c   : > { %v9017_v24 = vpop.f32.mrf.mxu1  ;;  %3525 = vmatmul.mubr.bf16.gmra.mxu1 %v10121_v8 }
 0x25d   : > { %v10419_v62 = vpack.c.bf16 %v2598_v19, %v2597_v38  ;;  %v2596_v45 = vmax.f32 %v2352_v61, 0.0  ;;  %3848 = vmatprep.mubr.bf16.mxu1 %v11897_v60  ;;  %v2373_v53 = vadd.f32 %v10331_v47, %v9017_v24 }
 0x25e   : > { %v2364_v12 = vpop.f32.mrf.mxu1 }
 0x25f   : > { %11970 = vst [vmem:[#allocation87_spill] sm:$0xff] %v10419_v62  ;;  %v10422_v22 = vpack.c.bf16 %v2596_v45, %v2595_v49  ;;  %v2365_v9 = vadd.f32 %v10331_v47, %v2364_v12  ;;  %v2601_v8 = vmax.f32 %v2373_v53, 0.0  ;;  %v11977_v62 = vld [vmem:[#allocation52_spill] sm:$0xff] }
 0x260   : > { %v9018_v0 = vpop.f32.mrf.mxu1 }
 0x261   : > { %11971 = vst [vmem:[#allocation88_spill] sm:$0xff] %v10422_v22  ;;  %v2376_v3 = vadd.f32 %v10331_v47, %v9018_v0  ;;  %3796 = vmatmul.mubr.bf16.gmra.mxu0 %v10123_v59  ;;  %v2599_v61 = vmax.f32 %v2365_v9, 0.0  ;;  %v11974_v9 = vld [vmem:[#allocation49_spill] sm:$0xff] }
 0x262   : > { %v2367_v5 = vpop.f32.mrf.mxu1  ;;  %3805 = vmatprep.mubr.bf16.mxu0 %v11897_v60 }
 0x263   : > { %v2602_v50 = vmax.f32 %v2376_v3, 0.0  ;;  %v2368_v38 = vadd.f32 %v10331_v47, %v2367_v5 }
 0x264   : > { %v9021_v19 = vpop.f32.mrf.mxu1  ;;  %3849 = vmatmul.mubr.bf16.vlgmr.msra.gmra.mxu1 %v10045_v17 }
 0x265   : > { %v10431_v49 = vpack.c.bf16 %v2602_v50, %v2601_v8  ;;  %v2600_v24 = vmax.f32 %v2368_v38, 0.0  ;;  %4043 = vmatpush1.bf16.msra.mxu1 %v9814_v37  ;;  %3858 = vmatprep.mubr.bf16.mxu1 %v11897_v60  ;;  %v2389_v12 = vadd.f32 %v10331_v47, %v9021_v19  ;;  %v11975_v50 = vld [vmem:[#allocation50_spill] sm:$0xff] }
 0x266   : > { %v2380_v0 = vpop.f32.mrf.mxu1  ;;  %4044 = vmatprep.subr.bf16.mxu1 %v10102_v51 }
 0x267   : > { %11972 = vst [vmem:[#allocation89_spill] sm:$0xff] %v10431_v49  ;;  %v10436_v45 = vpack.c.bf16 %v2600_v24, %v2599_v61  ;;  %v2381_v3 = vadd.f32 %v10331_v47, %v2380_v0  ;;  %v2605_v38 = vmax.f32 %v2389_v12, 0.0 }
 0x268   : > { %v9022_v53 = vpop.f32.mrf.mxu1 }
 0x269   : > { %11973 = vst [vmem:[#allocation90_spill] sm:$0xff] %v10436_v45  ;;  %v2392_v5 = vadd.f32 %v10331_v47, %v9022_v53  ;;  %3806 = vmatmul.mubr.bf16.gmra.mxu0 %v10114_v36  ;;  %4045 = vmatpush1.bf16.msra.mxu1 %v11974_v9  ;;  %v2603_v19 = vmax.f32 %v2381_v3, 0.0 }
 0x26a   : > { %v2383_v8 = vpop.f32.mrf.mxu1  ;;  %3961 = vmatprep.mubr.bf16.mxu0 %v11897_v60  ;;  %4046 = vmatprep.subr.bf16.mxu1 %v11975_v50 }
 0x26b   : > { %v2606_v49 = vmax.f32 %v2392_v5, 0.0  ;;  %v2384_v61 = vadd.f32 %v10331_v47, %v2383_v8 }
 0x26c   : > { %v9025_v24 = vpop.f32.mrf.mxu1  ;;  %3859 = vmatmul.mubr.bf16.gmra.mxu1 %v10037_v32 }
 0x26d   : > { %v10447_v0 = vpack.c.bf16 %v2606_v49, %v2605_v38  ;;  %v2604_v53 = vmax.f32 %v2384_v61, 0.0  ;;  %3868 = vmatprep.mubr.bf16.mxu1 %v11897_v60  ;;  %4047 = vmatpush1.bf16.msra.mxu1 %v10136_v20  ;;  %v2405_v12 = vadd.f32 %v10331_v47, %v9025_v24  ;;  %v11979_v49 = vld [vmem:[#allocation54_spill] sm:$0xff]  ;;  %v11980_v61 = vld [vmem:[#allocation55_spill] sm:$0xff] }
 0x26e   : > { %v2396_v45 = vpop.f32.mrf.mxu1  ;;  %4048 = vmatprep.subr.bf16.mxu1 %v11977_v62 }
 0x26f   : > { %11976 = vst [vmem:[#allocation91_spill] sm:$0xff] %v10447_v0  ;;  %v10452_v22 = vpack.c.bf16 %v2604_v53, %v2603_v19  ;;  %v2397_v8 = vadd.f32 %v10331_v47, %v2396_v45  ;;  %v2609_v0 = vmax.f32 %v2405_v12, 0.0 }
 0x270   : > { %v9026_v5 = vpop.f32.mrf.mxu1 }
 0x271   : > { %11978 = vst [vmem:[#allocation92_spill] sm:$0xff] %v10452_v22  ;;  %v2408_v39 = vadd.f32 %v10331_v47, %v9026_v5  ;;  %v3117_v3 = vpop.f32.mrf.mxu0  ;;  %3962 = vmatmul.mubr.bf16.vlgmr.msra.gmra.mxu0 %v10045_v17  ;;  %4049 = vmatpush1.bf16.msra.mxu1 %v11979_v49  ;;  %v11981_v22 = vld [vmem:[#allocation3_spill] sm:$0xff]  ;;  %v2607_v5 = vmax.f32 %v2397_v8, 0.0 }
 0x272   : > { %v2399_v38 = vpop.f32.mrf.mxu1  ;;  %3971 = vmatprep.mubr.bf16.mxu0 %v11897_v60  ;;  %4050 = vmatprep.subr.bf16.mxu1 %v11980_v61 }
 0x273   : > { %v2610_v19 = vmax.f32 %v2408_v39, 0.0  ;;  %v2400_v53 = vadd.f32 %v10331_v47, %v2399_v38  ;;  %v3119_v24 = vpop.f32.mrf.mxu0  ;;  %4332 = vmatpush1.bf16.msra.mxu0 %v11981_v22 }
 0x274   : > { %v9029_v45 = vpop.f32.mrf.mxu1  ;;  %3869 = vmatmul.mubr.bf16.gmra.mxu1 %v10068_v2  ;;  %4333 = vmatprep.subr.bf16.mxu0 %v9379_v10 }
 0x275   : > { %v10465_v62 = vpack.c.bf16 %v2610_v19, %v2609_v0  ;;  %v2608_v49 = vmax.f32 %v2400_v53, 0.0  ;;  %v3121_v20 = vpop.f32.mrf.mxu0  ;;  %3878 = vmatprep.mubr.bf16.mxu1 %v11897_v60  ;;  %4051 = vmatpush1.bf16.msra.mxu1 %v10172_v46  ;;  %v2421_v22 = vadd.f32 %v10331_v47, %v9029_v45 }
 0x276   : > { %v3535_v39 = vmax.f32 %v3117_v3, %v3121_v20  ;;  %v2412_v12 = vpop.f32.mrf.mxu1  ;;  %4052 = vmatprep.subr.bf16.mxu1 %v10176_v14 }
 0x277   : > { %11982 = vst [vmem:[#allocation93_spill] sm:$0xff] %v10465_v62  ;;  %v10470_v38 = vpack.c.bf16 %v2608_v49, %v2607_v5  ;;  %v3123_v61 = vpop.f32.mrf.mxu0  ;;  %4334 = vmatpush1.bf16.msra.mxu0 %v9381_v11  ;;  %v2413_v19 = vadd.f32 %v10331_v47, %v2412_v12  ;;  %v11984_v49 = vld [vmem:[#allocation60_spill] sm:$0xff]  ;;  %v2613_v45 = vmax.f32 %v2421_v22, 0.0 }
 0x278   : > { %v3556_v8 = vmax.f32 %v3119_v24, %v3123_v61  ;;  %v9030_v0 = vpop.f32.mrf.mxu1  ;;  %4335 = vmatprep.subr.bf16.mxu0 %v9423_v30 }
 0x279   : > { %11983 = vst [vmem:[#allocation94_spill] sm:$0xff] %v10470_v38  ;;  %v2424_v53 = vadd.f32 %v10331_v47, %v9030_v0  ;;  %v3127_v62 = vpop.f32.mrf.mxu0  ;;  %3972 = vmatmul.mubr.bf16.gmra.mxu0 %v10037_v32  ;;  %4053 = vmatpush1.bf16.msra.mxu1 %v10192_v15  ;;  %v11985_v38 = vld [vmem:[#allocation7_spill] sm:$0xff]  ;;  %v2611_v15 = vmax.f32 %v2413_v19, 0.0 }
 0x27a   : > { %v3536_v20 = vmax.f32 %v3535_v39, %v3127_v62  ;;  %v2415_v3 = vpop.f32.mrf.mxu1  ;;  %3981 = vmatprep.mubr.bf16.mxu0 %v11897_v60  ;;  %4054 = vmatprep.subr.bf16.mxu1 %v11984_v49 }
 0x27b   : > { %v2614_v61 = vmax.f32 %v2424_v53, 0.0  ;;  %v2416_v24 = vadd.f32 %v10331_v47, %v2415_v3  ;;  %v3129_v5 = vpop.f32.mrf.mxu0  ;;  %4336 = vmatpush1.bf16.msra.mxu0 %v9425_v31 }
 0x27c   : > { %v3557_v12 = vmax.f32 %v3556_v8, %v3129_v5  ;;  %v9033_v0 = vpop.f32.mrf.mxu1  ;;  %3879 = vmatmul.mubr.bf16.gmra.mxu1 %v10061_v26  ;;  %4337 = vmatprep.subr.bf16.mxu0 %v11985_v38 }
 0x27d   : > { %v10485_v62 = vpack.c.bf16 %v2614_v61, %v2613_v45  ;;  %v2612_v39 = vmax.f32 %v2416_v24, 0.0  ;;  %v3131_v30 = vpop.f32.mrf.mxu0  ;;  %3888 = vmatprep.mubr.bf16.mxu1 %v11897_v60  ;;  %4055 = vmatpush1.bf16.msra.mxu1 %v10212_v34  ;;  %v2437_v8 = vadd.f32 %v10331_v47, %v9033_v0 }
 0x27e   : > { %v3537_v22 = vmax.f32 %v3536_v20, %v3131_v30  ;;  %v2428_v53 = vpop.f32.mrf.mxu1  ;;  %4056 = vmatprep.subr.bf16.mxu1 %v10216_v27 }
 0x27f   : > { %11986 = vst [vmem:[#allocation60_spill] sm:$0xff] %v10485_v62  ;;  %v10490_v3 = vpack.c.bf16 %v2612_v39, %v2611_v15  ;;  %v3133_v5 = vpop.f32.mrf.mxu0  ;;  %4338 = vmatpush1.bf16.msra.mxu0 %v9469_v52  ;;  %v2429_v61 = vadd.f32 %v10331_v47, %v2428_v53  ;;  %v2617_v20 = vmax.f32 %v2437_v8, 0.0 }
 0x280   : > { %v3558_v19 = vmax.f32 %v3557_v12, %v3133_v5  ;;  %v9034_v45 = vpop.f32.mrf.mxu1  ;;  %4339 = vmatprep.subr.bf16.mxu0 %v9552_v54 }
 0x281   : > { %11987 = vst [vmem:[#allocation7_spill] sm:$0xff] %v10490_v3  ;;  %v2440_v24 = vadd.f32 %v10331_v47, %v9034_v45  ;;  %v3137_v62 = vpop.f32.mrf.mxu0  ;;  %3982 = vmatmul.mubr.bf16.gmra.mxu0 %v10068_v2  ;;  %4057 = vmatpush1.bf16.msra.mxu1 %v10226_v48  ;;  %v2615_v45 = vmax.f32 %v2429_v61, 0.0 }
 0x282   : > { %v3538_v30 = vmax.f32 %v3537_v22, %v3137_v62  ;;  %v2431_v15 = vpop.f32.mrf.mxu1  ;;  %3991 = vmatprep.mubr.bf16.mxu0 %v11897_v60  ;;  %4444 = vmatprep.subr.bf16.mxu1 %v9336_v55 }
 0x283   : > { %v2618_v12 = vmax.f32 %v2440_v24, 0.0  ;;  %v2432_v0 = vadd.f32 %v10331_v47, %v2431_v15  ;;  %v3139_v39 = vpop.f32.mrf.mxu0  ;;  %4340 = vmatpush1.bf16.msra.mxu0 %v9554_v57 }
 0x284   : > { %v3559_v53 = vmax.f32 %v3558_v19, %v3139_v39  ;;  %v9037_v5 = vpop.f32.mrf.mxu1  ;;  %3889 = vmatmul.mubr.bf16.gmra.mxu1 %v10087_v28  ;;  %4341 = vmatprep.subr.bf16.mxu0 %v9646_v40 }
 0x285   : > { %v10505_v62 = vpack.c.bf16 %v2618_v12, %v2617_v20  ;;  %v2616_v22 = vmax.f32 %v2432_v0, 0.0  ;;  %v3141_v3 = vpop.f32.mrf.mxu0  ;;  %3898 = vmatprep.mubr.bf16.mxu1 %v11897_v60  ;;  %v2453_v15 = vadd.f32 %v10331_v47, %v9037_v5 }
 0x286   : > { %v3539_v8 = vmax.f32 %v3538_v30, %v3141_v3  ;;  %v2444_v24 = vpop.f32.mrf.mxu1 }
 0x287   : > { %11988 = vst [vmem:[#allocation95_spill] sm:$0xff] %v10505_v62  ;;  %v10508_v55 = vpack.c.bf16 %v2616_v22, %v2615_v45  ;;  %v3143_v57 = vpop.f32.mrf.mxu0  ;;  %4342 = vmatpush1.bf16.msra.mxu0 %v9651_v43  ;;  %v2445_v61 = vadd.f32 %v10331_v47, %v2444_v24  ;;  %v2621_v0 = vmax.f32 %v2453_v15, 0.0 }
 0x288   : > { %v3560_v19 = vmax.f32 %v3559_v53, %v3143_v57  ;;  %v9038_v39 = vpop.f32.mrf.mxu1  ;;  %4343 = vmatprep.subr.bf16.mxu0 %v9705_v23 }
 0x289   : > { %11989 = vst [vmem:[#allocation96_spill] sm:$0xff] %v10508_v55  ;;  %v2456_v20 = vadd.f32 %v10331_v47, %v9038_v39  ;;  %v3147_v12 = vpop.f32.mrf.mxu0  ;;  %3992 = vmatmul.mubr.bf16.gmra.mxu0 %v10061_v26  ;;  %v2619_v24 = vmax.f32 %v2445_v61, 0.0 }
 0x28a   : > { %v3540_v3 = vmax.f32 %v3539_v8, %v3147_v12  ;;  %v2447_v30 = vpop.f32.mrf.mxu1  ;;  %4001 = vmatprep.mubr.bf16.mxu0 %v11897_v60 }
 0x28b   : > { %v2622_v5 = vmax.f32 %v2456_v20, 0.0  ;;  %v2448_v45 = vadd.f32 %v10331_v47, %v2447_v30  ;;  %v3149_v22 = vpop.f32.mrf.mxu0  ;;  %4344 = vmatpush1.bf16.msra.mxu0 %v9710_v25  ;;  %v11992_v25 = vld [vmem:[#allocation30_spill] sm:$0xff] }
 0x28c   : > { %v3561_v57 = vmax.f32 %v3560_v19, %v3149_v22  ;;  %v9041_v53 = vpop.f32.mrf.mxu1  ;;  %3899 = vmatmul.mubr.bf16.gmra.mxu1 %v10080_v35  ;;  %4345 = vmatprep.subr.bf16.mxu0 %v9729_v42 }
 0x28d   : > { %v10521_v39 = vpack.c.bf16 %v2622_v5, %v2621_v0  ;;  %v2620_v8 = vmax.f32 %v2448_v45, 0.0  ;;  %v3151_v12 = vpop.f32.mrf.mxu0  ;;  %3908 = vmatprep.mubr.bf16.mxu1 %v11897_v60  ;;  %v2469_v30 = vadd.f32 %v10331_v47, %v9041_v53 }
 0x28e   : > { %v3541_v15 = vmax.f32 %v3540_v3, %v3151_v12  ;;  %v2460_v20 = vpop.f32.mrf.mxu1 }
 0x28f   : > { %11990 = vst [vmem:[#allocation97_spill] sm:$0xff] %v10521_v39  ;;  %v10524_v62 = vpack.c.bf16 %v2620_v8, %v2619_v24  ;;  %v3153_v55 = vpop.f32.mrf.mxu0  ;;  %4346 = vmatpush1.bf16.msra.mxu0 %v9733_v58  ;;  %v2461_v61 = vadd.f32 %v10331_v47, %v2460_v20  ;;  %v2625_v24 = vmax.f32 %v2469_v30, 0.0 }
 0x290   : > { %v3562_v19 = vmax.f32 %v3561_v57, %v3153_v55  ;;  %v9042_v22 = vpop.f32.mrf.mxu1  ;;  %4557 = vmatprep.subr.bf16.mxu0 %v11992_v25 }
 0x291   : > { %11991 = vst [vmem:[#allocation98_spill] sm:$0xff] %v10524_v62  ;;  %v2472_v0 = vadd.f32 %v10331_v47, %v9042_v22  ;;  %v3157_v5 = vpop.f32.mrf.mxu0  ;;  %4002 = vmatmul.mubr.bf16.gmra.mxu0 %v10087_v28  ;;  %v2623_v39 = vmax.f32 %v2461_v61, 0.0 }
 0x292   : > { %v3542_v3 = vmax.f32 %v3541_v15, %v3157_v5  ;;  %v2463_v45 = vpop.f32.mrf.mxu1  ;;  %4011 = vmatprep.mubr.bf16.mxu0 %v11897_v60 }
 0x293   : > { %v2626_v53 = vmax.f32 %v2472_v0, 0.0  ;;  %v2464_v8 = vadd.f32 %v10331_v47, %v2463_v45  ;;  %v3159_v12 = vpop.f32.mrf.mxu0 }
 0x294   : > { %v3563_v55 = vmax.f32 %v3562_v19, %v3159_v12  ;;  %v9045_v57 = vpop.f32.mrf.mxu1  ;;  %3909 = vmatmul.mubr.bf16.gmra.mxu1 %v10123_v59 }
 0x295   : > { %v10535_v20 = vpack.c.bf16 %v2626_v53, %v2625_v24  ;;  %v2624_v22 = vmax.f32 %v2464_v8, 0.0  ;;  %v3161_v62 = vpop.f32.mrf.mxu0  ;;  %3918 = vmatprep.mubr.bf16.mxu1 %v11897_v60  ;;  %v2485_v30 = vadd.f32 %v10331_v47, %v9045_v57 }
 0x296   : > { %v3543_v15 = vmax.f32 %v3542_v3, %v3161_v62  ;;  %v2476_v5 = vpop.f32.mrf.mxu1 }
 0x297   : > { %11993 = vst [vmem:[#allocation99_spill] sm:$0xff] %v10535_v20  ;;  %v10538_v25 = vpack.c.bf16 %v2624_v22, %v2623_v39  ;;  %v3163_v0 = vpop.f32.mrf.mxu0  ;;  %v2477_v19 = vadd.f32 %v10331_v47, %v2476_v5  ;;  %v2629_v62 = vmax.f32 %v2485_v30, 0.0 }
 0x298   : > { %v3564_v45 = vmax.f32 %v3563_v55, %v3163_v0  ;;  %v9046_v58 = vpop.f32.mrf.mxu1 }
 0x299   : > { %11994 = vst [vmem:[#allocation100_spill] sm:$0xff] %v10538_v25  ;;  %v2488_v12 = vadd.f32 %v10331_v47, %v9046_v58  ;;  %v3167_v61 = vpop.f32.mrf.mxu0  ;;  %4012 = vmatmul.mubr.bf16.gmra.mxu0 %v10080_v35  ;;  %v2627_v55 = vmax.f32 %v2477_v19, 0.0 }
 0x29a   : > { %v3544_v24 = vmax.f32 %v3543_v15, %v3167_v61  ;;  %v2479_v53 = vpop.f32.mrf.mxu1  ;;  %4021 = vmatprep.mubr.bf16.mxu0 %v11897_v60 }
 0x29b   : > { %v2630_v3 = vmax.f32 %v2488_v12, 0.0  ;;  %v2480_v39 = vadd.f32 %v10331_v47, %v2479_v53  ;;  %v3169_v8 = vpop.f32.mrf.mxu0 }
 0x29c   : > { %v3565_v57 = vmax.f32 %v3564_v45, %v3169_v8  ;;  %v9049_v22 = vpop.f32.mrf.mxu1  ;;  %3919 = vmatmul.mubr.bf16.gmra.mxu1 %v10114_v36 }
 0x29d   : > { %v10547_v5 = vpack.c.bf16 %v2630_v3, %v2629_v62  ;;  %v2628_v58 = vmax.f32 %v2480_v39, 0.0  ;;  %v3171_v0 = vpop.f32.mrf.mxu0  ;;  %4074 = vmatprep.mubr.bf16.mxu1 %v11897_v60  ;;  %v2501_v30 = vadd.f32 %v10331_v47, %v9049_v22 }
 0x29e   : > { %v3545_v15 = vmax.f32 %v3544_v24, %v3171_v0  ;;  %v2492_v61 = vpop.f32.mrf.mxu1 }
 0x29f   : > { %11995 = vst [vmem:[#allocation101_spill] sm:$0xff] %v10547_v5  ;;  %v10550_v20 = vpack.c.bf16 %v2628_v58, %v2627_v55  ;;  %v3173_v12 = vpop.f32.mrf.mxu0  ;;  %v2493_v45 = vadd.f32 %v10331_v47, %v2492_v61  ;;  %v2633_v24 = vmax.f32 %v2501_v30, 0.0 }
 0x2a0   : > { %v3566_v53 = vmax.f32 %v3565_v57, %v3173_v12  ;;  %v9050_v25 = vpop.f32.mrf.mxu1 }
 0x2a1   : > { %11996 = vst [vmem:[#allocation102_spill] sm:$0xff] %v10550_v20  ;;  %v2504_v8 = vadd.f32 %v10331_v47, %v9050_v25  ;;  %v3177_v19 = vpop.f32.mrf.mxu0  ;;  %4022 = vmatmul.mubr.bf16.gmra.mxu0 %v10123_v59  ;;  %v2631_v57 = vmax.f32 %v2493_v45, 0.0 }
 0x2a2   : > { %v3546_v62 = vmax.f32 %v3545_v15, %v3177_v19  ;;  %v2495_v3 = vpop.f32.mrf.mxu1  ;;  %4031 = vmatprep.mubr.bf16.mxu0 %v11897_v60 }
 0x2a3   : > { %v2634_v39 = vmax.f32 %v2504_v8, 0.0  ;;  %v2496_v55 = vadd.f32 %v10331_v47, %v2495_v3  ;;  %v3179_v58 = vpop.f32.mrf.mxu0 }
 0x2a4   : > { %v3567_v22 = vmax.f32 %v3566_v53, %v3179_v58  ;;  %v3230_v0 = vpop.f32.mrf.mxu1  ;;  %4075 = vmatmul.mubr.bf16.vlgmr.msra.gmra.mxu1 %v10045_v17 }
 0x2a5   : > { %v10559_v61 = vpack.c.bf16 %v2634_v39, %v2633_v24  ;;  %v2632_v25 = vmax.f32 %v2496_v55, 0.0  ;;  %4445 = vmatpush1.bf16.msra.mxu1 %v9338_v56  ;;  %v3181_v12 = vpop.f32.mrf.mxu0  ;;  %4084 = vmatprep.mubr.bf16.mxu1 %v11897_v60 }
 0x2a6   : > { %v3547_v15 = vmax.f32 %v3546_v62, %v3181_v12  ;;  %v3232_v19 = vpop.f32.mrf.mxu1  ;;  %4446 = vmatprep.subr.bf16.mxu1 %v9518_v29 }
 0x2a7   : > { %11997 = vst [vmem:[#allocation103_spill] sm:$0xff] %v10559_v61  ;;  %v10564_v30 = vpack.c.bf16 %v2632_v25, %v2631_v57  ;;  %v3183_v47 = vpop.f32.mrf.mxu0 }
 0x2a8   : > { %v3568_v53 = vmax.f32 %v3567_v22, %v3183_v47  ;;  %v3234_v8 = vpop.f32.mrf.mxu1 }
 0x2a9   : > { %11998 = vst [vmem:[#allocation104_spill] sm:$0xff] %v10564_v30  ;;  %v3577_v3 = vmax.f32 %v3230_v0, %v3234_v8  ;;  %v3187_v17 = vpop.f32.mrf.mxu0  ;;  %4032 = vmatmul.mubr.bf16.gmra.mxu0 %v10114_v36  ;;  %4447 = vmatpush1.bf16.msra.mxu1 %v9533_v41  ;;  %v12004_v30 = vld [vmem:[#allocation36_spill] sm:$0xff] }
 0x2aa   : > { %v3548_v45 = vmax.f32 %v3547_v15, %v3187_v17  ;;  %v3236_v24 = vpop.f32.mrf.mxu1  ;;  %4363 = vmatprep.mubr.bf16.mxu0 %v11897_v60  ;;  %4448 = vmatprep.subr.bf16.mxu1 %v9537_v44  ;;  %v11999_v17 = vld [vmem:[#allocation56_spill] sm:$0xff] }
 0x2ab   : > { %v3598_v62 = vmax.f32 %v3232_v19, %v3236_v24  ;;  %v3189_v39 = vpop.f32.mrf.mxu0  ;;  %v12000_v24 = vld [vmem:[#allocation31_spill] sm:$0xff] }
 0x2ac   : > { %v3569_v55 = vmax.f32 %v3568_v53, %v3189_v39  ;;  %v3240_v58 = vpop.f32.mrf.mxu1  ;;  %4085 = vmatmul.mubr.bf16.gmra.mxu1 %v10037_v32 }
 0x2ad   : > { %v3578_v22 = vmax.f32 %v3577_v3, %v3240_v58  ;;  %v3191_v57 = vpop.f32.mrf.mxu0  ;;  %4094 = vmatprep.mubr.bf16.mxu1 %v11897_v60  ;;  %4449 = vmatpush1.bf16.msra.mxu1 %v9562_v1  ;;  %v12001_v58 = vld [vmem:[#allocation17_spill] sm:$0xff] }
 0x2ae   : > { %v10573_v0 = vmax.f32 %v3548_v45, %v3191_v57  ;;  %v3242_v25 = vpop.f32.mrf.mxu1  ;;  %4450 = vmatprep.subr.bf16.mxu1 %v9567_v4 }
 0x2af   : > { %v3599_v12 = vmax.f32 %v3598_v62, %v3242_v25  ;;  %v3193_v15 = vpop.f32.mrf.mxu0  ;;  %v12002_v25 = vld [vmem:[#allocation20_spill] sm:$0xff] }
 0x2b0   : > { %v10576_v47 = vmax.f32 %v3569_v55, %v3193_v15  ;;  %v3244_v19 = vpop.f32.mrf.mxu1 }
 0x2b1   : > { %v3579_v53 = vmax.f32 %v3578_v22, %v3244_v19  ;;  %v3343_v8 = vpop.f32.mrf.mxu0  ;;  %4364 = vmatmul.mubr.bf16.vlgmr.msra.gmra.mxu0 %v11999_v17  ;;  %4451 = vmatpush1.bf16.msra.mxu1 %v9583_v16  ;;  %v12003_v19 = vld [vmem:[#allocation35_spill] sm:$0xff] }
 0x2b2   : > { %v3246_v32 = vpop.f32.mrf.mxu1  ;;  %4373 = vmatprep.mubr.bf16.mxu0 %v11897_v60  ;;  %4452 = vmatprep.subr.bf16.mxu1 %v11936_v7 }
 0x2b3   : > { %v3600_v3 = vmax.f32 %v3599_v12, %v3246_v32  ;;  %v3345_v45 = vpop.f32.mrf.mxu0  ;;  %4558 = vmatpush1.bf16.msra.mxu0 %v12000_v24 }
 0x2b4   : > { %v3250_v62 = vpop.f32.mrf.mxu1  ;;  %4095 = vmatmul.mubr.bf16.gmra.mxu1 %v10068_v2  ;;  %4559 = vmatprep.subr.bf16.mxu0 %v11938_v6 }
 0x2b5   : > { %v3580_v39 = vmax.f32 %v3579_v53, %v3250_v62  ;;  %v3347_v55 = vpop.f32.mrf.mxu0  ;;  %4104 = vmatprep.mubr.bf16.mxu1 %v11897_v60  ;;  %4453 = vmatpush1.bf16.msra.mxu1 %v12001_v58  ;;  %v12005_v53 = vld [vmem:[#allocation53_spill] sm:$0xff] }
 0x2b6   : > { %v3619_v22 = vmax.f32 %v3343_v8, %v3347_v55  ;;  %v3252_v57 = vpop.f32.mrf.mxu1  ;;  %4454 = vmatprep.subr.bf16.mxu1 %v12002_v25  ;;  %v12006_v62 = vld [vmem:[#allocation21_spill] sm:$0xff]  ;;  %v12007_v8 = vld [vmem:[#allocation24_spill] sm:$0xff] }
 0x2b7   : > { %v3601_v15 = vmax.f32 %v3600_v3, %v3252_v57  ;;  %v3349_v12 = vpop.f32.mrf.mxu0  ;;  %4560 = vmatpush1.bf16.msra.mxu0 %v12003_v19  ;;  %v12008_v57 = vld [vmem:[#allocation37_spill] sm:$0xff] }
 0x2b8   : > { %v3640_v32 = vmax.f32 %v3345_v45, %v3349_v12  ;;  %v3254_v61 = vpop.f32.mrf.mxu1  ;;  %4561 = vmatprep.subr.bf16.mxu0 %v12004_v30  ;;  %v12010_v30 = vld [vmem:[#allocation28_spill] sm:$0xff] }
 0x2b9   : > { %v3581_v2 = vmax.f32 %v3580_v39, %v3254_v61  ;;  %v3353_v5 = vpop.f32.mrf.mxu0  ;;  %4374 = vmatmul.mubr.bf16.gmra.mxu0 %v12005_v53  ;;  %4455 = vmatpush1.bf16.msra.mxu1 %v12006_v62 }
 0x2ba   : > { %v3620_v20 = vmax.f32 %v3619_v22, %v3353_v5  ;;  %v3256_v58 = vpop.f32.mrf.mxu1  ;;  %4383 = vmatprep.mubr.bf16.mxu0 %v11897_v60  ;;  %4456 = vmatprep.subr.bf16.mxu1 %v12007_v8  ;;  %v12009_v5 = vld [vmem:[#allocation25_spill] sm:$0xff]  ;;  %v12011_v8 = vld [vmem:[#allocation39_spill] sm:$0xff] }
 0x2bb   : > { %v3602_v3 = vmax.f32 %v3601_v15, %v3256_v58  ;;  %v3355_v55 = vpop.f32.mrf.mxu0  ;;  %4562 = vmatpush1.bf16.msra.mxu0 %v12008_v57  ;;  %v12012_v57 = vld [vmem:[#allocation40_spill] sm:$0xff] }
 0x2bc   : > { %v3641_v45 = vmax.f32 %v3640_v32, %v3355_v55  ;;  %v3260_v12 = vpop.f32.mrf.mxu1  ;;  %4105 = vmatmul.mubr.bf16.gmra.mxu1 %v10061_v26  ;;  %4563 = vmatprep.subr.bf16.mxu0 %v11948_v18 }
 0x2bd   : > { %v3582_v61 = vmax.f32 %v3581_v2, %v3260_v12  ;;  %v3357_v39 = vpop.f32.mrf.mxu0  ;;  %4114 = vmatprep.mubr.bf16.mxu1 %v11897_v60  ;;  %4457 = vmatpush1.bf16.msra.mxu1 %v12009_v5  ;;  %v12013_v2 = vld [vmem:[#allocation61_spill] sm:$0xff] }
 0x2be   : > { %v3621_v22 = vmax.f32 %v3620_v20, %v3357_v39  ;;  %v3262_v62 = vpop.f32.mrf.mxu1  ;;  %4458 = vmatprep.subr.bf16.mxu1 %v12010_v30  ;;  %v12014_v12 = vld [vmem:[#allocation29_spill] sm:$0xff] }
 0x2bf   : > { %v3603_v58 = vmax.f32 %v3602_v3, %v3262_v62  ;;  %v3359_v15 = vpop.f32.mrf.mxu0  ;;  %4564 = vmatpush1.bf16.msra.mxu0 %v12011_v8  ;;  %v12015_v3 = vld [vmem:[#allocation41_spill] sm:$0xff] }
 0x2c0   : > { %v3642_v32 = vmax.f32 %v3641_v45, %v3359_v15  ;;  %v3264_v55 = vpop.f32.mrf.mxu1  ;;  %4565 = vmatprep.subr.bf16.mxu0 %v12012_v57 }
 0x2c1   : > { %v3583_v26 = vmax.f32 %v3582_v61, %v3264_v55  ;;  %v3363_v18 = vpop.f32.mrf.mxu0  ;;  %4384 = vmatmul.mubr.bf16.gmra.mxu0 %v12013_v2  ;;  %4459 = vmatpush1.bf16.msra.mxu1 %v12014_v12  ;;  %v12016_v61 = vld [vmem:[#allocation42_spill] sm:$0xff] }
 0x2c2   : > { %v3622_v19 = vmax.f32 %v3621_v22, %v3363_v18  ;;  %v3266_v5 = vpop.f32.mrf.mxu1  ;;  %4393 = vmatprep.mubr.bf16.mxu0 %v11897_v60  ;;  %4670 = vmatprep.subr.bf16.mxu1 %v11956_v33 }
 0x2c3   : > { %v3604_v20 = vmax.f32 %v3603_v58, %v3266_v5  ;;  %v3365_v62 = vpop.f32.mrf.mxu0  ;;  %4566 = vmatpush1.bf16.msra.mxu0 %v12015_v3  ;;  %v12017_v3 = vld [vmem:[#allocation58_spill] sm:$0xff] }
 0x2c4   : > { %v3643_v45 = vmax.f32 %v3642_v32, %v3365_v62  ;;  %v3270_v39 = vpop.f32.mrf.mxu1  ;;  %4115 = vmatmul.mubr.bf16.gmra.mxu1 %v10087_v28  ;;  %4567 = vmatprep.subr.bf16.mxu0 %v12016_v61 }
 0x2c5   : > { %v3584_v15 = vmax.f32 %v3583_v26, %v3270_v39  ;;  %v3367_v55 = vpop.f32.mrf.mxu0  ;;  %4124 = vmatprep.mubr.bf16.mxu1 %v11897_v60 }
 0x2c6   : > { %v3623_v18 = vmax.f32 %v3622_v19, %v3367_v55  ;;  %v3272_v22 = vpop.f32.mrf.mxu1  ;;  %v12018_v19 = vld [vmem:[#allocation45_spill] sm:$0xff] }
 0x2c7   : > { %v3605_v12 = vmax.f32 %v3604_v20, %v3272_v22  ;;  %v3369_v57 = vpop.f32.mrf.mxu0  ;;  %4568 = vmatpush1.bf16.msra.mxu0 %v11961_v21  ;;  %v12022_v21 = vld [vmem:[#allocation62_spill] sm:$0xff] }
 0x2c8   : > { %v3644_v5 = vmax.f32 %v3643_v45, %v3369_v57  ;;  %v3274_v58 = vpop.f32.mrf.mxu1  ;;  %4569 = vmatprep.subr.bf16.mxu0 %v11962_v63  ;;  %v12019_v57 = vld [vmem:[#allocation46_spill] sm:$0xff] }
 0x2c9   : > { %v3585_v32 = vmax.f32 %v3584_v15, %v3274_v58  ;;  %v3373_v62 = vpop.f32.mrf.mxu0  ;;  %4394 = vmatmul.mubr.bf16.gmra.mxu0 %v12017_v3  ;;  %v12020_v63 = vld [vmem:[#allocation2_spill] sm:$0xff] }
 0x2ca   : > { %v3624_v28 = vmax.f32 %v3623_v18, %v3373_v62  ;;  %v3276_v61 = vpop.f32.mrf.mxu1  ;;  %4403 = vmatprep.mubr.bf16.mxu0 %v11897_v60 }
 0x2cb   : > { %v3606_v26 = vmax.f32 %v3605_v12, %v3276_v61  ;;  %v3375_v39 = vpop.f32.mrf.mxu0  ;;  %4570 = vmatpush1.bf16.msra.mxu0 %v12018_v19  ;;  %v12021_v19 = vld [vmem:[#allocation64_spill] sm:$0xff] }
 0x2cc   : > { %v3645_v20 = vmax.f32 %v3644_v5, %v3375_v39  ;;  %v3280_v55 = vpop.f32.mrf.mxu1  ;;  %4125 = vmatmul.mubr.bf16.gmra.mxu1 %v10080_v35  ;;  %4571 = vmatprep.subr.bf16.mxu0 %v12019_v57 }
 0x2cd   : > { %v3586_v45 = vmax.f32 %v3585_v32, %v3280_v55  ;;  %v3377_v22 = vpop.f32.mrf.mxu0  ;;  %4134 = vmatprep.mubr.bf16.mxu1 %v11897_v60 }
 0x2ce   : > { %v3625_v15 = vmax.f32 %v3624_v28, %v3377_v22  ;;  %v3282_v58 = vpop.f32.mrf.mxu1 }
 0x2cf   : > { %v3607_v18 = vmax.f32 %v3606_v26, %v3282_v58  ;;  %v3379_v62 = vpop.f32.mrf.mxu0  ;;  %4572 = vmatpush1.bf16.msra.mxu0 %v11966_v13 }
 0x2d0   : > { %v3646_v12 = vmax.f32 %v3645_v20, %v3379_v62  ;;  %v3284_v61 = vpop.f32.mrf.mxu1  ;;  %4959 = vmatprep.subr.bf16.mxu0 %v12020_v63 }
 0x2d1   : > { %v3587_v5 = vmax.f32 %v3586_v45, %v3284_v61  ;;  %v3383_v39 = vpop.f32.mrf.mxu0  ;;  %4404 = vmatmul.mubr.bf16.gmra.mxu0 %v12021_v19 }
 0x2d2   : > { %v3626_v35 = vmax.f32 %v3625_v15, %v3383_v39  ;;  %v3286_v57 = vpop.f32.mrf.mxu1  ;;  %4413 = vmatprep.mubr.bf16.mxu0 %v11897_v60 }
 0x2d3   : > { %v3608_v32 = vmax.f32 %v3607_v18, %v3286_v57  ;;  %v3385_v55 = vpop.f32.mrf.mxu0 }
 0x2d4   : > { %v3647_v28 = vmax.f32 %v3646_v12, %v3385_v55  ;;  %v3290_v22 = vpop.f32.mrf.mxu1  ;;  %4135 = vmatmul.mubr.bf16.gmra.mxu1 %v10123_v59 }
 0x2d5   : > { %v3588_v26 = vmax.f32 %v3587_v5, %v3290_v22  ;;  %v3387_v58 = vpop.f32.mrf.mxu0  ;;  %4144 = vmatprep.mubr.bf16.mxu1 %v11897_v60 }
 0x2d6   : > { %v3627_v20 = vmax.f32 %v3626_v35, %v3387_v58  ;;  %v3292_v62 = vpop.f32.mrf.mxu1 }
 0x2d7   : > { %v3609_v45 = vmax.f32 %v3608_v32, %v3292_v62  ;;  %v3389_v61 = vpop.f32.mrf.mxu0 }
 0x2d8   : > { %v3648_v63 = vmax.f32 %v3647_v28, %v3389_v61  ;;  %v3294_v13 = vpop.f32.mrf.mxu1 }
 0x2d9   : > { %v3589_v15 = vmax.f32 %v3588_v26, %v3294_v13  ;;  %v3393_v39 = vpop.f32.mrf.mxu0  ;;  %4414 = vmatmul.mubr.bf16.gmra.mxu0 %v12022_v21 }
 0x2da   : > { %v3628_v57 = vmax.f32 %v3627_v20, %v3393_v39  ;;  %v3296_v18 = vpop.f32.mrf.mxu1  ;;  %4423 = vmatprep.mubr.bf16.mxu0 %v11897_v60  ;;  %v12023_v39 = vld [vmem:[#allocation66_spill] sm:$0xff] }
 0x2db   : > { %v3610_v12 = vmax.f32 %v3609_v45, %v3296_v18  ;;  %v3395_v59 = vpop.f32.mrf.mxu0 }
 0x2dc   : > { %v3649_v5 = vmax.f32 %v3648_v63, %v3395_v59  ;;  %v3300_v55 = vpop.f32.mrf.mxu1  ;;  %4145 = vmatmul.mubr.bf16.gmra.mxu1 %v10114_v36 }
 0x2dd   : > { %v3590_v35 = vmax.f32 %v3589_v15, %v3300_v55  ;;  %v3397_v22 = vpop.f32.mrf.mxu0  ;;  %4476 = vmatprep.mubr.bf16.mxu1 %v11897_v60 }
 0x2de   : > { %v3629_v32 = vmax.f32 %v3628_v57, %v3397_v22  ;;  %v3302_v28 = vpop.f32.mrf.mxu1 }
 0x2df   : > { %v3611_v13 = vmax.f32 %v3610_v12, %v3302_v28  ;;  %v3399_v26 = vpop.f32.mrf.mxu0 }
 0x2e0   : > { %v3650_v58 = vmax.f32 %v3649_v5, %v3399_v26  ;;  %v3304_v62 = vpop.f32.mrf.mxu1 }
 0x2e1   : > { %v10628_v20 = vmax.f32 %v3590_v35, %v3304_v62  ;;  %v3403_v61 = vpop.f32.mrf.mxu0  ;;  %4424 = vmatmul.mubr.bf16.gmra.mxu0 %v12023_v39 }
 0x2e2   : > { %v3630_v45 = vmax.f32 %v3629_v32, %v3403_v61  ;;  %v3306_v63 = vpop.f32.mrf.mxu1  ;;  %4433 = vmatprep.mubr.bf16.mxu0 %v11897_v60 }
 0x2e3   : > { %v10632_v36 = vmax.f32 %v3611_v13, %v3306_v63  ;;  %v3405_v15 = vpop.f32.mrf.mxu0  ;;  %v12024_v13 = vld [vmem:[#allocation65_spill] sm:$0xff] }
 0x2e4   : > { %v3651_v18 = vmax.f32 %v3650_v58, %v3405_v15  ;;  %v3456_v59 = vpop.f32.mrf.mxu1  ;;  %4477 = vmatmul.mubr.bf16.vlgmr.msra.gmra.mxu1 %v11999_v17 }
 0x2e5   : > { %4671 = vmatpush1.bf16.msra.mxu1 %v9814_v37  ;;  %v3407_v57 = vpop.f32.mrf.mxu0  ;;  %4486 = vmatprep.mubr.bf16.mxu1 %v11897_v60 }
 0x2e6   : > { %v3631_v12 = vmax.f32 %v3630_v45, %v3407_v57  ;;  %v3458_v5 = vpop.f32.mrf.mxu1  ;;  %4672 = vmatprep.subr.bf16.mxu1 %v10102_v51 }
 0x2e7   : > { %v3409_v55 = vpop.f32.mrf.mxu0 }
 0x2e8   : > { %v3652_v35 = vmax.f32 %v3651_v18, %v3409_v55  ;;  %v3460_v22 = vpop.f32.mrf.mxu1  ;;  %v12026_v55 = vld [vmem:[#allocation52_spill] sm:$0xff] }
 0x2e9   : > { %v3661_v32 = vmax.f32 %v3456_v59, %v3460_v22  ;;  %v3413_v28 = vpop.f32.mrf.mxu0  ;;  %4434 = vmatmul.mubr.bf16.gmra.mxu0 %v12024_v13  ;;  %4673 = vmatpush1.bf16.msra.mxu1 %v11974_v9  ;;  %v12025_v59 = vld [vmem:[#allocation51_spill] sm:$0xff] }
 0x2ea   : > { %v3632_v26 = vmax.f32 %v3631_v12, %v3413_v28  ;;  %v3462_v58 = vpop.f32.mrf.mxu1  ;;  %4589 = vmatprep.mubr.bf16.mxu0 %v11897_v60  ;;  %4674 = vmatprep.subr.bf16.mxu1 %v11975_v50 }
 0x2eb   : > { %v3682_v62 = vmax.f32 %v3458_v5, %v3462_v58  ;;  %v3415_v61 = vpop.f32.mrf.mxu0 }
 0x2ec   : > { %v3653_v45 = vmax.f32 %v3652_v35, %v3415_v61  ;;  %v3466_v63 = vpop.f32.mrf.mxu1  ;;  %4487 = vmatmul.mubr.bf16.gmra.mxu1 %v12005_v53 }
 0x2ed   : > { %v3662_v15 = vmax.f32 %v3661_v32, %v3466_v63  ;;  %v3417_v18 = vpop.f32.mrf.mxu0  ;;  %4496 = vmatprep.mubr.bf16.mxu1 %v11897_v60  ;;  %4675 = vmatpush1.bf16.msra.mxu1 %v12025_v59  ;;  %v12027_v32 = vld [vmem:[#allocation54_spill] sm:$0xff]  ;;  %v12028_v63 = vld [vmem:[#allocation55_spill] sm:$0xff] }
 0x2ee   : > { %v10645_v57 = vmax.f32 %v3632_v26, %v3417_v18  ;;  %v3468_v12 = vpop.f32.mrf.mxu1  ;;  %4676 = vmatprep.subr.bf16.mxu1 %v12026_v55  ;;  %v12029_v59 = vld [vmem:[#allocation3_spill] sm:$0xff] }
 0x2ef   : > { %v3683_v22 = vmax.f32 %v3682_v62, %v3468_v12  ;;  %v3419_v28 = vpop.f32.mrf.mxu0 }
 0x2f0   : > { %v10648_v50 = vmax.f32 %v3653_v45, %v3419_v28  ;;  %v3470_v5 = vpop.f32.mrf.mxu1 }
 0x2f1   : > { %v3663_v35 = vmax.f32 %v3662_v15, %v3470_v5  ;;  %v3737_v58 = vpop.f32.mrf.mxu0  ;;  %4590 = vmatmul.mubr.bf16.vlgmr.msra.gmra.mxu0 %v11999_v17  ;;  %4677 = vmatpush1.bf16.msra.mxu1 %v12027_v32 }
 0x2f2   : > { %v3472_v61 = vpop.f32.mrf.mxu1  ;;  %4599 = vmatprep.mubr.bf16.mxu0 %v11897_v60  ;;  %4678 = vmatprep.subr.bf16.mxu1 %v12028_v63  ;;  %v12030_v63 = vld [vmem:[#allocation6_spill] sm:$0xff] }
 0x2f3   : > { %v3684_v26 = vmax.f32 %v3683_v22, %v3472_v61  ;;  %v3739_v18 = vpop.f32.mrf.mxu0  ;;  %4960 = vmatpush1.bf16.msra.mxu0 %v12029_v59 }
 0x2f4   : > { %v3476_v62 = vpop.f32.mrf.mxu1  ;;  %4497 = vmatmul.mubr.bf16.gmra.mxu1 %v12013_v2  ;;  %4961 = vmatprep.subr.bf16.mxu0 %v9379_v10 }
 0x2f5   : > { %v3664_v45 = vmax.f32 %v3663_v35, %v3476_v62  ;;  %v3741_v15 = vpop.f32.mrf.mxu0  ;;  %4506 = vmatprep.mubr.bf16.mxu1 %v11897_v60  ;;  %4679 = vmatpush1.bf16.msra.mxu1 %v10172_v46  ;;  %v12031_v35 = vld [vmem:[#allocation59_spill] sm:$0xff] }
 0x2f6   : > { %v4155_v12 = vmax.f32 %v3737_v58, %v3741_v15  ;;  %v3478_v28 = vpop.f32.mrf.mxu1  ;;  %4680 = vmatprep.subr.bf16.mxu1 %v10176_v14 }
 0x2f7   : > { %v3685_v5 = vmax.f32 %v3684_v26, %v3478_v28  ;;  %v3743_v22 = vpop.f32.mrf.mxu0  ;;  %4962 = vmatpush1.bf16.msra.mxu0 %v9381_v11 }
 0x2f8   : > { %v4176_v61 = vmax.f32 %v3739_v18, %v3743_v22  ;;  %v3480_v59 = vpop.f32.mrf.mxu1  ;;  %4963 = vmatprep.subr.bf16.mxu0 %v12030_v63 }
 0x2f9   : > { %v3665_v32 = vmax.f32 %v3664_v45, %v3480_v59  ;;  %v3747_v10 = vpop.f32.mrf.mxu0  ;;  %4600 = vmatmul.mubr.bf16.gmra.mxu0 %v12005_v53  ;;  %4681 = vmatpush1.bf16.msra.mxu1 %v12031_v35 }
 0x2fa   : > { %v4156_v62 = vmax.f32 %v4155_v12, %v3747_v10  ;;  %v3482_v46 = vpop.f32.mrf.mxu1  ;;  %4609 = vmatprep.mubr.bf16.mxu0 %v11897_v60  ;;  %4682 = vmatprep.subr.bf16.mxu1 %v11984_v49 }
 0x2fb   : > { %v3686_v58 = vmax.f32 %v3685_v5, %v3482_v46  ;;  %v3749_v26 = vpop.f32.mrf.mxu0  ;;  %4964 = vmatpush1.bf16.msra.mxu0 %v9425_v31 }
 0x2fc   : > { %v4177_v18 = vmax.f32 %v4176_v61, %v3749_v26  ;;  %v3486_v15 = vpop.f32.mrf.mxu1  ;;  %4507 = vmatmul.mubr.bf16.gmra.mxu1 %v12017_v3  ;;  %4965 = vmatprep.subr.bf16.mxu0 %v11985_v38 }
 0x2fd   : > { %v3666_v59 = vmax.f32 %v3665_v32, %v3486_v15  ;;  %v3751_v45 = vpop.f32.mrf.mxu0  ;;  %4516 = vmatprep.mubr.bf16.mxu1 %v11897_v60  ;;  %4683 = vmatpush1.bf16.msra.mxu1 %v10212_v34 }
 0x2fe   : > { %v4157_v10 = vmax.f32 %v4156_v62, %v3751_v45  ;;  %v3488_v12 = vpop.f32.mrf.mxu1  ;;  %4684 = vmatprep.subr.bf16.mxu1 %v10216_v27  ;;  %v12032_v62 = vld [vmem:[#allocation4_spill] sm:$0xff] }
 0x2ff   : > { %v3687_v46 = vmax.f32 %v3686_v58, %v3488_v12  ;;  %v3753_v28 = vpop.f32.mrf.mxu0  ;;  %4966 = vmatpush1.bf16.msra.mxu0 %v9469_v52  ;;  %v12033_v12 = vld [vmem:[#allocation12_spill] sm:$0xff] }
 0x300   : > { %v4178_v5 = vmax.f32 %v4177_v18, %v3753_v28  ;;  %v3490_v22 = vpop.f32.mrf.mxu1  ;;  %4967 = vmatprep.subr.bf16.mxu0 %v9552_v54 }
 0x301   : > { %v3667_v61 = vmax.f32 %v3666_v59, %v3490_v22  ;;  %v3757_v26 = vpop.f32.mrf.mxu0  ;;  %4610 = vmatmul.mubr.bf16.gmra.mxu0 %v12013_v2  ;;  %4685 = vmatpush1.bf16.msra.mxu1 %v10226_v48 }
 0x302   : > { %v4158_v32 = vmax.f32 %v4157_v10, %v3757_v26  ;;  %v3492_v15 = vpop.f32.mrf.mxu1  ;;  %4619 = vmatprep.mubr.bf16.mxu0 %v11897_v60  ;;  %5072 = vmatprep.subr.bf16.mxu1 %v12032_v62 }
 0x303   : > { %v3688_v58 = vmax.f32 %v3687_v46, %v3492_v15  ;;  %v3759_v45 = vpop.f32.mrf.mxu0  ;;  %4968 = vmatpush1.bf16.msra.mxu0 %v12033_v12 }
 0x304   : > { %v4179_v18 = vmax.f32 %v4178_v5, %v3759_v45  ;;  %v3496_v28 = vpop.f32.mrf.mxu1  ;;  %4517 = vmatmul.mubr.bf16.gmra.mxu1 %v12021_v19  ;;  %4969 = vmatprep.subr.bf16.mxu0 %v9646_v40 }
 0x305   : > { %v3668_v59 = vmax.f32 %v3667_v61, %v3496_v28  ;;  %v3761_v22 = vpop.f32.mrf.mxu0  ;;  %4526 = vmatprep.mubr.bf16.mxu1 %v11897_v60 }
 0x306   : > { %v4159_v10 = vmax.f32 %v4158_v32, %v3761_v22  ;;  %v3498_v26 = vpop.f32.mrf.mxu1  ;;  %v12034_v32 = vld [vmem:[#allocation23_spill] sm:$0xff] }
 0x307   : > { %v3689_v48 = vmax.f32 %v3688_v58, %v3498_v26  ;;  %v3763_v54 = vpop.f32.mrf.mxu0  ;;  %4970 = vmatpush1.bf16.msra.mxu0 %v9651_v43 }
 0x308   : > { %v4180_v46 = vmax.f32 %v4179_v18, %v3763_v54  ;;  %v3500_v15 = vpop.f32.mrf.mxu1  ;;  %4971 = vmatprep.subr.bf16.mxu0 %v9705_v23  ;;  %v12036_v23 = vld [vmem:[#allocation30_spill] sm:$0xff] }
 0x309   : > { %v3669_v5 = vmax.f32 %v3668_v59, %v3500_v15  ;;  %v3767_v45 = vpop.f32.mrf.mxu0  ;;  %4620 = vmatmul.mubr.bf16.gmra.mxu0 %v12017_v3 }
 0x30a   : > { %v4160_v12 = vmax.f32 %v4159_v10, %v3767_v45  ;;  %v3502_v40 = vpop.f32.mrf.mxu1  ;;  %4629 = vmatprep.mubr.bf16.mxu0 %v11897_v60  ;;  %v12035_v45 = vld [vmem:[#allocation27_spill] sm:$0xff] }
 0x30b   : > { %v3690_v61 = vmax.f32 %v3689_v48, %v3502_v40  ;;  %v3769_v28 = vpop.f32.mrf.mxu0  ;;  %4972 = vmatpush1.bf16.msra.mxu0 %v12034_v32 }
 0x30c   : > { %v4181_v58 = vmax.f32 %v4180_v46, %v3769_v28  ;;  %v3506_v22 = vpop.f32.mrf.mxu1  ;;  %4527 = vmatmul.mubr.bf16.gmra.mxu1 %v12022_v21  ;;  %4973 = vmatprep.subr.bf16.mxu0 %v9729_v42 }
 0x30d   : > { %v3670_v54 = vmax.f32 %v3669_v5, %v3506_v22  ;;  %v3771_v18 = vpop.f32.mrf.mxu0  ;;  %4536 = vmatprep.mubr.bf16.mxu1 %v11897_v60 }
 0x30e   : > { %v4161_v59 = vmax.f32 %v4160_v12, %v3771_v18  ;;  %v3508_v26 = vpop.f32.mrf.mxu1 }
 0x30f   : > { %v3691_v10 = vmax.f32 %v3690_v61, %v3508_v26  ;;  %v3773_v15 = vpop.f32.mrf.mxu0  ;;  %4974 = vmatpush1.bf16.msra.mxu0 %v12035_v45 }
 0x310   : > { %v4182_v40 = vmax.f32 %v4181_v58, %v3773_v15  ;;  %v3510_v48 = vpop.f32.mrf.mxu1  ;;  %5185 = vmatprep.subr.bf16.mxu0 %v12036_v23 }
 0x311   : > { %v3671_v46 = vmax.f32 %v3670_v54, %v3510_v48  ;;  %v3777_v28 = vpop.f32.mrf.mxu0  ;;  %4630 = vmatmul.mubr.bf16.gmra.mxu0 %v12021_v19 }
 0x312   : > { %v4162_v32 = vmax.f32 %v4161_v59, %v3777_v28  ;;  %v3512_v42 = vpop.f32.mrf.mxu1  ;;  %4639 = vmatprep.mubr.bf16.mxu0 %v11897_v60 }
 0x313   : > { %v3692_v5 = vmax.f32 %v3691_v10, %v3512_v42  ;;  %v3779_v22 = vpop.f32.mrf.mxu0 }
 0x314   : > { %v4183_v12 = vmax.f32 %v4182_v40, %v3779_v22  ;;  %v3516_v18 = vpop.f32.mrf.mxu1  ;;  %4537 = vmatmul.mubr.bf16.gmra.mxu1 %v12023_v39 }
 0x315   : > { %v3672_v61 = vmax.f32 %v3671_v46, %v3516_v18  ;;  %v3781_v26 = vpop.f32.mrf.mxu0  ;;  %4546 = vmatprep.mubr.bf16.mxu1 %v11897_v60 }
 0x316   : > { %v4163_v58 = vmax.f32 %v4162_v32, %v3781_v26  ;;  %v3518_v15 = vpop.f32.mrf.mxu1 }
 0x317   : > { %v3693_v54 = vmax.f32 %v3692_v5, %v3518_v15  ;;  %v3783_v48 = vpop.f32.mrf.mxu0 }
 0x318   : > { %v4184_v23 = vmax.f32 %v4183_v12, %v3783_v48  ;;  %v3520_v45 = vpop.f32.mrf.mxu1 }
 0x319   : > { %v3673_v59 = vmax.f32 %v3672_v61, %v3520_v45  ;;  %v3787_v28 = vpop.f32.mrf.mxu0  ;;  %4640 = vmatmul.mubr.bf16.gmra.mxu0 %v12022_v21 }
 0x31a   : > { %v4164_v42 = vmax.f32 %v4163_v58, %v3787_v28  ;;  %v3522_v10 = vpop.f32.mrf.mxu1  ;;  %4649 = vmatprep.mubr.bf16.mxu0 %v11897_v60 }
 0x31b   : > { %v3694_v40 = vmax.f32 %v3693_v54, %v3522_v10  ;;  %v3789_v22 = vpop.f32.mrf.mxu0 }
 0x31c   : > { %v4185_v46 = vmax.f32 %v4184_v23, %v3789_v22  ;;  %v3526_v18 = vpop.f32.mrf.mxu1  ;;  %4547 = vmatmul.mubr.bf16.gmra.mxu1 %v12024_v13 }
 0x31d   : > { %v3674_v32 = vmax.f32 %v3673_v59, %v3526_v18  ;;  %v3791_v26 = vpop.f32.mrf.mxu0  ;;  %4702 = vmatprep.mubr.bf16.mxu1 %v11897_v60 }
 0x31e   : > { %v4165_v5 = vmax.f32 %v4164_v42, %v3791_v26  ;;  %v3528_v12 = vpop.f32.mrf.mxu1  ;;  %v3571_v26 = vrot.slane %v10576_v47, 4 }
 0x31f   : > { %v3695_v45 = vmax.f32 %v3694_v40, %v3528_v12  ;;  %v3793_v61 = vpop.f32.mrf.mxu0  ;;  %v3550_v40 = vrot.slane %v10573_v0, 4 }
 0x320   : > { %v4186_v15 = vmax.f32 %v4185_v46, %v3793_v61  ;;  %v3530_v48 = vpop.f32.mrf.mxu1 }
 0x321   : > { %v10700_v58 = vmax.f32 %v3674_v32, %v3530_v48  ;;  %v3797_v28 = vpop.f32.mrf.mxu0  ;;  %4650 = vmatmul.mubr.bf16.gmra.mxu0 %v12023_v39 }
 0x322   : > { %v4166_v54 = vmax.f32 %v4165_v5, %v3797_v28  ;;  %v3532_v23 = vpop.f32.mrf.mxu1  ;;  %4659 = vmatprep.mubr.bf16.mxu0 %v11897_v60 }
 0x323   : > { %v10704_v10 = vmax.f32 %v3695_v45, %v3532_v23  ;;  %v3799_v59 = vpop.f32.mrf.mxu0 }
 0x324   : > { %v4187_v22 = vmax.f32 %v4186_v15, %v3799_v59  ;;  %v3850_v18 = vpop.f32.mrf.mxu1  ;;  %4703 = vmatmul.mubr.bf16.vlgmr.msra.gmra.mxu1 %v11999_v17  ;;  %v3551_v17 = vmax.f32 %v10573_v0, %v3550_v40 }
 0x325   : > { %5073 = vmatpush1.bf16.msra.mxu1 %v9338_v56  ;;  %v3801_v42 = vpop.f32.mrf.mxu0  ;;  %4712 = vmatprep.mubr.bf16.mxu1 %v11897_v60 }
 0x326   : > { %v4167_v46 = vmax.f32 %v4166_v54, %v3801_v42  ;;  %v3852_v32 = vpop.f32.mrf.mxu1  ;;  %5074 = vmatprep.subr.bf16.mxu1 %v9518_v29  ;;  %v3572_v54 = vmax.f32 %v10576_v47, %v3571_v26  ;;  %v3552_v0 = vrot.slane %v3551_v17, 2 }
 0x327   : > { %v3803_v5 = vpop.f32.mrf.mxu0 }
 0x328   : > { %v4188_v12 = vmax.f32 %v4187_v22, %v3803_v5  ;;  %v3854_v45 = vpop.f32.mrf.mxu1 }
 0x329   : > { %v4197_v61 = vmax.f32 %v3850_v18, %v3854_v45  ;;  %v3807_v15 = vpop.f32.mrf.mxu0  ;;  %4660 = vmatmul.mubr.bf16.gmra.mxu0 %v12024_v13  ;;  %5075 = vmatpush1.bf16.msra.mxu1 %v9533_v41  ;;  %v3573_v45 = vrot.slane %v3572_v54, 2 }
 0x32a   : > { %v4168_v48 = vmax.f32 %v4167_v46, %v3807_v15  ;;  %v3856_v28 = vpop.f32.mrf.mxu1  ;;  %4991 = vmatprep.mubr.bf16.mxu0 %v11897_v60  ;;  %5076 = vmatprep.subr.bf16.mxu1 %v9537_v44 }
 0x32b   : > { %v4218_v23 = vmax.f32 %v3852_v32, %v3856_v28  ;;  %v3809_v59 = vpop.f32.mrf.mxu0 }
 0x32c   : > { %v4189_v22 = vmax.f32 %v4188_v12, %v3809_v59  ;;  %v3860_v42 = vpop.f32.mrf.mxu1  ;;  %4713 = vmatmul.mubr.bf16.gmra.mxu1 %v12005_v53  ;;  %v12037_v53 = vld [vmem:[#allocation68_spill] sm:$0xff] }
 0x32d   : > { %v4198_v18 = vmax.f32 %v4197_v61, %v3860_v42  ;;  %v3811_v5 = vpop.f32.mrf.mxu0  ;;  %4722 = vmatprep.mubr.bf16.mxu1 %v11897_v60  ;;  %5077 = vmatpush1.bf16.msra.mxu1 %v9562_v1  ;;  %v3553_v61 = vmax.f32 %v3551_v17, %v3552_v0 }
 0x32e   : > { %v4169_v40 = vmax.f32 %v4168_v48, %v3811_v5  ;;  %v3862_v46 = vpop.f32.mrf.mxu1  ;;  %5078 = vmatprep.subr.bf16.mxu1 %v9567_v4  ;;  %v3574_v48 = vmax.f32 %v3572_v54, %v3573_v45 }
 0x32f   : > { %v4219_v15 = vmax.f32 %v4218_v23, %v3862_v46  ;;  %v3813_v47 = vpop.f32.mrf.mxu0 }
 0x330   : > { %v4170_v32 = vrot.slane %v4169_v40, 4  ;;  %v4190_v26 = vmax.f32 %v4189_v22, %v3813_v47  ;;  %v3864_v12 = vpop.f32.mrf.mxu1  ;;  %v3554_v47 = vrot.slane %v3553_v61, 1 }
 0x331   : > { %v4199_v28 = vmax.f32 %v4198_v18, %v3864_v12  ;;  %v3963_v59 = vpop.f32.mrf.mxu0  ;;  %4992 = vmatmul.mubr.bf16.vlgmr.msra.gmra.mxu0 %v12037_v53  ;;  %5079 = vmatpush1.bf16.msra.mxu1 %v9583_v16  ;;  %v12039_v12 = vld [vmem:[#allocation35_spill] sm:$0xff] }
 0x332   : > { %v4171_v42 = vmax.f32 %v4169_v40, %v4170_v32  ;;  %v4191_v1 = vrot.slane %v4190_v26, 4  ;;  %v3866_v44 = vpop.f32.mrf.mxu1  ;;  %5001 = vmatprep.mubr.bf16.mxu0 %v11897_v60  ;;  %5080 = vmatprep.subr.bf16.mxu1 %v11936_v7  ;;  %v12038_v40 = vld [vmem:[#allocation17_spill] sm:$0xff]  ;;  %v12041_v16 = vld [vmem:[#allocation67_spill] sm:$0xff] }
 0x333   : > { %v4220_v23 = vmax.f32 %v4219_v15, %v3866_v44  ;;  %v3965_v5 = vpop.f32.mrf.mxu0  ;;  %5186 = vmatpush1.bf16.msra.mxu0 %v12000_v24  ;;  %v3575_v15 = vrot.slane %v3574_v48, 1  ;;  %v12040_v24 = vld [vmem:[#allocation36_spill] sm:$0xff] }
 0x334   : > { %v4172_v22 = vrot.slane %v4171_v42, 2  ;;  %v4192_v18 = vmax.f32 %v4190_v26, %v4191_v1  ;;  %v3870_v46 = vpop.f32.mrf.mxu1  ;;  %4723 = vmatmul.mubr.bf16.gmra.mxu1 %v12013_v2  ;;  %5187 = vmatprep.subr.bf16.mxu0 %v11938_v6 }
 0x335   : > { %v4200_v17 = vmax.f32 %v4199_v28, %v3870_v46  ;;  %v3967_v0 = vpop.f32.mrf.mxu0  ;;  %4732 = vmatprep.mubr.bf16.mxu1 %v11897_v60  ;;  %5081 = vmatpush1.bf16.msra.mxu1 %v12038_v40 }
 0x336   : > { %v4173_v32 = vmax.f32 %v4171_v42, %v4172_v22  ;;  %v4193_v54 = vrot.slane %v4192_v18, 2  ;;  %v4239_v44 = vmax.f32 %v3963_v59, %v3967_v0  ;;  %v3872_v45 = vpop.f32.mrf.mxu1  ;;  %5082 = vmatprep.subr.bf16.mxu1 %v12002_v25  ;;  %v12042_v42 = vld [vmem:[#allocation21_spill] sm:$0xff]  ;;  %v10736_v59 = vmax.f32 %v3553_v61, %v3554_v47 }
 0x337   : > { %v4221_v1 = vmax.f32 %v4220_v23, %v3872_v45  ;;  %v3969_v26 = vpop.f32.mrf.mxu0  ;;  %5188 = vmatpush1.bf16.msra.mxu0 %v12039_v12 }
 0x338   : > { %v4174_v2 = vrot.slane %v4173_v32, 1  ;;  %v4194_v6 = vmax.f32 %v4192_v18, %v4193_v54  ;;  %v4260_v28 = vmax.f32 %v3965_v5, %v3969_v26  ;;  %v3874_v46 = vpop.f32.mrf.mxu1  ;;  %5189 = vmatprep.subr.bf16.mxu0 %v12040_v24  ;;  %v12044_v18 = vld [vmem:[#allocation24_spill] sm:$0xff]  ;;  %v10742_v5 = vmax.f32 %v3574_v48, %v3575_v15  ;;  %v12046_v26 = vld [vmem:[#allocation37_spill] sm:$0xff] }
 0x339   : > { %v4201_v7 = vmax.f32 %v4200_v17, %v3874_v46  ;;  %v3973_v40 = vpop.f32.mrf.mxu0  ;;  %5002 = vmatmul.mubr.bf16.gmra.mxu0 %v12041_v16  ;;  %5083 = vmatpush1.bf16.msra.mxu1 %v12042_v42  ;;  %v12049_v48 = vld [vmem:[#allocation25_spill] sm:$0xff]  ;;  %v12051_v46 = vld [vmem:[#allocation70_spill] sm:$0xff] }
 0x33a   : > { %v10738_v22 = vmax.f32 %v4173_v32, %v4174_v2  ;;  %v4195_v23 = vrot.slane %v4194_v6, 1  ;;  %v4240_v0 = vmax.f32 %v4239_v44, %v3973_v40  ;;  %v3876_v45 = vpop.f32.mrf.mxu1  ;;  %5011 = vmatprep.mubr.bf16.mxu0 %v11897_v60  ;;  %5084 = vmatprep.subr.bf16.mxu1 %v12044_v18  ;;  %12045 = vst [vmem:[#allocation53_spill] sm:$0xff] %v10742_v5  ;;  %v12048_v40 = vld [vmem:[#allocation38_spill] sm:$0xff] }
 0x33b   : > { %v4222_v54 = vmax.f32 %v4221_v1, %v3876_v45  ;;  %v3975_v17 = vpop.f32.mrf.mxu0  ;;  %5190 = vmatpush1.bf16.msra.mxu0 %v12046_v26 }
 0x33c   : > { %12043 = vst [vmem:[#allocation56_spill] sm:$0xff] %v10738_v22  ;;  %v10747_v61 = vmax.f32 %v4194_v6, %v4195_v23  ;;  %v4261_v47 = vmax.f32 %v4260_v28, %v3975_v17  ;;  %v3880_v32 = vpop.f32.mrf.mxu1  ;;  %4733 = vmatmul.mubr.bf16.gmra.mxu1 %v12017_v3  ;;  %5191 = vmatprep.subr.bf16.mxu0 %v12048_v40  ;;  %v12050_v17 = vld [vmem:[#allocation40_spill] sm:$0xff]  ;;  %v12065_v22 = vld [vmem:[#allocation73_spill] sm:$0xff] }
 0x33d   : > { %v4202_v44 = vmax.f32 %v4201_v7, %v3880_v32  ;;  %v3977_v2 = vpop.f32.mrf.mxu0  ;;  %4742 = vmatprep.mubr.bf16.mxu1 %v11897_v60  ;;  %5085 = vmatpush1.bf16.msra.mxu1 %v12049_v48  ;;  %v12052_v48 = vld [vmem:[#allocation29_spill] sm:$0xff] }
 0x33e   : > { %12047 = vst [vmem:[#allocation61_spill] sm:$0xff] %v10747_v61  ;;  %v4241_v1 = vmax.f32 %v4240_v0, %v3977_v2  ;;  %v3882_v45 = vpop.f32.mrf.mxu1  ;;  %5086 = vmatprep.subr.bf16.mxu1 %v12010_v30  ;;  %v12053_v2 = vld [vmem:[#allocation41_spill] sm:$0xff] }
 0x33f   : > { %v4223_v6 = vmax.f32 %v4222_v54, %v3882_v45  ;;  %v3979_v28 = vpop.f32.mrf.mxu0  ;;  %5192 = vmatpush1.bf16.msra.mxu0 %v12011_v8  ;;  %v12055_v8 = vld [vmem:[#allocation43_spill] sm:$0xff] }
 0x340   : > { %v4262_v3 = vmax.f32 %v4261_v47, %v3979_v28  ;;  %v3884_v23 = vpop.f32.mrf.mxu1  ;;  %5193 = vmatprep.subr.bf16.mxu0 %v12050_v17 }
 0x341   : > { %v4203_v7 = vmax.f32 %v4202_v44, %v3884_v23  ;;  %v3983_v32 = vpop.f32.mrf.mxu0  ;;  %5012 = vmatmul.mubr.bf16.gmra.mxu0 %v12051_v46  ;;  %5087 = vmatpush1.bf16.msra.mxu1 %v12052_v48  ;;  %v12054_v44 = vld [vmem:[#allocation42_spill] sm:$0xff] }
 0x342   : > { %v4242_v40 = vmax.f32 %v4241_v1, %v3983_v32  ;;  %v3886_v15 = vpop.f32.mrf.mxu1  ;;  %5021 = vmatprep.mubr.bf16.mxu0 %v11897_v60  ;;  %5298 = vmatprep.subr.bf16.mxu1 %v11956_v33  ;;  %v12056_v33 = vld [vmem:[#allocation44_spill] sm:$0xff] }
 0x343   : > { %v4224_v0 = vmax.f32 %v4223_v6, %v3886_v15  ;;  %v3985_v54 = vpop.f32.mrf.mxu0  ;;  %5194 = vmatpush1.bf16.msra.mxu0 %v12053_v2  ;;  %v12057_v2 = vld [vmem:[#allocation69_spill] sm:$0xff] }
 0x344   : > { %v4263_v47 = vmax.f32 %v4262_v3, %v3985_v54  ;;  %v3890_v45 = vpop.f32.mrf.mxu1  ;;  %4743 = vmatmul.mubr.bf16.gmra.mxu1 %v12021_v19  ;;  %5195 = vmatprep.subr.bf16.mxu0 %v12054_v44 }
 0x345   : > { %v4204_v28 = vmax.f32 %v4203_v7, %v3890_v45  ;;  %v3987_v23 = vpop.f32.mrf.mxu0  ;;  %4752 = vmatprep.mubr.bf16.mxu1 %v11897_v60 }
 0x346   : > { %v4243_v1 = vmax.f32 %v4242_v40, %v3987_v23  ;;  %v3892_v32 = vpop.f32.mrf.mxu1  ;;  %v12058_v40 = vld [vmem:[#allocation45_spill] sm:$0xff] }
 0x347   : > { %v4225_v48 = vmax.f32 %v4224_v0, %v3892_v32  ;;  %v3989_v17 = vpop.f32.mrf.mxu0  ;;  %5196 = vmatpush1.bf16.msra.mxu0 %v12055_v8  ;;  %v12061_v8 = vld [vmem:[#allocation2_spill] sm:$0xff] }
 0x348   : > { %v4264_v15 = vmax.f32 %v4263_v47, %v3989_v17  ;;  %v3894_v6 = vpop.f32.mrf.mxu1  ;;  %5197 = vmatprep.subr.bf16.mxu0 %v12056_v33  ;;  %v12059_v17 = vld [vmem:[#allocation46_spill] sm:$0xff]  ;;  %v12060_v33 = vld [vmem:[#allocation47_spill] sm:$0xff] }
 0x349   : > { %v4205_v3 = vmax.f32 %v4204_v28, %v3894_v6  ;;  %v3993_v54 = vpop.f32.mrf.mxu0  ;;  %5022 = vmatmul.mubr.bf16.gmra.mxu0 %v12057_v2 }
 0x34a   : > { %v4244_v19 = vmax.f32 %v4243_v1, %v3993_v54  ;;  %v3896_v44 = vpop.f32.mrf.mxu1  ;;  %5031 = vmatprep.mubr.bf16.mxu0 %v11897_v60 }
 0x34b   : > { %v4226_v7 = vmax.f32 %v4225_v48, %v3896_v44  ;;  %v3995_v45 = vpop.f32.mrf.mxu0  ;;  %5198 = vmatpush1.bf16.msra.mxu0 %v12058_v40  ;;  %v12062_v40 = vld [vmem:[#allocation72_spill] sm:$0xff] }
 0x34c   : > { %v4265_v0 = vmax.f32 %v4264_v15, %v3995_v45  ;;  %v3900_v23 = vpop.f32.mrf.mxu1  ;;  %4753 = vmatmul.mubr.bf16.gmra.mxu1 %v12022_v21  ;;  %5199 = vmatprep.subr.bf16.mxu0 %v12059_v17 }
 0x34d   : > { %v4206_v47 = vmax.f32 %v4205_v3, %v3900_v23  ;;  %v3997_v32 = vpop.f32.mrf.mxu0  ;;  %4762 = vmatprep.mubr.bf16.mxu1 %v11897_v60 }
 0x34e   : > { %v4245_v28 = vmax.f32 %v4244_v19, %v3997_v32  ;;  %v3902_v6 = vpop.f32.mrf.mxu1 }
 0x34f   : > { %v4227_v1 = vmax.f32 %v4226_v7, %v3902_v6  ;;  %v3999_v54 = vpop.f32.mrf.mxu0  ;;  %5200 = vmatpush1.bf16.msra.mxu0 %v12060_v33 }
 0x350   : > { %v4266_v48 = vmax.f32 %v4265_v0, %v3999_v54  ;;  %v3904_v44 = vpop.f32.mrf.mxu1  ;;  %5587 = vmatprep.subr.bf16.mxu0 %v12061_v8 }
 0x351   : > { %v4207_v15 = vmax.f32 %v4206_v47, %v3904_v44  ;;  %v4003_v45 = vpop.f32.mrf.mxu0  ;;  %5032 = vmatmul.mubr.bf16.gmra.mxu0 %v12062_v40 }
 0x352   : > { %v4246_v21 = vmax.f32 %v4245_v28, %v4003_v45  ;;  %v3906_v17 = vpop.f32.mrf.mxu1  ;;  %5041 = vmatprep.mubr.bf16.mxu0 %v11897_v60  ;;  %v3592_v28 = vrot.slane %v10628_v20, 4 }
 0x353   : > { %v4228_v3 = vmax.f32 %v4227_v1, %v3906_v17  ;;  %v4005_v23 = vpop.f32.mrf.mxu0  ;;  %v12063_v17 = vld [vmem:[#allocation71_spill] sm:$0xff]  ;;  %v3613_v1 = vrot.slane %v10632_v36, 4 }
 0x354   : > { %v4267_v19 = vmax.f32 %v4266_v48, %v4005_v23  ;;  %v3910_v32 = vpop.f32.mrf.mxu1  ;;  %4763 = vmatmul.mubr.bf16.gmra.mxu1 %v12023_v39 }
 0x355   : > { %v4208_v7 = vmax.f32 %v4207_v15, %v3910_v32  ;;  %v4007_v6 = vpop.f32.mrf.mxu0  ;;  %4772 = vmatprep.mubr.bf16.mxu1 %v11897_v60 }
 0x356   : > { %v4247_v0 = vmax.f32 %v4246_v21, %v4007_v6  ;;  %v3912_v54 = vpop.f32.mrf.mxu1 }
 0x357   : > { %v4229_v47 = vmax.f32 %v4228_v3, %v3912_v54  ;;  %v4009_v44 = vpop.f32.mrf.mxu0  ;;  %v3593_v3 = vmax.f32 %v10628_v20, %v3592_v28 }
 0x358   : > { %v4268_v8 = vmax.f32 %v4267_v19, %v4009_v44  ;;  %v3914_v33 = vpop.f32.mrf.mxu1 }
 0x359   : > { %v4209_v45 = vmax.f32 %v4208_v7, %v3914_v33  ;;  %v4013_v30 = vpop.f32.mrf.mxu0  ;;  %5042 = vmatmul.mubr.bf16.gmra.mxu0 %v12063_v17  ;;  %v3614_v33 = vmax.f32 %v10632_v36, %v3613_v1 }
 0x35a   : > { %v4248_v48 = vmax.f32 %v4247_v0, %v4013_v30  ;;  %v3916_v39 = vpop.f32.mrf.mxu1  ;;  %5051 = vmatprep.mubr.bf16.mxu0 %v11897_v60 }
 0x35b   : > { %v4230_v15 = vmax.f32 %v4229_v47, %v3916_v39  ;;  %v4015_v23 = vpop.f32.mrf.mxu0  ;;  %v3594_v47 = vrot.slane %v3593_v3, 2 }
 0x35c   : > { %v4269_v21 = vmax.f32 %v4268_v8, %v4015_v23  ;;  %v3920_v32 = vpop.f32.mrf.mxu1  ;;  %4773 = vmatmul.mubr.bf16.gmra.mxu1 %v12024_v13  ;;  %v12064_v23 = vld [vmem:[#allocation74_spill] sm:$0xff]  ;;  %v3615_v13 = vrot.slane %v3614_v33, 2 }
 0x35d   : > { %v4210_v19 = vmax.f32 %v4209_v45, %v3920_v32  ;;  %v4017_v6 = vpop.f32.mrf.mxu0  ;;  %5104 = vmatprep.mubr.bf16.mxu1 %v11897_v60 }
 0x35e   : > { %v4249_v7 = vmax.f32 %v4248_v48, %v4017_v6  ;;  %v3922_v54 = vpop.f32.mrf.mxu1  ;;  %v3595_v48 = vmax.f32 %v3593_v3, %v3594_v47  ;;  %v3634_v6 = vrot.slane %v10645_v57, 4 }
 0x35f   : > { %v4231_v30 = vmax.f32 %v4230_v15, %v3922_v54  ;;  %v4019_v0 = vpop.f32.mrf.mxu0 }
 0x360   : > { %v4270_v44 = vmax.f32 %v4269_v21, %v4019_v0  ;;  %v3924_v61 = vpop.f32.mrf.mxu1 }
 0x361   : > { %v4211_v39 = vmax.f32 %v4210_v19, %v3924_v61  ;;  %v4023_v8 = vpop.f32.mrf.mxu0  ;;  %5052 = vmatmul.mubr.bf16.gmra.mxu0 %v12064_v23  ;;  %v3616_v19 = vmax.f32 %v3614_v33, %v3615_v13  ;;  %v3635_v33 = vmax.f32 %v10645_v57, %v3634_v6 }
 0x362   : > { %v4250_v5 = vmax.f32 %v4249_v7, %v4023_v8  ;;  %v3926_v20 = vpop.f32.mrf.mxu1  ;;  %5061 = vmatprep.mubr.bf16.mxu0 %v11897_v60 }
 0x363   : > { %v4212_v28 = vrot.slane %v4211_v39, 4  ;;  %v4232_v45 = vmax.f32 %v4231_v30, %v3926_v20  ;;  %v4025_v32 = vpop.f32.mrf.mxu0  ;;  %v3655_v30 = vrot.slane %v10648_v50, 4 }
 0x364   : > { %v4271_v36 = vmax.f32 %v4270_v44, %v4025_v32  ;;  %v4076_v1 = vpop.f32.mrf.mxu1  ;;  %5105 = vmatmul.mubr.bf16.vlgmr.msra.gmra.mxu1 %v12037_v53 }
 0x365   : > { %v4213_v15 = vmax.f32 %v4211_v39, %v4212_v28  ;;  %v4233_v21 = vrot.slane %v4232_v45, 4  ;;  %5299 = vmatpush1.bf16.msra.mxu1 %v9814_v37  ;;  %v4027_v61 = vpop.f32.mrf.mxu0  ;;  %5114 = vmatprep.mubr.bf16.mxu1 %v11897_v60  ;;  %v3596_v39 = vrot.slane %v3595_v48, 1 }
 0x366   : > { %v4251_v7 = vmax.f32 %v4250_v5, %v4027_v61  ;;  %v4078_v54 = vpop.f32.mrf.mxu1  ;;  %5300 = vmatprep.subr.bf16.mxu1 %v10102_v51  ;;  %v3617_v5 = vrot.slane %v3616_v19, 1 }
 0x367   : > { %v4214_v0 = vrot.slane %v4213_v15, 2  ;;  %v4234_v44 = vmax.f32 %v4232_v45, %v4233_v21  ;;  %v4029_v8 = vpop.f32.mrf.mxu0  ;;  %v12066_v45 = vld [vmem:[#allocation50_spill] sm:$0xff] }
 0x368   : > { %v4272_v3 = vmax.f32 %v4271_v36, %v4029_v8  ;;  %v4080_v47 = vpop.f32.mrf.mxu1  ;;  %v3656_v36 = vmax.f32 %v10648_v50, %v3655_v30  ;;  %v10809_v50 = vmax.f32 %v3616_v19, %v3617_v5  ;;  %v3636_v30 = vrot.slane %v3635_v33, 2  ;;  %v12071_v19 = vld [vmem:[#allocation5_spill] sm:$0xff] }
 0x369   : > { %v4215_v20 = vmax.f32 %v4213_v15, %v4214_v0  ;;  %v4235_v28 = vrot.slane %v4234_v44, 2  ;;  %v4281_v32 = vmax.f32 %v4076_v1, %v4080_v47  ;;  %v4033_v37 = vpop.f32.mrf.mxu0  ;;  %5062 = vmatmul.mubr.bf16.gmra.mxu0 %v12065_v22  ;;  %5301 = vmatpush1.bf16.msra.mxu1 %v11974_v9  ;;  %v10803_v9 = vmax.f32 %v3595_v48, %v3596_v39 }
 0x36a   : > { %v4252_v13 = vmax.f32 %v4251_v7, %v4033_v37  ;;  %v4082_v61 = vpop.f32.mrf.mxu1  ;;  %5217 = vmatprep.mubr.bf16.mxu0 %v11897_v60  ;;  %5302 = vmatprep.subr.bf16.mxu1 %v12066_v45  ;;  %v12067_v7 = vld [vmem:[#allocation51_spill] sm:$0xff] }
 0x36b   : > { %v4216_v21 = vrot.slane %v4215_v20, 1  ;;  %v4236_v15 = vmax.f32 %v4234_v44, %v4235_v28  ;;  %v4302_v0 = vmax.f32 %v4078_v54, %v4082_v61  ;;  %v4035_v1 = vpop.f32.mrf.mxu0 }
 0x36c   : > { %v4273_v8 = vmax.f32 %v4272_v3, %v4035_v1  ;;  %v4086_v47 = vpop.f32.mrf.mxu1  ;;  %5115 = vmatmul.mubr.bf16.gmra.mxu1 %v12041_v16  ;;  %v3657_v3 = vrot.slane %v3656_v36, 2 }
 0x36d   : > { %v10805_v51 = vmax.f32 %v4215_v20, %v4216_v21  ;;  %v4237_v37 = vrot.slane %v4236_v15, 1  ;;  %v4282_v57 = vmax.f32 %v4281_v32, %v4086_v47  ;;  %v4037_v6 = vpop.f32.mrf.mxu0  ;;  %5124 = vmatprep.mubr.bf16.mxu1 %v11897_v60  ;;  %5303 = vmatpush1.bf16.msra.mxu1 %v12067_v7  ;;  %v3637_v47 = vmax.f32 %v3635_v33, %v3636_v30 }
 0x36e   : > { %v4253_v54 = vmax.f32 %v4252_v13, %v4037_v6  ;;  %v4088_v44 = vpop.f32.mrf.mxu1  ;;  %5304 = vmatprep.subr.bf16.mxu1 %v12026_v55  ;;  %v12068_v13 = vld [vmem:[#allocation54_spill] sm:$0xff] }
 0x36f   : > { %v10814_v39 = vmax.f32 %v4236_v15, %v4237_v37  ;;  %v4303_v20 = vmax.f32 %v4302_v0, %v4088_v44  ;;  %v4039_v28 = vpop.f32.mrf.mxu0  ;;  %v12069_v15 = vld [vmem:[#allocation55_spill] sm:$0xff]  ;;  %v3658_v0 = vmax.f32 %v3656_v36, %v3657_v3 }
 0x370   : > { %v4254_v32 = vrot.slane %v4253_v54, 4  ;;  %v4274_v61 = vmax.f32 %v4273_v8, %v4039_v28  ;;  %v4090_v21 = vpop.f32.mrf.mxu1  ;;  %v12070_v44 = vld [vmem:[#allocation3_spill] sm:$0xff] }
 0x371   : > { %v4283_v5 = vmax.f32 %v4282_v57, %v4090_v21  ;;  %v4365_v1 = vpop.f32.mrf.mxu0  ;;  %5218 = vmatmul.mubr.bf16.vlgmr.msra.gmra.mxu0 %v12037_v53  ;;  %5305 = vmatpush1.bf16.msra.mxu1 %v12068_v13 }
 0x372   : > { %v4255_v6 = vmax.f32 %v4253_v54, %v4254_v32  ;;  %v4275_v55 = vrot.slane %v4274_v61, 4  ;;  %v4092_v48 = vpop.f32.mrf.mxu1  ;;  %5227 = vmatprep.mubr.bf16.mxu0 %v11897_v60  ;;  %5306 = vmatprep.subr.bf16.mxu1 %v12069_v15  ;;  %v12072_v54 = vld [vmem:[#allocation57_spill] sm:$0xff]  ;;  %v3638_v32 = vrot.slane %v3637_v47, 1 }
 0x373   : > { %v4304_v8 = vmax.f32 %v4303_v20, %v4092_v48  ;;  %v4367_v37 = vpop.f32.mrf.mxu0  ;;  %5588 = vmatpush1.bf16.msra.mxu0 %v12070_v44  ;;  %v3659_v20 = vrot.slane %v3658_v0, 1 }
 0x374   : > { %v4256_v28 = vrot.slane %v4255_v6, 2  ;;  %v4276_v57 = vmax.f32 %v4274_v61, %v4275_v55  ;;  %v4096_v21 = vpop.f32.mrf.mxu1  ;;  %5125 = vmatmul.mubr.bf16.gmra.mxu1 %v12051_v46  ;;  %5589 = vmatprep.subr.bf16.mxu0 %v12071_v19 }
 0x375   : > { %v4284_v33 = vmax.f32 %v4283_v5, %v4096_v21  ;;  %v4369_v30 = vpop.f32.mrf.mxu0  ;;  %5134 = vmatprep.mubr.bf16.mxu1 %v11897_v60  ;;  %5307 = vmatpush1.bf16.msra.mxu1 %v12072_v54 }
 0x376   : > { %v4257_v15 = vmax.f32 %v4255_v6, %v4256_v28  ;;  %v4277_v36 = vrot.slane %v4276_v57, 2  ;;  %v4783_v3 = vmax.f32 %v4365_v1, %v4369_v30  ;;  %v4098_v48 = vpop.f32.mrf.mxu1  ;;  %5308 = vmatprep.subr.bf16.mxu1 %v10176_v14  ;;  %v10832_v1 = vmax.f32 %v3637_v47, %v3638_v32 }
 0x377   : > { %v4305_v55 = vmax.f32 %v4304_v8, %v4098_v48  ;;  %v4371_v61 = vpop.f32.mrf.mxu0  ;;  %5590 = vmatpush1.bf16.msra.mxu0 %v9381_v11 }
 0x378   : > { %v4258_v44 = vrot.slane %v4257_v15, 1  ;;  %v4278_v19 = vmax.f32 %v4276_v57, %v4277_v36  ;;  %v4804_v5 = vmax.f32 %v4367_v37, %v4371_v61  ;;  %v4100_v21 = vpop.f32.mrf.mxu1  ;;  %5591 = vmatprep.subr.bf16.mxu0 %v12030_v63  ;;  %v10838_v37 = vmax.f32 %v3658_v0, %v3659_v20  ;;  %v12077_v36 = vld [vmem:[#allocation22_spill] sm:$0xff] }
 0x379   : > { %v4285_v13 = vmax.f32 %v4284_v33, %v4100_v21  ;;  %v4375_v54 = vpop.f32.mrf.mxu0  ;;  %5228 = vmatmul.mubr.bf16.gmra.mxu0 %v12041_v16  ;;  %5309 = vmatpush1.bf16.msra.mxu1 %v12031_v35 }
 0x37a   : > { %v10834_v6 = vmax.f32 %v4257_v15, %v4258_v44  ;;  %v4279_v8 = vrot.slane %v4278_v19, 1  ;;  %v4784_v28 = vmax.f32 %v4783_v3, %v4375_v54  ;;  %v4102_v30 = vpop.f32.mrf.mxu1  ;;  %5237 = vmatprep.mubr.bf16.mxu0 %v11897_v60  ;;  %5310 = vmatprep.subr.bf16.mxu1 %v11984_v49 }
 0x37b   : > { %v4306_v57 = vmax.f32 %v4305_v55, %v4102_v30  ;;  %v4377_v33 = vpop.f32.mrf.mxu0  ;;  %5592 = vmatpush1.bf16.msra.mxu0 %v9425_v31 }
 0x37c   : > { %v10843_v47 = vmax.f32 %v4278_v19, %v4279_v8  ;;  %v4805_v15 = vmax.f32 %v4804_v5, %v4377_v33  ;;  %v4106_v44 = vpop.f32.mrf.mxu1  ;;  %5135 = vmatmul.mubr.bf16.gmra.mxu1 %v12057_v2  ;;  %5593 = vmatprep.subr.bf16.mxu0 %v11985_v38  ;;  %v12073_v5 = vld [vmem:[#allocation11_spill] sm:$0xff] }
 0x37d   : > { %v4286_v54 = vmax.f32 %v4285_v13, %v4106_v44  ;;  %v4379_v32 = vpop.f32.mrf.mxu0  ;;  %5144 = vmatprep.mubr.bf16.mxu1 %v11897_v60  ;;  %5311 = vmatpush1.bf16.msra.mxu1 %v10212_v34  ;;  %v12074_v8 = vld [vmem:[#allocation63_spill] sm:$0xff]  ;;  %v12075_v44 = vld [vmem:[#allocation12_spill] sm:$0xff] }
 0x37e   : > { %v4785_v3 = vmax.f32 %v4784_v28, %v4379_v32  ;;  %v4108_v48 = vpop.f32.mrf.mxu1  ;;  %5312 = vmatprep.subr.bf16.mxu1 %v10216_v27 }
 0x37f   : > { %v4307_v19 = vmax.f32 %v4306_v57, %v4108_v48  ;;  %v4381_v20 = vpop.f32.mrf.mxu0  ;;  %5594 = vmatpush1.bf16.msra.mxu0 %v9469_v52 }
 0x380   : > { %v4806_v55 = vmax.f32 %v4805_v15, %v4381_v20  ;;  %v4110_v61 = vpop.f32.mrf.mxu1  ;;  %5595 = vmatprep.subr.bf16.mxu0 %v12073_v5 }
 0x381   : > { %v4287_v13 = vmax.f32 %v4286_v54, %v4110_v61  ;;  %v4385_v21 = vpop.f32.mrf.mxu0  ;;  %5238 = vmatmul.mubr.bf16.gmra.mxu0 %v12051_v46  ;;  %5313 = vmatpush1.bf16.msra.mxu1 %v12074_v8  ;;  %v12076_v54 = vld [vmem:[#allocation18_spill] sm:$0xff] }
 0x382   : > { %v4786_v30 = vmax.f32 %v4785_v3, %v4385_v21  ;;  %v4112_v33 = vpop.f32.mrf.mxu1  ;;  %5247 = vmatprep.mubr.bf16.mxu0 %v11897_v60  ;;  %5700 = vmatprep.subr.bf16.mxu1 %v12032_v62 }
 0x383   : > { %v4308_v28 = vmax.f32 %v4307_v19, %v4112_v33  ;;  %v4387_v57 = vpop.f32.mrf.mxu0  ;;  %5596 = vmatpush1.bf16.msra.mxu0 %v12075_v44 }
 0x384   : > { %v4807_v15 = vmax.f32 %v4806_v55, %v4387_v57  ;;  %v4116_v32 = vpop.f32.mrf.mxu1  ;;  %5145 = vmatmul.mubr.bf16.gmra.mxu1 %v12062_v40  ;;  %5597 = vmatprep.subr.bf16.mxu0 %v12076_v54 }
 0x385   : > { %v4288_v48 = vmax.f32 %v4287_v13, %v4116_v32  ;;  %v4389_v20 = vpop.f32.mrf.mxu0  ;;  %5154 = vmatprep.mubr.bf16.mxu1 %v11897_v60 }
 0x386   : > { %v4787_v3 = vmax.f32 %v4786_v30, %v4389_v20  ;;  %v4118_v61 = vpop.f32.mrf.mxu1  ;;  %v12078_v30 = vld [vmem:[#allocation23_spill] sm:$0xff] }
 0x387   : > { %v4309_v21 = vmax.f32 %v4308_v28, %v4118_v61  ;;  %v4391_v0 = vpop.f32.mrf.mxu0  ;;  %5598 = vmatpush1.bf16.msra.mxu0 %v9651_v43  ;;  %v12081_v43 = vld [vmem:[#allocation30_spill] sm:$0xff] }
 0x388   : > { %v4808_v19 = vmax.f32 %v4807_v15, %v4391_v0  ;;  %v4120_v33 = vpop.f32.mrf.mxu1  ;;  %5599 = vmatprep.subr.bf16.mxu0 %v12077_v36  ;;  %v12079_v0 = vld [vmem:[#allocation26_spill] sm:$0xff]  ;;  %v12080_v36 = vld [vmem:[#allocation27_spill] sm:$0xff] }
 0x389   : > { %v4289_v55 = vmax.f32 %v4288_v48, %v4120_v33  ;;  %v4395_v57 = vpop.f32.mrf.mxu0  ;;  %5248 = vmatmul.mubr.bf16.gmra.mxu0 %v12057_v2 }
 0x38a   : > { %v4788_v44 = vmax.f32 %v4787_v3, %v4395_v57  ;;  %v4122_v54 = vpop.f32.mrf.mxu1  ;;  %5257 = vmatprep.mubr.bf16.mxu0 %v11897_v60 }
 0x38b   : > { %v4310_v13 = vmax.f32 %v4309_v21, %v4122_v54  ;;  %v4397_v32 = vpop.f32.mrf.mxu0  ;;  %5600 = vmatpush1.bf16.msra.mxu0 %v12078_v30 }
 0x38c   : > { %v4809_v28 = vmax.f32 %v4808_v19, %v4397_v32  ;;  %v4126_v20 = vpop.f32.mrf.mxu1  ;;  %5155 = vmatmul.mubr.bf16.gmra.mxu1 %v12063_v17  ;;  %5601 = vmatprep.subr.bf16.mxu0 %v12079_v0 }
 0x38d   : > { %v4290_v15 = vmax.f32 %v4289_v55, %v4126_v20  ;;  %v4399_v61 = vpop.f32.mrf.mxu0  ;;  %5164 = vmatprep.mubr.bf16.mxu1 %v11897_v60 }
 0x38e   : > { %v4789_v48 = vmax.f32 %v4788_v44, %v4399_v61  ;;  %v4128_v33 = vpop.f32.mrf.mxu1 }
 0x38f   : > { %v4311_v3 = vmax.f32 %v4310_v13, %v4128_v33  ;;  %v4401_v57 = vpop.f32.mrf.mxu0  ;;  %5602 = vmatpush1.bf16.msra.mxu0 %v12080_v36 }
 0x390   : > { %v4810_v54 = vmax.f32 %v4809_v28, %v4401_v57  ;;  %v4130_v21 = vpop.f32.mrf.mxu1  ;;  %5813 = vmatprep.subr.bf16.mxu0 %v12081_v43 }
 0x391   : > { %v4291_v19 = vmax.f32 %v4290_v15, %v4130_v21  ;;  %v4405_v32 = vpop.f32.mrf.mxu0  ;;  %5258 = vmatmul.mubr.bf16.gmra.mxu0 %v12062_v40 }
 0x392   : > { %v4790_v30 = vmax.f32 %v4789_v48, %v4405_v32  ;;  %v4132_v0 = vpop.f32.mrf.mxu1  ;;  %5267 = vmatprep.mubr.bf16.mxu0 %v11897_v60  ;;  %v3676_v48 = vrot.slane %v10700_v58, 4 }
 0x393   : > { %v4312_v55 = vmax.f32 %v4311_v3, %v4132_v0  ;;  %v4407_v20 = vpop.f32.mrf.mxu0 }
 0x394   : > { %v4811_v44 = vmax.f32 %v4810_v54, %v4407_v20  ;;  %v4136_v61 = vpop.f32.mrf.mxu1  ;;  %5165 = vmatmul.mubr.bf16.gmra.mxu1 %v12064_v23  ;;  %v3697_v54 = vrot.slane %v10704_v10, 4 }
 0x395   : > { %v4292_v13 = vmax.f32 %v4291_v19, %v4136_v61  ;;  %v4409_v33 = vpop.f32.mrf.mxu0  ;;  %5174 = vmatprep.mubr.bf16.mxu1 %v11897_v60 }
 0x396   : > { %v4791_v28 = vmax.f32 %v4790_v30, %v4409_v33  ;;  %v4138_v57 = vpop.f32.mrf.mxu1 }
 0x397   : > { %v4313_v15 = vmax.f32 %v4312_v55, %v4138_v57  ;;  %v4411_v21 = vpop.f32.mrf.mxu0  ;;  %v3677_v55 = vmax.f32 %v10700_v58, %v3676_v48 }
 0x398   : > { %v4812_v43 = vmax.f32 %v4811_v44, %v4411_v21  ;;  %v4140_v36 = vpop.f32.mrf.mxu1 }
 0x399   : > { %v4293_v32 = vmax.f32 %v4292_v13, %v4140_v36  ;;  %v4415_v62 = vpop.f32.mrf.mxu0  ;;  %5268 = vmatmul.mubr.bf16.gmra.mxu0 %v12063_v17 }
 0x39a   : > { %v4792_v0 = vmax.f32 %v4791_v28, %v4415_v62  ;;  %v4142_v3 = vpop.f32.mrf.mxu1  ;;  %5277 = vmatprep.mubr.bf16.mxu0 %v11897_v60  ;;  %v3698_v62 = vmax.f32 %v10704_v10, %v3697_v54 }
 0x39b   : > { %v4314_v19 = vmax.f32 %v4313_v15, %v4142_v3  ;;  %v4417_v20 = vpop.f32.mrf.mxu0  ;;  %v3678_v15 = vrot.slane %v3677_v55, 2 }
 0x39c   : > { %v4813_v30 = vmax.f32 %v4812_v43, %v4417_v20  ;;  %v4146_v61 = vpop.f32.mrf.mxu1  ;;  %5175 = vmatmul.mubr.bf16.gmra.mxu1 %v12065_v22  ;;  %v3699_v58 = vrot.slane %v3698_v62, 2 }
 0x39d   : > { %v4294_v44 = vmax.f32 %v4293_v32, %v4146_v61  ;;  %v4419_v33 = vpop.f32.mrf.mxu0  ;;  %5330 = vmatprep.mubr.bf16.mxu1 %v11897_v60  ;;  %v3679_v10 = vmax.f32 %v3677_v55, %v3678_v15 }
 0x39e   : > { %v4793_v36 = vmax.f32 %v4792_v0, %v4419_v33  ;;  %v4148_v13 = vpop.f32.mrf.mxu1 }
 0x39f   : > { %v4315_v28 = vmax.f32 %v4314_v19, %v4148_v13  ;;  %v4421_v57 = vpop.f32.mrf.mxu0 }
 0x3a0   : > { %v4814_v21 = vmax.f32 %v4813_v30, %v4421_v57  ;;  %v4150_v8 = vpop.f32.mrf.mxu1 }
 0x3a1   : > { %v4295_v3 = vmax.f32 %v4294_v44, %v4150_v8  ;;  %v4425_v43 = vpop.f32.mrf.mxu0  ;;  %5278 = vmatmul.mubr.bf16.gmra.mxu0 %v12064_v23 }
 0x3a2   : > { %v4794_v20 = vmax.f32 %v4793_v36, %v4425_v43  ;;  %v4152_v5 = vpop.f32.mrf.mxu1  ;;  %5287 = vmatprep.mubr.bf16.mxu0 %v11897_v60  ;;  %v3700_v36 = vmax.f32 %v3698_v62, %v3699_v58  ;;  %v3680_v43 = vrot.slane %v3679_v10, 1 }
 0x3a3   : > { %v4296_v48 = vrot.slane %v4295_v3, 4  ;;  %v4316_v32 = vmax.f32 %v4315_v28, %v4152_v5  ;;  %v4427_v0 = vpop.f32.mrf.mxu0 }
 0x3a4   : > { %v4815_v61 = vmax.f32 %v4814_v21, %v4427_v0  ;;  %v4478_v33 = vpop.f32.mrf.mxu1  ;;  %5331 = vmatmul.mubr.bf16.vlgmr.msra.gmra.mxu1 %v12037_v53  ;;  %v12082_v0 = vld [vmem:[#allocation10_spill] sm:$0xff]  ;;  %v3701_v62 = vrot.slane %v3700_v36, 1 }
 0x3a5   : > { %v4297_v54 = vmax.f32 %v4295_v3, %v4296_v48  ;;  %v4317_v19 = vrot.slane %v4316_v32, 4  ;;  %5701 = vmatpush1.bf16.msra.mxu1 %v9338_v56  ;;  %v4429_v8 = vpop.f32.mrf.mxu0  ;;  %5340 = vmatprep.mubr.bf16.mxu1 %v11897_v60 }
 0x3a6   : > { %v4795_v30 = vmax.f32 %v4794_v20, %v4429_v8  ;;  %v4480_v44 = vpop.f32.mrf.mxu1  ;;  %5702 = vmatprep.subr.bf16.mxu1 %v9518_v29 }
 0x3a7   : > { %v4298_v13 = vrot.slane %v4297_v54, 2  ;;  %v4318_v5 = vmax.f32 %v4316_v32, %v4317_v19  ;;  %v4431_v28 = vpop.f32.mrf.mxu0 }
 0x3a8   : > { %v4816_v57 = vmax.f32 %v4815_v61, %v4431_v28  ;;  %v4482_v21 = vpop.f32.mrf.mxu1 }
 0x3a9   : > { %v4299_v53 = vmax.f32 %v4297_v54, %v4298_v13  ;;  %v4319_v55 = vrot.slane %v4318_v5, 2  ;;  %v4825_v15 = vmax.f32 %v4478_v33, %v4482_v21  ;;  %v4435_v3 = vpop.f32.mrf.mxu0  ;;  %5288 = vmatmul.mubr.bf16.gmra.mxu0 %v12065_v22  ;;  %5703 = vmatpush1.bf16.msra.mxu1 %v9533_v41  ;;  %v10895_v33 = vmax.f32 %v3679_v10, %v3680_v43 }
 0x3aa   : > { %v4796_v48 = vmax.f32 %v4795_v30, %v4435_v3  ;;  %v4484_v20 = vpop.f32.mrf.mxu1  ;;  %5619 = vmatprep.mubr.bf16.mxu0 %v11897_v60  ;;  %5704 = vmatprep.subr.bf16.mxu1 %v12082_v0  ;;  %v12083_v3 = vld [vmem:[#allocation13_spill] sm:$0xff] }
 0x3ab   : > { %v4300_v58 = vrot.slane %v4299_v53, 1  ;;  %v4320_v32 = vmax.f32 %v4318_v5, %v4319_v55  ;;  %v4846_v61 = vmax.f32 %v4480_v44, %v4484_v20  ;;  %v4437_v19 = vpop.f32.mrf.mxu0  ;;  %v10902_v44 = vmax.f32 %v3700_v36, %v3701_v62 }
 0x3ac   : > { %v4817_v8 = vmax.f32 %v4816_v57, %v4437_v19  ;;  %v4488_v54 = vpop.f32.mrf.mxu1  ;;  %5341 = vmatmul.mubr.bf16.gmra.mxu1 %v12041_v16  ;;  %v12085_v19 = vld [vmem:[#allocation15_spill] sm:$0xff] }
 0x3ad   : > { %v10897_v13 = vmax.f32 %v4299_v53, %v4300_v58  ;;  %v4321_v28 = vrot.slane %v4320_v32, 1  ;;  %v4826_v30 = vmax.f32 %v4825_v15, %v4488_v54  ;;  %v4439_v21 = vpop.f32.mrf.mxu0  ;;  %5350 = vmatprep.mubr.bf16.mxu1 %v11897_v60  ;;  %5705 = vmatpush1.bf16.msra.mxu1 %v12083_v3  ;;  %v12084_v58 = vld [vmem:[#allocation76_spill] sm:$0xff] }
 0x3ae   : > { %v4797_v0 = vmax.f32 %v4796_v48, %v4439_v21  ;;  %v4490_v41 = vpop.f32.mrf.mxu1  ;;  %5706 = vmatprep.subr.bf16.mxu1 %v9567_v4 }
 0x3af   : > { %v10906_v10 = vmax.f32 %v4320_v32, %v4321_v28  ;;  %v4847_v5 = vmax.f32 %v4846_v61, %v4490_v41  ;;  %v4441_v57 = vpop.f32.mrf.mxu0  ;;  %v12086_v32 = vld [vmem:[#allocation16_spill] sm:$0xff] }
 0x3b0   : > { %v4798_v43 = vrot.slane %v4797_v0, 4  ;;  %v4818_v53 = vmax.f32 %v4817_v8, %v4441_v57  ;;  %v4492_v55 = vpop.f32.mrf.mxu1  ;;  %v12087_v8 = vld [vmem:[#allocation31_spill] sm:$0xff] }
 0x3b1   : > { %v4827_v20 = vmax.f32 %v4826_v30, %v4492_v55  ;;  %v4591_v48 = vpop.f32.mrf.mxu0  ;;  %5620 = vmatmul.mubr.bf16.vlgmr.msra.gmra.mxu0 %v12084_v58  ;;  %5707 = vmatpush1.bf16.msra.mxu1 %v12085_v19  ;;  %v12088_v30 = vld [vmem:[#allocation34_spill] sm:$0xff]  ;;  %v12090_v19 = vld [vmem:[#allocation75_spill] sm:$0xff] }
 0x3b2   : > { %v4799_v36 = vmax.f32 %v4797_v0, %v4798_v43  ;;  %v4819_v62 = vrot.slane %v4818_v53, 4  ;;  %v4494_v54 = vpop.f32.mrf.mxu1  ;;  %5629 = vmatprep.mubr.bf16.mxu0 %v11897_v60  ;;  %5708 = vmatprep.subr.bf16.mxu1 %v12086_v32  ;;  %v12089_v0 = vld [vmem:[#allocation17_spill] sm:$0xff] }
 0x3b3   : > { %v4848_v41 = vmax.f32 %v4847_v5, %v4494_v54  ;;  %v4593_v61 = vpop.f32.mrf.mxu0  ;;  %5814 = vmatpush1.bf16.msra.mxu0 %v12087_v8 }
 0x3b4   : > { %v4800_v28 = vrot.slane %v4799_v36, 2  ;;  %v4820_v21 = vmax.f32 %v4818_v53, %v4819_v62  ;;  %v4498_v57 = vpop.f32.mrf.mxu1  ;;  %5351 = vmatmul.mubr.bf16.gmra.mxu1 %v12051_v46  ;;  %5815 = vmatprep.subr.bf16.mxu0 %v12088_v30 }
 0x3b5   : > { %v4828_v55 = vmax.f32 %v4827_v20, %v4498_v57  ;;  %v4595_v15 = vpop.f32.mrf.mxu0  ;;  %5360 = vmatprep.mubr.bf16.mxu1 %v11897_v60  ;;  %5709 = vmatpush1.bf16.msra.mxu1 %v12089_v0 }
 0x3b6   : > { %v4801_v43 = vmax.f32 %v4799_v36, %v4800_v28  ;;  %v4821_v16 = vrot.slane %v4820_v21, 2  ;;  %v4867_v32 = vmax.f32 %v4591_v48, %v4595_v15  ;;  %v4500_v5 = vpop.f32.mrf.mxu1  ;;  %5710 = vmatprep.subr.bf16.mxu1 %v12002_v25 }
 0x3b7   : > { %v4849_v54 = vmax.f32 %v4848_v41, %v4500_v5  ;;  %v4597_v8 = vpop.f32.mrf.mxu0  ;;  %5816 = vmatpush1.bf16.msra.mxu0 %v12039_v12 }
 0x3b8   : > { %v4802_v53 = vrot.slane %v4801_v43, 1  ;;  %v4822_v46 = vmax.f32 %v4820_v21, %v4821_v16  ;;  %v4888_v62 = vmax.f32 %v4593_v61, %v4597_v8  ;;  %v4502_v30 = vpop.f32.mrf.mxu1  ;;  %5817 = vmatprep.subr.bf16.mxu0 %v12040_v24  ;;  %v12091_v61 = vld [vmem:[#allocation56_spill] sm:$0xff] }
 0x3b9   : > { %v4829_v20 = vmax.f32 %v4828_v55, %v4502_v30  ;;  %v4601_v57 = vpop.f32.mrf.mxu0  ;;  %5630 = vmatmul.mubr.bf16.gmra.mxu0 %v12090_v19  ;;  %5711 = vmatpush1.bf16.msra.mxu1 %v12042_v42  ;;  %v12092_v8 = vmax.f32 %v10736_v59, %v12091_v61  ;;  %v12102_v61 = vld [vmem:[#allocation40_spill] sm:$0xff] }
 0x3ba   : > { %v4803_v15 = vmax.f32 %v4801_v43, %v4802_v53  ;;  %v4823_v48 = vrot.slane %v4822_v46, 1  ;;  %v4868_v36 = vmax.f32 %v4867_v32, %v4601_v57  ;;  %v4504_v28 = vpop.f32.mrf.mxu1  ;;  %5639 = vmatprep.mubr.bf16.mxu0 %v11897_v60  ;;  %5712 = vmatprep.subr.bf16.mxu1 %v12044_v18  ;;  %v12094_v32 = vld [vmem:[#allocation38_spill] sm:$0xff]  ;;  %v12096_v57 = vld [vmem:[#allocation53_spill] sm:$0xff] }
 0x3bb   : > { %v4850_v41 = vmax.f32 %v4849_v54, %v4504_v28  ;;  %v4603_v16 = vpop.f32.mrf.mxu0  ;;  %5818 = vmatpush1.bf16.msra.mxu0 %v12046_v26  ;;  %v12095_v54 = vld [vmem:[#allocation25_spill] sm:$0xff] }
 0x3bc   : > { %v10930_v21 = vmax.f32 %v12092_v8, %v4803_v15  ;;  %v4824_v30 = vmax.f32 %v4822_v46, %v4823_v48  ;;  %v4889_v55 = vmax.f32 %v4888_v62, %v4603_v16  ;;  %v4508_v5 = vpop.f32.mrf.mxu1  ;;  %5361 = vmatmul.mubr.bf16.gmra.mxu1 %v12057_v2  ;;  %5819 = vmatprep.subr.bf16.mxu0 %v12094_v32  ;;  %v12097_v28 = vld [vmem:[#allocation61_spill] sm:$0xff]  ;;  %v12100_v46 = vld [vmem:[#allocation28_spill] sm:$0xff]  ;;  %v12101_v2 = vld [vmem:[#allocation39_spill] sm:$0xff] }
 0x3bd   : > { %v4830_v43 = vmax.f32 %v4829_v20, %v4508_v5  ;;  %v4605_v53 = vpop.f32.mrf.mxu0  ;;  %5370 = vmatprep.mubr.bf16.mxu1 %v11897_v60  ;;  %5713 = vmatpush1.bf16.msra.mxu1 %v12095_v54  ;;  %v12098_v26 = vmax.f32 %v12096_v57, %v12097_v28  ;;  %v12103_v54 = vld [vmem:[#allocation78_spill] sm:$0xff]  ;;  %v12104_v32 = vld [vmem:[#allocation29_spill] sm:$0xff] }
 0x3be   : > { %12093 = vst [vmem:[#allocation58_spill] sm:$0xff] %v10930_v21  ;;  %v4869_v59 = vmax.f32 %v4868_v36, %v4605_v53  ;;  %v4510_v15 = vpop.f32.mrf.mxu1  ;;  %5714 = vmatprep.subr.bf16.mxu1 %v12100_v46  ;;  %v12105_v36 = vld [vmem:[#allocation32_spill] sm:$0xff]  ;;  %v12106_v57 = vld [vmem:[#allocation41_spill] sm:$0xff] }
 0x3bf   : > { %v10939_v18 = vmax.f32 %v12098_v26, %v4824_v30  ;;  %v4851_v62 = vmax.f32 %v4850_v41, %v4510_v15  ;;  %v4607_v48 = vpop.f32.mrf.mxu0  ;;  %5820 = vmatpush1.bf16.msra.mxu0 %v12101_v2  ;;  %v12116_v2 = vld [vmem:[#allocation79_spill] sm:$0xff] }
 0x3c0   : > { %v4890_v16 = vmax.f32 %v4889_v55, %v4607_v48  ;;  %v4512_v20 = vpop.f32.mrf.mxu1  ;;  %5821 = vmatprep.subr.bf16.mxu0 %v12102_v61  ;;  %v12108_v61 = vld [vmem:[#allocation43_spill] sm:$0xff] }
 0x3c1   : > { %12099 = vst [vmem:[#allocation64_spill] sm:$0xff] %v10939_v18  ;;  %v4831_v8 = vmax.f32 %v4830_v43, %v4512_v20  ;;  %v4611_v5 = vpop.f32.mrf.mxu0  ;;  %5640 = vmatmul.mubr.bf16.gmra.mxu0 %v12103_v54  ;;  %5715 = vmatpush1.bf16.msra.mxu1 %v12104_v32  ;;  %v12107_v43 = vld [vmem:[#allocation42_spill] sm:$0xff] }
 0x3c2   : > { %v4870_v26 = vmax.f32 %v4869_v59, %v4611_v5  ;;  %v4514_v30 = vpop.f32.mrf.mxu1  ;;  %5649 = vmatprep.mubr.bf16.mxu0 %v11897_v60  ;;  %5926 = vmatprep.subr.bf16.mxu1 %v12105_v36  ;;  %v12109_v36 = vld [vmem:[#allocation44_spill] sm:$0xff] }
 0x3c3   : > { %v4852_v41 = vmax.f32 %v4851_v62, %v4514_v30  ;;  %v4613_v53 = vpop.f32.mrf.mxu0  ;;  %5822 = vmatpush1.bf16.msra.mxu0 %v12106_v57  ;;  %v12110_v57 = vld [vmem:[#allocation77_spill] sm:$0xff] }
 0x3c4   : > { %v4891_v55 = vmax.f32 %v4890_v16, %v4613_v53  ;;  %v4518_v28 = vpop.f32.mrf.mxu1  ;;  %5371 = vmatmul.mubr.bf16.gmra.mxu1 %v12062_v40  ;;  %5823 = vmatprep.subr.bf16.mxu0 %v12107_v43 }
 0x3c5   : > { %v4832_v15 = vmax.f32 %v4831_v8, %v4518_v28  ;;  %v4615_v48 = vpop.f32.mrf.mxu0  ;;  %5380 = vmatprep.mubr.bf16.mxu1 %v11897_v60 }
 0x3c6   : > { %v4871_v59 = vmax.f32 %v4870_v26, %v4615_v48  ;;  %v4520_v20 = vpop.f32.mrf.mxu1  ;;  %v12111_v26 = vld [vmem:[#allocation45_spill] sm:$0xff] }
 0x3c7   : > { %v4853_v5 = vmax.f32 %v4852_v41, %v4520_v20  ;;  %v4617_v32 = vpop.f32.mrf.mxu0  ;;  %5824 = vmatpush1.bf16.msra.mxu0 %v12108_v61  ;;  %v12114_v61 = vld [vmem:[#allocation2_spill] sm:$0xff] }
 0x3c8   : > { %v4892_v62 = vmax.f32 %v4891_v55, %v4617_v32  ;;  %v4522_v30 = vpop.f32.mrf.mxu1  ;;  %5825 = vmatprep.subr.bf16.mxu0 %v12109_v36  ;;  %v12112_v32 = vld [vmem:[#allocation46_spill] sm:$0xff]  ;;  %v12113_v36 = vld [vmem:[#allocation47_spill] sm:$0xff] }
 0x3c9   : > { %v4833_v16 = vmax.f32 %v4832_v15, %v4522_v30  ;;  %v4621_v53 = vpop.f32.mrf.mxu0  ;;  %5650 = vmatmul.mubr.bf16.gmra.mxu0 %v12110_v57 }
 0x3ca   : > { %v4872_v40 = vmax.f32 %v4871_v59, %v4621_v53  ;;  %v4524_v43 = vpop.f32.mrf.mxu1  ;;  %5659 = vmatprep.mubr.bf16.mxu0 %v11897_v60 }
 0x3cb   : > { %v4854_v8 = vmax.f32 %v4853_v5, %v4524_v43  ;;  %v4623_v28 = vpop.f32.mrf.mxu0  ;;  %5826 = vmatpush1.bf16.msra.mxu0 %v12111_v26  ;;  %v12115_v26 = vld [vmem:[#allocation80_spill] sm:$0xff] }
 0x3cc   : > { %v4893_v41 = vmax.f32 %v4892_v62, %v4623_v28  ;;  %v4528_v48 = vpop.f32.mrf.mxu1  ;;  %5381 = vmatmul.mubr.bf16.gmra.mxu1 %v12063_v17  ;;  %5827 = vmatprep.subr.bf16.mxu0 %v12112_v32 }
 0x3cd   : > { %v4834_v55 = vmax.f32 %v4833_v16, %v4528_v48  ;;  %v4625_v20 = vpop.f32.mrf.mxu0  ;;  %5390 = vmatprep.mubr.bf16.mxu1 %v11897_v60 }
 0x3ce   : > { %v4873_v15 = vmax.f32 %v4872_v40, %v4625_v20  ;;  %v4530_v30 = vpop.f32.mrf.mxu1 }
 0x3cf   : > { %v4855_v59 = vmax.f32 %v4854_v8, %v4530_v30  ;;  %v4627_v53 = vpop.f32.mrf.mxu0  ;;  %5828 = vmatpush1.bf16.msra.mxu0 %v12113_v36 }
 0x3d0   : > { %v4894_v43 = vmax.f32 %v4893_v41, %v4627_v53  ;;  %v4532_v5 = vpop.f32.mrf.mxu1  ;;  %6215 = vmatprep.subr.bf16.mxu0 %v12114_v61 }
 0x3d1   : > { %v4835_v62 = vmax.f32 %v4834_v55, %v4532_v5  ;;  %v4631_v28 = vpop.f32.mrf.mxu0  ;;  %5660 = vmatmul.mubr.bf16.gmra.mxu0 %v12115_v26 }
 0x3d2   : > { %v4874_v17 = vmax.f32 %v4873_v15, %v4631_v28  ;;  %v4534_v32 = vpop.f32.mrf.mxu1  ;;  %5669 = vmatprep.mubr.bf16.mxu0 %v11897_v60 }
 0x3d3   : > { %v4856_v16 = vmax.f32 %v4855_v59, %v4534_v32  ;;  %v4633_v48 = vpop.f32.mrf.mxu0 }
 0x3d4   : > { %v4895_v40 = vmax.f32 %v4894_v43, %v4633_v48  ;;  %v4538_v20 = vpop.f32.mrf.mxu1  ;;  %5391 = vmatmul.mubr.bf16.gmra.mxu1 %v12064_v23 }
 0x3d5   : > { %v4836_v8 = vmax.f32 %v4835_v62, %v4538_v20  ;;  %v4635_v30 = vpop.f32.mrf.mxu0  ;;  %5400 = vmatprep.mubr.bf16.mxu1 %v11897_v60 }
 0x3d6   : > { %v4875_v41 = vmax.f32 %v4874_v17, %v4635_v30  ;;  %v4540_v53 = vpop.f32.mrf.mxu1 }
 0x3d7   : > { %v4857_v55 = vmax.f32 %v4856_v16, %v4540_v53  ;;  %v4637_v5 = vpop.f32.mrf.mxu0 }
 0x3d8   : > { %v4896_v61 = vmax.f32 %v4895_v40, %v4637_v5  ;;  %v4542_v36 = vpop.f32.mrf.mxu1 }
 0x3d9   : > { %v4837_v15 = vmax.f32 %v4836_v8, %v4542_v36  ;;  %v4641_v28 = vpop.f32.mrf.mxu0  ;;  %5670 = vmatmul.mubr.bf16.gmra.mxu0 %v12116_v2 }
 0x3da   : > { %v4876_v32 = vmax.f32 %v4875_v41, %v4641_v28  ;;  %v4544_v59 = vpop.f32.mrf.mxu1  ;;  %5679 = vmatprep.mubr.bf16.mxu0 %v11897_v60  ;;  %v12117_v28 = vld [vmem:[#allocation82_spill] sm:$0xff] }
 0x3db   : > { %v4858_v43 = vmax.f32 %v4857_v55, %v4544_v59  ;;  %v4643_v23 = vpop.f32.mrf.mxu0 }
 0x3dc   : > { %v4897_v62 = vmax.f32 %v4896_v61, %v4643_v23  ;;  %v4548_v48 = vpop.f32.mrf.mxu1  ;;  %5401 = vmatmul.mubr.bf16.gmra.mxu1 %v12065_v22 }
 0x3dd   : > { %v4838_v17 = vmax.f32 %v4837_v15, %v4548_v48  ;;  %v4645_v20 = vpop.f32.mrf.mxu0  ;;  %5732 = vmatprep.mubr.bf16.mxu1 %v11897_v60 }
 0x3de   : > { %v4877_v16 = vmax.f32 %v4876_v32, %v4645_v20  ;;  %v4550_v40 = vpop.f32.mrf.mxu1  ;;  %v12118_v20 = vld [vmem:[#allocation33_spill] sm:$0xff] }
 0x3df   : > { %v4859_v36 = vmax.f32 %v4858_v43, %v4550_v40  ;;  %v4647_v8 = vpop.f32.mrf.mxu0 }
 0x3e0   : > { %v4898_v30 = vmax.f32 %v4897_v62, %v4647_v8  ;;  %v4552_v53 = vpop.f32.mrf.mxu1 }
 0x3e1   : > { %v4839_v41 = vmax.f32 %v4838_v17, %v4552_v53  ;;  %v4651_v5 = vpop.f32.mrf.mxu0  ;;  %5680 = vmatmul.mubr.bf16.gmra.mxu0 %v12117_v28 }
 0x3e2   : > { %v4878_v55 = vmax.f32 %v4877_v16, %v4651_v5  ;;  %v4554_v59 = vpop.f32.mrf.mxu1  ;;  %5689 = vmatprep.mubr.bf16.mxu0 %v11897_v60  ;;  %v12119_v16 = vld [vmem:[#allocation48_spill] sm:$0xff] }
 0x3e3   : > { %v4840_v61 = vrot.slane %v4839_v41, 4  ;;  %v4860_v22 = vmax.f32 %v4859_v36, %v4554_v59  ;;  %v4653_v15 = vpop.f32.mrf.mxu0 }
 0x3e4   : > { %v4899_v23 = vmax.f32 %v4898_v30, %v4653_v15  ;;  %v4704_v48 = vpop.f32.mrf.mxu1  ;;  %5733 = vmatmul.mubr.bf16.vlgmr.msra.gmra.mxu1 %v12084_v58 }
 0x3e5   : > { %v4841_v32 = vmax.f32 %v4839_v41, %v4840_v61  ;;  %v4861_v43 = vrot.slane %v4860_v22, 4  ;;  %5927 = vmatpush1.bf16.msra.mxu1 %v12118_v20  ;;  %v4655_v62 = vpop.f32.mrf.mxu0  ;;  %5742 = vmatprep.mubr.bf16.mxu1 %v11897_v60  ;;  %v12120_v41 = vld [vmem:[#allocation81_spill] sm:$0xff] }
 0x3e6   : > { %v4879_v17 = vmax.f32 %v4878_v55, %v4655_v62  ;;  %v4706_v40 = vpop.f32.mrf.mxu1  ;;  %5928 = vmatprep.subr.bf16.mxu1 %v12119_v16  ;;  %v12121_v61 = vld [vmem:[#allocation49_spill] sm:$0xff] }
 0x3e7   : > { %v4842_v8 = vrot.slane %v4841_v32, 2  ;;  %v4862_v53 = vmax.f32 %v4860_v22, %v4861_v43  ;;  %v4657_v5 = vpop.f32.mrf.mxu0 }
 0x3e8   : > { %v4900_v36 = vmax.f32 %v4899_v23, %v4657_v5  ;;  %v4708_v59 = vpop.f32.mrf.mxu1 }
 0x3e9   : > { %v4843_v30 = vmax.f32 %v4841_v32, %v4842_v8  ;;  %v4863_v15 = vrot.slane %v4862_v53, 2  ;;  %v4909_v46 = vmax.f32 %v4704_v48, %v4708_v59  ;;  %v4661_v18 = vpop.f32.mrf.mxu0  ;;  %5690 = vmatmul.mubr.bf16.gmra.mxu0 %v12120_v41  ;;  %5929 = vmatpush1.bf16.msra.mxu1 %v12121_v61  ;;  %v12122_v61 = vld [vmem:[#allocation52_spill] sm:$0xff] }
 0x3ea   : > { %v4880_v20 = vmax.f32 %v4879_v17, %v4661_v18  ;;  %v4710_v21 = vpop.f32.mrf.mxu1  ;;  %5845 = vmatprep.mubr.bf16.mxu0 %v11897_v60  ;;  %5930 = vmatprep.subr.bf16.mxu1 %v12066_v45 }
 0x3eb   : > { %v4844_v55 = vrot.slane %v4843_v30, 1  ;;  %v4864_v62 = vmax.f32 %v4862_v53, %v4863_v15  ;;  %v4930_v22 = vmax.f32 %v4706_v40, %v4710_v21  ;;  %v4663_v43 = vpop.f32.mrf.mxu0  ;;  %v12123_v21 = vmax.f32 %v10803_v9, %v10805_v51 }
 0x3ec   : > { %v4901_v23 = vmax.f32 %v4900_v36, %v4663_v43  ;;  %v4714_v5 = vpop.f32.mrf.mxu1  ;;  %5743 = vmatmul.mubr.bf16.gmra.mxu1 %v12090_v19  ;;  %v12124_v43 = vmax.f32 %v10809_v50, %v10814_v39 }
 0x3ed   : > { %v4845_v48 = vmax.f32 %v4843_v30, %v4844_v55  ;;  %v4865_v32 = vrot.slane %v4864_v62, 1  ;;  %v4910_v8 = vmax.f32 %v4909_v46, %v4714_v5  ;;  %v4665_v59 = vpop.f32.mrf.mxu0  ;;  %5752 = vmatprep.mubr.bf16.mxu1 %v11897_v60  ;;  %5931 = vmatpush1.bf16.msra.mxu1 %v12067_v7 }
 0x3ee   : > { %v4881_v18 = vmax.f32 %v4880_v20, %v4665_v59  ;;  %v4716_v17 = vpop.f32.mrf.mxu1  ;;  %5932 = vmatprep.subr.bf16.mxu1 %v12122_v61  ;;  %v12125_v61 = vld [vmem:[#allocation54_spill] sm:$0xff] }
 0x3ef   : > { %v10987_v40 = vmax.f32 %v12123_v21, %v4845_v48  ;;  %v4866_v53 = vmax.f32 %v4864_v62, %v4865_v32  ;;  %v4931_v36 = vmax.f32 %v4930_v22, %v4716_v17  ;;  %v4667_v15 = vpop.f32.mrf.mxu0  ;;  %v12126_v62 = vld [vmem:[#allocation55_spill] sm:$0xff] }
 0x3f0   : > { %v4882_v30 = vrot.slane %v4881_v18, 4  ;;  %v4902_v55 = vmax.f32 %v4901_v23, %v4667_v15  ;;  %v4718_v46 = vpop.f32.mrf.mxu1  ;;  %v12127_v32 = vld [vmem:[#allocation3_spill] sm:$0xff] }
 0x3f1   : > { %v10992_v5 = vmax.f32 %v12124_v43, %v4866_v53  ;;  %v4911_v20 = vmax.f32 %v4910_v8, %v4718_v46  ;;  %v4993_v59 = vpop.f32.mrf.mxu0  ;;  %5846 = vmatmul.mubr.bf16.vlgmr.msra.gmra.mxu0 %v12084_v58  ;;  %5933 = vmatpush1.bf16.msra.mxu1 %v12125_v61  ;;  %v12128_v8 = vld [vmem:[#allocation5_spill] sm:$0xff] }
 0x3f2   : > { %v4883_v51 = vmax.f32 %v4881_v18, %v4882_v30  ;;  %v4903_v9 = vrot.slane %v4902_v55, 4  ;;  %v4720_v48 = vpop.f32.mrf.mxu1  ;;  %5855 = vmatprep.mubr.bf16.mxu0 %v11897_v60  ;;  %5934 = vmatprep.subr.bf16.mxu1 %v12126_v62  ;;  %v12129_v18 = vld [vmem:[#allocation57_spill] sm:$0xff] }
 0x3f3   : > { %v4932_v22 = vmax.f32 %v4931_v36, %v4720_v48  ;;  %v4995_v23 = vpop.f32.mrf.mxu0  ;;  %6216 = vmatpush1.bf16.msra.mxu0 %v12127_v32 }
 0x3f4   : > { %v4884_v50 = vrot.slane %v4883_v51, 2  ;;  %v4904_v39 = vmax.f32 %v4902_v55, %v4903_v9  ;;  %v4724_v17 = vpop.f32.mrf.mxu1  ;;  %5753 = vmatmul.mubr.bf16.gmra.mxu1 %v12103_v54  ;;  %6217 = vmatprep.subr.bf16.mxu0 %v12128_v8 }
 0x3f5   : > { %v4912_v21 = vmax.f32 %v4911_v20, %v4724_v17  ;;  %v4997_v53 = vpop.f32.mrf.mxu0  ;;  %5762 = vmatprep.mubr.bf16.mxu1 %v11897_v60  ;;  %5935 = vmatpush1.bf16.msra.mxu1 %v12129_v18 }
 0x3f6   : > { %v4885_v15 = vmax.f32 %v4883_v51, %v4884_v50  ;;  %v4905_v30 = vrot.slane %v4904_v39, 2  ;;  %v5411_v46 = vmax.f32 %v4993_v59, %v4997_v53  ;;  %v4726_v36 = vpop.f32.mrf.mxu1  ;;  %5936 = vmatprep.subr.bf16.mxu1 %v10176_v14 }
 0x3f7   : > { %v4933_v43 = vmax.f32 %v4932_v22, %v4726_v36  ;;  %v4999_v48 = vpop.f32.mrf.mxu0  ;;  %6218 = vmatpush1.bf16.msra.mxu0 %v9381_v11 }
 0x3f8   : > { %v4886_v55 = vrot.slane %v4885_v15, 1  ;;  %v4906_v9 = vmax.f32 %v4904_v39, %v4905_v30  ;;  %v5432_v32 = vmax.f32 %v4995_v23, %v4999_v48  ;;  %v4728_v8 = vpop.f32.mrf.mxu1  ;;  %6219 = vmatprep.subr.bf16.mxu0 %v12030_v63  ;;  %v12130_v23 = vmax.f32 %v10832_v1, %v10834_v6 }
 0x3f9   : > { %v4913_v20 = vmax.f32 %v4912_v21, %v4728_v8  ;;  %v5003_v17 = vpop.f32.mrf.mxu0  ;;  %5856 = vmatmul.mubr.bf16.gmra.mxu0 %v12090_v19  ;;  %5937 = vmatpush1.bf16.msra.mxu1 %v12031_v35 }
 0x3fa   : > { %v4887_v59 = vmax.f32 %v4885_v15, %v4886_v55  ;;  %v4907_v51 = vrot.slane %v4906_v9, 1  ;;  %v5412_v50 = vmax.f32 %v5411_v46, %v5003_v17  ;;  %v4730_v53 = vpop.f32.mrf.mxu1  ;;  %5865 = vmatprep.mubr.bf16.mxu0 %v11897_v60  ;;  %5938 = vmatprep.subr.bf16.mxu1 %v11984_v49  ;;  %v12132_v17 = vld [vmem:[#allocation11_spill] sm:$0xff] }
 0x3fb   : > { %v4934_v22 = vmax.f32 %v4933_v43, %v4730_v53  ;;  %v5005_v39 = vpop.f32.mrf.mxu0  ;;  %6220 = vmatpush1.bf16.msra.mxu0 %v9425_v31  ;;  %v12131_v43 = vmax.f32 %v10838_v37, %v10843_v47  ;;  %v12133_v53 = vld [vmem:[#allocation63_spill] sm:$0xff] }
 0x3fc   : > { %v11014_v8 = vmax.f32 %v12130_v23, %v4887_v59  ;;  %v4908_v21 = vmax.f32 %v4906_v9, %v4907_v51  ;;  %v5433_v30 = vmax.f32 %v5432_v32, %v5005_v39  ;;  %v4734_v36 = vpop.f32.mrf.mxu1  ;;  %5763 = vmatmul.mubr.bf16.gmra.mxu1 %v12110_v57  ;;  %6221 = vmatprep.subr.bf16.mxu0 %v11985_v38  ;;  %v12135_v23 = vld [vmem:[#allocation12_spill] sm:$0xff] }
 0x3fd   : > { %v4914_v15 = vmax.f32 %v4913_v20, %v4734_v36  ;;  %v5007_v46 = vpop.f32.mrf.mxu0  ;;  %5772 = vmatprep.mubr.bf16.mxu1 %v11897_v60  ;;  %5939 = vmatpush1.bf16.msra.mxu1 %v10212_v34  ;;  %v12136_v36 = vld [vmem:[#allocation18_spill] sm:$0xff] }
 0x3fe   : > { %v11023_v48 = vmax.f32 %v12131_v43, %v4908_v21  ;;  %v5413_v1 = vmax.f32 %v5412_v50, %v5007_v46  ;;  %v4736_v6 = vpop.f32.mrf.mxu1  ;;  %5940 = vmatprep.subr.bf16.mxu1 %v10216_v27  ;;  %v12134_v50 = vld [vmem:[#allocation4_spill] sm:$0xff] }
 0x3ff   : > { %v4935_v32 = vmax.f32 %v4934_v22, %v4736_v6  ;;  %v5009_v55 = vpop.f32.mrf.mxu0  ;;  %6222 = vmatpush1.bf16.msra.mxu0 %v9469_v52 }
 0x400   : > { %v5434_v9 = vmax.f32 %v5433_v30, %v5009_v55  ;;  %v4738_v20 = vpop.f32.mrf.mxu1  ;;  %6223 = vmatprep.subr.bf16.mxu0 %v12132_v17 }
 0x401   : > { %v4915_v59 = vmax.f32 %v4914_v15, %v4738_v20  ;;  %v5013_v51 = vpop.f32.mrf.mxu0  ;;  %5866 = vmatmul.mubr.bf16.gmra.mxu0 %v12103_v54  ;;  %5941 = vmatpush1.bf16.msra.mxu1 %v12133_v53  ;;  %v12137_v20 = vld [vmem:[#allocation19_spill] sm:$0xff] }
 0x402   : > { %v5414_v37 = vmax.f32 %v5413_v1, %v5013_v51  ;;  %v4740_v47 = vpop.f32.mrf.mxu1  ;;  %5875 = vmatprep.mubr.bf16.mxu0 %v11897_v60  ;;  %6328 = vmatprep.subr.bf16.mxu1 %v12134_v50 }
 0x403   : > { %v4936_v22 = vmax.f32 %v4935_v32, %v4740_v47  ;;  %v5015_v39 = vpop.f32.mrf.mxu0  ;;  %6224 = vmatpush1.bf16.msra.mxu0 %v12135_v23  ;;  %v12138_v47 = vld [vmem:[#allocation22_spill] sm:$0xff] }
 0x404   : > { %v5435_v21 = vmax.f32 %v5434_v9, %v5015_v39  ;;  %v4744_v30 = vpop.f32.mrf.mxu1  ;;  %5773 = vmatmul.mubr.bf16.gmra.mxu1 %v12115_v26  ;;  %6225 = vmatprep.subr.bf16.mxu0 %v12136_v36 }
 0x405   : > { %v4916_v15 = vmax.f32 %v4915_v59, %v4744_v30  ;;  %v5017_v46 = vpop.f32.mrf.mxu0  ;;  %5782 = vmatprep.mubr.bf16.mxu1 %v11897_v60 }
 0x406   : > { %v5415_v43 = vmax.f32 %v5414_v37, %v5017_v46  ;;  %v4746_v1 = vpop.f32.mrf.mxu1  ;;  %v12139_v37 = vld [vmem:[#allocation23_spill] sm:$0xff] }
 0x407   : > { %v4937_v6 = vmax.f32 %v4936_v22, %v4746_v1  ;;  %v5019_v55 = vpop.f32.mrf.mxu0  ;;  %6226 = vmatpush1.bf16.msra.mxu0 %v12137_v20  ;;  %v12142_v20 = vld [vmem:[#allocation30_spill] sm:$0xff] }
 0x408   : > { %v5436_v32 = vmax.f32 %v5435_v21, %v5019_v55  ;;  %v4748_v51 = vpop.f32.mrf.mxu1  ;;  %6227 = vmatprep.subr.bf16.mxu0 %v12138_v47  ;;  %v12140_v21 = vld [vmem:[#allocation26_spill] sm:$0xff]  ;;  %v12141_v47 = vld [vmem:[#allocation27_spill] sm:$0xff] }
 0x409   : > { %v4917_v9 = vmax.f32 %v4916_v15, %v4748_v51  ;;  %v5023_v39 = vpop.f32.mrf.mxu0  ;;  %5876 = vmatmul.mubr.bf16.gmra.mxu0 %v12110_v57 }
 0x40a   : > { %v5416_v23 = vmax.f32 %v5415_v43, %v5023_v39  ;;  %v4750_v36 = vpop.f32.mrf.mxu1  ;;  %5885 = vmatprep.mubr.bf16.mxu0 %v11897_v60 }
 0x40b   : > { %v4938_v59 = vmax.f32 %v4937_v6, %v4750_v36  ;;  %v5025_v30 = vpop.f32.mrf.mxu0  ;;  %6228 = vmatpush1.bf16.msra.mxu0 %v12139_v37 }
 0x40c   : > { %v5437_v22 = vmax.f32 %v5436_v32, %v5025_v30  ;;  %v4754_v46 = vpop.f32.mrf.mxu1  ;;  %5783 = vmatmul.mubr.bf16.gmra.mxu1 %v12116_v2  ;;  %6229 = vmatprep.subr.bf16.mxu0 %v12140_v21 }
 0x40d   : > { %v4918_v1 = vmax.f32 %v4917_v9, %v4754_v46  ;;  %v5027_v55 = vpop.f32.mrf.mxu0  ;;  %5792 = vmatprep.mubr.bf16.mxu1 %v11897_v60 }
 0x40e   : > { %v5417_v15 = vmax.f32 %v5416_v23, %v5027_v55  ;;  %v4756_v51 = vpop.f32.mrf.mxu1 }
 0x40f   : > { %v4939_v43 = vmax.f32 %v4938_v59, %v4756_v51  ;;  %v5029_v39 = vpop.f32.mrf.mxu0  ;;  %6230 = vmatpush1.bf16.msra.mxu0 %v12141_v47 }
 0x410   : > { %v5438_v36 = vmax.f32 %v5437_v22, %v5029_v39  ;;  %v4758_v6 = vpop.f32.mrf.mxu1  ;;  %6441 = vmatprep.subr.bf16.mxu0 %v12142_v20 }
 0x411   : > { %v4919_v32 = vmax.f32 %v4918_v1, %v4758_v6  ;;  %v5033_v30 = vpop.f32.mrf.mxu0  ;;  %5886 = vmatmul.mubr.bf16.gmra.mxu0 %v12115_v26 }
 0x412   : > { %v5418_v37 = vmax.f32 %v5417_v15, %v5033_v30  ;;  %v4760_v21 = vpop.f32.mrf.mxu1  ;;  %5895 = vmatprep.mubr.bf16.mxu0 %v11897_v60 }
 0x413   : > { %v4940_v9 = vmax.f32 %v4939_v43, %v4760_v21  ;;  %v5035_v46 = vpop.f32.mrf.mxu0 }
 0x414   : > { %v5439_v23 = vmax.f32 %v5438_v36, %v5035_v46  ;;  %v4764_v55 = vpop.f32.mrf.mxu1  ;;  %5793 = vmatmul.mubr.bf16.gmra.mxu1 %v12117_v28 }
 0x415   : > { %v4920_v59 = vmax.f32 %v4919_v32, %v4764_v55  ;;  %v5037_v51 = vpop.f32.mrf.mxu0  ;;  %5802 = vmatprep.mubr.bf16.mxu1 %v11897_v60 }
 0x416   : > { %v5419_v22 = vmax.f32 %v5418_v37, %v5037_v51  ;;  %v4766_v39 = vpop.f32.mrf.mxu1 }
 0x417   : > { %v4941_v1 = vmax.f32 %v4940_v9, %v4766_v39  ;;  %v5039_v6 = vpop.f32.mrf.mxu0 }
 0x418   : > { %v5440_v20 = vmax.f32 %v5439_v23, %v5039_v6  ;;  %v4768_v47 = vpop.f32.mrf.mxu1 }
 0x419   : > { %v4921_v15 = vmax.f32 %v4920_v59, %v4768_v47  ;;  %v5043_v30 = vpop.f32.mrf.mxu0  ;;  %5896 = vmatmul.mubr.bf16.gmra.mxu0 %v12116_v2 }
 0x41a   : > { %v5420_v21 = vmax.f32 %v5419_v22, %v5043_v30  ;;  %v4770_v43 = vpop.f32.mrf.mxu1  ;;  %5905 = vmatprep.mubr.bf16.mxu0 %v11897_v60 }
 0x41b   : > { %v4942_v36 = vmax.f32 %v4941_v1, %v4770_v43  ;;  %v5045_v46 = vpop.f32.mrf.mxu0 }
 0x41c   : > { %v5441_v32 = vmax.f32 %v5440_v20, %v5045_v46  ;;  %v4774_v55 = vpop.f32.mrf.mxu1  ;;  %5803 = vmatmul.mubr.bf16.gmra.mxu1 %v12120_v41 }
 0x41d   : > { %v4922_v37 = vmax.f32 %v4921_v15, %v4774_v55  ;;  %v5047_v51 = vpop.f32.mrf.mxu0  ;;  %5958 = vmatprep.mubr.bf16.mxu1 %v11897_v60 }
 0x41e   : > { %v5421_v9 = vmax.f32 %v5420_v21, %v5047_v51  ;;  %v4776_v23 = vpop.f32.mrf.mxu1 }
 0x41f   : > { %v4943_v47 = vmax.f32 %v4942_v36, %v4776_v23  ;;  %v5049_v59 = vpop.f32.mrf.mxu0 }
 0x420   : > { %v5442_v39 = vmax.f32 %v5441_v32, %v5049_v59  ;;  %v4778_v6 = vpop.f32.mrf.mxu1 }
 0x421   : > { %v4923_v22 = vmax.f32 %v4922_v37, %v4778_v6  ;;  %v5053_v30 = vpop.f32.mrf.mxu0  ;;  %5906 = vmatmul.mubr.bf16.gmra.mxu0 %v12117_v28 }
 0x422   : > { %v5422_v1 = vmax.f32 %v5421_v9, %v5053_v30  ;;  %v4780_v43 = vpop.f32.mrf.mxu1  ;;  %5915 = vmatprep.mubr.bf16.mxu0 %v11897_v60 }
 0x423   : > { %v4924_v20 = vrot.slane %v4923_v22, 4  ;;  %v4944_v46 = vmax.f32 %v4943_v47, %v4780_v43  ;;  %v5055_v15 = vpop.f32.mrf.mxu0 }
 0x424   : > { %v5443_v55 = vmax.f32 %v5442_v39, %v5055_v15  ;;  %v5106_v50 = vpop.f32.mrf.mxu1  ;;  %5959 = vmatmul.mubr.bf16.vlgmr.msra.gmra.mxu1 %v12084_v58 }
 0x425   : > { %v4925_v21 = vmax.f32 %v4923_v22, %v4924_v20  ;;  %v4945_v36 = vrot.slane %v4944_v46, 4  ;;  %6329 = vmatpush1.bf16.msra.mxu1 %v9338_v56  ;;  %v5057_v32 = vpop.f32.mrf.mxu0  ;;  %5968 = vmatprep.mubr.bf16.mxu1 %v11897_v60  ;;  %v12143_v22 = vld [vmem:[#allocation9_spill] sm:$0xff] }
 0x426   : > { %v5423_v37 = vmax.f32 %v5422_v1, %v5057_v32  ;;  %v5108_v51 = vpop.f32.mrf.mxu1  ;;  %6330 = vmatprep.subr.bf16.mxu1 %v9518_v29  ;;  %v12144_v1 = vld [vmem:[#allocation10_spill] sm:$0xff] }
 0x427   : > { %v4926_v9 = vrot.slane %v4925_v21, 2  ;;  %v4946_v23 = vmax.f32 %v4944_v46, %v4945_v36  ;;  %v5059_v59 = vpop.f32.mrf.mxu0 }
 0x428   : > { %v5444_v47 = vmax.f32 %v5443_v55, %v5059_v59  ;;  %v5110_v6 = vpop.f32.mrf.mxu1 }
 0x429   : > { %v4927_v39 = vmax.f32 %v4925_v21, %v4926_v9  ;;  %v4947_v30 = vrot.slane %v4946_v23, 2  ;;  %v5453_v43 = vmax.f32 %v5106_v50, %v5110_v6  ;;  %v5063_v58 = vpop.f32.mrf.mxu0  ;;  %5916 = vmatmul.mubr.bf16.gmra.mxu0 %v12120_v41  ;;  %6331 = vmatpush1.bf16.msra.mxu1 %v12143_v22 }
 0x42a   : > { %v5424_v20 = vmax.f32 %v5423_v37, %v5063_v58  ;;  %v5112_v15 = vpop.f32.mrf.mxu1  ;;  %6247 = vmatprep.mubr.bf16.mxu0 %v11897_v60  ;;  %6332 = vmatprep.subr.bf16.mxu1 %v12144_v1 }
 0x42b   : > { %v4928_v32 = vrot.slane %v4927_v39, 1  ;;  %v4948_v29 = vmax.f32 %v4946_v23, %v4947_v30  ;;  %v5474_v46 = vmax.f32 %v5108_v51, %v5112_v15  ;;  %v5065_v36 = vpop.f32.mrf.mxu0  ;;  %v12145_v51 = vmax.f32 %v10895_v33, %v10897_v13 }
 0x42c   : > { %v5445_v55 = vmax.f32 %v5444_v47, %v5065_v36  ;;  %v5116_v59 = vpop.f32.mrf.mxu1  ;;  %5969 = vmatmul.mubr.bf16.gmra.mxu1 %v12090_v19 }
 0x42d   : > { %v4929_v50 = vmax.f32 %v4927_v39, %v4928_v32  ;;  %v4949_v21 = vrot.slane %v4948_v29, 1  ;;  %v5454_v9 = vmax.f32 %v5453_v43, %v5116_v59  ;;  %v5067_v6 = vpop.f32.mrf.mxu0  ;;  %5978 = vmatprep.mubr.bf16.mxu1 %v11897_v60  ;;  %6333 = vmatpush1.bf16.msra.mxu1 %v12083_v3  ;;  %v12146_v32 = vmax.f32 %v10902_v44, %v10906_v10 }
 0x42e   : > { %v5425_v37 = vmax.f32 %v5424_v20, %v5067_v6  ;;  %v5118_v58 = vpop.f32.mrf.mxu1  ;;  %6334 = vmatprep.subr.bf16.mxu1 %v9567_v4  ;;  %v12147_v6 = vld [vmem:[#allocation84_spill] sm:$0xff]  ;;  %v12148_v4 = vld [vmem:[#allocation15_spill] sm:$0xff] }
 0x42f   : > { %v11071_v23 = vmax.f32 %v12145_v51, %v4929_v50  ;;  %v4950_v47 = vmax.f32 %v4948_v29, %v4949_v21  ;;  %v5475_v30 = vmax.f32 %v5474_v46, %v5118_v58  ;;  %v5069_v19 = vpop.f32.mrf.mxu0  ;;  %v12149_v29 = vld [vmem:[#allocation16_spill] sm:$0xff]  ;;  %v12150_v21 = vld [vmem:[#allocation31_spill] sm:$0xff] }
 0x430   : > { %v5426_v39 = vrot.slane %v5425_v37, 4  ;;  %v5446_v15 = vmax.f32 %v5445_v55, %v5069_v19  ;;  %v5120_v43 = vpop.f32.mrf.mxu1 }
 0x431   : > { %v11076_v36 = vmax.f32 %v12146_v32, %v4950_v47  ;;  %v5455_v20 = vmax.f32 %v5454_v9, %v5120_v43  ;;  %v5219_v59 = vpop.f32.mrf.mxu0  ;;  %6248 = vmatmul.mubr.bf16.vlgmr.msra.gmra.mxu0 %v12147_v6  ;;  %6335 = vmatpush1.bf16.msra.mxu1 %v12148_v4  ;;  %v12151_v9 = vld [vmem:[#allocation34_spill] sm:$0xff] }
 0x432   : > { %v5427_v33 = vmax.f32 %v5425_v37, %v5426_v39  ;;  %v5447_v13 = vrot.slane %v5446_v15, 4  ;;  %v5122_v50 = vpop.f32.mrf.mxu1  ;;  %6257 = vmatprep.mubr.bf16.mxu0 %v11897_v60  ;;  %6336 = vmatprep.subr.bf16.mxu1 %v12149_v29 }
 0x433   : > { %v5476_v46 = vmax.f32 %v5475_v30, %v5122_v50  ;;  %v5221_v55 = vpop.f32.mrf.mxu0  ;;  %6442 = vmatpush1.bf16.msra.mxu0 %v12150_v21 }
 0x434   : > { %v5428_v44 = vrot.slane %v5427_v33, 2  ;;  %v5448_v10 = vmax.f32 %v5446_v15, %v5447_v13  ;;  %v5126_v58 = vpop.f32.mrf.mxu1  ;;  %5979 = vmatmul.mubr.bf16.gmra.mxu1 %v12103_v54  ;;  %6443 = vmatprep.subr.bf16.mxu0 %v12151_v9  ;;  %v12152_v9 = vld [vmem:[#allocation83_spill] sm:$0xff] }
 0x435   : > { %v5456_v51 = vmax.f32 %v5455_v20, %v5126_v58  ;;  %v5223_v47 = vpop.f32.mrf.mxu0  ;;  %5988 = vmatprep.mubr.bf16.mxu1 %v11897_v60  ;;  %6337 = vmatpush1.bf16.msra.mxu1 %v12089_v0 }
 0x436   : > { %v5429_v37 = vmax.f32 %v5427_v33, %v5428_v44  ;;  %v5449_v19 = vrot.slane %v5448_v10, 2  ;;  %v5495_v39 = vmax.f32 %v5219_v59, %v5223_v47  ;;  %v5128_v30 = vpop.f32.mrf.mxu1  ;;  %6338 = vmatprep.subr.bf16.mxu1 %v12002_v25  ;;  %v12154_v47 = vld [vmem:[#allocation24_spill] sm:$0xff] }
 0x437   : > { %v5477_v43 = vmax.f32 %v5476_v46, %v5128_v30  ;;  %v5225_v32 = vpop.f32.mrf.mxu0  ;;  %6444 = vmatpush1.bf16.msra.mxu0 %v12039_v12  ;;  %v12161_v30 = vld [vmem:[#allocation28_spill] sm:$0xff] }
 0x438   : > { %v5430_v15 = vrot.slane %v5429_v37, 1  ;;  %v5450_v54 = vmax.f32 %v5448_v10, %v5449_v19  ;;  %v5516_v13 = vmax.f32 %v5221_v55, %v5225_v32  ;;  %v5130_v50 = vpop.f32.mrf.mxu1  ;;  %6445 = vmatprep.subr.bf16.mxu0 %v12040_v24  ;;  %v12155_v19 = vld [vmem:[#allocation37_spill] sm:$0xff] }
 0x439   : > { %v5457_v20 = vmax.f32 %v5456_v51, %v5130_v50  ;;  %v5229_v58 = vpop.f32.mrf.mxu0  ;;  %6258 = vmatmul.mubr.bf16.gmra.mxu0 %v12152_v9  ;;  %6339 = vmatpush1.bf16.msra.mxu1 %v12042_v42 }
 0x43a   : > { %v11092_v59 = vmax.f32 %v5429_v37, %v5430_v15  ;;  %v5451_v33 = vrot.slane %v5450_v54, 1  ;;  %v5496_v44 = vmax.f32 %v5495_v39, %v5229_v58  ;;  %v5132_v46 = vpop.f32.mrf.mxu1  ;;  %6267 = vmatprep.mubr.bf16.mxu0 %v11897_v60  ;;  %6340 = vmatprep.subr.bf16.mxu1 %v12154_v47  ;;  %v12158_v37 = vld [vmem:[#allocation38_spill] sm:$0xff]  ;;  %v12159_v58 = vld [vmem:[#allocation25_spill] sm:$0xff] }
 0x43b   : > { %v5478_v10 = vmax.f32 %v5477_v43, %v5132_v46  ;;  %v5231_v55 = vpop.f32.mrf.mxu0  ;;  %6446 = vmatpush1.bf16.msra.mxu0 %v12155_v19 }
 0x43c   : > { %12153 = vst [vmem:[#allocation62_spill] sm:$0xff] %v11092_v59  ;;  %v11099_v32 = vmax.f32 %v5450_v54, %v5451_v33  ;;  %v5517_v50 = vmax.f32 %v5516_v13, %v5231_v55  ;;  %v5136_v42 = vpop.f32.mrf.mxu1  ;;  %5989 = vmatmul.mubr.bf16.gmra.mxu1 %v12110_v57  ;;  %6447 = vmatprep.subr.bf16.mxu0 %v12158_v37  ;;  %v12162_v33 = vld [vmem:[#allocation39_spill] sm:$0xff]  ;;  %v12163_v37 = vld [vmem:[#allocation40_spill] sm:$0xff]  ;;  %v12164_v59 = vld [vmem:[#allocation86_spill] sm:$0xff] }
 0x43d   : > { %v5458_v39 = vmax.f32 %v5457_v20, %v5136_v42  ;;  %v5233_v15 = vpop.f32.mrf.mxu0  ;;  %5998 = vmatprep.mubr.bf16.mxu1 %v11897_v60  ;;  %6341 = vmatpush1.bf16.msra.mxu1 %v12159_v58  ;;  %v12165_v58 = vld [vmem:[#allocation29_spill] sm:$0xff] }
 0x43e   : > { %12157 = vst [vmem:[#allocation66_spill] sm:$0xff] %v11099_v32  ;;  %v5497_v19 = vmax.f32 %v5496_v44, %v5233_v15  ;;  %v5138_v47 = vpop.f32.mrf.mxu1  ;;  %6342 = vmatprep.subr.bf16.mxu1 %v12161_v30  ;;  %v12166_v44 = vld [vmem:[#allocation32_spill] sm:$0xff]  ;;  %v12167_v15 = vld [vmem:[#allocation41_spill] sm:$0xff]  ;;  %v12169_v30 = vld [vmem:[#allocation43_spill] sm:$0xff] }
 0x43f   : > { %v5479_v54 = vmax.f32 %v5478_v10, %v5138_v47  ;;  %v5235_v13 = vpop.f32.mrf.mxu0  ;;  %6448 = vmatpush1.bf16.msra.mxu0 %v12162_v33  ;;  %v12177_v32 = vld [vmem:[#allocation87_spill] sm:$0xff] }
 0x440   : > { %v5518_v57 = vmax.f32 %v5517_v50, %v5235_v13  ;;  %v5140_v55 = vpop.f32.mrf.mxu1  ;;  %6449 = vmatprep.subr.bf16.mxu0 %v12163_v37 }
 0x441   : > { %v5459_v42 = vmax.f32 %v5458_v39, %v5140_v55  ;;  %v5239_v20 = vpop.f32.mrf.mxu0  ;;  %6268 = vmatmul.mubr.bf16.gmra.mxu0 %v12164_v59  ;;  %6343 = vmatpush1.bf16.msra.mxu1 %v12165_v58  ;;  %v12168_v39 = vld [vmem:[#allocation42_spill] sm:$0xff] }
 0x442   : > { %v5498_v51 = vmax.f32 %v5497_v19, %v5239_v20  ;;  %v5142_v46 = vpop.f32.mrf.mxu1  ;;  %6277 = vmatprep.mubr.bf16.mxu0 %v11897_v60  ;;  %6554 = vmatprep.subr.bf16.mxu1 %v12166_v44  ;;  %v12170_v44 = vld [vmem:[#allocation44_spill] sm:$0xff] }
 0x443   : > { %v5480_v47 = vmax.f32 %v5479_v54, %v5142_v46  ;;  %v5241_v10 = vpop.f32.mrf.mxu0  ;;  %6450 = vmatpush1.bf16.msra.mxu0 %v12167_v15  ;;  %v12171_v15 = vld [vmem:[#allocation85_spill] sm:$0xff] }
 0x444   : > { %v5519_v50 = vmax.f32 %v5518_v57, %v5241_v10  ;;  %v5146_v13 = vpop.f32.mrf.mxu1  ;;  %5999 = vmatmul.mubr.bf16.gmra.mxu1 %v12115_v26  ;;  %6451 = vmatprep.subr.bf16.mxu0 %v12168_v39 }
 0x445   : > { %v5460_v55 = vmax.f32 %v5459_v42, %v5146_v13  ;;  %v5243_v37 = vpop.f32.mrf.mxu0  ;;  %6008 = vmatprep.mubr.bf16.mxu1 %v11897_v60 }
 0x446   : > { %v5499_v19 = vmax.f32 %v5498_v51, %v5243_v37  ;;  %v5148_v20 = vpop.f32.mrf.mxu1  ;;  %v12172_v51 = vld [vmem:[#allocation45_spill] sm:$0xff] }
 0x447   : > { %v5481_v58 = vmax.f32 %v5480_v47, %v5148_v20  ;;  %v5245_v33 = vpop.f32.mrf.mxu0  ;;  %6452 = vmatpush1.bf16.msra.mxu0 %v12169_v30  ;;  %v12175_v30 = vld [vmem:[#allocation2_spill] sm:$0xff] }
 0x448   : > { %v5520_v46 = vmax.f32 %v5519_v50, %v5245_v33  ;;  %v5150_v54 = vpop.f32.mrf.mxu1  ;;  %6453 = vmatprep.subr.bf16.mxu0 %v12170_v44  ;;  %v12173_v33 = vld [vmem:[#allocation46_spill] sm:$0xff]  ;;  %v12174_v44 = vld [vmem:[#allocation47_spill] sm:$0xff] }
 0x449   : > { %v5461_v57 = vmax.f32 %v5460_v55, %v5150_v54  ;;  %v5249_v10 = vpop.f32.mrf.mxu0  ;;  %6278 = vmatmul.mubr.bf16.gmra.mxu0 %v12171_v15 }
 0x44a   : > { %v5500_v26 = vmax.f32 %v5499_v19, %v5249_v10  ;;  %v5152_v39 = vpop.f32.mrf.mxu1  ;;  %6287 = vmatprep.mubr.bf16.mxu0 %v11897_v60 }
 0x44b   : > { %v5482_v42 = vmax.f32 %v5481_v58, %v5152_v39  ;;  %v5251_v13 = vpop.f32.mrf.mxu0  ;;  %6454 = vmatpush1.bf16.msra.mxu0 %v12172_v51  ;;  %v12176_v51 = vld [vmem:[#allocation88_spill] sm:$0xff] }
 0x44c   : > { %v5521_v37 = vmax.f32 %v5520_v46, %v5251_v13  ;;  %v5156_v47 = vpop.f32.mrf.mxu1  ;;  %6009 = vmatmul.mubr.bf16.gmra.mxu1 %v12116_v2  ;;  %6455 = vmatprep.subr.bf16.mxu0 %v12173_v33 }
 0x44d   : > { %v5462_v50 = vmax.f32 %v5461_v57, %v5156_v47  ;;  %v5253_v20 = vpop.f32.mrf.mxu0  ;;  %6018 = vmatprep.mubr.bf16.mxu1 %v11897_v60 }
 0x44e   : > { %v5501_v55 = vmax.f32 %v5500_v26, %v5253_v20  ;;  %v5158_v54 = vpop.f32.mrf.mxu1 }
 0x44f   : > { %v5483_v19 = vmax.f32 %v5482_v42, %v5158_v54  ;;  %v5255_v10 = vpop.f32.mrf.mxu0  ;;  %6456 = vmatpush1.bf16.msra.mxu0 %v12174_v44 }
 0x450   : > { %v5522_v58 = vmax.f32 %v5521_v37, %v5255_v10  ;;  %v5160_v39 = vpop.f32.mrf.mxu1  ;;  %6843 = vmatprep.subr.bf16.mxu0 %v12175_v30 }
 0x451   : > { %v5463_v46 = vmax.f32 %v5462_v50, %v5160_v39  ;;  %v5259_v13 = vpop.f32.mrf.mxu0  ;;  %6288 = vmatmul.mubr.bf16.gmra.mxu0 %v12176_v51 }
 0x452   : > { %v5502_v2 = vmax.f32 %v5501_v55, %v5259_v13  ;;  %v5162_v33 = vpop.f32.mrf.mxu1  ;;  %6297 = vmatprep.mubr.bf16.mxu0 %v11897_v60 }
 0x453   : > { %v5484_v57 = vmax.f32 %v5483_v19, %v5162_v33  ;;  %v5261_v47 = vpop.f32.mrf.mxu0 }
 0x454   : > { %v5523_v26 = vmax.f32 %v5522_v58, %v5261_v47  ;;  %v5166_v20 = vpop.f32.mrf.mxu1  ;;  %6019 = vmatmul.mubr.bf16.gmra.mxu1 %v12117_v28 }
 0x455   : > { %v5464_v42 = vmax.f32 %v5463_v46, %v5166_v20  ;;  %v5263_v54 = vpop.f32.mrf.mxu0  ;;  %6028 = vmatprep.mubr.bf16.mxu1 %v11897_v60 }
 0x456   : > { %v5503_v37 = vmax.f32 %v5502_v2, %v5263_v54  ;;  %v5168_v10 = vpop.f32.mrf.mxu1 }
 0x457   : > { %v5485_v50 = vmax.f32 %v5484_v57, %v5168_v10  ;;  %v5265_v39 = vpop.f32.mrf.mxu0 }
 0x458   : > { %v5524_v30 = vmax.f32 %v5523_v26, %v5265_v39  ;;  %v5170_v44 = vpop.f32.mrf.mxu1 }
 0x459   : > { %v5465_v55 = vmax.f32 %v5464_v42, %v5170_v44  ;;  %v5269_v13 = vpop.f32.mrf.mxu0  ;;  %6298 = vmatmul.mubr.bf16.gmra.mxu0 %v12177_v32 }
 0x45a   : > { %v5504_v33 = vmax.f32 %v5503_v37, %v5269_v13  ;;  %v5172_v19 = vpop.f32.mrf.mxu1  ;;  %6307 = vmatprep.mubr.bf16.mxu0 %v11897_v60  ;;  %v12178_v13 = vld [vmem:[#allocation90_spill] sm:$0xff] }
 0x45b   : > { %v5486_v58 = vmax.f32 %v5485_v50, %v5172_v19  ;;  %v5271_v28 = vpop.f32.mrf.mxu0 }
 0x45c   : > { %v5525_v46 = vmax.f32 %v5524_v30, %v5271_v28  ;;  %v5176_v47 = vpop.f32.mrf.mxu1  ;;  %6029 = vmatmul.mubr.bf16.gmra.mxu1 %v12120_v41 }
 0x45d   : > { %v5466_v2 = vmax.f32 %v5465_v55, %v5176_v47  ;;  %v5273_v20 = vpop.f32.mrf.mxu0  ;;  %6360 = vmatprep.mubr.bf16.mxu1 %v11897_v60 }
 0x45e   : > { %v5505_v57 = vmax.f32 %v5504_v33, %v5273_v20  ;;  %v5178_v26 = vpop.f32.mrf.mxu1  ;;  %v12179_v20 = vld [vmem:[#allocation33_spill] sm:$0xff] }
 0x45f   : > { %v5487_v44 = vmax.f32 %v5486_v58, %v5178_v26  ;;  %v5275_v42 = vpop.f32.mrf.mxu0 }
 0x460   : > { %v5526_v54 = vmax.f32 %v5525_v46, %v5275_v42  ;;  %v5180_v10 = vpop.f32.mrf.mxu1 }
 0x461   : > { %v5467_v37 = vmax.f32 %v5466_v2, %v5180_v10  ;;  %v5279_v39 = vpop.f32.mrf.mxu0  ;;  %6308 = vmatmul.mubr.bf16.gmra.mxu0 %v12178_v13 }
 0x462   : > { %v5506_v50 = vmax.f32 %v5505_v57, %v5279_v39  ;;  %v5182_v19 = vpop.f32.mrf.mxu1  ;;  %6317 = vmatprep.mubr.bf16.mxu0 %v11897_v60 }
 0x463   : > { %v5468_v30 = vrot.slane %v5467_v37, 4  ;;  %v5488_v41 = vmax.f32 %v5487_v44, %v5182_v19  ;;  %v5281_v55 = vpop.f32.mrf.mxu0 }
 0x464   : > { %v5527_v28 = vmax.f32 %v5526_v54, %v5281_v55  ;;  %v5332_v47 = vpop.f32.mrf.mxu1  ;;  %6361 = vmatmul.mubr.bf16.vlgmr.msra.gmra.mxu1 %v12147_v6 }
 0x465   : > { %v5469_v33 = vmax.f32 %v5467_v37, %v5468_v30  ;;  %v5489_v58 = vrot.slane %v5488_v41, 4  ;;  %6555 = vmatpush1.bf16.msra.mxu1 %v12179_v20  ;;  %v5283_v46 = vpop.f32.mrf.mxu0  ;;  %6370 = vmatprep.mubr.bf16.mxu1 %v11897_v60  ;;  %v12180_v37 = vld [vmem:[#allocation89_spill] sm:$0xff] }
 0x466   : > { %v5507_v2 = vmax.f32 %v5506_v50, %v5283_v46  ;;  %v5334_v26 = vpop.f32.mrf.mxu1  ;;  %6556 = vmatprep.subr.bf16.mxu1 %v12119_v16  ;;  %v12181_v30 = vld [vmem:[#allocation49_spill] sm:$0xff] }
 0x467   : > { %v5470_v57 = vrot.slane %v5469_v33, 2  ;;  %v5490_v42 = vmax.f32 %v5488_v41, %v5489_v58  ;;  %v5285_v10 = vpop.f32.mrf.mxu0 }
 0x468   : > { %v5528_v44 = vmax.f32 %v5527_v28, %v5285_v10  ;;  %v5336_v39 = vpop.f32.mrf.mxu1 }
 0x469   : > { %v5471_v54 = vmax.f32 %v5469_v33, %v5470_v57  ;;  %v5491_v19 = vrot.slane %v5490_v42, 2  ;;  %v5537_v55 = vmax.f32 %v5332_v47, %v5336_v39  ;;  %v5289_v43 = vpop.f32.mrf.mxu0  ;;  %6318 = vmatmul.mubr.bf16.gmra.mxu0 %v12180_v37  ;;  %6557 = vmatpush1.bf16.msra.mxu1 %v12181_v30 }
 0x46a   : > { %v5508_v20 = vmax.f32 %v5507_v2, %v5289_v43  ;;  %v5338_v24 = vpop.f32.mrf.mxu1  ;;  %6473 = vmatprep.mubr.bf16.mxu0 %v11897_v60  ;;  %6558 = vmatprep.subr.bf16.mxu1 %v12066_v45  ;;  %v12182_v45 = vld [vmem:[#allocation52_spill] sm:$0xff] }
 0x46b   : > { %v5472_v50 = vrot.slane %v5471_v54, 1  ;;  %v5492_v46 = vmax.f32 %v5490_v42, %v5491_v19  ;;  %v5558_v41 = vmax.f32 %v5334_v26, %v5338_v24  ;;  %v5291_v58 = vpop.f32.mrf.mxu0 }
 0x46c   : > { %v5529_v28 = vmax.f32 %v5528_v44, %v5291_v58  ;;  %v5342_v10 = vpop.f32.mrf.mxu1  ;;  %6371 = vmatmul.mubr.bf16.gmra.mxu1 %v12152_v9 }
 0x46d   : > { %v11147_v47 = vmax.f32 %v5471_v54, %v5472_v50  ;;  %v5493_v33 = vrot.slane %v5492_v46, 1  ;;  %v5538_v57 = vmax.f32 %v5537_v55, %v5342_v10  ;;  %v5293_v39 = vpop.f32.mrf.mxu0  ;;  %6380 = vmatprep.mubr.bf16.mxu1 %v11897_v60  ;;  %6559 = vmatpush1.bf16.msra.mxu1 %v12067_v7 }
 0x46e   : > { %v5509_v43 = vmax.f32 %v5508_v20, %v5293_v39  ;;  %v5344_v2 = vpop.f32.mrf.mxu1  ;;  %6560 = vmatprep.subr.bf16.mxu1 %v12182_v45 }
 0x46f   : > { %v11154_v26 = vmax.f32 %v5492_v46, %v5493_v33  ;;  %v5559_v42 = vmax.f32 %v5558_v41, %v5344_v2  ;;  %v5295_v44 = vpop.f32.mrf.mxu0 }
 0x470   : > { %v5510_v54 = vrot.slane %v5509_v43, 4  ;;  %v5530_v19 = vmax.f32 %v5529_v28, %v5295_v44  ;;  %v5346_v50 = vpop.f32.mrf.mxu1  ;;  %v12183_v28 = vld [vmem:[#allocation3_spill] sm:$0xff] }
 0x471   : > { %v5539_v58 = vmax.f32 %v5538_v57, %v5346_v50  ;;  %v5621_v10 = vpop.f32.mrf.mxu0  ;;  %6474 = vmatmul.mubr.bf16.vlgmr.msra.gmra.mxu0 %v12147_v6  ;;  %6561 = vmatpush1.bf16.msra.mxu1 %v12125_v61  ;;  %v12184_v57 = vld [vmem:[#allocation5_spill] sm:$0xff] }
 0x472   : > { %v5511_v20 = vmax.f32 %v5509_v43, %v5510_v54  ;;  %v5531_v39 = vrot.slane %v5530_v19, 4  ;;  %v5348_v45 = vpop.f32.mrf.mxu1  ;;  %6483 = vmatprep.mubr.bf16.mxu0 %v11897_v60  ;;  %6562 = vmatprep.subr.bf16.mxu1 %v12126_v62 }
 0x473   : > { %v5560_v46 = vmax.f32 %v5559_v42, %v5348_v45  ;;  %v5623_v41 = vpop.f32.mrf.mxu0  ;;  %6844 = vmatpush1.bf16.msra.mxu0 %v12183_v28 }
 0x474   : > { %v5512_v33 = vrot.slane %v5511_v20, 2  ;;  %v5532_v2 = vmax.f32 %v5530_v19, %v5531_v39  ;;  %v5352_v44 = vpop.f32.mrf.mxu1  ;;  %6381 = vmatmul.mubr.bf16.gmra.mxu1 %v12164_v59  ;;  %6845 = vmatprep.subr.bf16.mxu0 %v12184_v57 }
 0x475   : > { %v5540_v50 = vmax.f32 %v5539_v58, %v5352_v44  ;;  %v5625_v55 = vpop.f32.mrf.mxu0  ;;  %6390 = vmatprep.mubr.bf16.mxu1 %v11897_v60  ;;  %6563 = vmatpush1.bf16.msra.mxu1 %v12129_v18 }
 0x476   : > { %v5513_v43 = vmax.f32 %v5511_v20, %v5512_v33  ;;  %v5533_v54 = vrot.slane %v5532_v2, 2  ;;  %v6039_v24 = vmax.f32 %v5621_v10, %v5625_v55  ;;  %v5354_v45 = vpop.f32.mrf.mxu1  ;;  %6564 = vmatprep.subr.bf16.mxu1 %v10176_v14 }
 0x477   : > { %v5561_v42 = vmax.f32 %v5560_v46, %v5354_v45  ;;  %v5627_v28 = vpop.f32.mrf.mxu0  ;;  %6846 = vmatpush1.bf16.msra.mxu0 %v9381_v11 }
 0x478   : > { %v5514_v19 = vrot.slane %v5513_v43, 1  ;;  %v5534_v39 = vmax.f32 %v5532_v2, %v5533_v54  ;;  %v6060_v62 = vmax.f32 %v5623_v41, %v5627_v28  ;;  %v5356_v57 = vpop.f32.mrf.mxu1  ;;  %6847 = vmatprep.subr.bf16.mxu0 %v12030_v63 }
 0x479   : > { %v5541_v58 = vmax.f32 %v5540_v50, %v5356_v57  ;;  %v5631_v44 = vpop.f32.mrf.mxu0  ;;  %6484 = vmatmul.mubr.bf16.gmra.mxu0 %v12152_v9  ;;  %6565 = vmatpush1.bf16.msra.mxu1 %v12031_v35 }
 0x47a   : > { %v11172_v55 = vmax.f32 %v5513_v43, %v5514_v19  ;;  %v5535_v10 = vrot.slane %v5534_v39, 1  ;;  %v6040_v20 = vmax.f32 %v6039_v24, %v5631_v44  ;;  %v5358_v46 = vpop.f32.mrf.mxu1  ;;  %6493 = vmatprep.mubr.bf16.mxu0 %v11897_v60  ;;  %6566 = vmatprep.subr.bf16.mxu1 %v11984_v49 }
 0x47b   : > { %v5562_v33 = vmax.f32 %v5561_v42, %v5358_v46  ;;  %v5633_v41 = vpop.f32.mrf.mxu0  ;;  %6848 = vmatpush1.bf16.msra.mxu0 %v9425_v31 }
 0x47c   : > { %v11179_v2 = vmax.f32 %v5534_v39, %v5535_v10  ;;  %v6061_v57 = vmax.f32 %v6060_v62, %v5633_v41  ;;  %v5362_v50 = vpop.f32.mrf.mxu1  ;;  %6391 = vmatmul.mubr.bf16.gmra.mxu1 %v12171_v15  ;;  %6849 = vmatprep.subr.bf16.mxu0 %v11985_v38 }
 0x47d   : > { %v5542_v24 = vmax.f32 %v5541_v58, %v5362_v50  ;;  %v5635_v43 = vpop.f32.mrf.mxu0  ;;  %6400 = vmatprep.mubr.bf16.mxu1 %v11897_v60  ;;  %6567 = vmatpush1.bf16.msra.mxu1 %v10212_v34 }
 0x47e   : > { %v6041_v45 = vmax.f32 %v6040_v20, %v5635_v43  ;;  %v5364_v42 = vpop.f32.mrf.mxu1  ;;  %6568 = vmatprep.subr.bf16.mxu1 %v10216_v27  ;;  %v12185_v20 = vld [vmem:[#allocation4_spill] sm:$0xff] }
 0x47f   : > { %v5563_v19 = vmax.f32 %v5562_v33, %v5364_v42  ;;  %v5637_v62 = vpop.f32.mrf.mxu0  ;;  %6850 = vmatpush1.bf16.msra.mxu0 %v9469_v52  ;;  %v12186_v43 = vld [vmem:[#allocation12_spill] sm:$0xff] }
 0x480   : > { %v6062_v39 = vmax.f32 %v6061_v57, %v5637_v62  ;;  %v5366_v44 = vpop.f32.mrf.mxu1  ;;  %6851 = vmatprep.subr.bf16.mxu0 %v12132_v17 }
 0x481   : > { %v5543_v58 = vmax.f32 %v5542_v24, %v5366_v44  ;;  %v5641_v10 = vpop.f32.mrf.mxu0  ;;  %6494 = vmatmul.mubr.bf16.gmra.mxu0 %v12164_v59  ;;  %6569 = vmatpush1.bf16.msra.mxu1 %v12133_v53  ;;  %v12187_v24 = vld [vmem:[#allocation18_spill] sm:$0xff]  ;;  %v12188_v53 = vld [vmem:[#allocation19_spill] sm:$0xff] }
 0x482   : > { %v6042_v46 = vmax.f32 %v6041_v45, %v5641_v10  ;;  %v5368_v41 = vpop.f32.mrf.mxu1  ;;  %6503 = vmatprep.mubr.bf16.mxu0 %v11897_v60  ;;  %6956 = vmatprep.subr.bf16.mxu1 %v12185_v20  ;;  %v12189_v20 = vld [vmem:[#allocation22_spill] sm:$0xff] }
 0x483   : > { %v5564_v33 = vmax.f32 %v5563_v19, %v5368_v41  ;;  %v5643_v50 = vpop.f32.mrf.mxu0  ;;  %6852 = vmatpush1.bf16.msra.mxu0 %v12186_v43 }
 0x484   : > { %v6063_v57 = vmax.f32 %v6062_v39, %v5643_v50  ;;  %v5372_v42 = vpop.f32.mrf.mxu1  ;;  %6401 = vmatmul.mubr.bf16.gmra.mxu1 %v12176_v51  ;;  %6853 = vmatprep.subr.bf16.mxu0 %v12187_v24 }
 0x485   : > { %v5544_v62 = vmax.f32 %v5543_v58, %v5372_v42  ;;  %v5645_v44 = vpop.f32.mrf.mxu0  ;;  %6410 = vmatprep.mubr.bf16.mxu1 %v11897_v60 }
 0x486   : > { %v6043_v45 = vmax.f32 %v6042_v46, %v5645_v44  ;;  %v5374_v10 = vpop.f32.mrf.mxu1  ;;  %v12190_v46 = vld [vmem:[#allocation23_spill] sm:$0xff] }
 0x487   : > { %v5565_v54 = vmax.f32 %v5564_v33, %v5374_v10  ;;  %v5647_v28 = vpop.f32.mrf.mxu0  ;;  %6854 = vmatpush1.bf16.msra.mxu0 %v12188_v53  ;;  %v12193_v53 = vld [vmem:[#allocation30_spill] sm:$0xff] }
 0x488   : > { %v6064_v19 = vmax.f32 %v6063_v57, %v5647_v28  ;;  %v5376_v41 = vpop.f32.mrf.mxu1  ;;  %6855 = vmatprep.subr.bf16.mxu0 %v12189_v20  ;;  %v12191_v28 = vld [vmem:[#allocation26_spill] sm:$0xff]  ;;  %v12192_v20 = vld [vmem:[#allocation27_spill] sm:$0xff] }
 0x489   : > { %v5545_v39 = vmax.f32 %v5544_v62, %v5376_v41  ;;  %v5651_v50 = vpop.f32.mrf.mxu0  ;;  %6504 = vmatmul.mubr.bf16.gmra.mxu0 %v12171_v15 }
 0x48a   : > { %v6044_v43 = vmax.f32 %v6043_v45, %v5651_v50  ;;  %v5378_v24 = vpop.f32.mrf.mxu1  ;;  %6513 = vmatprep.mubr.bf16.mxu0 %v11897_v60 }
 0x48b   : > { %v5566_v58 = vmax.f32 %v5565_v54, %v5378_v24  ;;  %v5653_v42 = vpop.f32.mrf.mxu0  ;;  %6856 = vmatpush1.bf16.msra.mxu0 %v12190_v46 }
 0x48c   : > { %v6065_v33 = vmax.f32 %v6064_v19, %v5653_v42  ;;  %v5382_v44 = vpop.f32.mrf.mxu1  ;;  %6411 = vmatmul.mubr.bf16.gmra.mxu1 %v12177_v32  ;;  %6857 = vmatprep.subr.bf16.mxu0 %v12191_v28 }
 0x48d   : > { %v5546_v57 = vmax.f32 %v5545_v39, %v5382_v44  ;;  %v5655_v10 = vpop.f32.mrf.mxu0  ;;  %6420 = vmatprep.mubr.bf16.mxu1 %v11897_v60 }
 0x48e   : > { %v6045_v62 = vmax.f32 %v6044_v43, %v5655_v10  ;;  %v5384_v41 = vpop.f32.mrf.mxu1 }
 0x48f   : > { %v5567_v45 = vmax.f32 %v5566_v58, %v5384_v41  ;;  %v5657_v50 = vpop.f32.mrf.mxu0  ;;  %6858 = vmatpush1.bf16.msra.mxu0 %v12192_v20 }
 0x490   : > { %v6066_v54 = vmax.f32 %v6065_v33, %v5657_v50  ;;  %v5386_v24 = vpop.f32.mrf.mxu1  ;;  %7069 = vmatprep.subr.bf16.mxu0 %v12193_v53 }
 0x491   : > { %v5547_v19 = vmax.f32 %v5546_v57, %v5386_v24  ;;  %v5661_v42 = vpop.f32.mrf.mxu0  ;;  %6514 = vmatmul.mubr.bf16.gmra.mxu0 %v12176_v51 }
 0x492   : > { %v6046_v46 = vmax.f32 %v6045_v62, %v5661_v42  ;;  %v5388_v28 = vpop.f32.mrf.mxu1  ;;  %6523 = vmatprep.mubr.bf16.mxu0 %v11897_v60 }
 0x493   : > { %v5568_v39 = vmax.f32 %v5567_v45, %v5388_v28  ;;  %v5663_v44 = vpop.f32.mrf.mxu0 }
 0x494   : > { %v6067_v43 = vmax.f32 %v6066_v54, %v5663_v44  ;;  %v5392_v10 = vpop.f32.mrf.mxu1  ;;  %6421 = vmatmul.mubr.bf16.gmra.mxu1 %v12178_v13 }
 0x495   : > { %v5548_v58 = vmax.f32 %v5547_v19, %v5392_v10  ;;  %v5665_v41 = vpop.f32.mrf.mxu0  ;;  %6430 = vmatprep.mubr.bf16.mxu1 %v11897_v60 }
 0x496   : > { %v6047_v33 = vmax.f32 %v6046_v46, %v5665_v41  ;;  %v5394_v50 = vpop.f32.mrf.mxu1 }
 0x497   : > { %v5569_v57 = vmax.f32 %v5568_v39, %v5394_v50  ;;  %v5667_v24 = vpop.f32.mrf.mxu0 }
 0x498   : > { %v6068_v53 = vmax.f32 %v6067_v43, %v5667_v24  ;;  %v5396_v20 = vpop.f32.mrf.mxu1 }
 0x499   : > { %v5549_v62 = vmax.f32 %v5548_v58, %v5396_v20  ;;  %v5671_v42 = vpop.f32.mrf.mxu0  ;;  %6524 = vmatmul.mubr.bf16.gmra.mxu0 %v12177_v32 }
 0x49a   : > { %v6048_v28 = vmax.f32 %v6047_v33, %v5671_v42  ;;  %v5398_v45 = vpop.f32.mrf.mxu1  ;;  %6533 = vmatprep.mubr.bf16.mxu0 %v11897_v60 }
 0x49b   : > { %v5570_v54 = vmax.f32 %v5569_v57, %v5398_v45  ;;  %v5673_v44 = vpop.f32.mrf.mxu0 }
 0x49c   : > { %v6069_v19 = vmax.f32 %v6068_v53, %v5673_v44  ;;  %v5402_v10 = vpop.f32.mrf.mxu1  ;;  %6431 = vmatmul.mubr.bf16.gmra.mxu1 %v12180_v37 }
 0x49d   : > { %v5550_v46 = vmax.f32 %v5549_v62, %v5402_v10  ;;  %v5675_v41 = vpop.f32.mrf.mxu0  ;;  %6586 = vmatprep.mubr.bf16.mxu1 %v11897_v60 }
 0x49e   : > { %v6049_v39 = vmax.f32 %v6048_v28, %v5675_v41  ;;  %v5404_v43 = vpop.f32.mrf.mxu1 }
 0x49f   : > { %v5571_v20 = vmax.f32 %v5570_v54, %v5404_v43  ;;  %v5677_v58 = vpop.f32.mrf.mxu0 }
 0x4a0   : > { %v6070_v50 = vmax.f32 %v6069_v19, %v5677_v58  ;;  %v5406_v24 = vpop.f32.mrf.mxu1 }
 0x4a1   : > { %v5551_v33 = vmax.f32 %v5550_v46, %v5406_v24  ;;  %v5681_v42 = vpop.f32.mrf.mxu0  ;;  %6534 = vmatmul.mubr.bf16.gmra.mxu0 %v12178_v13 }
 0x4a2   : > { %v6050_v57 = vmax.f32 %v6049_v39, %v5681_v42  ;;  %v5408_v45 = vpop.f32.mrf.mxu1  ;;  %6543 = vmatprep.mubr.bf16.mxu0 %v11897_v60  ;;  %v12194_v39 = vld [vmem:[#allocation8_spill] sm:$0xff] }
 0x4a3   : > { %v5552_v53 = vrot.slane %v5551_v33, 4  ;;  %v5572_v44 = vmax.f32 %v5571_v20, %v5408_v45  ;;  %v5683_v62 = vpop.f32.mrf.mxu0 }
 0x4a4   : > { %v6071_v10 = vmax.f32 %v6070_v50, %v5683_v62  ;;  %v5734_v17 = vpop.f32.mrf.mxu1  ;;  %6587 = vmatmul.mubr.bf16.vlgmr.msra.gmra.mxu1 %v12147_v6 }
 0x4a5   : > { %v5553_v28 = vmax.f32 %v5551_v33, %v5552_v53  ;;  %v5573_v54 = vrot.slane %v5572_v44, 4  ;;  %6957 = vmatpush1.bf16.msra.mxu1 %v9338_v56  ;;  %v5685_v19 = vpop.f32.mrf.mxu0  ;;  %6596 = vmatprep.mubr.bf16.mxu1 %v11897_v60 }
 0x4a6   : > { %v6051_v46 = vmax.f32 %v6050_v57, %v5685_v19  ;;  %v5736_v41 = vpop.f32.mrf.mxu1  ;;  %6958 = vmatprep.subr.bf16.mxu1 %v12194_v39 }
 0x4a7   : > { %v5554_v43 = vrot.slane %v5553_v28, 2  ;;  %v5574_v58 = vmax.f32 %v5572_v44, %v5573_v54  ;;  %v5687_v24 = vpop.f32.mrf.mxu0 }
 0x4a8   : > { %v6072_v20 = vmax.f32 %v6071_v10, %v5687_v24  ;;  %v5738_v42 = vpop.f32.mrf.mxu1 }
 0x4a9   : > { %v5555_v50 = vmax.f32 %v5553_v28, %v5554_v43  ;;  %v5575_v45 = vrot.slane %v5574_v58, 2  ;;  %v6081_v62 = vmax.f32 %v5734_v17, %v5738_v42  ;;  %v5691_v6 = vpop.f32.mrf.mxu0  ;;  %6544 = vmatmul.mubr.bf16.gmra.mxu0 %v12180_v37  ;;  %6959 = vmatpush1.bf16.msra.mxu1 %v12143_v22 }
 0x4aa   : > { %v6052_v33 = vmax.f32 %v6051_v46, %v5691_v6  ;;  %v5740_v53 = vpop.f32.mrf.mxu1  ;;  %6875 = vmatprep.mubr.bf16.mxu0 %v11897_v60  ;;  %6960 = vmatprep.subr.bf16.mxu1 %v12144_v1  ;;  %v12195_v1 = vld [vmem:[#allocation14_spill] sm:$0xff] }
 0x4ab   : > { %v5556_v57 = vrot.slane %v5555_v50, 1  ;;  %v5576_v19 = vmax.f32 %v5574_v58, %v5575_v45  ;;  %v6102_v44 = vmax.f32 %v5736_v41, %v5740_v53  ;;  %v5693_v54 = vpop.f32.mrf.mxu0 }
 0x4ac   : > { %v6073_v10 = vmax.f32 %v6072_v20, %v5693_v54  ;;  %v5744_v24 = vpop.f32.mrf.mxu1  ;;  %6597 = vmatmul.mubr.bf16.gmra.mxu1 %v12152_v9 }
 0x4ad   : > { %v11227_v17 = vmax.f32 %v5555_v50, %v5556_v57  ;;  %v5577_v28 = vrot.slane %v5576_v19, 1  ;;  %v6082_v43 = vmax.f32 %v6081_v62, %v5744_v24  ;;  %v5695_v42 = vpop.f32.mrf.mxu0  ;;  %6606 = vmatprep.mubr.bf16.mxu1 %v11897_v60  ;;  %6961 = vmatpush1.bf16.msra.mxu1 %v12083_v3  ;;  %v12196_v24 = vld [vmem:[#allocation92_spill] sm:$0xff] }
 0x4ae   : > { %v6053_v46 = vmax.f32 %v6052_v33, %v5695_v42  ;;  %v5746_v6 = vpop.f32.mrf.mxu1  ;;  %6962 = vmatprep.subr.bf16.mxu1 %v12195_v1 }
 0x4af   : > { %v11234_v58 = vmax.f32 %v5576_v19, %v5577_v28  ;;  %v6103_v20 = vmax.f32 %v6102_v44, %v5746_v6  ;;  %v5697_v9 = vpop.f32.mrf.mxu0 }
 0x4b0   : > { %v6054_v50 = vrot.slane %v6053_v46, 4  ;;  %v6074_v45 = vmax.f32 %v6073_v10, %v5697_v9  ;;  %v5748_v53 = vpop.f32.mrf.mxu1 }
 0x4b1   : > { %v6083_v57 = vmax.f32 %v6082_v43, %v5748_v53  ;;  %v5847_v54 = vpop.f32.mrf.mxu0  ;;  %6876 = vmatmul.mubr.bf16.vlgmr.msra.gmra.mxu0 %v12196_v24  ;;  %6963 = vmatpush1.bf16.msra.mxu1 %v12148_v4  ;;  %v12197_v43 = vld [vmem:[#allocation34_spill] sm:$0xff] }
 0x4b2   : > { %v6055_v33 = vmax.f32 %v6053_v46, %v6054_v50  ;;  %v6075_v42 = vrot.slane %v6074_v45, 4  ;;  %v5750_v1 = vpop.f32.mrf.mxu1  ;;  %6885 = vmatprep.mubr.bf16.mxu0 %v11897_v60  ;;  %6964 = vmatprep.subr.bf16.mxu1 %v12149_v29  ;;  %v12199_v29 = vld [vmem:[#allocation91_spill] sm:$0xff] }
 0x4b3   : > { %v6104_v19 = vmax.f32 %v6103_v20, %v5750_v1  ;;  %v5849_v44 = vpop.f32.mrf.mxu0  ;;  %7070 = vmatpush1.bf16.msra.mxu0 %v12150_v21 }
 0x4b4   : > { %v6056_v10 = vrot.slane %v6055_v33, 2  ;;  %v6076_v28 = vmax.f32 %v6074_v45, %v6075_v42  ;;  %v5754_v6 = vpop.f32.mrf.mxu1  ;;  %6607 = vmatmul.mubr.bf16.gmra.mxu1 %v12164_v59  ;;  %7071 = vmatprep.subr.bf16.mxu0 %v12197_v43 }
 0x4b5   : > { %v6084_v9 = vmax.f32 %v6083_v57, %v5754_v6  ;;  %v5851_v53 = vpop.f32.mrf.mxu0  ;;  %6616 = vmatprep.mubr.bf16.mxu1 %v11897_v60  ;;  %6965 = vmatpush1.bf16.msra.mxu1 %v12089_v0  ;;  %v12198_v57 = vld [vmem:[#allocation36_spill] sm:$0xff] }
 0x4b6   : > { %v6057_v46 = vmax.f32 %v6055_v33, %v6056_v10  ;;  %v6077_v50 = vrot.slane %v6076_v28, 2  ;;  %v6123_v62 = vmax.f32 %v5847_v54, %v5851_v53  ;;  %v5756_v1 = vpop.f32.mrf.mxu1  ;;  %6966 = vmatprep.subr.bf16.mxu1 %v12002_v25  ;;  %v12200_v33 = vld [vmem:[#allocation21_spill] sm:$0xff] }
 0x4b7   : > { %v6105_v20 = vmax.f32 %v6104_v19, %v5756_v1  ;;  %v5853_v41 = vpop.f32.mrf.mxu0  ;;  %7072 = vmatpush1.bf16.msra.mxu0 %v12039_v12  ;;  %v12201_v19 = vld [vmem:[#allocation24_spill] sm:$0xff] }
 0x4b8   : > { %v6058_v45 = vrot.slane %v6057_v46, 1  ;;  %v6078_v59 = vmax.f32 %v6076_v28, %v6077_v50  ;;  %v6144_v42 = vmax.f32 %v5849_v44, %v5853_v41  ;;  %v5758_v43 = vpop.f32.mrf.mxu1  ;;  %7073 = vmatprep.subr.bf16.mxu0 %v12198_v57  ;;  %v12202_v41 = vld [vmem:[#allocation37_spill] sm:$0xff]  ;;  %v12203_v44 = vld [vmem:[#allocation58_spill] sm:$0xff] }
 0x4b9   : > { %v6085_v6 = vmax.f32 %v6084_v9, %v5758_v43  ;;  %v5857_v21 = vpop.f32.mrf.mxu0  ;;  %6886 = vmatmul.mubr.bf16.gmra.mxu0 %v12199_v29  ;;  %6967 = vmatpush1.bf16.msra.mxu1 %v12200_v33  ;;  %v12204_v50 = vld [vmem:[#allocation62_spill] sm:$0xff] }
 0x4ba   : > { %v6059_v54 = vmax.f32 %v6057_v46, %v6058_v45  ;;  %v6079_v10 = vrot.slane %v6078_v59, 1  ;;  %v6124_v53 = vmax.f32 %v6123_v62, %v5857_v21  ;;  %v5760_v25 = vpop.f32.mrf.mxu1  ;;  %6895 = vmatprep.mubr.bf16.mxu0 %v11897_v60  ;;  %6968 = vmatprep.subr.bf16.mxu1 %v12201_v19  ;;  %v12205_v43 = vmax.f32 %v12203_v44, %v12204_v50  ;;  %v12206_v21 = vld [vmem:[#allocation38_spill] sm:$0xff] }
 0x4bb   : > { %v6106_v1 = vmax.f32 %v6105_v20, %v5760_v25  ;;  %v5859_v28 = vpop.f32.mrf.mxu0  ;;  %7074 = vmatpush1.bf16.msra.mxu0 %v12202_v41  ;;  %v12207_v25 = vld [vmem:[#allocation25_spill] sm:$0xff]  ;;  %v12208_v20 = vld [vmem:[#allocation64_spill] sm:$0xff]  ;;  %v12209_v45 = vld [vmem:[#allocation66_spill] sm:$0xff] }
 0x4bc   : > { %v11258_v9 = vmax.f32 %v12205_v43, %v6059_v54  ;;  %v6080_v57 = vmax.f32 %v6078_v59, %v6079_v10  ;;  %v6145_v12 = vmax.f32 %v6144_v42, %v5859_v28  ;;  %v5764_v33 = vpop.f32.mrf.mxu1  ;;  %6617 = vmatmul.mubr.bf16.gmra.mxu1 %v12171_v15  ;;  %7075 = vmatprep.subr.bf16.mxu0 %v12206_v21  ;;  %v12211_v59 = vld [vmem:[#allocation28_spill] sm:$0xff]  ;;  %v12212_v15 = vld [vmem:[#allocation39_spill] sm:$0xff]  ;;  %v12215_v21 = vld [vmem:[#allocation29_spill] sm:$0xff] }
 0x4bd   : > { %v6086_v62 = vmax.f32 %v6085_v6, %v5764_v33  ;;  %v5861_v46 = vpop.f32.mrf.mxu0  ;;  %6626 = vmatprep.mubr.bf16.mxu1 %v11897_v60  ;;  %6969 = vmatpush1.bf16.msra.mxu1 %v12207_v25  ;;  %v12210_v41 = vmax.f32 %v12208_v20, %v12209_v45  ;;  %v12213_v33 = vld [vmem:[#allocation40_spill] sm:$0xff]  ;;  %v12214_v25 = vld [vmem:[#allocation94_spill] sm:$0xff]  ;;  %v12217_v20 = vld [vmem:[#allocation41_spill] sm:$0xff] }
 0x4be   : > { %v6125_v54 = vmax.f32 %v6124_v53, %v5861_v46  ;;  %v5766_v44 = vpop.f32.mrf.mxu1  ;;  %6970 = vmatprep.subr.bf16.mxu1 %v12211_v59  ;;  %v12216_v53 = vld [vmem:[#allocation32_spill] sm:$0xff] }
 0x4bf   : > { %v11267_v19 = vmax.f32 %v12210_v41, %v6080_v57  ;;  %v6107_v42 = vmax.f32 %v6106_v1, %v5766_v44  ;;  %v5863_v10 = vpop.f32.mrf.mxu0  ;;  %7076 = vmatpush1.bf16.msra.mxu0 %v12212_v15  ;;  %v12227_v15 = vld [vmem:[#allocation60_spill] sm:$0xff] }
 0x4c0   : > { %v6146_v28 = vmax.f32 %v6145_v12, %v5863_v10  ;;  %v5768_v6 = vpop.f32.mrf.mxu1  ;;  %7077 = vmatprep.subr.bf16.mxu0 %v12213_v33  ;;  %v12219_v33 = vld [vmem:[#allocation43_spill] sm:$0xff] }
 0x4c1   : > { %v6087_v50 = vmax.f32 %v6086_v62, %v5768_v6  ;;  %v5867_v43 = vpop.f32.mrf.mxu0  ;;  %6896 = vmatmul.mubr.bf16.gmra.mxu0 %v12214_v25  ;;  %6971 = vmatpush1.bf16.msra.mxu1 %v12215_v21  ;;  %v12218_v62 = vld [vmem:[#allocation42_spill] sm:$0xff] }
 0x4c2   : > { %v6126_v57 = vmax.f32 %v6125_v54, %v5867_v43  ;;  %v5770_v41 = vpop.f32.mrf.mxu1  ;;  %6905 = vmatprep.mubr.bf16.mxu0 %v11897_v60  ;;  %7182 = vmatprep.subr.bf16.mxu1 %v12216_v53  ;;  %v12220_v53 = vld [vmem:[#allocation44_spill] sm:$0xff] }
 0x4c3   : > { %v6108_v1 = vmax.f32 %v6107_v42, %v5770_v41  ;;  %v5869_v46 = vpop.f32.mrf.mxu0  ;;  %7078 = vmatpush1.bf16.msra.mxu0 %v12217_v20  ;;  %v12221_v20 = vld [vmem:[#allocation93_spill] sm:$0xff] }
 0x4c4   : > { %v6147_v12 = vmax.f32 %v6146_v28, %v5869_v46  ;;  %v5774_v45 = vpop.f32.mrf.mxu1  ;;  %6627 = vmatmul.mubr.bf16.gmra.mxu1 %v12176_v51  ;;  %7079 = vmatprep.subr.bf16.mxu0 %v12218_v62 }
 0x4c5   : > { %v6088_v44 = vmax.f32 %v6087_v50, %v5774_v45  ;;  %v5871_v10 = vpop.f32.mrf.mxu0  ;;  %6636 = vmatprep.mubr.bf16.mxu1 %v11897_v60 }
 0x4c6   : > { %v6127_v54 = vmax.f32 %v6126_v57, %v5871_v10  ;;  %v5776_v6 = vpop.f32.mrf.mxu1  ;;  %v12222_v57 = vld [vmem:[#allocation45_spill] sm:$0xff] }
 0x4c7   : > { %v6109_v43 = vmax.f32 %v6108_v1, %v5776_v6  ;;  %v5873_v21 = vpop.f32.mrf.mxu0  ;;  %7080 = vmatpush1.bf16.msra.mxu0 %v12219_v33  ;;  %v12225_v33 = vld [vmem:[#allocation2_spill] sm:$0xff] }
 0x4c8   : > { %v6148_v42 = vmax.f32 %v6147_v12, %v5873_v21  ;;  %v5778_v41 = vpop.f32.mrf.mxu1  ;;  %7081 = vmatprep.subr.bf16.mxu0 %v12220_v53  ;;  %v12223_v21 = vld [vmem:[#allocation46_spill] sm:$0xff]  ;;  %v12224_v53 = vld [vmem:[#allocation47_spill] sm:$0xff] }
 0x4c9   : > { %v6089_v28 = vmax.f32 %v6088_v44, %v5778_v41  ;;  %v5877_v46 = vpop.f32.mrf.mxu0  ;;  %6906 = vmatmul.mubr.bf16.gmra.mxu0 %v12221_v20 }
 0x4ca   : > { %v6128_v51 = vmax.f32 %v6127_v54, %v5877_v46  ;;  %v5780_v62 = vpop.f32.mrf.mxu1  ;;  %6915 = vmatprep.mubr.bf16.mxu0 %v11897_v60 }
 0x4cb   : > { %v6110_v50 = vmax.f32 %v6109_v43, %v5780_v62  ;;  %v5879_v45 = vpop.f32.mrf.mxu0  ;;  %7082 = vmatpush1.bf16.msra.mxu0 %v12222_v57  ;;  %v12226_v57 = vld [vmem:[#allocation7_spill] sm:$0xff] }
 0x4cc   : > { %v6149_v1 = vmax.f32 %v6148_v42, %v5879_v45  ;;  %v5784_v10 = vpop.f32.mrf.mxu1  ;;  %6637 = vmatmul.mubr.bf16.gmra.mxu1 %v12177_v32  ;;  %7083 = vmatprep.subr.bf16.mxu0 %v12223_v21 }
 0x4cd   : > { %v6090_v12 = vmax.f32 %v6089_v28, %v5784_v10  ;;  %v5881_v6 = vpop.f32.mrf.mxu0  ;;  %6646 = vmatprep.mubr.bf16.mxu1 %v11897_v60 }
 0x4ce   : > { %v6129_v44 = vmax.f32 %v6128_v51, %v5881_v6  ;;  %v5786_v41 = vpop.f32.mrf.mxu1 }
 0x4cf   : > { %v6111_v54 = vmax.f32 %v6110_v50, %v5786_v41  ;;  %v5883_v46 = vpop.f32.mrf.mxu0  ;;  %7084 = vmatpush1.bf16.msra.mxu0 %v12224_v53 }
 0x4d0   : > { %v6150_v62 = vmax.f32 %v6149_v1, %v5883_v46  ;;  %v5788_v43 = vpop.f32.mrf.mxu1  ;;  %7471 = vmatprep.subr.bf16.mxu0 %v12225_v33 }
 0x4d1   : > { %v6091_v42 = vmax.f32 %v6090_v12, %v5788_v43  ;;  %v5887_v45 = vpop.f32.mrf.mxu0  ;;  %6916 = vmatmul.mubr.bf16.gmra.mxu0 %v12226_v57 }
 0x4d2   : > { %v6130_v32 = vmax.f32 %v6129_v44, %v5887_v45  ;;  %v5790_v21 = vpop.f32.mrf.mxu1  ;;  %6925 = vmatprep.mubr.bf16.mxu0 %v11897_v60 }
 0x4d3   : > { %v6112_v28 = vmax.f32 %v6111_v54, %v5790_v21  ;;  %v5889_v10 = vpop.f32.mrf.mxu0 }
 0x4d4   : > { %v6151_v51 = vmax.f32 %v6150_v62, %v5889_v10  ;;  %v5794_v6 = vpop.f32.mrf.mxu1  ;;  %6647 = vmatmul.mubr.bf16.gmra.mxu1 %v12178_v13 }
 0x4d5   : > { %v6092_v50 = vmax.f32 %v6091_v42, %v5794_v6  ;;  %v5891_v41 = vpop.f32.mrf.mxu0  ;;  %6656 = vmatprep.mubr.bf16.mxu1 %v11897_v60 }
 0x4d6   : > { %v6131_v1 = vmax.f32 %v6130_v32, %v5891_v41  ;;  %v5796_v33 = vpop.f32.mrf.mxu1 }
 0x4d7   : > { %v6113_v12 = vmax.f32 %v6112_v28, %v5796_v33  ;;  %v5893_v46 = vpop.f32.mrf.mxu0 }
 0x4d8   : > { %v6152_v43 = vmax.f32 %v6151_v51, %v5893_v46  ;;  %v5798_v53 = vpop.f32.mrf.mxu1 }
 0x4d9   : > { %v6093_v44 = vmax.f32 %v6092_v50, %v5798_v53  ;;  %v5897_v45 = vpop.f32.mrf.mxu0  ;;  %6926 = vmatmul.mubr.bf16.gmra.mxu0 %v12227_v15 }
 0x4da   : > { %v6132_v21 = vmax.f32 %v6131_v1, %v5897_v45  ;;  %v5800_v54 = vpop.f32.mrf.mxu1  ;;  %6935 = vmatprep.mubr.bf16.mxu0 %v11897_v60  ;;  %v12228_v45 = vld [vmem:[#allocation96_spill] sm:$0xff] }
 0x4db   : > { %v6114_v62 = vmax.f32 %v6113_v12, %v5800_v54  ;;  %v5899_v13 = vpop.f32.mrf.mxu0 }
 0x4dc   : > { %v6153_v42 = vmax.f32 %v6152_v43, %v5899_v13  ;;  %v5804_v10 = vpop.f32.mrf.mxu1  ;;  %6657 = vmatmul.mubr.bf16.gmra.mxu1 %v12180_v37 }
 0x4dd   : > { %v6094_v32 = vmax.f32 %v6093_v44, %v5804_v10  ;;  %v5901_v6 = vpop.f32.mrf.mxu0  ;;  %6988 = vmatprep.mubr.bf16.mxu1 %v11897_v60 }
 0x4de   : > { %v6133_v28 = vmax.f32 %v6132_v21, %v5901_v6  ;;  %v5806_v51 = vpop.f32.mrf.mxu1  ;;  %v12229_v6 = vld [vmem:[#allocation33_spill] sm:$0xff] }
 0x4df   : > { %v6115_v53 = vmax.f32 %v6114_v62, %v5806_v51  ;;  %v5903_v50 = vpop.f32.mrf.mxu0 }
 0x4e0   : > { %v6154_v41 = vmax.f32 %v6153_v42, %v5903_v50  ;;  %v5808_v33 = vpop.f32.mrf.mxu1 }
 0x4e1   : > { %v6095_v1 = vmax.f32 %v6094_v32, %v5808_v33  ;;  %v5907_v46 = vpop.f32.mrf.mxu0  ;;  %6936 = vmatmul.mubr.bf16.gmra.mxu0 %v12228_v45 }
 0x4e2   : > { %v6134_v12 = vmax.f32 %v6133_v28, %v5907_v46  ;;  %v5810_v54 = vpop.f32.mrf.mxu1  ;;  %6945 = vmatprep.mubr.bf16.mxu0 %v11897_v60 }
 0x4e3   : > { %v6096_v43 = vrot.slane %v6095_v1, 4  ;;  %v6116_v37 = vmax.f32 %v6115_v53, %v5810_v54  ;;  %v5909_v44 = vpop.f32.mrf.mxu0 }
 0x4e4   : > { %v6155_v13 = vmax.f32 %v6154_v41, %v5909_v44  ;;  %v5960_v10 = vpop.f32.mrf.mxu1  ;;  %6989 = vmatmul.mubr.bf16.vlgmr.msra.gmra.mxu1 %v12196_v24 }
 0x4e5   : > { %v6097_v21 = vmax.f32 %v6095_v1, %v6096_v43  ;;  %v6117_v62 = vrot.slane %v6116_v37, 4  ;;  %7183 = vmatpush1.bf16.msra.mxu1 %v12229_v6  ;;  %v5911_v42 = vpop.f32.mrf.mxu0  ;;  %6998 = vmatprep.mubr.bf16.mxu1 %v11897_v60  ;;  %v12230_v1 = vld [vmem:[#allocation95_spill] sm:$0xff] }
 0x4e6   : > { %v6135_v32 = vmax.f32 %v6134_v12, %v5911_v42  ;;  %v5962_v51 = vpop.f32.mrf.mxu1  ;;  %7184 = vmatprep.subr.bf16.mxu1 %v12119_v16  ;;  %v12231_v12 = vld [vmem:[#allocation50_spill] sm:$0xff] }
 0x4e7   : > { %v6098_v28 = vrot.slane %v6097_v21, 2  ;;  %v6118_v50 = vmax.f32 %v6116_v37, %v6117_v62  ;;  %v5913_v33 = vpop.f32.mrf.mxu0 }
 0x4e8   : > { %v6156_v53 = vmax.f32 %v6155_v13, %v5913_v33  ;;  %v5964_v46 = vpop.f32.mrf.mxu1 }
 0x4e9   : > { %v6099_v41 = vmax.f32 %v6097_v21, %v6098_v28  ;;  %v6119_v54 = vrot.slane %v6118_v50, 2  ;;  %v6165_v44 = vmax.f32 %v5960_v10, %v5964_v46  ;;  %v5917_v59 = vpop.f32.mrf.mxu0  ;;  %6946 = vmatmul.mubr.bf16.gmra.mxu0 %v12230_v1  ;;  %7185 = vmatpush1.bf16.msra.mxu1 %v12181_v30  ;;  %v12232_v30 = vld [vmem:[#allocation52_spill] sm:$0xff] }
 0x4ea   : > { %v6136_v43 = vmax.f32 %v6135_v32, %v5917_v59  ;;  %v5966_v6 = vpop.f32.mrf.mxu1  ;;  %7101 = vmatprep.mubr.bf16.mxu0 %v11897_v60  ;;  %7186 = vmatprep.subr.bf16.mxu1 %v12231_v12 }
 0x4eb   : > { %v6100_v42 = vrot.slane %v6099_v41, 1  ;;  %v6120_v16 = vmax.f32 %v6118_v50, %v6119_v54  ;;  %v6186_v37 = vmax.f32 %v5962_v51, %v5966_v6  ;;  %v5919_v62 = vpop.f32.mrf.mxu0  ;;  %v12233_v6 = vmax.f32 %v10987_v40, %v11147_v47 }
 0x4ec   : > { %v6157_v13 = vmax.f32 %v6156_v53, %v5919_v62  ;;  %v5970_v33 = vpop.f32.mrf.mxu1  ;;  %6999 = vmatmul.mubr.bf16.gmra.mxu1 %v12199_v29  ;;  %v12234_v62 = vmax.f32 %v10992_v5, %v11154_v26 }
 0x4ed   : > { %v6101_v10 = vmax.f32 %v6099_v41, %v6100_v42  ;;  %v6121_v21 = vrot.slane %v6120_v16, 1  ;;  %v6166_v28 = vmax.f32 %v6165_v44, %v5970_v33  ;;  %v5921_v46 = vpop.f32.mrf.mxu0  ;;  %7008 = vmatprep.mubr.bf16.mxu1 %v11897_v60  ;;  %7187 = vmatpush1.bf16.msra.mxu1 %v12067_v7 }
 0x4ee   : > { %v6137_v59 = vmax.f32 %v6136_v43, %v5921_v46  ;;  %v5972_v32 = vpop.f32.mrf.mxu1  ;;  %7188 = vmatprep.subr.bf16.mxu1 %v12232_v30 }
 0x4ef   : > { %v11315_v51 = vmax.f32 %v12233_v6, %v6101_v10  ;;  %v6122_v50 = vmax.f32 %v6120_v16, %v6121_v21  ;;  %v6187_v53 = vmax.f32 %v6186_v37, %v5972_v32  ;;  %v5923_v54 = vpop.f32.mrf.mxu0  ;;  %v12235_v16 = vld [vmem:[#allocation55_spill] sm:$0xff] }
 0x4f0   : > { %v6138_v41 = vrot.slane %v6137_v59, 4  ;;  %v6158_v42 = vmax.f32 %v6157_v13, %v5923_v54  ;;  %v5974_v44 = vpop.f32.mrf.mxu1  ;;  %v12236_v21 = vld [vmem:[#allocation3_spill] sm:$0xff] }
 0x4f1   : > { %v11320_v33 = vmax.f32 %v12234_v62, %v6122_v50  ;;  %v6167_v43 = vmax.f32 %v6166_v28, %v5974_v44  ;;  %v6249_v46 = vpop.f32.mrf.mxu0  ;;  %7102 = vmatmul.mubr.bf16.vlgmr.msra.gmra.mxu0 %v12196_v24  ;;  %7189 = vmatpush1.bf16.msra.mxu1 %v12125_v61  ;;  %v12237_v28 = vld [vmem:[#allocation5_spill] sm:$0xff] }
 0x4f2   : > { %v6139_v40 = vmax.f32 %v6137_v59, %v6138_v41  ;;  %v6159_v47 = vrot.slane %v6158_v42, 4  ;;  %v5976_v10 = vpop.f32.mrf.mxu1  ;;  %7111 = vmatprep.mubr.bf16.mxu0 %v11897_v60  ;;  %7190 = vmatprep.subr.bf16.mxu1 %v12235_v16 }
 0x4f3   : > { %v6188_v37 = vmax.f32 %v6187_v53, %v5976_v10  ;;  %v6251_v13 = vpop.f32.mrf.mxu0  ;;  %7472 = vmatpush1.bf16.msra.mxu0 %v12236_v21 }
 0x4f4   : > { %v6140_v5 = vrot.slane %v6139_v40, 2  ;;  %v6160_v26 = vmax.f32 %v6158_v42, %v6159_v47  ;;  %v5980_v32 = vpop.f32.mrf.mxu1  ;;  %7009 = vmatmul.mubr.bf16.gmra.mxu1 %v12214_v25  ;;  %7473 = vmatprep.subr.bf16.mxu0 %v12237_v28 }
 0x4f5   : > { %v6168_v6 = vmax.f32 %v6167_v43, %v5980_v32  ;;  %v6253_v50 = vpop.f32.mrf.mxu0  ;;  %7018 = vmatprep.mubr.bf16.mxu1 %v11897_v60  ;;  %7191 = vmatpush1.bf16.msra.mxu1 %v12129_v18 }
 0x4f6   : > { %v6141_v59 = vmax.f32 %v6139_v40, %v6140_v5  ;;  %v6161_v54 = vrot.slane %v6160_v26, 2  ;;  %v6667_v41 = vmax.f32 %v6249_v46, %v6253_v50  ;;  %v5982_v53 = vpop.f32.mrf.mxu1  ;;  %7192 = vmatprep.subr.bf16.mxu1 %v10176_v14 }
 0x4f7   : > { %v6189_v44 = vmax.f32 %v6188_v37, %v5982_v53  ;;  %v6255_v62 = vpop.f32.mrf.mxu0  ;;  %7474 = vmatpush1.bf16.msra.mxu0 %v9381_v11 }
 0x4f8   : > { %v6142_v42 = vrot.slane %v6141_v59, 1  ;;  %v6162_v47 = vmax.f32 %v6160_v26, %v6161_v54  ;;  %v6688_v10 = vmax.f32 %v6251_v13, %v6255_v62  ;;  %v5984_v21 = vpop.f32.mrf.mxu1  ;;  %7475 = vmatprep.subr.bf16.mxu0 %v12030_v63  ;;  %v12238_v63 = vmax.f32 %v11014_v8, %v11172_v55 }
 0x4f9   : > { %v6169_v43 = vmax.f32 %v6168_v6, %v5984_v21  ;;  %v6259_v32 = vpop.f32.mrf.mxu0  ;;  %7112 = vmatmul.mubr.bf16.gmra.mxu0 %v12199_v29  ;;  %7193 = vmatpush1.bf16.msra.mxu1 %v12031_v35  ;;  %v12241_v21 = vld [vmem:[#allocation63_spill] sm:$0xff] }
 0x4fa   : > { %v6143_v46 = vmax.f32 %v6141_v59, %v6142_v42  ;;  %v6163_v40 = vrot.slane %v6162_v47, 1  ;;  %v6668_v5 = vmax.f32 %v6667_v41, %v6259_v32  ;;  %v5986_v28 = vpop.f32.mrf.mxu1  ;;  %7121 = vmatprep.mubr.bf16.mxu0 %v11897_v60  ;;  %7194 = vmatprep.subr.bf16.mxu1 %v11984_v49  ;;  %v12240_v42 = vld [vmem:[#allocation11_spill] sm:$0xff] }
 0x4fb   : > { %v6190_v11 = vmax.f32 %v6189_v44, %v5986_v28  ;;  %v6261_v37 = vpop.f32.mrf.mxu0  ;;  %7476 = vmatpush1.bf16.msra.mxu0 %v9425_v31  ;;  %v12239_v31 = vmax.f32 %v11023_v48, %v11179_v2  ;;  %v12244_v28 = vld [vmem:[#allocation18_spill] sm:$0xff] }
 0x4fc   : > { %v11342_v13 = vmax.f32 %v12238_v63, %v6143_v46  ;;  %v6164_v26 = vmax.f32 %v6162_v47, %v6163_v40  ;;  %v6689_v6 = vmax.f32 %v6688_v10, %v6261_v37  ;;  %v5990_v50 = vpop.f32.mrf.mxu1  ;;  %7019 = vmatmul.mubr.bf16.gmra.mxu1 %v12221_v20  ;;  %7477 = vmatprep.subr.bf16.mxu0 %v11985_v38  ;;  %v12243_v40 = vld [vmem:[#allocation12_spill] sm:$0xff] }
 0x4fd   : > { %v6170_v59 = vmax.f32 %v6169_v43, %v5990_v50  ;;  %v6263_v54 = vpop.f32.mrf.mxu0  ;;  %7028 = vmatprep.mubr.bf16.mxu1 %v11897_v60  ;;  %7195 = vmatpush1.bf16.msra.mxu1 %v10212_v34  ;;  %v12242_v43 = vld [vmem:[#allocation4_spill] sm:$0xff] }
 0x4fe   : > { %v11351_v41 = vmax.f32 %v12239_v31, %v6164_v26  ;;  %v6669_v8 = vmax.f32 %v6668_v5, %v6263_v54  ;;  %v5992_v55 = vpop.f32.mrf.mxu1  ;;  %7196 = vmatprep.subr.bf16.mxu1 %v10216_v27 }
 0x4ff   : > { %v6191_v53 = vmax.f32 %v6190_v11, %v5992_v55  ;;  %v6265_v44 = vpop.f32.mrf.mxu0  ;;  %7478 = vmatpush1.bf16.msra.mxu0 %v9469_v52 }
 0x500   : > { %v6690_v38 = vmax.f32 %v6689_v6, %v6265_v44  ;;  %v5994_v62 = vpop.f32.mrf.mxu1  ;;  %7479 = vmatprep.subr.bf16.mxu0 %v12240_v42 }
 0x501   : > { %v6171_v47 = vmax.f32 %v6170_v59, %v5994_v62  ;;  %v6269_v10 = vpop.f32.mrf.mxu0  ;;  %7122 = vmatmul.mubr.bf16.gmra.mxu0 %v12214_v25  ;;  %7197 = vmatpush1.bf16.msra.mxu1 %v12241_v21  ;;  %v12245_v59 = vld [vmem:[#allocation19_spill] sm:$0xff] }
 0x502   : > { %v6670_v48 = vmax.f32 %v6669_v8, %v6269_v10  ;;  %v5996_v2 = vpop.f32.mrf.mxu1  ;;  %7131 = vmatprep.mubr.bf16.mxu0 %v11897_v60  ;;  %7584 = vmatprep.subr.bf16.mxu1 %v12242_v43  ;;  %v12246_v8 = vld [vmem:[#allocation22_spill] sm:$0xff] }
 0x503   : > { %v6192_v32 = vmax.f32 %v6191_v53, %v5996_v2  ;;  %v6271_v46 = vpop.f32.mrf.mxu0  ;;  %7480 = vmatpush1.bf16.msra.mxu0 %v12243_v40  ;;  %v12248_v2 = vld [vmem:[#allocation26_spill] sm:$0xff] }
 0x504   : > { %v6691_v52 = vmax.f32 %v6690_v38, %v6271_v46  ;;  %v6000_v5 = vpop.f32.mrf.mxu1  ;;  %7029 = vmatmul.mubr.bf16.gmra.mxu1 %v12226_v57  ;;  %7481 = vmatprep.subr.bf16.mxu0 %v12244_v28  ;;  %v12249_v28 = vld [vmem:[#allocation27_spill] sm:$0xff] }
 0x505   : > { %v6172_v11 = vmax.f32 %v6171_v47, %v6000_v5  ;;  %v6273_v37 = vpop.f32.mrf.mxu0  ;;  %7038 = vmatprep.mubr.bf16.mxu1 %v11897_v60  ;;  %v12247_v47 = vld [vmem:[#allocation23_spill] sm:$0xff] }
 0x506   : > { %v6671_v63 = vmax.f32 %v6670_v48, %v6273_v37  ;;  %v6002_v26 = vpop.f32.mrf.mxu1 }
 0x507   : > { %v6193_v6 = vmax.f32 %v6192_v32, %v6002_v26  ;;  %v6275_v50 = vpop.f32.mrf.mxu0  ;;  %7482 = vmatpush1.bf16.msra.mxu0 %v12245_v59 }
 0x508   : > { %v6692_v54 = vmax.f32 %v6691_v52, %v6275_v50  ;;  %v6004_v31 = vpop.f32.mrf.mxu1  ;;  %7483 = vmatprep.subr.bf16.mxu0 %v12246_v8 }
 0x509   : > { %v6173_v55 = vmax.f32 %v6172_v11, %v6004_v31  ;;  %v6279_v53 = vpop.f32.mrf.mxu0  ;;  %7132 = vmatmul.mubr.bf16.gmra.mxu0 %v12221_v20 }
 0x50a   : > { %v6672_v44 = vmax.f32 %v6671_v63, %v6279_v53  ;;  %v6006_v38 = vpop.f32.mrf.mxu1  ;;  %7141 = vmatprep.mubr.bf16.mxu0 %v11897_v60  ;;  %v12250_v63 = vld [vmem:[#allocation30_spill] sm:$0xff] }
 0x50b   : > { %v6194_v62 = vmax.f32 %v6193_v6, %v6006_v38  ;;  %v6281_v42 = vpop.f32.mrf.mxu0  ;;  %7484 = vmatpush1.bf16.msra.mxu0 %v12247_v47 }
 0x50c   : > { %v6693_v10 = vmax.f32 %v6692_v54, %v6281_v42  ;;  %v6010_v48 = vpop.f32.mrf.mxu1  ;;  %7039 = vmatmul.mubr.bf16.gmra.mxu1 %v12227_v15  ;;  %7485 = vmatprep.subr.bf16.mxu0 %v12248_v2 }
 0x50d   : > { %v6174_v43 = vmax.f32 %v6173_v55, %v6010_v48  ;;  %v6283_v32 = vpop.f32.mrf.mxu0  ;;  %7048 = vmatprep.mubr.bf16.mxu1 %v11897_v60 }
 0x50e   : > { %v6673_v46 = vmax.f32 %v6672_v44, %v6283_v32  ;;  %v6012_v40 = vpop.f32.mrf.mxu1 }
 0x50f   : > { %v6195_v52 = vmax.f32 %v6194_v62, %v6012_v40  ;;  %v6285_v5 = vpop.f32.mrf.mxu0  ;;  %7486 = vmatpush1.bf16.msra.mxu0 %v12249_v28 }
 0x510   : > { %v6694_v11 = vmax.f32 %v6693_v10, %v6285_v5  ;;  %v6014_v37 = vpop.f32.mrf.mxu1  ;;  %7697 = vmatprep.subr.bf16.mxu0 %v12250_v63 }
 0x511   : > { %v6175_v26 = vmax.f32 %v6174_v43, %v6014_v37  ;;  %v6289_v6 = vpop.f32.mrf.mxu0  ;;  %7142 = vmatmul.mubr.bf16.gmra.mxu0 %v12226_v57 }
 0x512   : > { %v6674_v50 = vmax.f32 %v6673_v46, %v6289_v6  ;;  %v6016_v59 = vpop.f32.mrf.mxu1  ;;  %7151 = vmatprep.mubr.bf16.mxu0 %v11897_v60 }
 0x513   : > { %v6196_v54 = vmax.f32 %v6195_v52, %v6016_v59  ;;  %v6291_v31 = vpop.f32.mrf.mxu0 }
 0x514   : > { %v6695_v8 = vmax.f32 %v6694_v11, %v6291_v31  ;;  %v6020_v55 = vpop.f32.mrf.mxu1  ;;  %7049 = vmatmul.mubr.bf16.gmra.mxu1 %v12228_v45 }
 0x515   : > { %v6176_v53 = vmax.f32 %v6175_v26, %v6020_v55  ;;  %v6293_v44 = vpop.f32.mrf.mxu0  ;;  %7058 = vmatprep.mubr.bf16.mxu1 %v11897_v60 }
 0x516   : > { %v6675_v38 = vmax.f32 %v6674_v50, %v6293_v44  ;;  %v6022_v62 = vpop.f32.mrf.mxu1 }
 0x517   : > { %v6197_v42 = vmax.f32 %v6196_v54, %v6022_v62  ;;  %v6295_v47 = vpop.f32.mrf.mxu0 }
 0x518   : > { %v6696_v10 = vmax.f32 %v6695_v8, %v6295_v47  ;;  %v6024_v48 = vpop.f32.mrf.mxu1 }
 0x519   : > { %v6177_v2 = vmax.f32 %v6176_v53, %v6024_v48  ;;  %v6299_v43 = vpop.f32.mrf.mxu0  ;;  %7152 = vmatmul.mubr.bf16.gmra.mxu0 %v12227_v15 }
 0x51a   : > { %v6676_v32 = vmax.f32 %v6675_v38, %v6299_v43  ;;  %v6026_v46 = vpop.f32.mrf.mxu1  ;;  %7161 = vmatprep.mubr.bf16.mxu0 %v11897_v60 }
 0x51b   : > { %v6198_v40 = vmax.f32 %v6197_v42, %v6026_v46  ;;  %v6301_v52 = vpop.f32.mrf.mxu0 }
 0x51c   : > { %v6697_v5 = vmax.f32 %v6696_v10, %v6301_v52  ;;  %v6030_v28 = vpop.f32.mrf.mxu1  ;;  %7059 = vmatmul.mubr.bf16.gmra.mxu1 %v12230_v1 }
 0x51d   : > { %v6178_v11 = vmax.f32 %v6177_v2, %v6030_v28  ;;  %v6303_v37 = vpop.f32.mrf.mxu0  ;;  %7214 = vmatprep.mubr.bf16.mxu1 %v11897_v60 }
 0x51e   : > { %v6677_v63 = vmax.f32 %v6676_v32, %v6303_v37  ;;  %v6032_v26 = vpop.f32.mrf.mxu1 }
 0x51f   : > { %v6199_v6 = vmax.f32 %v6198_v40, %v6032_v26  ;;  %v6305_v50 = vpop.f32.mrf.mxu0 }
 0x520   : > { %v6698_v59 = vmax.f32 %v6697_v5, %v6305_v50  ;;  %v6034_v54 = vpop.f32.mrf.mxu1 }
 0x521   : > { %v6179_v31 = vmax.f32 %v6178_v11, %v6034_v54  ;;  %v6309_v8 = vpop.f32.mrf.mxu0  ;;  %7162 = vmatmul.mubr.bf16.gmra.mxu0 %v12228_v45 }
 0x522   : > { %v6678_v55 = vmax.f32 %v6677_v63, %v6309_v8  ;;  %v6036_v53 = vpop.f32.mrf.mxu1  ;;  %7171 = vmatprep.mubr.bf16.mxu0 %v11897_v60 }
 0x523   : > { %v6180_v44 = vrot.slane %v6179_v31, 4  ;;  %v6200_v38 = vmax.f32 %v6199_v6, %v6036_v53  ;;  %v6311_v62 = vpop.f32.mrf.mxu0  ;;  %v12251_v6 = vld [vmem:[#allocation10_spill] sm:$0xff] }
 0x524   : > { %v6699_v42 = vmax.f32 %v6698_v59, %v6311_v62  ;;  %v6362_v47 = vpop.f32.mrf.mxu1  ;;  %7215 = vmatmul.mubr.bf16.vlgmr.msra.gmra.mxu1 %v12196_v24 }
 0x525   : > { %v6181_v10 = vmax.f32 %v6179_v31, %v6180_v44  ;;  %v6201_v48 = vrot.slane %v6200_v38, 4  ;;  %7585 = vmatpush1.bf16.msra.mxu1 %v9338_v56  ;;  %v6313_v2 = vpop.f32.mrf.mxu0  ;;  %7224 = vmatprep.mubr.bf16.mxu1 %v11897_v60 }
 0x526   : > { %v6679_v43 = vmax.f32 %v6678_v55, %v6313_v2  ;;  %v6364_v32 = vpop.f32.mrf.mxu1  ;;  %7586 = vmatprep.subr.bf16.mxu1 %v12194_v39 }
 0x527   : > { %v6182_v46 = vrot.slane %v6181_v10, 2  ;;  %v6202_v40 = vmax.f32 %v6200_v38, %v6201_v48  ;;  %v6315_v52 = vpop.f32.mrf.mxu0 }
 0x528   : > { %v6700_v5 = vmax.f32 %v6699_v42, %v6315_v52  ;;  %v6366_v28 = vpop.f32.mrf.mxu1  ;;  %v12252_v42 = vld [vmem:[#allocation14_spill] sm:$0xff] }
 0x529   : > { %v6183_v11 = vmax.f32 %v6181_v10, %v6182_v46  ;;  %v6203_v37 = vrot.slane %v6202_v40, 2  ;;  %v6709_v63 = vmax.f32 %v6362_v47, %v6366_v28  ;;  %v6319_v24 = vpop.f32.mrf.mxu0  ;;  %7172 = vmatmul.mubr.bf16.gmra.mxu0 %v12230_v1  ;;  %7587 = vmatpush1.bf16.msra.mxu1 %v12143_v22  ;;  %v12253_v47 = vmax.f32 %v11071_v23, %v11227_v17  ;;  %v12255_v28 = vld [vmem:[#allocation98_spill] sm:$0xff] }
 0x52a   : > { %v6680_v56 = vmax.f32 %v6679_v43, %v6319_v24  ;;  %v6368_v26 = vpop.f32.mrf.mxu1  ;;  %7503 = vmatprep.mubr.bf16.mxu0 %v11897_v60  ;;  %7588 = vmatprep.subr.bf16.mxu1 %v12251_v6  ;;  %v12258_v6 = vld [vmem:[#allocation34_spill] sm:$0xff] }
 0x52b   : > { %v6184_v39 = vrot.slane %v6183_v11, 1  ;;  %v6204_v50 = vmax.f32 %v6202_v40, %v6203_v37  ;;  %v6730_v59 = vmax.f32 %v6364_v32, %v6368_v26  ;;  %v6321_v54 = vpop.f32.mrf.mxu0  ;;  %v12254_v40 = vmax.f32 %v11076_v36, %v11234_v58  ;;  %v12256_v37 = vld [vmem:[#allocation16_spill] sm:$0xff] }
 0x52c   : > { %v6701_v31 = vmax.f32 %v6700_v5, %v6321_v54  ;;  %v6372_v8 = vpop.f32.mrf.mxu1  ;;  %7225 = vmatmul.mubr.bf16.gmra.mxu1 %v12199_v29 }
 0x52d   : > { %v6185_v55 = vmax.f32 %v6183_v11, %v6184_v39  ;;  %v6205_v53 = vrot.slane %v6204_v50, 1  ;;  %v6710_v44 = vmax.f32 %v6709_v63, %v6372_v8  ;;  %v6323_v38 = vpop.f32.mrf.mxu0  ;;  %7234 = vmatprep.mubr.bf16.mxu1 %v11897_v60  ;;  %7589 = vmatpush1.bf16.msra.mxu1 %v12083_v3  ;;  %v12259_v8 = vld [vmem:[#allocation20_spill] sm:$0xff] }
 0x52e   : > { %v6681_v22 = vmax.f32 %v6680_v56, %v6323_v38  ;;  %v6374_v62 = vpop.f32.mrf.mxu1  ;;  %7590 = vmatprep.subr.bf16.mxu1 %v12252_v42  ;;  %v12257_v56 = vld [vmem:[#allocation31_spill] sm:$0xff]  ;;  %v12261_v42 = vld [vmem:[#allocation36_spill] sm:$0xff] }
 0x52f   : > { %v11399_v10 = vmax.f32 %v12253_v47, %v6185_v55  ;;  %v6206_v48 = vmax.f32 %v6204_v50, %v6205_v53  ;;  %v6731_v2 = vmax.f32 %v6730_v59, %v6374_v62  ;;  %v6325_v29 = vpop.f32.mrf.mxu0 }
 0x530   : > { %v6682_v43 = vrot.slane %v6681_v22, 4  ;;  %v6702_v32 = vmax.f32 %v6701_v31, %v6325_v29  ;;  %v6376_v46 = vpop.f32.mrf.mxu1 }
 0x531   : > { %v11404_v52 = vmax.f32 %v12254_v40, %v6206_v48  ;;  %v6711_v3 = vmax.f32 %v6710_v44, %v6376_v46  ;;  %v6475_v5 = vpop.f32.mrf.mxu0  ;;  %7504 = vmatmul.mubr.bf16.vlgmr.msra.gmra.mxu0 %v12255_v28  ;;  %7591 = vmatpush1.bf16.msra.mxu1 %v12148_v4  ;;  %v12260_v44 = vld [vmem:[#allocation35_spill] sm:$0xff]  ;;  %v12264_v40 = vld [vmem:[#allocation24_spill] sm:$0xff] }
 0x532   : > { %v6683_v23 = vmax.f32 %v6681_v22, %v6682_v43  ;;  %v6703_v17 = vrot.slane %v6702_v32, 4  ;;  %v6378_v11 = vpop.f32.mrf.mxu1  ;;  %7513 = vmatprep.mubr.bf16.mxu0 %v11897_v60  ;;  %7592 = vmatprep.subr.bf16.mxu1 %v12256_v37 }
 0x533   : > { %v6732_v63 = vmax.f32 %v6731_v2, %v6378_v11  ;;  %v6477_v24 = vpop.f32.mrf.mxu0  ;;  %7698 = vmatpush1.bf16.msra.mxu0 %v12257_v56  ;;  %v12262_v2 = vld [vmem:[#allocation97_spill] sm:$0xff] }
 0x534   : > { %v6684_v36 = vrot.slane %v6683_v23, 2  ;;  %v6704_v58 = vmax.f32 %v6702_v32, %v6703_v17  ;;  %v6382_v26 = vpop.f32.mrf.mxu1  ;;  %7235 = vmatmul.mubr.bf16.gmra.mxu1 %v12214_v25  ;;  %7699 = vmatprep.subr.bf16.mxu0 %v12258_v6 }
 0x535   : > { %v6712_v39 = vmax.f32 %v6711_v3, %v6382_v26  ;;  %v6479_v4 = vpop.f32.mrf.mxu0  ;;  %7244 = vmatprep.mubr.bf16.mxu1 %v11897_v60  ;;  %7593 = vmatpush1.bf16.msra.mxu1 %v12089_v0  ;;  %v12263_v0 = vld [vmem:[#allocation21_spill] sm:$0xff] }
 0x536   : > { %v6685_v50 = vmax.f32 %v6683_v23, %v6684_v36  ;;  %v6705_v59 = vrot.slane %v6704_v58, 2  ;;  %v6751_v54 = vmax.f32 %v6475_v5, %v6479_v4  ;;  %v6384_v31 = vpop.f32.mrf.mxu1  ;;  %7594 = vmatprep.subr.bf16.mxu1 %v12259_v8  ;;  %v12265_v23 = vld [vmem:[#allocation37_spill] sm:$0xff]  ;;  %v12268_v4 = vld [vmem:[#allocation28_spill] sm:$0xff] }
 0x537   : > { %v6733_v55 = vmax.f32 %v6732_v63, %v6384_v31  ;;  %v6481_v53 = vpop.f32.mrf.mxu0  ;;  %7700 = vmatpush1.bf16.msra.mxu0 %v12260_v44  ;;  %v12270_v8 = vld [vmem:[#allocation40_spill] sm:$0xff] }
 0x538   : > { %v6686_v38 = vrot.slane %v6685_v50, 1  ;;  %v6706_v25 = vmax.f32 %v6704_v58, %v6705_v59  ;;  %v6772_v22 = vmax.f32 %v6477_v24, %v6481_v53  ;;  %v6386_v62 = vpop.f32.mrf.mxu1  ;;  %7701 = vmatprep.subr.bf16.mxu0 %v12261_v42  ;;  %v12266_v24 = vld [vmem:[#allocation38_spill] sm:$0xff]  ;;  %v12267_v58 = vld [vmem:[#allocation25_spill] sm:$0xff]  ;;  %v12271_v44 = vld [vmem:[#allocation100_spill] sm:$0xff] }
 0x539   : > { %v6713_v47 = vmax.f32 %v6712_v39, %v6386_v62  ;;  %v6485_v48 = vpop.f32.mrf.mxu0  ;;  %7514 = vmatmul.mubr.bf16.gmra.mxu0 %v12262_v2  ;;  %7595 = vmatpush1.bf16.msra.mxu1 %v12263_v0  ;;  %v12273_v62 = vld [vmem:[#allocation32_spill] sm:$0xff] }
 0x53a   : > { %v11420_v29 = vmax.f32 %v6685_v50, %v6686_v38  ;;  %v6707_v43 = vrot.slane %v6706_v25, 1  ;;  %v6752_v32 = vmax.f32 %v6751_v54, %v6485_v48  ;;  %v6388_v46 = vpop.f32.mrf.mxu1  ;;  %7523 = vmatprep.mubr.bf16.mxu0 %v11897_v60  ;;  %7596 = vmatprep.subr.bf16.mxu1 %v12264_v40  ;;  %v12269_v54 = vld [vmem:[#allocation39_spill] sm:$0xff]  ;;  %v12272_v38 = vld [vmem:[#allocation29_spill] sm:$0xff] }
 0x53b   : > { %v6734_v3 = vmax.f32 %v6733_v55, %v6388_v46  ;;  %v6487_v5 = vpop.f32.mrf.mxu0  ;;  %7702 = vmatpush1.bf16.msra.mxu0 %v12265_v23  ;;  %v12274_v48 = vld [vmem:[#allocation41_spill] sm:$0xff] }
 0x53c   : > { %v6835_v17 = vmax.f32 %v11258_v9, %v11420_v29  ;;  %v11427_v11 = vmax.f32 %v6706_v25, %v6707_v43  ;;  %v6773_v37 = vmax.f32 %v6772_v22, %v6487_v5  ;;  %v6392_v63 = vpop.f32.mrf.mxu1  ;;  %7245 = vmatmul.mubr.bf16.gmra.mxu1 %v12221_v20  ;;  %7703 = vmatprep.subr.bf16.mxu0 %v12266_v24 }
 0x53d   : > { %v6714_v56 = vmax.f32 %v6713_v47, %v6392_v63  ;;  %v6489_v36 = vpop.f32.mrf.mxu0  ;;  %7254 = vmatprep.mubr.bf16.mxu1 %v11897_v60  ;;  %7597 = vmatpush1.bf16.msra.mxu1 %v12267_v58  ;;  %v12276_v63 = vld [vmem:[#allocation43_spill] sm:$0xff] }
 0x53e   : > { %v6836_v26 = vmax.f32 %v11267_v19, %v11427_v11  ;;  %v6753_v6 = vmax.f32 %v6752_v32, %v6489_v36  ;;  %v6394_v39 = vpop.f32.mrf.mxu1  ;;  %7598 = vmatprep.subr.bf16.mxu1 %v12268_v4  ;;  %v12275_v32 = vld [vmem:[#allocation42_spill] sm:$0xff]  ;;  %v12277_v36 = vld [vmem:[#allocation44_spill] sm:$0xff] }
 0x53f   : > { %v6735_v50 = vmax.f32 %v6734_v3, %v6394_v39  ;;  %v6491_v59 = vpop.f32.mrf.mxu0  ;;  %7704 = vmatpush1.bf16.msra.mxu0 %v12269_v54  ;;  %v12278_v39 = vld [vmem:[#allocation99_spill] sm:$0xff]  ;;  %v12279_v54 = vld [vmem:[#allocation45_spill] sm:$0xff] }
 0x540   : > { %v6774_v20 = vmax.f32 %v6773_v37, %v6491_v59  ;;  %v6396_v31 = vpop.f32.mrf.mxu1  ;;  %7705 = vmatprep.subr.bf16.mxu0 %v12270_v8  ;;  %v12280_v8 = vld [vmem:[#allocation46_spill] sm:$0xff] }
 0x541   : > { %v6715_v55 = vmax.f32 %v6714_v56, %v6396_v31  ;;  %v6495_v53 = vpop.f32.mrf.mxu0  ;;  %7524 = vmatmul.mubr.bf16.gmra.mxu0 %v12271_v44  ;;  %7599 = vmatpush1.bf16.msra.mxu1 %v12272_v38 }
 0x542   : > { %v6754_v25 = vmax.f32 %v6753_v6, %v6495_v53  ;;  %v6398_v22 = vpop.f32.mrf.mxu1  ;;  %7533 = vmatprep.mubr.bf16.mxu0 %v11897_v60  ;;  %7810 = vmatprep.subr.bf16.mxu1 %v12273_v62 }
 0x543   : > { %v6736_v42 = vmax.f32 %v6735_v50, %v6398_v22  ;;  %v6497_v47 = vpop.f32.mrf.mxu0  ;;  %7706 = vmatpush1.bf16.msra.mxu0 %v12274_v48 }
 0x544   : > { %v6775_v0 = vmax.f32 %v6774_v20, %v6497_v47  ;;  %v6402_v43 = vpop.f32.mrf.mxu1  ;;  %7255 = vmatmul.mubr.bf16.gmra.mxu1 %v12226_v57  ;;  %7707 = vmatprep.subr.bf16.mxu0 %v12275_v32  ;;  %v12282_v32 = vld [vmem:[#allocation102_spill] sm:$0xff] }
 0x545   : > { %v6716_v46 = vmax.f32 %v6715_v55, %v6402_v43  ;;  %v6499_v40 = vpop.f32.mrf.mxu0  ;;  %7264 = vmatprep.mubr.bf16.mxu1 %v11897_v60 }
 0x546   : > { %v6755_v3 = vmax.f32 %v6754_v25, %v6499_v40  ;;  %v6404_v5 = vpop.f32.mrf.mxu1 }
 0x547   : > { %v6737_v23 = vmax.f32 %v6736_v42, %v6404_v5  ;;  %v6501_v37 = vpop.f32.mrf.mxu0  ;;  %7708 = vmatpush1.bf16.msra.mxu0 %v12276_v63  ;;  %v12281_v42 = vld [vmem:[#allocation47_spill] sm:$0xff] }
 0x548   : > { %v6776_v24 = vmax.f32 %v6775_v0, %v6501_v37  ;;  %v6406_v56 = vpop.f32.mrf.mxu1  ;;  %7709 = vmatprep.subr.bf16.mxu0 %v12277_v36 }
 0x549   : > { %v6717_v58 = vmax.f32 %v6716_v46, %v6406_v56  ;;  %v6505_v6 = vpop.f32.mrf.mxu0  ;;  %7534 = vmatmul.mubr.bf16.gmra.mxu0 %v12278_v39 }
 0x54a   : > { %v6756_v57 = vmax.f32 %v6755_v3, %v6505_v6  ;;  %v6408_v4 = vpop.f32.mrf.mxu1  ;;  %7543 = vmatprep.mubr.bf16.mxu0 %v11897_v60 }
 0x54b   : > { %v6738_v50 = vmax.f32 %v6737_v23, %v6408_v4  ;;  %v6507_v59 = vpop.f32.mrf.mxu0  ;;  %7710 = vmatpush1.bf16.msra.mxu0 %v12279_v54 }
 0x54c   : > { %v6777_v20 = vmax.f32 %v6776_v24, %v6507_v59  ;;  %v6412_v31 = vpop.f32.mrf.mxu1  ;;  %7265 = vmatmul.mubr.bf16.gmra.mxu1 %v12227_v15  ;;  %7711 = vmatprep.subr.bf16.mxu0 %v12280_v8  ;;  %v12283_v59 = vld [vmem:[#allocation101_spill] sm:$0xff] }
 0x54d   : > { %v6718_v55 = vmax.f32 %v6717_v58, %v6412_v31  ;;  %v6509_v53 = vpop.f32.mrf.mxu0  ;;  %7274 = vmatprep.mubr.bf16.mxu1 %v11897_v60 }
 0x54e   : > { %v6757_v38 = vmax.f32 %v6756_v57, %v6509_v53  ;;  %v6414_v25 = vpop.f32.mrf.mxu1 }
 0x54f   : > { %v6739_v22 = vmax.f32 %v6738_v50, %v6414_v25  ;;  %v6511_v62 = vpop.f32.mrf.mxu0  ;;  %7712 = vmatpush1.bf16.msra.mxu0 %v12281_v42 }
 0x550   : > { %v6778_v47 = vmax.f32 %v6777_v20, %v6511_v62  ;;  %v6416_v48 = vpop.f32.mrf.mxu1 }
 0x551   : > { %v6719_v0 = vmax.f32 %v6718_v55, %v6416_v48  ;;  %v6515_v43 = vpop.f32.mrf.mxu0  ;;  %7544 = vmatmul.mubr.bf16.gmra.mxu0 %v12282_v32 }
 0x552   : > { %v6758_v46 = vmax.f32 %v6757_v38, %v6515_v43  ;;  %v6418_v15 = vpop.f32.mrf.mxu1  ;;  %7553 = vmatprep.mubr.bf16.mxu0 %v11897_v60 }
 0x553   : > { %v6740_v40 = vmax.f32 %v6739_v22, %v6418_v15  ;;  %v6517_v3 = vpop.f32.mrf.mxu0 }
 0x554   : > { %v6779_v5 = vmax.f32 %v6778_v47, %v6517_v3  ;;  %v6422_v23 = vpop.f32.mrf.mxu1  ;;  %7275 = vmatmul.mubr.bf16.gmra.mxu1 %v12228_v45 }
 0x555   : > { %v6720_v37 = vmax.f32 %v6719_v0, %v6422_v23  ;;  %v6519_v63 = vpop.f32.mrf.mxu0  ;;  %7284 = vmatprep.mubr.bf16.mxu1 %v11897_v60 }
 0x556   : > { %v6759_v24 = vmax.f32 %v6758_v46, %v6519_v63  ;;  %v6424_v56 = vpop.f32.mrf.mxu1  ;;  %v12284_v46 = vld [vmem:[#allocation104_spill] sm:$0xff] }
 0x557   : > { %v6741_v36 = vmax.f32 %v6740_v40, %v6424_v56  ;;  %v6521_v58 = vpop.f32.mrf.mxu0  ;;  %v12285_v56 = vld [vmem:[#allocation33_spill] sm:$0xff] }
 0x558   : > { %v6780_v6 = vmax.f32 %v6779_v5, %v6521_v58  ;;  %v6426_v57 = vpop.f32.mrf.mxu1 }
 0x559   : > { %v6721_v4 = vmax.f32 %v6720_v37, %v6426_v57  ;;  %v6525_v50 = vpop.f32.mrf.mxu0  ;;  %7554 = vmatmul.mubr.bf16.gmra.mxu0 %v12283_v59  ;;  %v12286_v57 = vld [vmem:[#allocation48_spill] sm:$0xff] }
 0x55a   : > { %v6760_v54 = vmax.f32 %v6759_v24, %v6525_v50  ;;  %v6428_v20 = vpop.f32.mrf.mxu1  ;;  %7563 = vmatprep.mubr.bf16.mxu0 %v11897_v60 }
 0x55b   : > { %v6742_v31 = vmax.f32 %v6741_v36, %v6428_v20  ;;  %v6527_v45 = vpop.f32.mrf.mxu0 }
 0x55c   : > { %v6781_v8 = vmax.f32 %v6780_v6, %v6527_v45  ;;  %v6432_v55 = vpop.f32.mrf.mxu1  ;;  %7285 = vmatmul.mubr.bf16.gmra.mxu1 %v12230_v1 }
 0x55d   : > { %v6722_v53 = vmax.f32 %v6721_v4, %v6432_v55  ;;  %v6529_v38 = vpop.f32.mrf.mxu0  ;;  %7616 = vmatprep.mubr.bf16.mxu1 %v11897_v60 }
 0x55e   : > { %v6761_v25 = vmax.f32 %v6760_v54, %v6529_v38  ;;  %v6434_v22 = vpop.f32.mrf.mxu1  ;;  %v12287_v38 = vld [vmem:[#allocation103_spill] sm:$0xff] }
 0x55f   : > { %v6743_v62 = vmax.f32 %v6742_v31, %v6434_v22  ;;  %v6531_v42 = vpop.f32.mrf.mxu0 }
 0x560   : > { %v6782_v47 = vmax.f32 %v6781_v8, %v6531_v42  ;;  %v6436_v48 = vpop.f32.mrf.mxu1 }
 0x561   : > { %v6723_v0 = vmax.f32 %v6722_v53, %v6436_v48  ;;  %v6535_v43 = vpop.f32.mrf.mxu0  ;;  %7564 = vmatmul.mubr.bf16.gmra.mxu0 %v12284_v46 }
 0x562   : > { %v6762_v15 = vmax.f32 %v6761_v25, %v6535_v43  ;;  %v6438_v40 = vpop.f32.mrf.mxu1  ;;  %7573 = vmatprep.mubr.bf16.mxu0 %v11897_v60  ;;  %v12288_v25 = vld [vmem:[#allocation49_spill] sm:$0xff] }
 0x563   : > { %v6724_v3 = vrot.slane %v6723_v0, 4  ;;  %v6744_v1 = vmax.f32 %v6743_v62, %v6438_v40  ;;  %v6537_v5 = vpop.f32.mrf.mxu0 }
 0x564   : > { %v6783_v23 = vmax.f32 %v6782_v47, %v6537_v5  ;;  %v6588_v37 = vpop.f32.mrf.mxu1  ;;  %7617 = vmatmul.mubr.bf16.vlgmr.msra.gmra.mxu1 %v12255_v28 }
 0x565   : > { %v6725_v63 = vmax.f32 %v6723_v0, %v6724_v3  ;;  %v6745_v24 = vrot.slane %v6744_v1, 4  ;;  %7811 = vmatpush1.bf16.msra.mxu1 %v12285_v56  ;;  %v6539_v36 = vpop.f32.mrf.mxu0  ;;  %7626 = vmatprep.mubr.bf16.mxu1 %v11897_v60 }
 0x566   : > { %v6763_v58 = vmax.f32 %v6762_v15, %v6539_v36  ;;  %v6590_v6 = vpop.f32.mrf.mxu1  ;;  %7812 = vmatprep.subr.bf16.mxu1 %v12286_v57 }
 0x567   : > { %v6726_v4 = vrot.slane %v6725_v63, 2  ;;  %v6746_v50 = vmax.f32 %v6744_v1, %v6745_v24  ;;  %v6541_v54 = vpop.f32.mrf.mxu0 }
 0x568   : > { %v6784_v20 = vmax.f32 %v6783_v23, %v6541_v54  ;;  %v6592_v31 = vpop.f32.mrf.mxu1 }
 0x569   : > { %v6727_v45 = vmax.f32 %v6725_v63, %v6726_v4  ;;  %v6747_v8 = vrot.slane %v6746_v50, 2  ;;  %v6793_v55 = vmax.f32 %v6588_v37, %v6592_v31  ;;  %v6545_v53 = vpop.f32.mrf.mxu0  ;;  %7574 = vmatmul.mubr.bf16.gmra.mxu0 %v12287_v38  ;;  %7813 = vmatpush1.bf16.msra.mxu1 %v12288_v25 }
 0x56a   : > { %v6764_v22 = vmax.f32 %v6763_v58, %v6545_v53  ;;  %v6594_v62 = vpop.f32.mrf.mxu1  ;;  %7729 = vmatprep.mubr.bf16.mxu0 %v11897_v60  ;;  %7814 = vmatprep.subr.bf16.mxu1 %v12231_v12 }
 0x56b   : > { %v6728_v42 = vrot.slane %v6727_v45, 1  ;;  %v6748_v47 = vmax.f32 %v6746_v50, %v6747_v8  ;;  %v6814_v48 = vmax.f32 %v6590_v6, %v6594_v62  ;;  %v6547_v0 = vpop.f32.mrf.mxu0 }
 0x56c   : > { %v6785_v43 = vmax.f32 %v6784_v20, %v6547_v0  ;;  %v6598_v15 = vpop.f32.mrf.mxu1  ;;  %7627 = vmatmul.mubr.bf16.gmra.mxu1 %v12262_v2 }
 0x56d   : > { %v11474_v40 = vmax.f32 %v6727_v45, %v6728_v42  ;;  %v6749_v3 = vrot.slane %v6748_v47, 1  ;;  %v6794_v1 = vmax.f32 %v6793_v55, %v6598_v15  ;;  %v6549_v5 = vpop.f32.mrf.mxu0  ;;  %7636 = vmatprep.mubr.bf16.mxu1 %v11897_v60  ;;  %7815 = vmatpush1.bf16.msra.mxu1 %v12067_v7 }
 0x56e   : > { %v6765_v23 = vmax.f32 %v6764_v22, %v6549_v5  ;;  %v6600_v37 = vpop.f32.mrf.mxu1  ;;  %7816 = vmatprep.subr.bf16.mxu1 %v12232_v30 }
 0x56f   : > { %v6837_v12 = vmax.f32 %v11315_v51, %v11474_v40  ;;  %v11481_v63 = vmax.f32 %v6748_v47, %v6749_v3  ;;  %v6815_v24 = vmax.f32 %v6814_v48, %v6600_v37  ;;  %v6551_v56 = vpop.f32.mrf.mxu0 }
 0x570   : > { %v6766_v36 = vrot.slane %v6765_v23, 4  ;;  %v6786_v58 = vmax.f32 %v6785_v43, %v6551_v56  ;;  %v6602_v6 = vpop.f32.mrf.mxu1 }
 0x571   : > { %v6838_v57 = vmax.f32 %v11320_v33, %v11481_v63  ;;  %v6795_v4 = vmax.f32 %v6794_v1, %v6602_v6  ;;  %v6877_v50 = vpop.f32.mrf.mxu0  ;;  %7730 = vmatmul.mubr.bf16.vlgmr.msra.gmra.mxu0 %v12255_v28  ;;  %7817 = vmatpush1.bf16.msra.mxu1 %v12125_v61 }
 0x572   : > { %v6767_v7 = vmax.f32 %v6765_v23, %v6766_v36  ;;  %v6787_v30 = vrot.slane %v6786_v58, 4  ;;  %v6604_v54 = vpop.f32.mrf.mxu1  ;;  %7739 = vmatprep.mubr.bf16.mxu0 %v11897_v60  ;;  %7818 = vmatprep.subr.bf16.mxu1 %v12235_v16 }
 0x573   : > { %v6816_v20 = vmax.f32 %v6815_v24, %v6604_v54  ;;  %v6879_v31 = vpop.f32.mrf.mxu0 }
 0x574   : > { %v6768_v45 = vrot.slane %v6767_v7, 2  ;;  %v6788_v8 = vmax.f32 %v6786_v58, %v6787_v30  ;;  %v6608_v55 = vpop.f32.mrf.mxu1  ;;  %7637 = vmatmul.mubr.bf16.gmra.mxu1 %v12271_v44 }
 0x575   : > { %v6796_v53 = vmax.f32 %v6795_v4, %v6608_v55  ;;  %v6881_v25 = vpop.f32.mrf.mxu0  ;;  %7646 = vmatprep.mubr.bf16.mxu1 %v11897_v60  ;;  %7819 = vmatpush1.bf16.msra.mxu1 %v12129_v18 }
 0x576   : > { %v6769_v61 = vmax.f32 %v6767_v7, %v6768_v45  ;;  %v6789_v22 = vrot.slane %v6788_v8, 2  ;;  %v7295_v62 = vmax.f32 %v6877_v50, %v6881_v25  ;;  %v6610_v42 = vpop.f32.mrf.mxu1  ;;  %7820 = vmatprep.subr.bf16.mxu1 %v10176_v14 }
 0x577   : > { %v6817_v16 = vmax.f32 %v6816_v20, %v6610_v42  ;;  %v6883_v47 = vpop.f32.mrf.mxu0 }
 0x578   : > { %v6770_v48 = vrot.slane %v6769_v61, 1  ;;  %v6790_v0 = vmax.f32 %v6788_v8, %v6789_v22  ;;  %v7316_v43 = vmax.f32 %v6879_v31, %v6883_v47  ;;  %v6612_v15 = vpop.f32.mrf.mxu1 }
 0x579   : > { %v6797_v3 = vmax.f32 %v6796_v53, %v6612_v15  ;;  %v6887_v1 = vpop.f32.mrf.mxu0  ;;  %7740 = vmatmul.mubr.bf16.gmra.mxu0 %v12262_v2  ;;  %7821 = vmatpush1.bf16.msra.mxu1 %v12031_v35 }
 0x57a   : > { %v11495_v5 = vmax.f32 %v6769_v61, %v6770_v48  ;;  %v6791_v18 = vrot.slane %v6790_v0, 1  ;;  %v7296_v23 = vmax.f32 %v7295_v62, %v6887_v1  ;;  %v6614_v37 = vpop.f32.mrf.mxu1  ;;  %7749 = vmatprep.mubr.bf16.mxu0 %v11897_v60  ;;  %7822 = vmatprep.subr.bf16.mxu1 %v11984_v49 }
 0x57b   : > { %v6818_v14 = vmax.f32 %v6817_v16, %v6614_v37  ;;  %v6889_v24 = vpop.f32.mrf.mxu0 }
 0x57c   : > { %v6839_v56 = vmax.f32 %v11342_v13, %v11495_v5  ;;  %v11501_v36 = vmax.f32 %v6790_v0, %v6791_v18  ;;  %v7317_v58 = vmax.f32 %v7316_v43, %v6889_v24  ;;  %v6618_v6 = vpop.f32.mrf.mxu1  ;;  %7647 = vmatmul.mubr.bf16.gmra.mxu1 %v12278_v39 }
 0x57d   : > { %v6798_v35 = vmax.f32 %v6797_v3, %v6618_v6  ;;  %v6891_v4 = vpop.f32.mrf.mxu0  ;;  %7656 = vmatprep.mubr.bf16.mxu1 %v11897_v60  ;;  %7823 = vmatpush1.bf16.msra.mxu1 %v10212_v34 }
 0x57e   : > { %v6840_v49 = vmax.f32 %v11351_v41, %v11501_v36  ;;  %v7297_v50 = vmax.f32 %v7296_v23, %v6891_v4  ;;  %v6620_v7 = vpop.f32.mrf.mxu1  ;;  %7824 = vmatprep.subr.bf16.mxu1 %v10216_v27 }
 0x57f   : > { %v6819_v30 = vmax.f32 %v6818_v14, %v6620_v7  ;;  %v6893_v54 = vpop.f32.mrf.mxu0 }
 0x580   : > { %v7318_v20 = vmax.f32 %v7317_v58, %v6893_v54  ;;  %v6622_v31 = vpop.f32.mrf.mxu1 }
 0x581   : > { %v6799_v45 = vmax.f32 %v6798_v35, %v6622_v31  ;;  %v6897_v8 = vpop.f32.mrf.mxu0  ;;  %7750 = vmatmul.mubr.bf16.gmra.mxu0 %v12271_v44  ;;  %7825 = vmatpush1.bf16.msra.mxu1 %v12241_v21 }
 0x582   : > { %v7298_v55 = vmax.f32 %v7297_v50, %v6897_v8  ;;  %v6624_v53 = vpop.f32.mrf.mxu1  ;;  %7759 = vmatprep.mubr.bf16.mxu0 %v11897_v60 }
 0x583   : > { %v6820_v34 = vmax.f32 %v6819_v30, %v6624_v53  ;;  %v6899_v25 = vpop.f32.mrf.mxu0 }
 0x584   : > { %v7319_v61 = vmax.f32 %v7318_v20, %v6899_v25  ;;  %v6628_v22 = vpop.f32.mrf.mxu1  ;;  %7657 = vmatmul.mubr.bf16.gmra.mxu1 %v12282_v32 }
 0x585   : > { %v6800_v27 = vmax.f32 %v6799_v45, %v6628_v22  ;;  %v6901_v62 = vpop.f32.mrf.mxu0  ;;  %7666 = vmatprep.mubr.bf16.mxu1 %v11897_v60 }
 0x586   : > { %v7299_v42 = vmax.f32 %v7298_v55, %v6901_v62  ;;  %v6630_v16 = vpop.f32.mrf.mxu1 }
 0x587   : > { %v6821_v47 = vmax.f32 %v6820_v34, %v6630_v16  ;;  %v6903_v48 = vpop.f32.mrf.mxu0 }
 0x588   : > { %v7320_v0 = vmax.f32 %v7319_v61, %v6903_v48  ;;  %v6632_v21 = vpop.f32.mrf.mxu1 }
 0x589   : > { %v6801_v43 = vmax.f32 %v6800_v27, %v6632_v21  ;;  %v6907_v15 = vpop.f32.mrf.mxu0  ;;  %7760 = vmatmul.mubr.bf16.gmra.mxu0 %v12278_v39 }
 0x58a   : > { %v7300_v3 = vmax.f32 %v7299_v42, %v6907_v15  ;;  %v6634_v1 = vpop.f32.mrf.mxu1  ;;  %7769 = vmatprep.mubr.bf16.mxu0 %v11897_v60 }
 0x58b   : > { %v6822_v18 = vmax.f32 %v6821_v47, %v6634_v1  ;;  %v6909_v23 = vpop.f32.mrf.mxu0 }
 0x58c   : > { %v7321_v37 = vmax.f32 %v7320_v0, %v6909_v23  ;;  %v6638_v14 = vpop.f32.mrf.mxu1  ;;  %7667 = vmatmul.mubr.bf16.gmra.mxu1 %v12283_v59 }
 0x58d   : > { %v6802_v24 = vmax.f32 %v6801_v43, %v6638_v14  ;;  %v6911_v58 = vpop.f32.mrf.mxu0  ;;  %7676 = vmatprep.mubr.bf16.mxu1 %v11897_v60 }
 0x58e   : > { %v7301_v6 = vmax.f32 %v7300_v3, %v6911_v58  ;;  %v6640_v35 = vpop.f32.mrf.mxu1 }
 0x58f   : > { %v6823_v4 = vmax.f32 %v6822_v18, %v6640_v35  ;;  %v6913_v50 = vpop.f32.mrf.mxu0 }
 0x590   : > { %v7322_v7 = vmax.f32 %v7321_v37, %v6913_v50  ;;  %v6642_v30 = vpop.f32.mrf.mxu1 }
 0x591   : > { %v6803_v54 = vmax.f32 %v6802_v24, %v6642_v30  ;;  %v6917_v20 = vpop.f32.mrf.mxu0  ;;  %7770 = vmatmul.mubr.bf16.gmra.mxu0 %v12282_v32 }
 0x592   : > { %v7302_v31 = vmax.f32 %v7301_v6, %v6917_v20  ;;  %v6644_v45 = vpop.f32.mrf.mxu1  ;;  %7779 = vmatprep.mubr.bf16.mxu0 %v11897_v60 }
 0x593   : > { %v6824_v8 = vmax.f32 %v6823_v4, %v6644_v45  ;;  %v6919_v55 = vpop.f32.mrf.mxu0 }
 0x594   : > { %v7323_v53 = vmax.f32 %v7322_v7, %v6919_v55  ;;  %v6648_v34 = vpop.f32.mrf.mxu1  ;;  %7677 = vmatmul.mubr.bf16.gmra.mxu1 %v12284_v46 }
 0x595   : > { %v6804_v25 = vmax.f32 %v6803_v54, %v6648_v34  ;;  %v6921_v61 = vpop.f32.mrf.mxu0  ;;  %7686 = vmatprep.mubr.bf16.mxu1 %v11897_v60 }
 0x596   : > { %v7303_v22 = vmax.f32 %v7302_v31, %v6921_v61  ;;  %v6650_v27 = vpop.f32.mrf.mxu1 }
 0x597   : > { %v6825_v62 = vmax.f32 %v6824_v8, %v6650_v27  ;;  %v6923_v42 = vpop.f32.mrf.mxu0 }
 0x598   : > { %v7324_v16 = vmax.f32 %v7323_v53, %v6923_v42  ;;  %v6652_v47 = vpop.f32.mrf.mxu1 }
 0x599   : > { %v6805_v48 = vmax.f32 %v6804_v25, %v6652_v47  ;;  %v6927_v0 = vpop.f32.mrf.mxu0  ;;  %7780 = vmatmul.mubr.bf16.gmra.mxu0 %v12283_v59 }
 0x59a   : > { %v7304_v21 = vmax.f32 %v7303_v22, %v6927_v0  ;;  %v6654_v43 = vpop.f32.mrf.mxu1  ;;  %7789 = vmatprep.mubr.bf16.mxu0 %v11897_v60 }
 0x59b   : > { %v6826_v15 = vmax.f32 %v6825_v62, %v6654_v43  ;;  %v6929_v3 = vpop.f32.mrf.mxu0 }
 0x59c   : > { %v7325_v1 = vmax.f32 %v7324_v16, %v6929_v3  ;;  %v6658_v18 = vpop.f32.mrf.mxu1  ;;  %7687 = vmatmul.mubr.bf16.gmra.mxu1 %v12287_v38 }
 0x59d   : > { %v6806_v23 = vmax.f32 %v6805_v48, %v6658_v18  ;;  %v6931_v37 = vpop.f32.mrf.mxu0  ;;  %7842 = vmatprep.mubr.bf16.mxu1 %v11897_v60 }
 0x59e   : > { %v7305_v14 = vmax.f32 %v7304_v21, %v6931_v37  ;;  %v6660_v24 = vpop.f32.mrf.mxu1 }
 0x59f   : > { %v6827_v58 = vmax.f32 %v6826_v15, %v6660_v24  ;;  %v6933_v6 = vpop.f32.mrf.mxu0 }
 0x5a0   : > { %v7326_v35 = vmax.f32 %v7325_v1, %v6933_v6  ;;  %v6662_v4 = vpop.f32.mrf.mxu1 }
 0x5a1   : > { %v6807_v50 = vmax.f32 %v6806_v23, %v6662_v4  ;;  %v6937_v7 = vpop.f32.mrf.mxu0  ;;  %7790 = vmatmul.mubr.bf16.gmra.mxu0 %v12284_v46 }
 0x5a2   : > { %v7306_v30 = vmax.f32 %v7305_v14, %v6937_v7  ;;  %v6664_v54 = vpop.f32.mrf.mxu1  ;;  %7799 = vmatprep.mubr.bf16.mxu0 %v11897_v60 }
 0x5a3   : > { %v6808_v20 = vrot.slane %v6807_v50, 4  ;;  %v6828_v31 = vmax.f32 %v6827_v58, %v6664_v54  ;;  %v6939_v45 = vpop.f32.mrf.mxu0 }
 0x5a4   : > { %v7327_v8 = vmax.f32 %v7326_v35, %v6939_v45  ;;  %v6990_v55 = vpop.f32.mrf.mxu1  ;;  %7843 = vmatmul.mubr.bf16.vlgmr.msra.gmra.mxu1 %v12255_v28 }
 0x5a5   : > { %v6809_v53 = vmax.f32 %v6807_v50, %v6808_v20  ;;  %v6829_v34 = vrot.slane %v6828_v31, 4  ;;  %v6941_v25 = vpop.f32.mrf.mxu0  ;;  %7852 = vmatprep.mubr.bf16.mxu1 %v11897_v60 }
 0x5a6   : > { %v7307_v61 = vmax.f32 %v7306_v30, %v6941_v25  ;;  %v6992_v22 = vpop.f32.mrf.mxu1 }
 0x5a7   : > { %v6810_v27 = vrot.slane %v6809_v53, 2  ;;  %v6830_v62 = vmax.f32 %v6828_v31, %v6829_v34  ;;  %v6943_v42 = vpop.f32.mrf.mxu0 }
 0x5a8   : > { %v7328_v16 = vmax.f32 %v7327_v8, %v6943_v42  ;;  %v6994_v47 = vpop.f32.mrf.mxu1 }
 0x5a9   : > { %v6811_v48 = vmax.f32 %v6809_v53, %v6810_v27  ;;  %v6831_v0 = vrot.slane %v6830_v62, 2  ;;  %v7337_v21 = vmax.f32 %v6990_v55, %v6994_v47  ;;  %v6947_v43 = vpop.f32.mrf.mxu0  ;;  %7800 = vmatmul.mubr.bf16.gmra.mxu0 %v12287_v38 }
 0x5aa   : > { %v7308_v15 = vmax.f32 %v7307_v61, %v6947_v43  ;;  %v6996_v28 = vpop.f32.mrf.mxu1 }
 0x5ab   : > { %v6812_v3 = vrot.slane %v6811_v48, 1  ;;  %v6832_v1 = vmax.f32 %v6830_v62, %v6831_v0  ;;  %v7358_v18 = vmax.f32 %v6992_v22, %v6996_v28  ;;  %v6949_v23 = vpop.f32.mrf.mxu0 }
 0x5ac   : > { %v7329_v37 = vmax.f32 %v7328_v16, %v6949_v23  ;;  %v7000_v14 = vpop.f32.mrf.mxu1  ;;  %7853 = vmatmul.mubr.bf16.gmra.mxu1 %v12262_v2 }
 0x5ad   : > { %v11532_v24 = vmax.f32 %v6811_v48, %v6812_v3  ;;  %v6833_v58 = vrot.slane %v6832_v1, 1  ;;  %v7338_v6 = vmax.f32 %v7337_v21, %v7000_v14  ;;  %v6951_v35 = vpop.f32.mrf.mxu0  ;;  %7862 = vmatprep.mubr.bf16.mxu1 %v11897_v60 }
 0x5ae   : > { %v7309_v4 = vmax.f32 %v7308_v15, %v6951_v35  ;;  %v7002_v50 = vpop.f32.mrf.mxu1 }
 0x5af   : > { %v6841_v7 = vmax.f32 %v11399_v10, %v11532_v24  ;;  %v11537_v30 = vmax.f32 %v6832_v1, %v6833_v58  ;;  %v7359_v54 = vmax.f32 %v7358_v18, %v7002_v50  ;;  %v6953_v20 = vpop.f32.mrf.mxu0 }
 0x5b0   : > { %v7310_v31 = vrot.slane %v7309_v4, 4  ;;  %v7330_v45 = vmax.f32 %v7329_v37, %v6953_v20  ;;  %v7004_v8 = vpop.f32.mrf.mxu1 }
 0x5b1   : > { %v6842_v2 = vmax.f32 %v11404_v52, %v11537_v30  ;;  %v7339_v55 = vmax.f32 %v7338_v6, %v7004_v8  ;;  %v7103_v53 = vpop.f32.mrf.mxu0 }
 0x5b2   : > { %v7311_v34 = vmax.f32 %v7309_v4, %v7310_v31  ;;  %v7331_v25 = vrot.slane %v7330_v45, 4  ;;  %v7006_v61 = vpop.f32.mrf.mxu1 }
 0x5b3   : > { %v7360_v22 = vmax.f32 %v7359_v54, %v7006_v61  ;;  %v7105_v27 = vpop.f32.mrf.mxu0 }
 0x5b4   : > { %v7312_v62 = vrot.slane %v7311_v34, 2  ;;  %v7332_v42 = vmax.f32 %v7330_v45, %v7331_v25  ;;  %v7010_v16 = vpop.f32.mrf.mxu1  ;;  %7863 = vmatmul.mubr.bf16.gmra.mxu1 %v12271_v44 }
 0x5b5   : > { %v7340_v47 = vmax.f32 %v7339_v55, %v7010_v16  ;;  %v7107_v48 = vpop.f32.mrf.mxu0  ;;  %7872 = vmatprep.mubr.bf16.mxu1 %v11897_v60 }
 0x5b6   : > { %v7313_v0 = vmax.f32 %v7311_v34, %v7312_v62  ;;  %v7333_v21 = vrot.slane %v7332_v42, 2  ;;  %v7379_v43 = vmax.f32 %v7103_v53, %v7107_v48  ;;  %v7012_v15 = vpop.f32.mrf.mxu1 }
 0x5b7   : > { %v7361_v28 = vmax.f32 %v7360_v22, %v7012_v15  ;;  %v7109_v3 = vpop.f32.mrf.mxu0 }
 0x5b8   : > { %v7314_v1 = vrot.slane %v7313_v0, 1  ;;  %v7334_v18 = vmax.f32 %v7332_v42, %v7333_v21  ;;  %v7400_v23 = vmax.f32 %v7105_v27, %v7109_v3  ;;  %v7014_v37 = vpop.f32.mrf.mxu1 }
 0x5b9   : > { %v7341_v14 = vmax.f32 %v7340_v47, %v7014_v37  ;;  %v7113_v58 = vpop.f32.mrf.mxu0 }
 0x5ba   : > { %v7315_v6 = vmax.f32 %v7313_v0, %v7314_v1  ;;  %v7335_v35 = vrot.slane %v7334_v18, 1  ;;  %v7380_v4 = vmax.f32 %v7379_v43, %v7113_v58  ;;  %v7016_v44 = vpop.f32.mrf.mxu1 }
 0x5bb   : > { %v7362_v50 = vmax.f32 %v7361_v28, %v7016_v44  ;;  %v7115_v54 = vpop.f32.mrf.mxu0 }
 0x5bc   : > { %v11546_v20 = vmax.f32 %v6835_v17, %v7315_v6  ;;  %v7336_v31 = vmax.f32 %v7334_v18, %v7335_v35  ;;  %v7401_v45 = vmax.f32 %v7400_v23, %v7115_v54  ;;  %v7020_v8 = vpop.f32.mrf.mxu1  ;;  %7873 = vmatmul.mubr.bf16.gmra.mxu1 %v12278_v39 }
 0x5bd   : > { %v7342_v55 = vmax.f32 %v7341_v14, %v7020_v8  ;;  %v7117_v53 = vpop.f32.mrf.mxu0  ;;  %7882 = vmatprep.mubr.bf16.mxu1 %v11897_v60 }
 0x5be   : > { %v11553_v34 = vmax.f32 %v6836_v26, %v7336_v31  ;;  %v7381_v25 = vmax.f32 %v7380_v4, %v7117_v53  ;;  %v7022_v61 = vpop.f32.mrf.mxu1 }
 0x5bf   : > { %v7363_v22 = vmax.f32 %v7362_v50, %v7022_v61  ;;  %v7119_v9 = vpop.f32.mrf.mxu0 }
 0x5c0   : > { %v7402_v29 = vmax.f32 %v7401_v45, %v7119_v9  ;;  %v7024_v17 = vpop.f32.mrf.mxu1 }
 0x5c1   : > { %v7343_v27 = vmax.f32 %v7342_v55, %v7024_v17  ;;  %v7123_v62 = vpop.f32.mrf.mxu0 }
 0x5c2   : > { %v7382_v42 = vmax.f32 %v7381_v25, %v7123_v62  ;;  %v7026_v16 = vpop.f32.mrf.mxu1 }
 0x5c3   : > { %v7364_v39 = vmax.f32 %v7363_v22, %v7026_v16  ;;  %v7125_v47 = vpop.f32.mrf.mxu0 }
 0x5c4   : > { %v7403_v48 = vmax.f32 %v7402_v29, %v7125_v47  ;;  %v7030_v0 = vpop.f32.mrf.mxu1  ;;  %7883 = vmatmul.mubr.bf16.gmra.mxu1 %v12282_v32 }
 0x5c5   : > { %v7344_v21 = vmax.f32 %v7343_v27, %v7030_v0  ;;  %v7127_v19 = vpop.f32.mrf.mxu0  ;;  %7892 = vmatprep.mubr.bf16.mxu1 %v11897_v60 }
 0x5c6   : > { %v7383_v11 = vmax.f32 %v7382_v42, %v7127_v19  ;;  %v7032_v26 = vpop.f32.mrf.mxu1 }
 0x5c7   : > { %v7365_v43 = vmax.f32 %v7364_v39, %v7032_v26  ;;  %v7129_v15 = vpop.f32.mrf.mxu0 }
 0x5c8   : > { %v7404_v28 = vmax.f32 %v7403_v48, %v7129_v15  ;;  %v7034_v3 = vpop.f32.mrf.mxu1 }
 0x5c9   : > { %v7345_v1 = vmax.f32 %v7344_v21, %v7034_v3  ;;  %v7133_v18 = vpop.f32.mrf.mxu0 }
 0x5ca   : > { %v7384_v23 = vmax.f32 %v7383_v11, %v7133_v18  ;;  %v7036_v37 = vpop.f32.mrf.mxu1 }
 0x5cb   : > { %v7366_v14 = vmax.f32 %v7365_v43, %v7036_v37  ;;  %v7135_v58 = vpop.f32.mrf.mxu0 }
 0x5cc   : > { %v7405_v6 = vmax.f32 %v7404_v28, %v7135_v58  ;;  %v7040_v35 = vpop.f32.mrf.mxu1  ;;  %7893 = vmatmul.mubr.bf16.gmra.mxu1 %v12283_v59 }
 0x5cd   : > { %v7346_v32 = vmax.f32 %v7345_v1, %v7040_v35  ;;  %v7137_v4 = vpop.f32.mrf.mxu0  ;;  %7902 = vmatprep.mubr.bf16.mxu1 %v11897_v60 }
 0x5ce   : > { %v7385_v44 = vmax.f32 %v7384_v23, %v7137_v4  ;;  %v7042_v50 = vpop.f32.mrf.mxu1 }
 0x5cf   : > { %v7367_v54 = vmax.f32 %v7366_v14, %v7042_v50  ;;  %v7139_v31 = vpop.f32.mrf.mxu0 }
 0x5d0   : > { %v7406_v45 = vmax.f32 %v7405_v6, %v7139_v31  ;;  %v7044_v8 = vpop.f32.mrf.mxu1 }
 0x5d1   : > { %v7347_v55 = vmax.f32 %v7346_v32, %v7044_v8  ;;  %v7143_v53 = vpop.f32.mrf.mxu0 }
 0x5d2   : > { %v7386_v25 = vmax.f32 %v7385_v44, %v7143_v53  ;;  %v7046_v61 = vpop.f32.mrf.mxu1 }
 0x5d3   : > { %v7368_v22 = vmax.f32 %v7367_v54, %v7046_v61  ;;  %v7145_v9 = vpop.f32.mrf.mxu0 }
 0x5d4   : > { %v7407_v29 = vmax.f32 %v7406_v45, %v7145_v9  ;;  %v7050_v17 = vpop.f32.mrf.mxu1  ;;  %7903 = vmatmul.mubr.bf16.gmra.mxu1 %v12284_v46 }
 0x5d5   : > { %v7348_v59 = vmax.f32 %v7347_v55, %v7050_v17  ;;  %v7147_v27 = vpop.f32.mrf.mxu0  ;;  %7912 = vmatprep.mubr.bf16.mxu1 %v11897_v60 }
 0x5d6   : > { %v7387_v62 = vmax.f32 %v7386_v25, %v7147_v27  ;;  %v7052_v42 = vpop.f32.mrf.mxu1 }
 0x5d7   : > { %v7369_v16 = vmax.f32 %v7368_v22, %v7052_v42  ;;  %v7149_v39 = vpop.f32.mrf.mxu0 }
 0x5d8   : > { %v7408_v47 = vmax.f32 %v7407_v29, %v7149_v39  ;;  %v7054_v48 = vpop.f32.mrf.mxu1 }
 0x5d9   : > { %v7349_v0 = vmax.f32 %v7348_v59, %v7054_v48  ;;  %v7153_v21 = vpop.f32.mrf.mxu0 }
 0x5da   : > { %v7388_v19 = vmax.f32 %v7387_v62, %v7153_v21  ;;  %v7056_v11 = vpop.f32.mrf.mxu1 }
 0x5db   : > { %v7370_v26 = vmax.f32 %v7369_v16, %v7056_v11  ;;  %v7155_v43 = vpop.f32.mrf.mxu0 }
 0x5dc   : > { %v7409_v15 = vmax.f32 %v7408_v47, %v7155_v43  ;;  %v7060_v28 = vpop.f32.mrf.mxu1  ;;  %7913 = vmatmul.mubr.bf16.gmra.mxu1 %v12287_v38 }
 0x5dd   : > { %v7350_v46 = vmax.f32 %v7349_v0, %v7060_v28  ;;  %v7157_v3 = vpop.f32.mrf.mxu0 }
 0x5de   : > { %v7389_v1 = vmax.f32 %v7388_v19, %v7157_v3  ;;  %v7062_v60 = vpop.f32.mrf.mxu1 }
 0x5df   : > { %v7371_v18 = vmax.f32 %v7370_v26, %v7062_v60  ;;  %v7159_v23 = vpop.f32.mrf.mxu0 }
 0x5e0   : > { %v7410_v37 = vmax.f32 %v7409_v15, %v7159_v23  ;;  %v7064_v14 = vpop.f32.mrf.mxu1 }
 0x5e1   : > { %v7351_v58 = vmax.f32 %v7350_v46, %v7064_v14  ;;  %v7163_v6 = vpop.f32.mrf.mxu0 }
 0x5e2   : > { %v7390_v35 = vmax.f32 %v7389_v1, %v7163_v6  ;;  %v7066_v32 = vpop.f32.mrf.mxu1 }
 0x5e3   : > { %v7352_v4 = vrot.slane %v7351_v58, 4  ;;  %v7372_v44 = vmax.f32 %v7371_v18, %v7066_v32  ;;  %v7165_v50 = vpop.f32.mrf.mxu0 }
 0x5e4   : > { %v7411_v54 = vmax.f32 %v7410_v37, %v7165_v50  ;;  %v7216_v31 = vpop.f32.mrf.mxu1 }
 0x5e5   : > { %v7353_v45 = vmax.f32 %v7351_v58, %v7352_v4  ;;  %v7373_v8 = vrot.slane %v7372_v44, 4  ;;  %v7167_v38 = vpop.f32.mrf.mxu0 }
 0x5e6   : > { %v7391_v55 = vmax.f32 %v7390_v35, %v7167_v38  ;;  %v7218_v53 = vpop.f32.mrf.mxu1 }
 0x5e7   : > { %v7354_v25 = vrot.slane %v7353_v45, 2  ;;  %v7374_v61 = vmax.f32 %v7372_v44, %v7373_v8  ;;  %v7169_v22 = vpop.f32.mrf.mxu0 }
 0x5e8   : > { %v7412_v9 = vmax.f32 %v7411_v54, %v7169_v22  ;;  %v7220_v29 = vpop.f32.mrf.mxu1 }
 0x5e9   : > { %v7355_v17 = vmax.f32 %v7353_v45, %v7354_v25  ;;  %v7375_v59 = vrot.slane %v7374_v61, 2  ;;  %v7421_v27 = vmax.f32 %v7216_v31, %v7220_v29  ;;  %v7173_v62 = vpop.f32.mrf.mxu0 }
 0x5ea   : > { %v7392_v42 = vmax.f32 %v7391_v55, %v7173_v62  ;;  %v7222_v16 = vpop.f32.mrf.mxu1 }
 0x5eb   : > { %v7356_v39 = vrot.slane %v7355_v17, 1  ;;  %v7376_v47 = vmax.f32 %v7374_v61, %v7375_v59  ;;  %v7442_v48 = vmax.f32 %v7218_v53, %v7222_v16  ;;  %v7175_v0 = vpop.f32.mrf.mxu0 }
 0x5ec   : > { %v7413_v21 = vmax.f32 %v7412_v9, %v7175_v0  ;;  %v7226_v19 = vpop.f32.mrf.mxu1 }
 0x5ed   : > { %v7357_v11 = vmax.f32 %v7355_v17, %v7356_v39  ;;  %v7377_v26 = vrot.slane %v7376_v47, 1  ;;  %v7422_v43 = vmax.f32 %v7421_v27, %v7226_v19  ;;  %v7177_v15 = vpop.f32.mrf.mxu0 }
 0x5ee   : > { %v7393_v28 = vmax.f32 %v7392_v42, %v7177_v15  ;;  %v7228_v46 = vpop.f32.mrf.mxu1 }
 0x5ef   : > { %v11565_v3 = vmax.f32 %v6837_v12, %v7357_v11  ;;  %v7378_v1 = vmax.f32 %v7376_v47, %v7377_v26  ;;  %v7443_v60 = vmax.f32 %v7442_v48, %v7228_v46  ;;  %v7179_v18 = vpop.f32.mrf.mxu0 }
 0x5f0   : > { %v7394_v23 = vrot.slane %v7393_v28, 4  ;;  %v7414_v37 = vmax.f32 %v7413_v21, %v7179_v18  ;;  %v7230_v14 = vpop.f32.mrf.mxu1 }
 0x5f1   : > { %v11570_v58 = vmax.f32 %v6838_v57, %v7378_v1  ;;  %v7423_v6 = vmax.f32 %v7422_v43, %v7230_v14  ;;  %v7505_v35 = vpop.f32.mrf.mxu0 }
 0x5f2   : > { %v7395_v32 = vmax.f32 %v7393_v28, %v7394_v23  ;;  %v7415_v4 = vrot.slane %v7414_v37, 4  ;;  %v7232_v44 = vpop.f32.mrf.mxu1 }
 0x5f3   : > { %v7444_v50 = vmax.f32 %v7443_v60, %v7232_v44  ;;  %v7507_v51 = vpop.f32.mrf.mxu0 }
 0x5f4   : > { %v7396_v40 = vrot.slane %v7395_v32, 2  ;;  %v7416_v12 = vmax.f32 %v7414_v37, %v7415_v4  ;;  %v7236_v54 = vpop.f32.mrf.mxu1 }
 0x5f5   : > { %v7424_v31 = vmax.f32 %v7423_v6, %v7236_v54  ;;  %v7509_v45 = vpop.f32.mrf.mxu0 }
 0x5f6   : > { %v7397_v8 = vmax.f32 %v7395_v32, %v7396_v40  ;;  %v7417_v38 = vrot.slane %v7416_v12, 2  ;;  %v7923_v55 = vmax.f32 %v7505_v35, %v7509_v45  ;;  %v7238_v53 = vpop.f32.mrf.mxu1 }
 0x5f7   : > { %v7445_v25 = vmax.f32 %v7444_v50, %v7238_v53  ;;  %v7511_v33 = vpop.f32.mrf.mxu0 }
 0x5f8   : > { %v7398_v63 = vrot.slane %v7397_v8, 1  ;;  %v7418_v57 = vmax.f32 %v7416_v12, %v7417_v38  ;;  %v7944_v61 = vmax.f32 %v7507_v51, %v7511_v33  ;;  %v7240_v22 = vpop.f32.mrf.mxu1 }
 0x5f9   : > { %v7425_v9 = vmax.f32 %v7424_v31, %v7240_v22  ;;  %v7515_v29 = vpop.f32.mrf.mxu0 }
 0x5fa   : > { %v7399_v17 = vmax.f32 %v7397_v8, %v7398_v63  ;;  %v7419_v59 = vrot.slane %v7418_v57, 1  ;;  %v7924_v27 = vmax.f32 %v7923_v55, %v7515_v29  ;;  %v7242_v62 = vpop.f32.mrf.mxu1 }
 0x5fb   : > { %v7446_v42 = vmax.f32 %v7445_v25, %v7242_v62  ;;  %v7517_v16 = vpop.f32.mrf.mxu0 }
 0x5fc   : > { %v11575_v39 = vmax.f32 %v6839_v56, %v7399_v17  ;;  %v7420_v47 = vmax.f32 %v7418_v57, %v7419_v59  ;;  %v7945_v48 = vmax.f32 %v7944_v61, %v7517_v16  ;;  %v7246_v0 = vpop.f32.mrf.mxu1 }
 0x5fd   : > { %v7426_v21 = vmax.f32 %v7425_v9, %v7246_v0  ;;  %v7519_v19 = vpop.f32.mrf.mxu0 }
 0x5fe   : > { %v11580_v11 = vmax.f32 %v6840_v49, %v7420_v47  ;;  %v7925_v26 = vmax.f32 %v7924_v27, %v7519_v19  ;;  %v7248_v43 = vpop.f32.mrf.mxu1 }
 0x5ff   : > { %v7447_v15 = vmax.f32 %v7446_v42, %v7248_v43  ;;  %v7521_v28 = vpop.f32.mrf.mxu0 }
 0x600   : > { %v7946_v46 = vmax.f32 %v7945_v48, %v7521_v28  ;;  %v7250_v1 = vpop.f32.mrf.mxu1 }
 0x601   : > { %v7427_v60 = vmax.f32 %v7426_v21, %v7250_v1  ;;  %v7525_v13 = vpop.f32.mrf.mxu0 }
 0x602   : > { %v7926_v5 = vmax.f32 %v7925_v26, %v7525_v13  ;;  %v7252_v56 = vpop.f32.mrf.mxu1 }
 0x603   : > { %v7448_v18 = vmax.f32 %v7447_v15, %v7252_v56  ;;  %v7527_v23 = vpop.f32.mrf.mxu0 }
 0x604   : > { %v7947_v37 = vmax.f32 %v7946_v46, %v7527_v23  ;;  %v7256_v14 = vpop.f32.mrf.mxu1 }
 0x605   : > { %v7428_v6 = vmax.f32 %v7427_v60, %v7256_v14  ;;  %v7529_v35 = vpop.f32.mrf.mxu0 }
 0x606   : > { %v7927_v32 = vmax.f32 %v7926_v5, %v7529_v35  ;;  %v7258_v41 = vpop.f32.mrf.mxu1 }
 0x607   : > { %v7449_v36 = vmax.f32 %v7448_v18, %v7258_v41  ;;  %v7531_v49 = vpop.f32.mrf.mxu0 }
 0x608   : > { %v7948_v4 = vmax.f32 %v7947_v37, %v7531_v49  ;;  %v7260_v44 = vpop.f32.mrf.mxu1 }
 0x609   : > { %v7429_v50 = vmax.f32 %v7428_v6, %v7260_v44  ;;  %v7535_v51 = vpop.f32.mrf.mxu0 }
 0x60a   : > { %v7928_v40 = vmax.f32 %v7927_v32, %v7535_v51  ;;  %v7262_v12 = vpop.f32.mrf.mxu1 }
 0x60b   : > { %v7450_v54 = vmax.f32 %v7449_v36, %v7262_v12  ;;  %v7537_v31 = vpop.f32.mrf.mxu0 }
 0x60c   : > { %v7949_v45 = vmax.f32 %v7948_v4, %v7537_v31  ;;  %v7266_v8 = vpop.f32.mrf.mxu1 }
 0x60d   : > { %v7430_v38 = vmax.f32 %v7429_v50, %v7266_v8  ;;  %v7539_v55 = vpop.f32.mrf.mxu0 }
 0x60e   : > { %v7929_v53 = vmax.f32 %v7928_v40, %v7539_v55  ;;  %v7268_v25 = vpop.f32.mrf.mxu1 }
 0x60f   : > { %v7451_v33 = vmax.f32 %v7450_v54, %v7268_v25  ;;  %v7541_v63 = vpop.f32.mrf.mxu0 }
 0x610   : > { %v7950_v57 = vmax.f32 %v7949_v45, %v7541_v63  ;;  %v7270_v61 = vpop.f32.mrf.mxu1 }
 0x611   : > { %v7431_v22 = vmax.f32 %v7430_v38, %v7270_v61  ;;  %v7545_v9 = vpop.f32.mrf.mxu0 }
 0x612   : > { %v7930_v29 = vmax.f32 %v7929_v53, %v7545_v9  ;;  %v7272_v17 = vpop.f32.mrf.mxu1 }
 0x613   : > { %v7452_v59 = vmax.f32 %v7451_v33, %v7272_v17  ;;  %v7547_v27 = vpop.f32.mrf.mxu0 }
 0x614   : > { %v7951_v62 = vmax.f32 %v7950_v57, %v7547_v27  ;;  %v7276_v42 = vpop.f32.mrf.mxu1 }
 0x615   : > { %v7432_v16 = vmax.f32 %v7431_v22, %v7276_v42  ;;  %v7549_v47 = vpop.f32.mrf.mxu0 }
 0x616   : > { %v7931_v48 = vmax.f32 %v7930_v29, %v7549_v47  ;;  %v7278_v0 = vpop.f32.mrf.mxu1 }
 0x617   : > { %v7453_v21 = vmax.f32 %v7452_v59, %v7278_v0  ;;  %v7551_v19 = vpop.f32.mrf.mxu0 }
 0x618   : > { %v7952_v26 = vmax.f32 %v7951_v62, %v7551_v19  ;;  %v7280_v43 = vpop.f32.mrf.mxu1 }
 0x619   : > { %v7433_v15 = vmax.f32 %v7432_v16, %v7280_v43  ;;  %v7555_v28 = vpop.f32.mrf.mxu0 }
 0x61a   : > { %v7932_v46 = vmax.f32 %v7931_v48, %v7555_v28  ;;  %v7282_v1 = vpop.f32.mrf.mxu1 }
 0x61b   : > { %v7454_v60 = vmax.f32 %v7453_v21, %v7282_v1  ;;  %v7557_v13 = vpop.f32.mrf.mxu0 }
 0x61c   : > { %v7953_v5 = vmax.f32 %v7952_v26, %v7557_v13  ;;  %v7286_v56 = vpop.f32.mrf.mxu1 }
 0x61d   : > { %v7434_v18 = vmax.f32 %v7433_v15, %v7286_v56  ;;  %v7559_v23 = vpop.f32.mrf.mxu0 }
 0x61e   : > { %v7933_v37 = vmax.f32 %v7932_v46, %v7559_v23  ;;  %v7288_v14 = vpop.f32.mrf.mxu1 }
 0x61f   : > { %v7455_v6 = vmax.f32 %v7454_v60, %v7288_v14  ;;  %v7561_v35 = vpop.f32.mrf.mxu0 }
 0x620   : > { %v7954_v32 = vmax.f32 %v7953_v5, %v7561_v35  ;;  %v7290_v41 = vpop.f32.mrf.mxu1 }
 0x621   : > { %v7435_v36 = vmax.f32 %v7434_v18, %v7290_v41  ;;  %v7565_v49 = vpop.f32.mrf.mxu0 }
 0x622   : > { %v7934_v4 = vmax.f32 %v7933_v37, %v7565_v49  ;;  %v7292_v44 = vpop.f32.mrf.mxu1 }
 0x623   : > { %v7436_v50 = vrot.slane %v7435_v36, 4  ;;  %v7456_v51 = vmax.f32 %v7455_v6, %v7292_v44  ;;  %v7567_v40 = vpop.f32.mrf.mxu0 }
 0x624   : > { %v7955_v12 = vmax.f32 %v7954_v32, %v7567_v40  ;;  %v7618_v54 = vpop.f32.mrf.mxu1 }
 0x625   : > { %v7437_v31 = vmax.f32 %v7435_v36, %v7436_v50  ;;  %v7457_v45 = vrot.slane %v7456_v51, 4  ;;  %v7569_v8 = vpop.f32.mrf.mxu0 }
 0x626   : > { %v7935_v38 = vmax.f32 %v7934_v4, %v7569_v8  ;;  %v7620_v55 = vpop.f32.mrf.mxu1 }
 0x627   : > { %v7438_v53 = vrot.slane %v7437_v31, 2  ;;  %v7458_v25 = vmax.f32 %v7456_v51, %v7457_v45  ;;  %v7571_v33 = vpop.f32.mrf.mxu0 }
 0x628   : > { %v7956_v63 = vmax.f32 %v7955_v12, %v7571_v33  ;;  %v7622_v57 = vpop.f32.mrf.mxu1 }
 0x629   : > { %v7439_v61 = vmax.f32 %v7437_v31, %v7438_v53  ;;  %v7459_v22 = vrot.slane %v7458_v25, 2  ;;  %v7965_v9 = vmax.f32 %v7618_v54, %v7622_v57  ;;  %v7575_v29 = vpop.f32.mrf.mxu0 }
 0x62a   : > { %v7936_v17 = vmax.f32 %v7935_v38, %v7575_v29  ;;  %v7624_v59 = vpop.f32.mrf.mxu1 }
 0x62b   : > { %v7440_v27 = vrot.slane %v7439_v61, 1  ;;  %v7460_v62 = vmax.f32 %v7458_v25, %v7459_v22  ;;  %v7986_v42 = vmax.f32 %v7620_v55, %v7624_v59  ;;  %v7577_v16 = vpop.f32.mrf.mxu0 }
 0x62c   : > { %v7957_v47 = vmax.f32 %v7956_v63, %v7577_v16  ;;  %v7628_v48 = vpop.f32.mrf.mxu1 }
 0x62d   : > { %v7441_v0 = vmax.f32 %v7439_v61, %v7440_v27  ;;  %v7461_v21 = vrot.slane %v7460_v62, 1  ;;  %v7966_v19 = vmax.f32 %v7965_v9, %v7628_v48  ;;  %v7579_v26 = vpop.f32.mrf.mxu0 }
 0x62e   : > { %v7937_v43 = vmax.f32 %v7936_v17, %v7579_v26  ;;  %v7630_v15 = vpop.f32.mrf.mxu1 }
 0x62f   : > { %v11585_v28 = vmax.f32 %v6841_v7, %v7441_v0  ;;  %v7462_v46 = vmax.f32 %v7460_v62, %v7461_v21  ;;  %v7987_v1 = vmax.f32 %v7986_v42, %v7630_v15  ;;  %v7581_v60 = vpop.f32.mrf.mxu0 }
 0x630   : > { %v7938_v13 = vrot.slane %v7937_v43, 4  ;;  %v7958_v5 = vmax.f32 %v7957_v47, %v7581_v60  ;;  %v7632_v56 = vpop.f32.mrf.mxu1 }
 0x631   : > { %v11590_v18 = vmax.f32 %v6842_v2, %v7462_v46  ;;  %v7967_v23 = vmax.f32 %v7966_v19, %v7632_v56  ;;  %v11592_v37 = vpop.f32.mrf.mxu0 }
 0x632   : > { %v7939_v14 = vmax.f32 %v7937_v43, %v7938_v13  ;;  %v7959_v6 = vrot.slane %v7958_v5, 4  ;;  %v7634_v35 = vpop.f32.mrf.mxu1 }
 0x633   : > { %v7988_v10 = vmax.f32 %v7987_v1, %v7634_v35  ;;  %v11594_v24 = vpop.f32.mrf.mxu0 }
 0x634   : > { %v7940_v7 = vrot.slane %v7939_v14, 2  ;;  %v7960_v32 = vmax.f32 %v7958_v5, %v7959_v6  ;;  %v7638_v41 = vpop.f32.mrf.mxu1 }
 0x635   : > { %v7968_v36 = vmax.f32 %v7967_v23, %v7638_v41  ;;  %v7735_v49 = vpop.f32.mrf.mxu0 }
 0x636   : > { %v7941_v4 = vmax.f32 %v7939_v14, %v7940_v7  ;;  %v7961_v44 = vrot.slane %v7960_v32, 2  ;;  %v7640_v50 = vpop.f32.mrf.mxu1 }
 0x637   : > { %v7989_v52 = vmax.f32 %v7988_v10, %v7640_v50  ;;  %v7737_v30 = vpop.f32.mrf.mxu0 }
 0x638   : > { %v7942_v2 = vrot.slane %v7941_v4, 1  ;;  %v7962_v51 = vmax.f32 %v7960_v32, %v7961_v44  ;;  %v7642_v40 = vpop.f32.mrf.mxu1  ;;  %v8007_v32 = vmax.f32 %v11592_v37, %v7735_v49  ;;  %v8028_v44 = vmax.f32 %v11594_v24, %v7737_v30 }
 0x639   : > { %v7969_v12 = vmax.f32 %v7968_v36, %v7642_v40  ;;  %v7741_v54 = vpop.f32.mrf.mxu0 }
 0x63a   : > { %v7943_v31 = vmax.f32 %v7941_v4, %v7942_v2  ;;  %v7963_v45 = vrot.slane %v7962_v51, 1  ;;  %v7644_v8 = vpop.f32.mrf.mxu1  ;;  %v8008_v50 = vmax.f32 %v8007_v32, %v7741_v54 }
 0x63b   : > { %v7990_v38 = vmax.f32 %v7989_v52, %v7644_v8  ;;  %v7743_v55 = vpop.f32.mrf.mxu0 }
 0x63c   : > { %v8091_v53 = vmax.f32 %v11546_v20, %v7943_v31  ;;  %v7964_v25 = vmax.f32 %v7962_v51, %v7963_v45  ;;  %v7648_v33 = vpop.f32.mrf.mxu1  ;;  %v8029_v40 = vmax.f32 %v8028_v44, %v7743_v55 }
 0x63d   : > { %v7970_v63 = vmax.f32 %v7969_v12, %v7648_v33  ;;  %v7745_v57 = vpop.f32.mrf.mxu0 }
 0x63e   : > { %v8092_v61 = vmax.f32 %v11553_v34, %v7964_v25  ;;  %v7650_v22 = vpop.f32.mrf.mxu1  ;;  %v8009_v12 = vmax.f32 %v8008_v50, %v7745_v57  ;;  %v8115_v50 = vlaneseq }
 0x63f   : > { %v7991_v9 = vmax.f32 %v7990_v38, %v7650_v22  ;;  %v7747_v29 = vpop.f32.mrf.mxu0 }
 0x640   : > { %v11598_v17 = vcombine.low %v8091_v53, %v8092_v61  ;;  %v7652_v59 = vpop.f32.mrf.mxu1  ;;  %v8030_v38 = vmax.f32 %v8029_v40, %v7747_v29 }
 0x641   : > { %v7971_v27 = vmax.f32 %v7970_v63, %v7652_v59  ;;  %v7751_v62 = vpop.f32.mrf.mxu0 }
 0x642   : > { %v7654_v42 = vpop.f32.mrf.mxu1  ;;  %v8010_v53 = vmax.f32 %v8009_v12, %v7751_v62 }
 0x643   : > { %v7992_v16 = vmax.f32 %v7991_v9, %v7654_v42  ;;  %v7753_v47 = vpop.f32.mrf.mxu0 }
 0x644   : > { %v7658_v48 = vpop.f32.mrf.mxu1  ;;  %v8031_v37 = vmax.f32 %v8030_v38, %v7753_v47 }
 0x645   : > { %v7972_v0 = vmax.f32 %v7971_v27, %v7658_v48  ;;  %v7755_v20 = vpop.f32.mrf.mxu0 }
 0x646   : > { %v7660_v21 = vpop.f32.mrf.mxu1  ;;  %v8011_v49 = vmax.f32 %v8010_v53, %v7755_v20 }
 0x647   : > { %v7993_v19 = vmax.f32 %v7992_v16, %v7660_v21  ;;  %v7757_v26 = vpop.f32.mrf.mxu0 }
 0x648   : > { %v7662_v43 = vpop.f32.mrf.mxu1  ;;  %v8032_v24 = vmax.f32 %v8031_v37, %v7757_v26  ;;  %v8116_v37 = vshrl.u32 %v8115_v50, 7 }
 0x649   : > { %v7973_v15 = vmax.f32 %v7972_v0, %v7662_v43  ;;  %v7761_v34 = vpop.f32.mrf.mxu0 }
 0x64a   : > { %v7664_v46 = vpop.f32.mrf.mxu1  ;;  %v8012_v30 = vmax.f32 %v8011_v49, %v7761_v34 }
 0x64b   : > { %v7994_v1 = vmax.f32 %v7993_v19, %v7664_v46  ;;  %v7763_v60 = vpop.f32.mrf.mxu0 }
 0x64c   : > { %v7668_v13 = vpop.f32.mrf.mxu1  ;;  %v8033_v55 = vmax.f32 %v8032_v24, %v7763_v60 }
 0x64d   : > { %v7974_v5 = vmax.f32 %v7973_v15, %v7668_v13  ;;  %v7765_v56 = vpop.f32.mrf.mxu0 }
 0x64e   : > { %v7670_v23 = vpop.f32.mrf.mxu1  ;;  %v8013_v57 = vmax.f32 %v8012_v30, %v7765_v56 }
 0x64f   : > { %v7995_v14 = vmax.f32 %v7994_v1, %v7670_v23  ;;  %v7767_v6 = vpop.f32.mrf.mxu0 }
 0x650   : > { %v7672_v35 = vpop.f32.mrf.mxu1  ;;  %v8034_v29 = vmax.f32 %v8033_v55, %v7767_v6 }
 0x651   : > { %v7975_v10 = vmax.f32 %v7974_v5, %v7672_v35  ;;  %v7771_v7 = vpop.f32.mrf.mxu0 }
 0x652   : > { %v7674_v41 = vpop.f32.mrf.mxu1  ;;  %v8014_v62 = vmax.f32 %v8013_v57, %v7771_v7 }
 0x653   : > { %v7996_v36 = vmax.f32 %v7995_v14, %v7674_v41  ;;  %v7773_v4 = vpop.f32.mrf.mxu0 }
 0x654   : > { %v7678_v52 = vpop.f32.mrf.mxu1  ;;  %v8035_v47 = vmax.f32 %v8034_v29, %v7773_v4  ;;  %v9141_v4 = vmov 1966171168  }
 0x655   : > { %v7976_v2 = vmax.f32 %v7975_v10, %v7678_v52  ;;  %v7775_v51 = vpop.f32.mrf.mxu0  ;;  %v8113_v44 = vunpack.c.l.s4 %v9141_v4 }
 0x656   : > { %v7680_v31 = vpop.f32.mrf.mxu1  ;;  %v8015_v20 = vmax.f32 %v8014_v62, %v7775_v51 }
 0x657   : > { %v7997_v45 = vmax.f32 %v7996_v36, %v7680_v31  ;;  %v7777_v8 = vpop.f32.mrf.mxu0 }
 0x658   : > { %v7682_v25 = vpop.f32.mrf.mxu1  ;;  %v8036_v34 = vmax.f32 %v8035_v47, %v7777_v8 }
 0x659   : > { %v7977_v33 = vmax.f32 %v7976_v2, %v7682_v25  ;;  %v7781_v63 = vpop.f32.mrf.mxu0 }
 0x65a   : > { %v7684_v61 = vpop.f32.mrf.mxu1  ;;  %v8016_v1 = vmax.f32 %v8015_v20, %v7781_v63  ;;  %v8114_v63 = vunpack.c.0.s8 %v8113_v44 }
 0x65b   : > { %v7998_v22 = vmax.f32 %v7997_v45, %v7684_v61  ;;  %v7783_v9 = vpop.f32.mrf.mxu0 }
 0x65c   : > { %v7688_v54 = vpop.f32.mrf.mxu1  ;;  %v8037_v23 = vmax.f32 %v8036_v34, %v7783_v9 }
 0x65d   : > { %v7978_v59 = vmax.f32 %v7977_v33, %v7688_v54  ;;  %v7785_v27 = vpop.f32.mrf.mxu0 }
 0x65e   : > { %v7690_v42 = vpop.f32.mrf.mxu1  ;;  %v8017_v14 = vmax.f32 %v8016_v1, %v7785_v27 }
 0x65f   : > { %v7999_v16 = vmax.f32 %v7998_v22, %v7690_v42  ;;  %v7787_v48 = vpop.f32.mrf.mxu0 }
 0x660   : > { %v7692_v0 = vpop.f32.mrf.mxu1  ;;  %v8038_v32 = vmax.f32 %v8037_v23, %v7787_v48 }
 0x661   : > { %v7979_v21 = vmax.f32 %v7978_v59, %v7692_v0  ;;  %v7791_v19 = vpop.f32.mrf.mxu0 }
 0x662   : > { %v7694_v43 = vpop.f32.mrf.mxu1  ;;  %v8018_v41 = vmax.f32 %v8017_v14, %v7791_v19 }
 0x663   : > { %v7980_v15 = vrot.slane %v7979_v21, 4  ;;  %v8000_v46 = vmax.f32 %v7999_v16, %v7694_v43  ;;  %v7793_v26 = vpop.f32.mrf.mxu0  ;;  %v11609_v16 = vsub.s32 %v8114_v63, %v8116_v37 }
 0x664   : > { %v11602_v13 = vpop.f32.mrf.mxu1  ;;  %v8039_v40 = vmax.f32 %v8038_v32, %v7793_v26 }
 0x665   : > { %v7981_v60 = vmax.f32 %v7979_v21, %v7980_v15  ;;  %v8001_v5 = vrot.slane %v8000_v46, 4  ;;  %v7795_v56 = vpop.f32.mrf.mxu0  ;;  %v8118_v43 = vrot.slane %v11598_v17, %v11609_v16 }
 0x666   : > { %v11604_v6 = vpop.f32.mrf.mxu1  ;;  %v8019_v12 = vmax.f32 %v8018_v41, %v7795_v56 }
 0x667   : > { %v7982_v35 = vrot.slane %v7981_v60, 2  ;;  %v8002_v10 = vmax.f32 %v8000_v46, %v8001_v5  ;;  %v7797_v7 = vpop.f32.mrf.mxu0 }
 0x668   : > { %v11606_v36 = vpop.f32.mrf.mxu1  ;;  %v8040_v53 = vmax.f32 %v8039_v40, %v7797_v7 }
 0x669   : > { %v7983_v52 = vmax.f32 %v7981_v60, %v7982_v35  ;;  %v8003_v2 = vrot.slane %v8002_v10, 2  ;;  %v7801_v51 = vpop.f32.mrf.mxu0  ;;  %v8049_v50 = vmax.f32 %v11602_v13, %v11606_v36 }
 0x66a   : > { %v7850_v31 = vpop.f32.mrf.mxu1  ;;  %v8020_v25 = vmax.f32 %v8019_v12, %v7801_v51 }
 0x66b   : > { %v7984_v45 = vrot.slane %v7983_v52, 1  ;;  %v8004_v8 = vmax.f32 %v8002_v10, %v8003_v2  ;;  %v7803_v38 = vpop.f32.mrf.mxu0  ;;  %v8070_v2 = vmax.f32 %v11604_v6, %v7850_v31 }
 0x66c   : > { %v7854_v33 = vpop.f32.mrf.mxu1  ;;  %v8041_v9 = vmax.f32 %v8040_v53, %v7803_v38 }
 0x66d   : > { %v7985_v49 = vmax.f32 %v7983_v52, %v7984_v45  ;;  %v8005_v61 = vrot.slane %v8004_v8, 1  ;;  %v7805_v22 = vpop.f32.mrf.mxu0  ;;  %v8050_v51 = vmax.f32 %v8049_v50, %v7854_v33 }
 0x66e   : > { %v8021_v24 = vmax.f32 %v8020_v25, %v7805_v22  ;;  %v7856_v30 = vpop.f32.mrf.mxu1 }
 0x66f   : > { %v8093_v54 = vmax.f32 %v11565_v3, %v7985_v49  ;;  %v8006_v59 = vmax.f32 %v8004_v8, %v8005_v61  ;;  %v7807_v27 = vpop.f32.mrf.mxu0  ;;  %v8071_v12 = vmax.f32 %v8070_v2, %v7856_v30 }
 0x670   : > { %v8022_v55 = vrot.slane %v8021_v24, 4  ;;  %v8042_v57 = vmax.f32 %v8041_v9, %v7807_v27  ;;  %v7858_v42 = vpop.f32.mrf.mxu1 }
 0x671   : > { %v8094_v48 = vmax.f32 %v11570_v58, %v8006_v59  ;;  %v8051_v45 = vmax.f32 %v8050_v51, %v7858_v42 }
 0x672   : > { %v8023_v29 = vmax.f32 %v8021_v24, %v8022_v55  ;;  %v8043_v62 = vrot.slane %v8042_v57, 4  ;;  %v7860_v0 = vpop.f32.mrf.mxu1 }
 0x673   : > { %v8109_v21 = vcombine.low %v8093_v54, %v8094_v48 }
 0x674   : > { %v8024_v19 = vrot.slane %v8023_v29, 2  ;;  %v8044_v47 = vmax.f32 %v8042_v57, %v8043_v62  ;;  %v7864_v20 = vpop.f32.mrf.mxu1 }
 0x675   : > { %v8125_v3 = vrot.slane %v8109_v21, %v11609_v16  ;;  %v8052_v38 = vmax.f32 %v8051_v45, %v7864_v20 }
 0x676   : > { %v8025_v15 = vmax.f32 %v8023_v29, %v8024_v19  ;;  %v8045_v46 = vrot.slane %v8044_v47, 2  ;;  %v7866_v26 = vpop.f32.mrf.mxu1 }
 0x677   : > { %v11615_v34 = vcombine.low %v8118_v43, %v8125_v3 }
 0x678   : > { %v8026_v1 = vrot.slane %v8025_v15, 1  ;;  %v8046_v60 = vmax.f32 %v8044_v47, %v8045_v46  ;;  %v7868_v58 = vpop.f32.mrf.mxu1 }
 0x679   : > { %v8053_v25 = vmax.f32 %v8052_v38, %v7868_v58 }
 0x67a   : > { %v8027_v5 = vmax.f32 %v8025_v15, %v8026_v1  ;;  %v8047_v56 = vrot.slane %v8046_v60, 1  ;;  %v7870_v23 = vpop.f32.mrf.mxu1 }
 0x67c   : > { %v8048_v14 = vmax.f32 %v8046_v60, %v8047_v56  ;;  %v7874_v35 = vpop.f32.mrf.mxu1  ;;  %v8095_v10 = vmax.f32 %v11575_v39, %v8027_v5  ;;  %v8072_v39 = vmax.f32 %v8071_v12, %v7860_v0 }
 0x67d   : > { %v8054_v49 = vmax.f32 %v8053_v25, %v7874_v35 }
 0x67e   : > { %v8096_v7 = vmax.f32 %v11580_v11, %v8048_v14  ;;  %v7876_v17 = vpop.f32.mrf.mxu1  ;;  %v8073_v53 = vmax.f32 %v8072_v39, %v7866_v26 }
 0x680   : > { %v11619_v32 = vcombine.low %v8095_v10, %v8096_v7  ;;  %v7878_v41 = vpop.f32.mrf.mxu1  ;;  %v8074_v37 = vmax.f32 %v8073_v53, %v7870_v23 }
 0x681   : > { %v8055_v9 = vmax.f32 %v8054_v49, %v7878_v41 }
 0x682   : > { %v7880_v4 = vpop.f32.mrf.mxu1  ;;  %v8075_v22 = vmax.f32 %v8074_v37, %v7876_v17 }
 0x684   : > { %v7884_v44 = vpop.f32.mrf.mxu1  ;;  %v8076_v36 = vmax.f32 %v8075_v22, %v7880_v4 }
 0x685   : > { %v8056_v24 = vmax.f32 %v8055_v9, %v7884_v44 }
 0x686   : > { %v7886_v52 = vpop.f32.mrf.mxu1 }
 0x687   : > { %v8077_v31 = vmax.f32 %v8076_v36, %v7886_v52  ;;  %v8132_v52 = vrot.slane %v11619_v32, %v11609_v16 }
 0x688   : > { %v7888_v40 = vpop.f32.mrf.mxu1 }
 0x689   : > { %v8057_v33 = vmax.f32 %v8056_v24, %v7888_v40  ;;  %v8148_v40 = vrot.slane %v11615_v34, %v11609_v16 }
 0x68a   : > { %v7890_v8 = vpop.f32.mrf.mxu1 }
 0x68b   : > { %v8078_v54 = vmax.f32 %v8077_v31, %v7890_v8 }
 0x68c   : > { %v7894_v11 = vpop.f32.mrf.mxu1 }
 0x68d   : > { %v8058_v59 = vmax.f32 %v8057_v33, %v7894_v11 }
 0x68e   : > { %v7896_v63 = vpop.f32.mrf.mxu1 }
 0x68f   : > { %v8079_v55 = vmax.f32 %v8078_v54, %v7896_v63 }
 0x690   : > { %v7898_v61 = vpop.f32.mrf.mxu1 }
 0x691   : > { %v8059_v57 = vmax.f32 %v8058_v59, %v7898_v61 }
 0x692   : > { %v7900_v13 = vpop.f32.mrf.mxu1 }
 0x693   : > { %v8080_v48 = vmax.f32 %v8079_v55, %v7900_v13 }
 0x694   : > { %v7904_v6 = vpop.f32.mrf.mxu1 }
 0x695   : > { %v8060_v29 = vmax.f32 %v8059_v57, %v7904_v6 }
 0x696   : > { %v7906_v30 = vpop.f32.mrf.mxu1 }
 0x697   : > { %v8081_v0 = vmax.f32 %v8080_v48, %v7906_v30 }
 0x698   : > { %v7908_v27 = vpop.f32.mrf.mxu1 }
 0x699   : > { %v8061_v21 = vmax.f32 %v8060_v29, %v7908_v27 }
 0x69a   : > { %v7910_v42 = vpop.f32.mrf.mxu1 }
 0x69b   : > { %v8082_v47 = vmax.f32 %v8081_v0, %v7910_v42 }
 0x69c   : > { %v7914_v62 = vpop.f32.mrf.mxu1 }
 0x69d   : > { %v8062_v20 = vmax.f32 %v8061_v21, %v7914_v62 }
 0x69e   : > { %v7916_v19 = vpop.f32.mrf.mxu1 }
 0x69f   : > { %v8083_v3 = vmax.f32 %v8082_v47, %v7916_v19 }
 0x6a0   : > { %v7918_v43 = vpop.f32.mrf.mxu1 }
 0x6a1   : > { %v8063_v15 = vmax.f32 %v8062_v20, %v7918_v43 }
 0x6a2   : > { %v7920_v46 = vpop.f32.mrf.mxu1 }
 0x6a3   : > { %v8064_v26 = vrot.slane %v8063_v15, 4  ;;  %v8084_v1 = vmax.f32 %v8083_v3, %v7920_v46 }
 0x6a5   : > { %v8065_v60 = vmax.f32 %v8063_v15, %v8064_v26  ;;  %v8085_v58 = vrot.slane %v8084_v1, 4 }
 0x6a7   : > { %v8066_v5 = vrot.slane %v8065_v60, 2  ;;  %v8086_v56 = vmax.f32 %v8084_v1, %v8085_v58 }
 0x6a9   : > { %v8067_v23 = vmax.f32 %v8065_v60, %v8066_v5  ;;  %v8087_v14 = vrot.slane %v8086_v56, 2 }
 0x6ab   : > { %v8068_v35 = vrot.slane %v8067_v23, 1  ;;  %v8088_v10 = vmax.f32 %v8086_v56, %v8087_v14 }
 0x6ad   : > { %v8069_v7 = vmax.f32 %v8067_v23, %v8068_v35  ;;  %v8089_v17 = vrot.slane %v8088_v10, 1 }
 0x6af   : > { %v8090_v41 = vmax.f32 %v8088_v10, %v8089_v17  ;;  %v8097_v4 = vmax.f32 %v11585_v28, %v8069_v7 }
 0x6b1   : > { %v8098_v44 = vmax.f32 %v11590_v18, %v8090_v41 }
 0x6b3   : > { %v8111_v50 = vcombine.low %v8097_v4, %v8098_v44 }
 0x6b5   : > { %v8139_v2 = vrot.slane %v8111_v50, %v11609_v16 }
 0x6b7   : > { %v8141_v51 = vcombine.low %v8132_v52, %v8139_v2 }
 0x6b9   : > { %v8155_v12 = vrot.slane %v8141_v51, %v11609_v16 }
 0x6bb   : > { %v8156_v45 = vcombine.low %v8148_v40, %v8155_v12 }
 0x6bd   : > { %8159 = vst [vmem:[%s301_s11] sm:$0xff] %v8156_v45 }
 0x6be PF: > { %s16_s25 = sadd.s32 1, %s9138_s25   ;;  %s12289_s21 = smov %s9130_s23 }
 0x6bf   : > { %p13_p8 = scmp.ge.s32.totalorder %s16_s25, 6   ;;  %s12290_s22 = smov %s9134_s24 }
 0x6c0   : > { %s12291_s23 = smov %s12294_s26  ;;  %s12292_s24 = smov %s12298_s27 }
 0x6c1   :  { %15 = sbr.rel (!%p13_p8) target bundleno = 3 (0x3), region = 78 }

</bundles_post_ra>
